<compile_context>
chip_gen: v7x
topology: tpu7x:2x2x1
jax: 0.10.0
libtpu: 0.0.40
codegen_flags: <defaults>
</compile_context>

<pallas_src>
import functools

import jax
import jax.numpy as jnp
from jax.experimental import pallas as pl
from jax.experimental.pallas import tpu as pltpu

_EPS = 1e-8
_STORE_DTYPE = jnp.bfloat16          # inter-kernel activation / weight storage
_SMEM = pl.BlockSpec(memory_space=pltpu.MemorySpace.SMEM)


def _pick_tt(T, max_tt=512):
    """Time tile: full T if small, else the largest divisor of T <= max_tt
    that is a multiple of 8."""
    if T <= max_tt:
        return T
    for cand in range(max_tt, 7, -1):
        if T % cand == 0 and cand % 8 == 0:
            return cand
    # TODO(synk): pad T to a tile multiple (masking padded rows out of the gLN
    #             statistics and depthwise taps) instead of a whole-T block.
    return T


def _pick_cc(C, max_cc=256):
    """Channel tile for the depthwise conv (full-T blocks, lane-aligned)."""
    if C <= 128:
        return C
    for cand in (max_cc, 128):
        if C % cand == 0:
            return cand
    return C


def _finalize_stats(partials, denom, eps=_EPS):
    """Combine per-tile (sum, sumsq) partials -> per-batch (mean, rstd)."""
    ssum, ssq = partials
    ssum = jnp.sum(ssum, axis=(1, 2, 3))                      # (Bt,)
    ssq = jnp.sum(ssq, axis=(1, 2, 3))
    mean = ssum / denom
    var = jnp.maximum(ssq / denom - mean * mean, 0.0)
    rstd = jax.lax.rsqrt(var + eps)
    return mean.astype(jnp.float32), rstd.astype(jnp.float32)


# ---------------------------------------------------------------------------
# Fused pointwise (1x1) convolution kernel
#   y = act( prenorm(x) @ W + bias ) [+ residual]
#   optionally emits per-tile (sum, sumsq) of y for a downstream gLN.
# ---------------------------------------------------------------------------
def _pw_kernel(*refs, act, has_prenorm, has_res, want_stats):
    it = iter(refs)
    x_ref = next(it)
    if has_prenorm:
        mean_ref = next(it)
        rstd_ref = next(it)
        g_ref = next(it)
        be_ref = next(it)
    w_ref = next(it)
    b_ref = next(it)
    if act == "prelu":
        a_ref = next(it)
    if has_res:
        res_ref = next(it)
    o_ref = next(it)
    if want_stats:
        osum_ref = next(it)
        osq_ref = next(it)

    b_idx = pl.program_id(0)
    xr = x_ref[0]                                             # (TT, Cin)
    if has_prenorm:                                           # fused gLN normalize (f32)
        xf = xr.astype(jnp.float32)
        xf = (xf - mean_ref[b_idx]) * rstd_ref[b_idx] * g_ref[...] + be_ref[...]
        xm = xf.astype(w_ref.dtype)
    else:
        xm = xr.astype(w_ref.dtype)

    acc = jnp.dot(xm, w_ref[...], preferred_element_type=jnp.float32)
    acc = acc + b_ref[...]
    if act == "relu":
        acc = jnp.maximum(acc, 0.0)
    elif act == "sigmoid":
        acc = jax.nn.sigmoid(acc)
    elif act == "prelu":
        al = a_ref[0]
        acc = jnp.where(acc >= 0, acc, al * acc)
    if has_res:                                               # fused residual add
        acc = acc + res_ref[0].astype(jnp.float32)

    o_ref[0] = acc.astype(o_ref.dtype)
    if want_stats:                                            # per-tile gLN partials
        osum_ref[...] = jnp.sum(acc).reshape(1, 1, 1, 1)
        osq_ref[...] = jnp.sum(acc * acc).reshape(1, 1, 1, 1)


def pointwise_conv(x, w, b, *, act="none", alpha=None, prenorm=None,
                   residual=None, want_stats=False, max_tt=512):
    """x:[Bt,T,Cin] (bf16), w:[Cin,Cout], b:[Cout].  Returns y (+ stats)."""
    assert not (want_stats and residual is not None), \
        "gLN stats of a residual-summed tensor is not a pattern this net uses"
    Bt, T, Cin = x.shape
    Cout = w.shape[1]
    TT = _pick_tt(T, max_tt)
    nT = T // TT

    inputs = [x]
    in_specs = [pl.BlockSpec((1, TT, Cin), lambda b_, t_: (b_, t_, 0))]
    if prenorm is not None:
        mean, rstd, gamma, beta = prenorm
        inputs += [mean, rstd,
                   gamma.reshape(1, Cin).astype(jnp.float32),
                   beta.reshape(1, Cin).astype(jnp.float32)]
        in_specs += [_SMEM, _SMEM,
                     pl.BlockSpec((1, Cin), lambda b_, t_: (0, 0)),
                     pl.BlockSpec((1, Cin), lambda b_, t_: (0, 0))]
    inputs += [w.astype(_STORE_DTYPE), b.reshape(1, Cout).astype(jnp.float32)]
    in_specs += [pl.BlockSpec((Cin, Cout), lambda b_, t_: (0, 0)),
                 pl.BlockSpec((1, Cout), lambda b_, t_: (0, 0))]
    if act == "prelu":
        inputs.append(alpha.reshape(-1).astype(jnp.float32))
        in_specs.append(_SMEM)
    if residual is not None:
        inputs.append(residual)
        in_specs.append(pl.BlockSpec((1, TT, Cout), lambda b_, t_: (b_, t_, 0)))

    out_shapes = [jax.ShapeDtypeStruct((Bt, T, Cout), _STORE_DTYPE)]
    out_specs = [pl.BlockSpec((1, TT, Cout), lambda b_, t_: (b_, t_, 0))]
    if want_stats:
        out_shapes += [jax.ShapeDtypeStruct((Bt, nT, 1, 1), jnp.float32)] * 2
        out_specs += [pl.BlockSpec((1, 1, 1, 1),
                                   lambda b_, t_: (b_, t_, 0, 0))] * 2

    kernel = functools.partial(_pw_kernel, act=act,
                               has_prenorm=prenorm is not None,
                               has_res=residual is not None,
                               want_stats=want_stats)
    outs = pl.pallas_call(
        kernel,
        out_shape=tuple(out_shapes),
        grid=(Bt, nT),
        in_specs=in_specs,
        out_specs=tuple(out_specs),
        compiler_params=pltpu.CompilerParams(
            dimension_semantics=("parallel", "parallel")),
    )(*inputs)
    if want_stats:
        return outs[0], (outs[1], outs[2])
    return outs[0]


# ---------------------------------------------------------------------------
# "Bridge" kernel: two fused 1x1 convs sharing a time tile.
#   stage1 = prenorm?(x) @ W1 + b1 (+ rowadd) (+ residual)   -> stored (bf16)
#   stage2 = PReLU(stage1 @ W2 + b2)                          -> stored (bf16)
#   also emits per-tile gLN partial (sum, sumsq) of stage2.
# Used for:  out-conv(+gLN2+res) -> next in-conv,  and  fuse-conv -> in-conv.
# ---------------------------------------------------------------------------
def _bridge_kernel(*refs, has_prenorm, has_rowadd, has_res):
    it = iter(refs)
    x_ref = next(it)
    if has_prenorm:
        mean_ref = next(it)
        rstd_ref = next(it)
        g_ref = next(it)
        be_ref = next(it)
    w1_ref = next(it)
    b1_ref = next(it)
    if has_rowadd:
        ra_ref = next(it)
    if has_res:
        res_ref = next(it)
    w2_ref = next(it)
    b2_ref = next(it)
    a_ref = next(it)
    mid_ref = next(it)
    o_ref = next(it)
    osum_ref = next(it)
    osq_ref = next(it)

    b_idx = pl.program_id(0)
    xr = x_ref[0]
    if has_prenorm:
        xf = xr.astype(jnp.float32)
        xf = (xf - mean_ref[b_idx]) * rstd_ref[b_idx] * g_ref[...] + be_ref[...]
        xm = xf.astype(w1_ref.dtype)
    else:
        xm = xr.astype(w1_ref.dtype)

    mid = jnp.dot(xm, w1_ref[...], preferred_element_type=jnp.float32)
    mid = mid + b1_ref[...]
    if has_rowadd:                                  # per-batch speaker projection
        mid = mid + ra_ref[0]
    if has_res:                                     # residual add
        mid = mid + res_ref[0].astype(jnp.float32)
    mid_ref[0] = mid.astype(mid_ref.dtype)

    y = jnp.dot(mid.astype(w2_ref.dtype), w2_ref[...],
                preferred_element_type=jnp.float32) + b2_ref[...]
    al = a_ref[0]
    y = jnp.where(y >= 0, y, al * y)                # fused PReLU
    o_ref[0] = y.astype(o_ref.dtype)
    osum_ref[...] = jnp.sum(y).reshape(1, 1, 1, 1)
    osq_ref[...] = jnp.sum(y * y).reshape(1, 1, 1, 1)


def bridge_conv(x, w1, b1, w2, b2, alpha, *, prenorm=None, rowadd=None,
                residual=None, max_tt=512):
    Bt, T, Cin = x.shape
    Cmid = w1.shape[1]
    Cout = w2.shape[1]
    TT = _pick_tt(T, max_tt)
    nT = T // TT

    inputs = [x]
    in_specs = [pl.BlockSpec((1, TT, Cin), lambda b_, t_: (b_, t_, 0))]
    if prenorm is not None:
        mean, rstd, gamma, beta = prenorm
        inputs += [mean, rstd,
                   gamma.reshape(1, Cin).astype(jnp.float32),
                   beta.reshape(1, Cin).astype(jnp.float32)]
        in_specs += [_SMEM, _SMEM,
                     pl.BlockSpec((1, Cin), lambda b_, t_: (0, 0)),
                     pl.BlockSpec((1, Cin), lambda b_, t_: (0, 0))]
    inputs += [w1.astype(_STORE_DTYPE), b1.reshape(1, Cmid).astype(jnp.float32)]
    in_specs += [pl.BlockSpec((Cin, Cmid), lambda b_, t_: (0, 0)),
                 pl.BlockSpec((1, Cmid), lambda b_, t_: (0, 0))]
    if rowadd is not None:
        inputs.append(rowadd.reshape(Bt, 1, Cmid).astype(jnp.float32))
        in_specs.append(pl.BlockSpec((1, 1, Cmid), lambda b_, t_: (b_, 0, 0)))
    if residual is not None:
        inputs.append(residual)
        in_specs.append(pl.BlockSpec((1, TT, Cmid), lambda b_, t_: (b_, t_, 0)))
    inputs += [w2.astype(_STORE_DTYPE), b2.reshape(1, Cout).astype(jnp.float32),
               alpha.reshape(-1).astype(jnp.float32)]
    in_specs += [pl.BlockSpec((Cmid, Cout), lambda b_, t_: (0, 0)),
                 pl.BlockSpec((1, Cout), lambda b_, t_: (0, 0)),
                 _SMEM]

    out_shapes = (jax.ShapeDtypeStruct((Bt, T, Cmid), _STORE_DTYPE),
                  jax.ShapeDtypeStruct((Bt, T, Cout), _STORE_DTYPE),
                  jax.ShapeDtypeStruct((Bt, nT, 1, 1), jnp.float32),
                  jax.ShapeDtypeStruct((Bt, nT, 1, 1), jnp.float32))
    out_specs = (pl.BlockSpec((1, TT, Cmid), lambda b_, t_: (b_, t_, 0)),
                 pl.BlockSpec((1, TT, Cout), lambda b_, t_: (b_, t_, 0)),
                 pl.BlockSpec((1, 1, 1, 1), lambda b_, t_: (b_, t_, 0, 0)),
                 pl.BlockSpec((1, 1, 1, 1), lambda b_, t_: (b_, t_, 0, 0)))

    kernel = functools.partial(_bridge_kernel,
                               has_prenorm=prenorm is not None,
                               has_rowadd=rowadd is not None,
                               has_res=residual is not None)
    mid, out, ssum, ssq = pl.pallas_call(
        kernel,
        out_shape=out_shapes,
        grid=(Bt, nT),
        in_specs=in_specs,
        out_specs=out_specs,
        compiler_params=pltpu.CompilerParams(
            dimension_semantics=("parallel", "parallel")),
    )(*inputs)
    return mid, out, (ssum, ssq)


# ---------------------------------------------------------------------------
# Dilated depthwise conv, channel-tiled (full-T blocks), with fused input-side
# gLN normalize + PReLU; taps are realized with pltpu.roll + static edge masks
# (no zero-pad concatenate, no sublane-misaligned slices).  Emits per-channel-
# tile gLN partial stats of its output.
# ---------------------------------------------------------------------------
def _dwconv_kernel(x_ref, mean_ref, rstd_ref, g_ref, be_ref, w_ref, b_ref,
                   a_ref, o_ref, osum_ref, osq_ref, *, P, dil, T):
    b_idx = pl.program_id(0)
    x = x_ref[0].astype(jnp.float32)                          # (T, CC)
    xn = (x - mean_ref[b_idx]) * rstd_ref[b_idx] * g_ref[...] + be_ref[...]

    pad_l = dil * (P - 1) // 2
    rows = jax.lax.broadcasted_iota(jnp.int32, xn.shape, 0)
    acc = jnp.zeros_like(xn)
    for k in range(P):                                        # small static P
        off = k * dil - pad_l                                 # static tap offset
        if off <= -T or off >= T:
            continue
        if off == 0:
            tap = xn
        else:
            tap = pltpu.roll(xn, (-off) % T, 0)               # XLU sublane roll
            if off < 0:
                tap = jnp.where(rows >= -off, tap, 0.0)
            else:
                tap = jnp.where(rows < T - off, tap, 0.0)
        acc = acc + tap * w_ref[k:k + 1, :]
    acc = acc + b_ref[...]
    al = a_ref[0]
    y = jnp.where(acc >= 0, acc, al * acc)                    # fused PReLU

    o_ref[0] = y.astype(o_ref.dtype)
    osum_ref[...] = jnp.sum(y).reshape(1, 1, 1, 1)
    osq_ref[...] = jnp.sum(y * y).reshape(1, 1, 1, 1)


def dwconv_gln_prelu(x, prenorm, w, b, alpha, dil):
    """x:[Bt,T,C] (bf16); prenorm=(mean,rstd,gamma,beta); w:[P,C]; b:[C]."""
    Bt, T, C = x.shape
    P = w.shape[0]
    mean, rstd, gamma, beta = prenorm
    CC = _pick_cc(C)
    nC = C // CC
    kernel = functools.partial(_dwconv_kernel, P=P, dil=dil, T=T)
    y, osum, osq = pl.pallas_call(
        kernel,
        out_shape=(jax.ShapeDtypeStruct((Bt, T, C), _STORE_DTYPE),
                   jax.ShapeDtypeStruct((Bt, nC, 1, 1), jnp.float32),
                   jax.ShapeDtypeStruct((Bt, nC, 1, 1), jnp.float32)),
        grid=(Bt, nC),
        in_specs=[
            pl.BlockSpec((1, T, CC), lambda b_, c_: (b_, 0, c_)),
            _SMEM, _SMEM,
            pl.BlockSpec((1, CC), lambda b_, c_: (0, c_)),
            pl.BlockSpec((1, CC), lambda b_, c_: (0, c_)),
            pl.BlockSpec((P, CC), lambda b_, c_: (0, c_)),
            pl.BlockSpec((1, CC), lambda b_, c_: (0, c_)),
            _SMEM,
        ],
        out_specs=(pl.BlockSpec((1, T, CC), lambda b_, c_: (b_, 0, c_)),
                   pl.BlockSpec((1, 1, 1, 1), lambda b_, c_: (b_, c_, 0, 0)),
                   pl.BlockSpec((1, 1, 1, 1), lambda b_, c_: (b_, c_, 0, 0))),
        compiler_params=pltpu.CompilerParams(
            dimension_semantics=("parallel", "parallel")),
    )(x, mean, rstd,
      gamma.reshape(1, C).astype(jnp.float32),
      beta.reshape(1, C).astype(jnp.float32),
      w.astype(jnp.float32), b.reshape(1, C).astype(jnp.float32),
      alpha.reshape(-1).astype(jnp.float32))
    return y, (osum, osq)


# ---------------------------------------------------------------------------
# Fused gen_masks -> ReLU -> mask-apply -> decoder matmul (one kernel)
# ---------------------------------------------------------------------------
def _mask_decode_kernel(e_ref, enc_ref, mw_ref, mb_ref, dw_ref, o_ref):
    e = e_ref[0]
    m = jnp.dot(e.astype(mw_ref.dtype), mw_ref[...],
                preferred_element_type=jnp.float32) + mb_ref[...]
    m = jnp.maximum(m, 0.0)                                   # activation='relu'
    masked = enc_ref[0].astype(jnp.float32) * m               # (TT, N)
    frames = jnp.dot(masked.astype(dw_ref.dtype), dw_ref[...],
                     preferred_element_type=jnp.float32)      # (TT, L)
    # TODO(synk): repack frames into a lane-dense (TT*L/128, 128) slab (or fuse
    #             the overlap-add) once Mosaic reshape support for this fold is
    #             confirmed; currently stored as (TT, L=16) frames.
    o_ref[0] = frames.astype(o_ref.dtype)


def mask_decode(e, enc, mask_w, mask_b, dec_w, *, max_tt=512):
    Bt, T, Bc = e.shape
    N = enc.shape[-1]
    L = dec_w.shape[1]
    TT = _pick_tt(T, max_tt)
    nT = T // TT
    return pl.pallas_call(
        _mask_decode_kernel,
        out_shape=jax.ShapeDtypeStruct((Bt, T, L), jnp.float32),
        grid=(Bt, nT),
        in_specs=[
            pl.BlockSpec((1, TT, Bc), lambda b_, t_: (b_, t_, 0)),
            pl.BlockSpec((1, TT, N), lambda b_, t_: (b_, t_, 0)),
            pl.BlockSpec((Bc, N), lambda b_, t_: (0, 0)),
            pl.BlockSpec((1, N), lambda b_, t_: (0, 0)),
            pl.BlockSpec((N, L), lambda b_, t_: (0, 0)),
        ],
        out_specs=pl.BlockSpec((1, TT, L), lambda b_, t_: (b_, t_, 0)),
        compiler_params=pltpu.CompilerParams(
            dimension_semantics=("parallel", "parallel")),
    )(e, enc, mask_w.astype(_STORE_DTYPE),
      mask_b.reshape(1, N).astype(jnp.float32), dec_w.astype(_STORE_DTYPE))


# ---------------------------------------------------------------------------
# Parameters (deterministic synthetic init — shapes follow ConvTasNet.__init__)
# ---------------------------------------------------------------------------
def init_params(key, N, L, B, H, P, X, R, E):
    keys = iter(jax.random.split(key, 4 + R * (1 + X) * 8))

    def w(shape, scale=0.1):
        return scale * jax.random.normal(next(keys), shape, jnp.float32)

    params = {
        # encoder: Conv1D(1, N, L, stride=L//2) + ReLU
        "enc_w": w((L, N)), "enc_b": jnp.zeros((N,), jnp.float32),
        # LayerN_S: gLN(N)
        "ln_g": jnp.ones((N,), jnp.float32), "ln_b": jnp.zeros((N,), jnp.float32),
        # BottleN_S: Conv1D(N, B, 1)
        "bottle_w": w((N, B)), "bottle_b": jnp.zeros((B,), jnp.float32),
        # gen_masks: Conv1D(B, N, 1)
        "mask_w": w((B, N)), "mask_b": jnp.zeros((N,), jnp.float32),
        # decoder: ConvTranspose1d(N, 1, L, stride=L//2)
        "dec_w": w((N, L)), "dec_b": jnp.zeros((1,), jnp.float32),
        "repeats": [],
    }
    for _ in range(R):
        rep = {
            # concatConv speaker fusion: Conv1D(B + spk_emb_dim, B, 1)
            "fuse_w": w((B + E, B)), "fuse_b": jnp.zeros((B,), jnp.float32),
            "blocks": [],
        }
        for _ in range(X):
            blk = {
                "in_w": w((B, H)), "in_b": jnp.zeros((H,), jnp.float32),
                "prelu1": jnp.full((1,), 0.25, jnp.float32),
                "n1_g": jnp.ones((H,), jnp.float32), "n1_b": jnp.zeros((H,), jnp.float32),
                "dw_w": w((P, H)), "dw_b": jnp.zeros((H,), jnp.float32),
                "prelu2": jnp.full((1,), 0.25, jnp.float32),
                "n2_g": jnp.ones((H,), jnp.float32), "n2_b": jnp.zeros((H,), jnp.float32),
                "out_w": w((H, B)), "out_b": jnp.zeros((B,), jnp.float32),
            }
            rep["blocks"].append(blk)
        params["repeats"].append(rep)
    return params


# ---------------------------------------------------------------------------
# Forward pass
# ---------------------------------------------------------------------------
def conv_tasnet_forward(params, x, embeddings, *, L, hop):
    if x.ndim >= 3:
        raise RuntimeError("ConvTasNet accepts 1/2D tensor as input")
    if x.ndim == 1:
        x = x[None, :]
    Bt, S = x.shape
    assert L == 2 * hop, "encoder assumes stride = L // 2 with even L"
    T = (S - L) // hop + 1

    # ---- Encoder framing: strided reshape + concat (no gather) ----------------
    # TODO(synk): feed a lane-dense waveform slab and frame it in-kernel to make
    #             the L=16 encoder path lane-dense.
    chunks = x[:, :(T + 1) * hop].reshape(Bt, T + 1, hop)
    frames = jnp.concatenate([chunks[:, :T], chunks[:, 1:T + 1]],
                             axis=-1).astype(_STORE_DTYPE)                # [Bt,T,L]

    N = params["enc_w"].shape[1]
    H = params["repeats"][0]["blocks"][0]["in_w"].shape[1]

    # ---- Encoder Conv1D + ReLU (+ per-tile gLN partial stats) ------------------
    enc, enc_stats = pointwise_conv(frames, params["enc_w"], params["enc_b"],
                                    act="relu", want_stats=True)          # [Bt,T,N]
    enc_mean, enc_rstd = _finalize_stats(enc_stats, float(T * N))

    # ---- LayerN_S (gLN, normalize fused) + BottleN_S (1x1 conv) ----------------
    e = pointwise_conv(enc, params["bottle_w"], params["bottle_b"],
                       prenorm=(enc_mean, enc_rstd,
                                params["ln_g"], params["ln_b"]))          # [Bt,T,B]
    Bc = e.shape[-1]

    # ---- speaker transform (Identity); joint_training handled upstream ---------
    spk = embeddings                                                       # [Bt, E]

    # ---- FuseSeparation: R repeats of (concatConv fuse + X dilated TCN blocks) -
    for rep in params["repeats"]:
        # concat([e, spk]) @ W == e @ W[:Bc] + spk @ W[Bc:]  (spk time-invariant)
        spk_proj = spk @ rep["fuse_w"][Bc:]                               # [Bt, Bc]
        blk0 = rep["blocks"][0]
        # fused: speaker-fusion conv  ->  block-0 in-conv (+PReLU +gLN1 stats)
        e, h, h_stats = bridge_conv(e, rep["fuse_w"][:Bc], rep["fuse_b"],
                                    blk0["in_w"], blk0["in_b"], blk0["prelu1"],
                                    rowadd=spk_proj)
        X = len(rep["blocks"])
        for xi, blk in enumerate(rep["blocks"]):
            dil = 2 ** xi
            h_mean, h_rstd = _finalize_stats(h_stats, float(T * H))
            # gLN1-normalize + dilated depthwise conv + PReLU, emit gLN2 stats
            h2, h2_stats = dwconv_gln_prelu(
                h, (h_mean, h_rstd, blk["n1_g"], blk["n1_b"]),
                blk["dw_w"], blk["dw_b"], blk["prelu2"], dil)
            h2_mean, h2_rstd = _finalize_stats(h2_stats, float(T * H))
            if xi + 1 < X:
                nxt = rep["blocks"][xi + 1]
                # fused: out-conv (+gLN2 + residual) -> next in-conv (+PReLU +stats)
                e, h, h_stats = bridge_conv(
                    h2, blk["out_w"], blk["out_b"],
                    nxt["in_w"], nxt["in_b"], nxt["prelu1"],
                    prenorm=(h2_mean, h2_rstd, blk["n2_g"], blk["n2_b"]),
                    residual=e)
            else:
                # last block of the repeat: standalone out-conv (+gLN2 + residual)
                e = pointwise_conv(h2, blk["out_w"], blk["out_b"],
                                   prenorm=(h2_mean, h2_rstd,
                                            blk["n2_g"], blk["n2_b"]),
                                   residual=e)

    # ---- gen_masks + ReLU + mask apply + decoder matmul (one fused kernel) -----
    frames_out = mask_decode(e, enc, params["mask_w"], params["mask_b"],
                             params["dec_w"])                             # [Bt,T,L]

    # ---- Overlap-add (hop = L/2): two padded vector adds ------------------------
    first = frames_out[:, :, :hop].reshape(Bt, T * hop)
    second = frames_out[:, :, hop:].reshape(Bt, T * hop)
    sig = (jnp.pad(first, ((0, 0), (0, hop)))
           + jnp.pad(second, ((0, 0), (hop, 0)))
           + params["dec_b"][0])
    return sig


# ---------------------------------------------------------------------------
if __name__ == "__main__":
    # small synthetic config (N, L, B, H, P, X, R, spk_emb_dim)
    N, L, B, H, P, X, R, E = 32, 16, 16, 32, 3, 2, 2, 16
    hop = L // 2
    Bt = 2
    T = 128
    S = (T - 1) * hop + L                                     # 1032 samples

    key = jax.random.PRNGKey(0)
    kp, kx, ke = jax.random.split(key, 3)
    params = init_params(kp, N, L, B, H, P, X, R, E)
    x = jax.random.normal(kx, (Bt, S), jnp.float32)           # mixture waveform
    emb = jax.random.normal(ke, (Bt, E), jnp.float32)         # speaker embedding

    fwd = jax.jit(functools.partial(conv_tasnet_forward, L=L, hop=hop))
    out = fwd(params, x, emb)
    jax.block_until_ready(out)

    assert out.shape == (Bt, (T - 1) * hop + L) and out.dtype == jnp.float32
    assert bool(jnp.all(jnp.isfinite(out)))
    print("KERNEL_OK")
</pallas_src>

<mosaic_0001>
module attributes {stable_mosaic.version = 11 : i64} {
  func.func @_pw_kernel(%arg0: i32, %arg1: i32, %arg2: memref<1x128x16xbf16, #tpu.memory_space<vmem>>, %arg3: memref<16x32xbf16, #tpu.memory_space<vmem>>, %arg4: memref<1x32xf32, #tpu.memory_space<vmem>>, %arg5: memref<1x128x32xbf16, #tpu.memory_space<vmem>>, %arg6: memref<1x1x1x1xf32, #tpu.memory_space<vmem>>, %arg7: memref<1x1x1x1xf32, #tpu.memory_space<vmem>>) attributes {dimension_semantics = [#tpu.dimension_semantics<parallel>, #tpu.dimension_semantics<parallel>], iteration_bounds = array<i64: 2, 1>, scalar_prefetch = 0 : i64, scratch_operands = 0 : i64, tpu.core_type = #tpu.core_type<tc>, window_params = [{transform_indices = @transform_0, window_bounds = array<i64: 1, 128, 16>}, {pipeline_mode = #tpu.pipeline_mode<synchronous>, transform_indices = @transform_1, window_bounds = array<i64: 16, 32>}, {pipeline_mode = #tpu.pipeline_mode<synchronous>, transform_indices = @transform_2, window_bounds = array<i64: 1, 32>}, {transform_indices = @transform_3, window_bounds = array<i64: 1, 128, 32>}, {transform_indices = @transform_4, window_bounds = array<i64: 1, 1, 1, 1>}, {transform_indices = @transform_5, window_bounds = array<i64: 1, 1, 1, 1>}]} {
    %c0 = arith.constant 0 : index
    %c0_0 = arith.constant 0 : index
    %c0_1 = arith.constant 0 : index
    %0 = vector.load %arg2[%c0, %c0_0, %c0_1] : memref<1x128x16xbf16, #tpu.memory_space<vmem>>, vector<1x128x16xbf16>
    %1 = vector.shape_cast %0 : vector<1x128x16xbf16> to vector<128x16xbf16>
    %c0_2 = arith.constant 0 : index
    %c0_3 = arith.constant 0 : index
    %2 = vector.load %arg3[%c0_2, %c0_3] : memref<16x32xbf16, #tpu.memory_space<vmem>>, vector<16x32xbf16>
    %cst = arith.constant dense<0.000000e+00> : vector<128x32xf32>
    %3 = tpu.matmul %1, %2, %cst {dimension_numbers = #tpu.dot_dimension_numbers<[1], [0], [0], [1], [0, 0, 1, 1], [], []>} : vector<128x16xbf16>, vector<16x32xbf16>, vector<128x32xf32> -> vector<128x32xf32>
    %c0_4 = arith.constant 0 : index
    %c0_5 = arith.constant 0 : index
    %4 = vector.load %arg4[%c0_4, %c0_5] : memref<1x32xf32, #tpu.memory_space<vmem>>, vector<1x32xf32>
    %5 = vector.broadcast %4 : vector<1x32xf32> to vector<128x32xf32>
    %6 = arith.addf %3, %5 : vector<128x32xf32>
    %cst_6 = arith.constant 0.000000e+00 : f32
    %7 = vector.broadcast %cst_6 : f32 to vector<128x32xf32>
    %8 = arith.maximumf %6, %7 : vector<128x32xf32>
    %9 = arith.truncf %8 : vector<128x32xf32> to vector<128x32xbf16>
    %c0_7 = arith.constant 0 : index
    %c0_8 = arith.constant 0 : index
    %c0_9 = arith.constant 0 : index
    %10 = vector.load %arg5[%c0_7, %c0_8, %c0_9] : memref<1x128x32xbf16, #tpu.memory_space<vmem>>, vector<1x128x32xbf16>
    %11 = vector.shape_cast %10 : vector<1x128x32xbf16> to vector<128x32xbf16>
    %12 = vector.shape_cast %9 : vector<128x32xbf16> to vector<1x128x32xbf16>
    tpu.vector_store %arg5[%c0_7, %c0_8, %c0_9], %12 {strides = array<i32>} : memref<1x128x32xbf16, #tpu.memory_space<vmem>>, vector<1x128x32xbf16>,
    %13 = vector.shape_cast %8 : vector<128x32xf32> to vector<1x128x32xf32>
    %cst_10 = arith.constant dense<0.000000e+00> : vector<1xf32>
    %14 = vector.multi_reduction <add>, %13, %cst_10 [1, 2] : vector<1x128x32xf32> to vector<1xf32>
    %15 = vector.shape_cast %14 : vector<1xf32> to vector<1x1x1xf32>
    %16 = vector.extract %15[0, 0, 0] : f32 from vector<1x1x1xf32>
    %17 = vector.broadcast %16 : f32 to vector<1x1x1x1xf32>
    %c0_11 = arith.constant 0 : index
    %c0_12 = arith.constant 0 : index
    %c0_13 = arith.constant 0 : index
    %c0_14 = arith.constant 0 : index
    %18 = vector.load %arg6[%c0_11, %c0_12, %c0_13, %c0_14] : memref<1x1x1x1xf32, #tpu.memory_space<vmem>>, vector<1x1x1x1xf32>
    tpu.vector_store %arg6[%c0_11, %c0_12, %c0_13, %c0_14], %17 {strides = array<i32>} : memref<1x1x1x1xf32, #tpu.memory_space<vmem>>, vector<1x1x1x1xf32>,
    %19 = arith.mulf %8, %8 : vector<128x32xf32>
    %20 = vector.shape_cast %19 : vector<128x32xf32> to vector<1x128x32xf32>
    %cst_15 = arith.constant dense<0.000000e+00> : vector<1xf32>
    %21 = vector.multi_reduction <add>, %20, %cst_15 [1, 2] : vector<1x128x32xf32> to vector<1xf32>
    %22 = vector.shape_cast %21 : vector<1xf32> to vector<1x1x1xf32>
    %23 = vector.extract %22[0, 0, 0] : f32 from vector<1x1x1xf32>
    %24 = vector.broadcast %23 : f32 to vector<1x1x1x1xf32>
    %c0_16 = arith.constant 0 : index
    %c0_17 = arith.constant 0 : index
    %c0_18 = arith.constant 0 : index
    %c0_19 = arith.constant 0 : index
    %25 = vector.load %arg7[%c0_16, %c0_17, %c0_18, %c0_19] : memref<1x1x1x1xf32, #tpu.memory_space<vmem>>, vector<1x1x1x1xf32>
    tpu.vector_store %arg7[%c0_16, %c0_17, %c0_18, %c0_19], %24 {strides = array<i32>} : memref<1x1x1x1xf32, #tpu.memory_space<vmem>>, vector<1x1x1x1xf32>,
    return
  }
  func.func @transform_0(%arg0: i32, %arg1: i32) -> (i32, i32, i32) {
    %c0_i32 = arith.constant 0 : i32
    %c0_i32_0 = arith.constant 0 : i32
    return %arg0, %arg1, %c0_i32 : i32, i32, i32
  }
  func.func @transform_1(%arg0: i32, %arg1: i32) -> (i32, i32) {
    %c0_i32 = arith.constant 0 : i32
    %c0_i32_0 = arith.constant 0 : i32
    %c0_i32_1 = arith.constant 0 : i32
    return %c0_i32, %c0_i32_0 : i32, i32
  }
  func.func @transform_2(%arg0: i32, %arg1: i32) -> (i32, i32) {
    %c0_i32 = arith.constant 0 : i32
    %c0_i32_0 = arith.constant 0 : i32
    %c0_i32_1 = arith.constant 0 : i32
    return %c0_i32, %c0_i32_0 : i32, i32
  }
  func.func @transform_3(%arg0: i32, %arg1: i32) -> (i32, i32, i32) {
    %c0_i32 = arith.constant 0 : i32
    %c0_i32_0 = arith.constant 0 : i32
    return %arg0, %arg1, %c0_i32 : i32, i32, i32
  }
  func.func @transform_4(%arg0: i32, %arg1: i32) -> (i32, i32, i32, i32) {
    %c0_i32 = arith.constant 0 : i32
    %c0_i32_0 = arith.constant 0 : i32
    %c0_i32_1 = arith.constant 0 : i32
    return %arg0, %arg1, %c0_i32, %c0_i32_0 : i32, i32, i32, i32
  }
  func.func @transform_5(%arg0: i32, %arg1: i32) -> (i32, i32, i32, i32) {
    %c0_i32 = arith.constant 0 : i32
    %c0_i32_0 = arith.constant 0 : i32
    %c0_i32_1 = arith.constant 0 : i32
    return %arg0, %arg1, %c0_i32, %c0_i32_0 : i32, i32, i32, i32
  }
}

module attributes {stable_mosaic.version = 11 : i64} {
  func.func @_pw_kernel(%arg0: i32, %arg1: i32, %arg2: memref<1x128x32xbf16, #tpu.memory_space<vmem>>, %arg3: memref<2xf32, #tpu.memory_space<smem>>, %arg4: memref<2xf32, #tpu.memory_space<smem>>, %arg5: memref<1x32xf32, #tpu.memory_space<vmem>>, %arg6: memref<1x32xf32, #tpu.memory_space<vmem>>, %arg7: memref<32x16xbf16, #tpu.memory_space<vmem>>, %arg8: memref<1x16xf32, #tpu.memory_space<vmem>>, %arg9: memref<1x128x16xbf16, #tpu.memory_space<vmem>>) attributes {dimension_semantics = [#tpu.dimension_semantics<parallel>, #tpu.dimension_semantics<parallel>], iteration_bounds = array<i64: 2, 1>, scalar_prefetch = 0 : i64, scratch_operands = 0 : i64, tpu.core_type = #tpu.core_type<tc>, window_params = [{transform_indices = @transform_0, window_bounds = array<i64: 1, 128, 32>}, {transform_indices = @transform_1, window_bounds = array<i64: 2>}, {transform_indices = @transform_2, window_bounds = array<i64: 2>}, {pipeline_mode = #tpu.pipeline_mode<synchronous>, transform_indices = @transform_3, window_bounds = array<i64: 1, 32>}, {pipeline_mode = #tpu.pipeline_mode<synchronous>, transform_indices = @transform_4, window_bounds = array<i64: 1, 32>}, {pipeline_mode = #tpu.pipeline_mode<synchronous>, transform_indices = @transform_5, window_bounds = array<i64: 32, 16>}, {pipeline_mode = #tpu.pipeline_mode<synchronous>, transform_indices = @transform_6, window_bounds = array<i64: 1, 16>}, {transform_indices = @transform_7, window_bounds = array<i64: 1, 128, 16>}]} {
    %c0 = arith.constant 0 : index
    %c0_0 = arith.constant 0 : index
    %c0_1 = arith.constant 0 : index
    %0 = vector.load %arg2[%c0, %c0_0, %c0_1] : memref<1x128x32xbf16, #tpu.memory_space<vmem>>, vector<1x128x32xbf16>
    %1 = vector.shape_cast %0 : vector<1x128x32xbf16> to vector<128x32xbf16>
    %2 = arith.extf %1 : vector<128x32xbf16> to vector<128x32xf32>
    %3 = arith.index_cast %arg0 : i32 to index
    %4 = memref.load %arg3[%3] : memref<2xf32, #tpu.memory_space<smem>>
    %5 = vector.broadcast %4 : f32 to vector<128x32xf32>
    %6 = arith.subf %2, %5 : vector<128x32xf32>
    %7 = arith.index_cast %arg0 : i32 to index
    %8 = memref.load %arg4[%7] : memref<2xf32, #tpu.memory_space<smem>>
    %9 = vector.broadcast %8 : f32 to vector<128x32xf32>
    %10 = arith.mulf %6, %9 : vector<128x32xf32>
    %c0_2 = arith.constant 0 : index
    %c0_3 = arith.constant 0 : index
    %11 = vector.load %arg5[%c0_2, %c0_3] : memref<1x32xf32, #tpu.memory_space<vmem>>, vector<1x32xf32>
    %12 = vector.broadcast %11 : vector<1x32xf32> to vector<128x32xf32>
    %13 = arith.mulf %10, %12 : vector<128x32xf32>
    %c0_4 = arith.constant 0 : index
    %c0_5 = arith.constant 0 : index
    %14 = vector.load %arg6[%c0_4, %c0_5] : memref<1x32xf32, #tpu.memory_space<vmem>>, vector<1x32xf32>
    %15 = vector.broadcast %14 : vector<1x32xf32> to vector<128x32xf32>
    %16 = arith.addf %13, %15 : vector<128x32xf32>
    %17 = arith.truncf %16 : vector<128x32xf32> to vector<128x32xbf16>
    %c0_6 = arith.constant 0 : index
    %c0_7 = arith.constant 0 : index
    %18 = vector.load %arg7[%c0_6, %c0_7] : memref<32x16xbf16, #tpu.memory_space<vmem>>, vector<32x16xbf16>
    %cst = arith.constant dense<0.000000e+00> : vector<128x16xf32>
    %19 = tpu.matmul %17, %18, %cst {dimension_numbers = #tpu.dot_dimension_numbers<[1], [0], [0], [1], [0, 0, 1, 1], [], []>} : vector<128x32xbf16>, vector<32x16xbf16>, vector<128x16xf32> -> vector<128x16xf32>
    %c0_8 = arith.constant 0 : index
    %c0_9 = arith.constant 0 : index
    %20 = vector.load %arg8[%c0_8, %c0_9] : memref<1x16xf32, #tpu.memory_space<vmem>>, vector<1x16xf32>
    %21 = vector.broadcast %20 : vector<1x16xf32> to vector<128x16xf32>
    %22 = arith.addf %19, %21 : vector<128x16xf32>
    %23 = arith.truncf %22 : vector<128x16xf32> to vector<128x16xbf16>
    %c0_10 = arith.constant 0 : index
    %c0_11 = arith.constant 0 : index
    %c0_12 = arith.constant 0 : index
    %24 = vector.load %arg9[%c0_10, %c0_11, %c0_12] : memref<1x128x16xbf16, #tpu.memory_space<vmem>>, vector<1x128x16xbf16>
    %25 = vector.shape_cast %24 : vector<1x128x16xbf16> to vector<128x16xbf16>
    %26 = vector.shape_cast %23 : vector<128x16xbf16> to vector<1x128x16xbf16>
    tpu.vector_store %arg9[%c0_10, %c0_11, %c0_12], %26 {strides = array<i32>} : memref<1x128x16xbf16, #tpu.memory_space<vmem>>, vector<1x128x16xbf16>,
    return
  }
  func.func @transform_0(%arg0: i32, %arg1: i32) -> (i32, i32, i32) {
    %c0_i32 = arith.constant 0 : i32
    %c0_i32_0 = arith.constant 0 : i32
    return %arg0, %arg1, %c0_i32 : i32, i32, i32
  }
  func.func @transform_1(%arg0: i32, %arg1: i32) -> i32 {
    %c0_i32 = arith.constant 0 : i32
    %c0_i32_0 = arith.constant 0 : i32
    return %c0_i32 : i32
  }
  func.func @transform_2(%arg0: i32, %arg1: i32) -> i32 {
    %c0_i32 = arith.constant 0 : i32
    %c0_i32_0 = arith.constant 0 : i32
    return %c0_i32 : i32
  }
  func.func @transform_3(%arg0: i32, %arg1: i32) -> (i32, i32) {
    %c0_i32 = arith.constant 0 : i32
    %c0_i32_0 = arith.constant 0 : i32
    %c0_i32_1 = arith.constant 0 : i32
    return %c0_i32, %c0_i32_0 : i32, i32
  }
  func.func @transform_4(%arg0: i32, %arg1: i32) -> (i32, i32) {
    %c0_i32 = arith.constant 0 : i32
    %c0_i32_0 = arith.constant 0 : i32
    %c0_i32_1 = arith.constant 0 : i32
    return %c0_i32, %c0_i32_0 : i32, i32
  }
  func.func @transform_5(%arg0: i32, %arg1: i32) -> (i32, i32) {
    %c0_i32 = arith.constant 0 : i32
    %c0_i32_0 = arith.constant 0 : i32
    %c0_i32_1 = arith.constant 0 : i32
    return %c0_i32, %c0_i32_0 : i32, i32
  }
  func.func @transform_6(%arg0: i32, %arg1: i32) -> (i32, i32) {
    %c0_i32 = arith.constant 0 : i32
    %c0_i32_0 = arith.constant 0 : i32
    %c0_i32_1 = arith.constant 0 : i32
    return %c0_i32, %c0_i32_0 : i32, i32
  }
  func.func @transform_7(%arg0: i32, %arg1: i32) -> (i32, i32, i32) {
    %c0_i32 = arith.constant 0 : i32
    %c0_i32_0 = arith.constant 0 : i32
    return %arg0, %arg1, %c0_i32 : i32, i32, i32
  }
}

module attributes {stable_mosaic.version = 11 : i64} {
  func.func @_bridge_kernel(%arg0: i32, %arg1: i32, %arg2: memref<1x128x16xbf16, #tpu.memory_space<vmem>>, %arg3: memref<16x16xbf16, #tpu.memory_space<vmem>>, %arg4: memref<1x16xf32, #tpu.memory_space<vmem>>, %arg5: memref<1x1x16xf32, #tpu.memory_space<vmem>>, %arg6: memref<16x32xbf16, #tpu.memory_space<vmem>>, %arg7: memref<1x32xf32, #tpu.memory_space<vmem>>, %arg8: memref<1xf32, #tpu.memory_space<smem>>, %arg9: memref<1x128x16xbf16, #tpu.memory_space<vmem>>, %arg10: memref<1x128x32xbf16, #tpu.memory_space<vmem>>, %arg11: memref<1x1x1x1xf32, #tpu.memory_space<vmem>>, %arg12: memref<1x1x1x1xf32, #tpu.memory_space<vmem>>) attributes {dimension_semantics = [#tpu.dimension_semantics<parallel>, #tpu.dimension_semantics<parallel>], iteration_bounds = array<i64: 2, 1>, scalar_prefetch = 0 : i64, scratch_operands = 0 : i64, tpu.core_type = #tpu.core_type<tc>, window_params = [{transform_indices = @transform_0, window_bounds = array<i64: 1, 128, 16>}, {pipeline_mode = #tpu.pipeline_mode<synchronous>, transform_indices = @transform_1, window_bounds = array<i64: 16, 16>}, {pipeline_mode = #tpu.pipeline_mode<synchronous>, transform_indices = @transform_2, window_bounds = array<i64: 1, 16>}, {transform_indices = @transform_3, window_bounds = array<i64: 1, 1, 16>}, {pipeline_mode = #tpu.pipeline_mode<synchronous>, transform_indices = @transform_4, window_bounds = array<i64: 16, 32>}, {pipeline_mode = #tpu.pipeline_mode<synchronous>, transform_indices = @transform_5, window_bounds = array<i64: 1, 32>}, {transform_indices = @transform_6, window_bounds = array<i64: 1>}, {transform_indices = @transform_7, window_bounds = array<i64: 1, 128, 16>}, {transform_indices = @transform_8, window_bounds = array<i64: 1, 128, 32>}, {transform_indices = @transform_9, window_bounds = array<i64: 1, 1, 1, 1>}, {transform_indices = @transform_10, window_bounds = array<i64: 1, 1, 1, 1>}]} {
    %c0 = arith.constant 0 : index
    %c0_0 = arith.constant 0 : index
    %c0_1 = arith.constant 0 : index
    %0 = vector.load %arg2[%c0, %c0_0, %c0_1] : memref<1x128x16xbf16, #tpu.memory_space<vmem>>, vector<1x128x16xbf16>
    %1 = vector.shape_cast %0 : vector<1x128x16xbf16> to vector<128x16xbf16>
    %c0_2 = arith.constant 0 : index
    %c0_3 = arith.constant 0 : index
    %2 = vector.load %arg3[%c0_2, %c0_3] : memref<16x16xbf16, #tpu.memory_space<vmem>>, vector<16x16xbf16>
    %cst = arith.constant dense<0.000000e+00> : vector<128x16xf32>
    %3 = tpu.matmul %1, %2, %cst {dimension_numbers = #tpu.dot_dimension_numbers<[1], [0], [0], [1], [0, 0, 1, 1], [], []>} : vector<128x16xbf16>, vector<16x16xbf16>, vector<128x16xf32> -> vector<128x16xf32>
    %c0_4 = arith.constant 0 : index
    %c0_5 = arith.constant 0 : index
    %4 = vector.load %arg4[%c0_4, %c0_5] : memref<1x16xf32, #tpu.memory_space<vmem>>, vector<1x16xf32>
    %5 = vector.broadcast %4 : vector<1x16xf32> to vector<128x16xf32>
    %6 = arith.addf %3, %5 : vector<128x16xf32>
    %c0_6 = arith.constant 0 : index
    %c0_7 = arith.constant 0 : index
    %c0_8 = arith.constant 0 : index
    %7 = vector.load %arg5[%c0_6, %c0_7, %c0_8] : memref<1x1x16xf32, #tpu.memory_space<vmem>>, vector<1x1x16xf32>
    %8 = vector.shape_cast %7 : vector<1x1x16xf32> to vector<1x16xf32>
    %9 = vector.broadcast %8 : vector<1x16xf32> to vector<128x16xf32>
    %10 = arith.addf %6, %9 : vector<128x16xf32>
    %11 = arith.truncf %10 : vector<128x16xf32> to vector<128x16xbf16>
    %c0_9 = arith.constant 0 : index
    %c0_10 = arith.constant 0 : index
    %c0_11 = arith.constant 0 : index
    %12 = vector.load %arg9[%c0_9, %c0_10, %c0_11] : memref<1x128x16xbf16, #tpu.memory_space<vmem>>, vector<1x128x16xbf16>
    %13 = vector.shape_cast %12 : vector<1x128x16xbf16> to vector<128x16xbf16>
    %14 = vector.shape_cast %11 : vector<128x16xbf16> to vector<1x128x16xbf16>
    tpu.vector_store %arg9[%c0_9, %c0_10, %c0_11], %14 {strides = array<i32>} : memref<1x128x16xbf16, #tpu.memory_space<vmem>>, vector<1x128x16xbf16>,
    %15 = arith.truncf %10 : vector<128x16xf32> to vector<128x16xbf16>
    %c0_12 = arith.constant 0 : index
    %c0_13 = arith.constant 0 : index
    %16 = vector.load %arg6[%c0_12, %c0_13] : memref<16x32xbf16, #tpu.memory_space<vmem>>, vector<16x32xbf16>
    %cst_14 = arith.constant dense<0.000000e+00> : vector<128x32xf32>
    %17 = tpu.matmul %15, %16, %cst_14 {dimension_numbers = #tpu.dot_dimension_numbers<[1], [0], [0], [1], [0, 0, 1, 1], [], []>} : vector<128x16xbf16>, vector<16x32xbf16>, vector<128x32xf32> -> vector<128x32xf32>
    %c0_15 = arith.constant 0 : index
    %c0_16 = arith.constant 0 : index
    %18 = vector.load %arg7[%c0_15, %c0_16] : memref<1x32xf32, #tpu.memory_space<vmem>>, vector<1x32xf32>
    %19 = vector.broadcast %18 : vector<1x32xf32> to vector<128x32xf32>
    %20 = arith.addf %17, %19 : vector<128x32xf32>
    %c0_17 = arith.constant 0 : index
    %21 = memref.load %arg8[%c0_17] : memref<1xf32, #tpu.memory_space<smem>>
    %cst_18 = arith.constant 0.000000e+00 : f32
    %22 = vector.broadcast %cst_18 : f32 to vector<128x32xf32>
    %23 = arith.cmpf oge, %20, %22 : vector<128x32xf32>
    %24 = vector.broadcast %21 : f32 to vector<128x32xf32>
    %25 = arith.mulf %24, %20 : vector<128x32xf32>
    %26 = arith.select %23, %20, %25 : vector<128x32xi1>, vector<128x32xf32>
    %27 = arith.truncf %26 : vector<128x32xf32> to vector<128x32xbf16>
    %c0_19 = arith.constant 0 : index
    %c0_20 = arith.constant 0 : index
    %c0_21 = arith.constant 0 : index
    %28 = vector.load %arg10[%c0_19, %c0_20, %c0_21] : memref<1x128x32xbf16, #tpu.memory_space<vmem>>, vector<1x128x32xbf16>
    %29 = vector.shape_cast %28 : vector<1x128x32xbf16> to vector<128x32xbf16>
    %30 = vector.shape_cast %27 : vector<128x32xbf16> to vector<1x128x32xbf16>
    tpu.vector_store %arg10[%c0_19, %c0_20, %c0_21], %30 {strides = array<i32>} : memref<1x128x32xbf16, #tpu.memory_space<vmem>>, vector<1x128x32xbf16>,
    %31 = vector.shape_cast %26 : vector<128x32xf32> to vector<1x128x32xf32>
    %cst_22 = arith.constant dense<0.000000e+00> : vector<1xf32>
    %32 = vector.multi_reduction <add>, %31, %cst_22 [1, 2] : vector<1x128x32xf32> to vector<1xf32>
    %33 = vector.shape_cast %32 : vector<1xf32> to vector<1x1x1xf32>
    %34 = vector.extract %33[0, 0, 0] : f32 from vector<1x1x1xf32>
    %35 = vector.broadcast %34 : f32 to vector<1x1x1x1xf32>
    %c0_23 = arith.constant 0 : index
    %c0_24 = arith.constant 0 : index
    %c0_25 = arith.constant 0 : index
    %c0_26 = arith.constant 0 : index
    %36 = vector.load %arg11[%c0_23, %c0_24, %c0_25, %c0_26] : memref<1x1x1x1xf32, #tpu.memory_space<vmem>>, vector<1x1x1x1xf32>
    tpu.vector_store %arg11[%c0_23, %c0_24, %c0_25, %c0_26], %35 {strides = array<i32>} : memref<1x1x1x1xf32, #tpu.memory_space<vmem>>, vector<1x1x1x1xf32>,
    %37 = arith.mulf %26, %26 : vector<128x32xf32>
    %38 = vector.shape_cast %37 : vector<128x32xf32> to vector<1x128x32xf32>
    %cst_27 = arith.constant dense<0.000000e+00> : vector<1xf32>
    %39 = vector.multi_reduction <add>, %38, %cst_27 [1, 2] : vector<1x128x32xf32> to vector<1xf32>
    %40 = vector.shape_cast %39 : vector<1xf32> to vector<1x1x1xf32>
    %41 = vector.extract %40[0, 0, 0] : f32 from vector<1x1x1xf32>
    %42 = vector.broadcast %41 : f32 to vector<1x1x1x1xf32>
    %c0_28 = arith.constant 0 : index
    %c0_29 = arith.constant 0 : index
    %c0_30 = arith.constant 0 : index
    %c0_31 = arith.constant 0 : index
    %43 = vector.load %arg12[%c0_28, %c0_29, %c0_30, %c0_31] : memref<1x1x1x1xf32, #tpu.memory_space<vmem>>, vector<1x1x1x1xf32>
    tpu.vector_store %arg12[%c0_28, %c0_29, %c0_30, %c0_31], %42 {strides = array<i32>} : memref<1x1x1x1xf32, #tpu.memory_space<vmem>>, vector<1x1x1x1xf32>,
    return
  }
  func.func @transform_0(%arg0: i32, %arg1: i32) -> (i32, i32, i32) {
    %c0_i32 = arith.constant 0 : i32
    %c0_i32_0 = arith.constant 0 : i32
    return %arg0, %arg1, %c0_i32 : i32, i32, i32
  }
  func.func @transform_1(%arg0: i32, %arg1: i32) -> (i32, i32) {
    %c0_i32 = arith.constant 0 : i32
    %c0_i32_0 = arith.constant 0 : i32
    %c0_i32_1 = arith.constant 0 : i32
    return %c0_i32, %c0_i32_0 : i32, i32
  }
  func.func @transform_2(%arg0: i32, %arg1: i32) -> (i32, i32) {
    %c0_i32 = arith.constant 0 : i32
    %c0_i32_0 = arith.constant 0 : i32
    %c0_i32_1 = arith.constant 0 : i32
    return %c0_i32, %c0_i32_0 : i32, i32
  }
  func.func @transform_3(%arg0: i32, %arg1: i32) -> (i32, i32, i32) {
    %c0_i32 = arith.constant 0 : i32
    %c0_i32_0 = arith.constant 0 : i32
    %c0_i32_1 = arith.constant 0 : i32
    return %arg0, %c0_i32, %c0_i32_0 : i32, i32, i32
  }
  func.func @transform_4(%arg0: i32, %arg1: i32) -> (i32, i32) {
    %c0_i32 = arith.constant 0 : i32
    %c0_i32_0 = arith.constant 0 : i32
    %c0_i32_1 = arith.constant 0 : i32
    return %c0_i32, %c0_i32_0 : i32, i32
  }
  func.func @transform_5(%arg0: i32, %arg1: i32) -> (i32, i32) {
    %c0_i32 = arith.constant 0 : i32
    %c0_i32_0 = arith.constant 0 : i32
    %c0_i32_1 = arith.constant 0 : i32
    return %c0_i32, %c0_i32_0 : i32, i32
  }
  func.func @transform_6(%arg0: i32, %arg1: i32) -> i32 {
    %c0_i32 = arith.constant 0 : i32
    %c0_i32_0 = arith.constant 0 : i32
    return %c0_i32 : i32
  }
  func.func @transform_7(%arg0: i32, %arg1: i32) -> (i32, i32, i32) {
    %c0_i32 = arith.constant 0 : i32
    %c0_i32_0 = arith.constant 0 : i32
    return %arg0, %arg1, %c0_i32 : i32, i32, i32
  }
  func.func @transform_8(%arg0: i32, %arg1: i32) -> (i32, i32, i32) {
    %c0_i32 = arith.constant 0 : i32
    %c0_i32_0 = arith.constant 0 : i32
    return %arg0, %arg1, %c0_i32 : i32, i32, i32
  }
  func.func @transform_9(%arg0: i32, %arg1: i32) -> (i32, i32, i32, i32) {
    %c0_i32 = arith.constant 0 : i32
    %c0_i32_0 = arith.constant 0 : i32
    %c0_i32_1 = arith.constant 0 : i32
    return %arg0, %arg1, %c0_i32, %c0_i32_0 : i32, i32, i32, i32
  }
  func.func @transform_10(%arg0: i32, %arg1: i32) -> (i32, i32, i32, i32) {
    %c0_i32 = arith.constant 0 : i32
    %c0_i32_0 = arith.constant 0 : i32
    %c0_i32_1 = arith.constant 0 : i32
    return %arg0, %arg1, %c0_i32, %c0_i32_0 : i32, i32, i32, i32
  }
}

module attributes {stable_mosaic.version = 11 : i64} {
  func.func @_dwconv_kernel(%arg0: i32, %arg1: i32, %arg2: memref<1x128x32xbf16, #tpu.memory_space<vmem>>, %arg3: memref<2xf32, #tpu.memory_space<smem>>, %arg4: memref<2xf32, #tpu.memory_space<smem>>, %arg5: memref<1x32xf32, #tpu.memory_space<vmem>>, %arg6: memref<1x32xf32, #tpu.memory_space<vmem>>, %arg7: memref<3x32xf32, #tpu.memory_space<vmem>>, %arg8: memref<1x32xf32, #tpu.memory_space<vmem>>, %arg9: memref<1xf32, #tpu.memory_space<smem>>, %arg10: memref<1x128x32xbf16, #tpu.memory_space<vmem>>, %arg11: memref<1x1x1x1xf32, #tpu.memory_space<vmem>>, %arg12: memref<1x1x1x1xf32, #tpu.memory_space<vmem>>) attributes {dimension_semantics = [#tpu.dimension_semantics<parallel>, #tpu.dimension_semantics<parallel>], iteration_bounds = array<i64: 2, 1>, scalar_prefetch = 0 : i64, scratch_operands = 0 : i64, tpu.core_type = #tpu.core_type<tc>, window_params = [{transform_indices = @transform_0, window_bounds = array<i64: 1, 128, 32>}, {transform_indices = @transform_1, window_bounds = array<i64: 2>}, {transform_indices = @transform_2, window_bounds = array<i64: 2>}, {transform_indices = @transform_3, window_bounds = array<i64: 1, 32>}, {transform_indices = @transform_4, window_bounds = array<i64: 1, 32>}, {transform_indices = @transform_5, window_bounds = array<i64: 3, 32>}, {transform_indices = @transform_6, window_bounds = array<i64: 1, 32>}, {transform_indices = @transform_7, window_bounds = array<i64: 1>}, {transform_indices = @transform_8, window_bounds = array<i64: 1, 128, 32>}, {transform_indices = @transform_9, window_bounds = array<i64: 1, 1, 1, 1>}, {transform_indices = @transform_10, window_bounds = array<i64: 1, 1, 1, 1>}]} {
    %c0 = arith.constant 0 : index
    %c0_0 = arith.constant 0 : index
    %c0_1 = arith.constant 0 : index
    %0 = vector.load %arg2[%c0, %c0_0, %c0_1] : memref<1x128x32xbf16, #tpu.memory_space<vmem>>, vector<1x128x32xbf16>
    %1 = vector.shape_cast %0 : vector<1x128x32xbf16> to vector<128x32xbf16>
    %2 = arith.extf %1 : vector<128x32xbf16> to vector<128x32xf32>
    %3 = arith.index_cast %arg0 : i32 to index
    %4 = memref.load %arg3[%3] : memref<2xf32, #tpu.memory_space<smem>>
    %5 = vector.broadcast %4 : f32 to vector<128x32xf32>
    %6 = arith.subf %2, %5 : vector<128x32xf32>
    %7 = arith.index_cast %arg0 : i32 to index
    %8 = memref.load %arg4[%7] : memref<2xf32, #tpu.memory_space<smem>>
    %9 = vector.broadcast %8 : f32 to vector<128x32xf32>
    %10 = arith.mulf %6, %9 : vector<128x32xf32>
    %c0_2 = arith.constant 0 : index
    %c0_3 = arith.constant 0 : index
    %11 = vector.load %arg5[%c0_2, %c0_3] : memref<1x32xf32, #tpu.memory_space<vmem>>, vector<1x32xf32>
    %12 = vector.broadcast %11 : vector<1x32xf32> to vector<128x32xf32>
    %13 = arith.mulf %10, %12 : vector<128x32xf32>
    %c0_4 = arith.constant 0 : index
    %c0_5 = arith.constant 0 : index
    %14 = vector.load %arg6[%c0_4, %c0_5] : memref<1x32xf32, #tpu.memory_space<vmem>>, vector<1x32xf32>
    %15 = vector.broadcast %14 : vector<1x32xf32> to vector<128x32xf32>
    %16 = arith.addf %13, %15 : vector<128x32xf32>
    %17 = tpu.iota {dimensions = array<i32: 0>} : vector<128x32xi32>
    %cst = arith.constant 0.000000e+00 : f32
    %18 = vector.broadcast %cst : f32 to vector<128x32xf32>
    %c1_i32 = arith.constant 1 : i32
    %19 = tpu.dynamic_rotate %16 by %c1_i32 dim 0 : vector<128x32xf32>, i32 -> vector<128x32xf32>
    %c1_i32_6 = arith.constant 1 : i32
    %20 = vector.broadcast %c1_i32_6 : i32 to vector<128x32xi32>
    %21 = arith.cmpi sge, %17, %20 : vector<128x32xi32>
    %cst_7 = arith.constant 0.000000e+00 : f32
    %22 = vector.broadcast %cst_7 : f32 to vector<128x32xf32>
    %23 = arith.select %21, %19, %22 : vector<128x32xi1>, vector<128x32xf32>
    %c0_8 = arith.constant 0 : index
    %c0_9 = arith.constant 0 : index
    %24 = vector.load %arg7[%c0_8, %c0_9] : memref<3x32xf32, #tpu.memory_space<vmem>>, vector<1x32xf32>
    %25 = vector.broadcast %24 : vector<1x32xf32> to vector<128x32xf32>
    %26 = arith.mulf %23, %25 : vector<128x32xf32>
    %27 = arith.addf %18, %26 : vector<128x32xf32>
    %c1 = arith.constant 1 : index
    %c0_10 = arith.constant 0 : index
    %28 = vector.load %arg7[%c1, %c0_10] : memref<3x32xf32, #tpu.memory_space<vmem>>, vector<1x32xf32>
    %29 = vector.broadcast %28 : vector<1x32xf32> to vector<128x32xf32>
    %30 = arith.mulf %16, %29 : vector<128x32xf32>
    %31 = arith.addf %27, %30 : vector<128x32xf32>
    %c127_i32 = arith.constant 127 : i32
    %32 = tpu.dynamic_rotate %16 by %c127_i32 dim 0 : vector<128x32xf32>, i32 -> vector<128x32xf32>
    %c127_i32_11 = arith.constant 127 : i32
    %33 = vector.broadcast %c127_i32_11 : i32 to vector<128x32xi32>
    %34 = arith.cmpi slt, %17, %33 : vector<128x32xi32>
    %cst_12 = arith.constant 0.000000e+00 : f32
    %35 = vector.broadcast %cst_12 : f32 to vector<128x32xf32>
    %36 = arith.select %34, %32, %35 : vector<128x32xi1>, vector<128x32xf32>
    %c2 = arith.constant 2 : index
    %c0_13 = arith.constant 0 : index
    %37 = vector.load %arg7[%c2, %c0_13] : memref<3x32xf32, #tpu.memory_space<vmem>>, vector<1x32xf32>
    %38 = vector.broadcast %37 : vector<1x32xf32> to vector<128x32xf32>
    %39 = arith.mulf %36, %38 : vector<128x32xf32>
    %40 = arith.addf %31, %39 : vector<128x32xf32>
    %c0_14 = arith.constant 0 : index
    %c0_15 = arith.constant 0 : index
    %41 = vector.load %arg8[%c0_14, %c0_15] : memref<1x32xf32, #tpu.memory_space<vmem>>, vector<1x32xf32>
    %42 = vector.broadcast %41 : vector<1x32xf32> to vector<128x32xf32>
    %43 = arith.addf %40, %42 : vector<128x32xf32>
    %c0_16 = arith.constant 0 : index
    %44 = memref.load %arg9[%c0_16] : memref<1xf32, #tpu.memory_space<smem>>
    %cst_17 = arith.constant 0.000000e+00 : f32
    %45 = vector.broadcast %cst_17 : f32 to vector<128x32xf32>
    %46 = arith.cmpf oge, %43, %45 : vector<128x32xf32>
    %47 = vector.broadcast %44 : f32 to vector<128x32xf32>
    %48 = arith.mulf %47, %43 : vector<128x32xf32>
    %49 = arith.select %46, %43, %48 : vector<128x32xi1>, vector<128x32xf32>
    %50 = arith.truncf %49 : vector<128x32xf32> to vector<128x32xbf16>
    %c0_18 = arith.constant 0 : index
    %c0_19 = arith.constant 0 : index
    %c0_20 = arith.constant 0 : index
    %51 = vector.load %arg10[%c0_18, %c0_19, %c0_20] : memref<1x128x32xbf16, #tpu.memory_space<vmem>>, vector<1x128x32xbf16>
    %52 = vector.shape_cast %51 : vector<1x128x32xbf16> to vector<128x32xbf16>
    %53 = vector.shape_cast %50 : vector<128x32xbf16> to vector<1x128x32xbf16>
    tpu.vector_store %arg10[%c0_18, %c0_19, %c0_20], %53 {strides = array<i32>} : memref<1x128x32xbf16, #tpu.memory_space<vmem>>, vector<1x128x32xbf16>,
    %54 = vector.shape_cast %49 : vector<128x32xf32> to vector<1x128x32xf32>
    %cst_21 = arith.constant dense<0.000000e+00> : vector<1xf32>
    %55 = vector.multi_reduction <add>, %54, %cst_21 [1, 2] : vector<1x128x32xf32> to vector<1xf32>
    %56 = vector.shape_cast %55 : vector<1xf32> to vector<1x1x1xf32>
    %57 = vector.extract %56[0, 0, 0] : f32 from vector<1x1x1xf32>
    %58 = vector.broadcast %57 : f32 to vector<1x1x1x1xf32>
    %c0_22 = arith.constant 0 : index
    %c0_23 = arith.constant 0 : index
    %c0_24 = arith.constant 0 : index
    %c0_25 = arith.constant 0 : index
    %59 = vector.load %arg11[%c0_22, %c0_23, %c0_24, %c0_25] : memref<1x1x1x1xf32, #tpu.memory_space<vmem>>, vector<1x1x1x1xf32>
    tpu.vector_store %arg11[%c0_22, %c0_23, %c0_24, %c0_25], %58 {strides = array<i32>} : memref<1x1x1x1xf32, #tpu.memory_space<vmem>>, vector<1x1x1x1xf32>,
    %60 = arith.mulf %49, %49 : vector<128x32xf32>
    %61 = vector.shape_cast %60 : vector<128x32xf32> to vector<1x128x32xf32>
    %cst_26 = arith.constant dense<0.000000e+00> : vector<1xf32>
    %62 = vector.multi_reduction <add>, %61, %cst_26 [1, 2] : vector<1x128x32xf32> to vector<1xf32>
    %63 = vector.shape_cast %62 : vector<1xf32> to vector<1x1x1xf32>
    %64 = vector.extract %63[0, 0, 0] : f32 from vector<1x1x1xf32>
    %65 = vector.broadcast %64 : f32 to vector<1x1x1x1xf32>
    %c0_27 = arith.constant 0 : index
    %c0_28 = arith.constant 0 : index
    %c0_29 = arith.constant 0 : index
    %c0_30 = arith.constant 0 : index
    %66 = vector.load %arg12[%c0_27, %c0_28, %c0_29, %c0_30] : memref<1x1x1x1xf32, #tpu.memory_space<vmem>>, vector<1x1x1x1xf32>
    tpu.vector_store %arg12[%c0_27, %c0_28, %c0_29, %c0_30], %65 {strides = array<i32>} : memref<1x1x1x1xf32, #tpu.memory_space<vmem>>, vector<1x1x1x1xf32>,
    return
  }
  func.func @transform_0(%arg0: i32, %arg1: i32) -> (i32, i32, i32) {
    %c0_i32 = arith.constant 0 : i32
    %c0_i32_0 = arith.constant 0 : i32
    return %arg0, %c0_i32, %arg1 : i32, i32, i32
  }
  func.func @transform_1(%arg0: i32, %arg1: i32) -> i32 {
    %c0_i32 = arith.constant 0 : i32
    %c0_i32_0 = arith.constant 0 : i32
    return %c0_i32 : i32
  }
  func.func @transform_2(%arg0: i32, %arg1: i32) -> i32 {
    %c0_i32 = arith.constant 0 : i32
    %c0_i32_0 = arith.constant 0 : i32
    return %c0_i32 : i32
  }
  func.func @transform_3(%arg0: i32, %arg1: i32) -> (i32, i32) {
    %c0_i32 = arith.constant 0 : i32
    %c0_i32_0 = arith.constant 0 : i32
    return %c0_i32, %arg1 : i32, i32
  }
  func.func @transform_4(%arg0: i32, %arg1: i32) -> (i32, i32) {
    %c0_i32 = arith.constant 0 : i32
    %c0_i32_0 = arith.constant 0 : i32
    return %c0_i32, %arg1 : i32, i32
  }
  func.func @transform_5(%arg0: i32, %arg1: i32) -> (i32, i32) {
    %c0_i32 = arith.constant 0 : i32
    %c0_i32_0 = arith.constant 0 : i32
    return %c0_i32, %arg1 : i32, i32
  }
  func.func @transform_6(%arg0: i32, %arg1: i32) -> (i32, i32) {
    %c0_i32 = arith.constant 0 : i32
    %c0_i32_0 = arith.constant 0 : i32
    return %c0_i32, %arg1 : i32, i32
  }
  func.func @transform_7(%arg0: i32, %arg1: i32) -> i32 {
    %c0_i32 = arith.constant 0 : i32
    %c0_i32_0 = arith.constant 0 : i32
    return %c0_i32 : i32
  }
  func.func @transform_8(%arg0: i32, %arg1: i32) -> (i32, i32, i32) {
    %c0_i32 = arith.constant 0 : i32
    %c0_i32_0 = arith.constant 0 : i32
    return %arg0, %c0_i32, %arg1 : i32, i32, i32
  }
  func.func @transform_9(%arg0: i32, %arg1: i32) -> (i32, i32, i32, i32) {
    %c0_i32 = arith.constant 0 : i32
    %c0_i32_0 = arith.constant 0 : i32
    %c0_i32_1 = arith.constant 0 : i32
    return %arg0, %arg1, %c0_i32, %c0_i32_0 : i32, i32, i32, i32
  }
  func.func @transform_10(%arg0: i32, %arg1: i32) -> (i32, i32, i32, i32) {
    %c0_i32 = arith.constant 0 : i32
    %c0_i32_0 = arith.constant 0 : i32
    %c0_i32_1 = arith.constant 0 : i32
    return %arg0, %arg1, %c0_i32, %c0_i32_0 : i32, i32, i32, i32
  }
}

module attributes {stable_mosaic.version = 11 : i64} {
  func.func @_bridge_kernel(%arg0: i32, %arg1: i32, %arg2: memref<1x128x32xbf16, #tpu.memory_space<vmem>>, %arg3: memref<2xf32, #tpu.memory_space<smem>>, %arg4: memref<2xf32, #tpu.memory_space<smem>>, %arg5: memref<1x32xf32, #tpu.memory_space<vmem>>, %arg6: memref<1x32xf32, #tpu.memory_space<vmem>>, %arg7: memref<32x16xbf16, #tpu.memory_space<vmem>>, %arg8: memref<1x16xf32, #tpu.memory_space<vmem>>, %arg9: memref<1x128x16xbf16, #tpu.memory_space<vmem>>, %arg10: memref<16x32xbf16, #tpu.memory_space<vmem>>, %arg11: memref<1x32xf32, #tpu.memory_space<vmem>>, %arg12: memref<1xf32, #tpu.memory_space<smem>>, %arg13: memref<1x128x16xbf16, #tpu.memory_space<vmem>>, %arg14: memref<1x128x32xbf16, #tpu.memory_space<vmem>>, %arg15: memref<1x1x1x1xf32, #tpu.memory_space<vmem>>, %arg16: memref<1x1x1x1xf32, #tpu.memory_space<vmem>>) attributes {dimension_semantics = [#tpu.dimension_semantics<parallel>, #tpu.dimension_semantics<parallel>], iteration_bounds = array<i64: 2, 1>, scalar_prefetch = 0 : i64, scratch_operands = 0 : i64, tpu.core_type = #tpu.core_type<tc>, window_params = [{transform_indices = @transform_0, window_bounds = array<i64: 1, 128, 32>}, {transform_indices = @transform_1, window_bounds = array<i64: 2>}, {transform_indices = @transform_2, window_bounds = array<i64: 2>}, {pipeline_mode = #tpu.pipeline_mode<synchronous>, transform_indices = @transform_3, window_bounds = array<i64: 1, 32>}, {pipeline_mode = #tpu.pipeline_mode<synchronous>, transform_indices = @transform_4, window_bounds = array<i64: 1, 32>}, {pipeline_mode = #tpu.pipeline_mode<synchronous>, transform_indices = @transform_5, window_bounds = array<i64: 32, 16>}, {pipeline_mode = #tpu.pipeline_mode<synchronous>, transform_indices = @transform_6, window_bounds = array<i64: 1, 16>}, {transform_indices = @transform_7, window_bounds = array<i64: 1, 128, 16>}, {pipeline_mode = #tpu.pipeline_mode<synchronous>, transform_indices = @transform_8, window_bounds = array<i64: 16, 32>}, {pipeline_mode = #tpu.pipeline_mode<synchronous>, transform_indices = @transform_9, window_bounds = array<i64: 1, 32>}, {transform_indices = @transform_10, window_bounds = array<i64: 1>}, {transform_indices = @transform_11, window_bounds = array<i64: 1, 128, 16>}, {transform_indices = @transform_12, window_bounds = array<i64: 1, 128, 32>}, {transform_indices = @transform_13, window_bounds = array<i64: 1, 1, 1, 1>}, {transform_indices = @transform_14, window_bounds = array<i64: 1, 1, 1, 1>}]} {
    %c0 = arith.constant 0 : index
    %c0_0 = arith.constant 0 : index
    %c0_1 = arith.constant 0 : index
    %0 = vector.load %arg2[%c0, %c0_0, %c0_1] : memref<1x128x32xbf16, #tpu.memory_space<vmem>>, vector<1x128x32xbf16>
    %1 = vector.shape_cast %0 : vector<1x128x32xbf16> to vector<128x32xbf16>
    %2 = arith.extf %1 : vector<128x32xbf16> to vector<128x32xf32>
    %3 = arith.index_cast %arg0 : i32 to index
    %4 = memref.load %arg3[%3] : memref<2xf32, #tpu.memory_space<smem>>
    %5 = vector.broadcast %4 : f32 to vector<128x32xf32>
    %6 = arith.subf %2, %5 : vector<128x32xf32>
    %7 = arith.index_cast %arg0 : i32 to index
    %8 = memref.load %arg4[%7] : memref<2xf32, #tpu.memory_space<smem>>
    %9 = vector.broadcast %8 : f32 to vector<128x32xf32>
    %10 = arith.mulf %6, %9 : vector<128x32xf32>
    %c0_2 = arith.constant 0 : index
    %c0_3 = arith.constant 0 : index
    %11 = vector.load %arg5[%c0_2, %c0_3] : memref<1x32xf32, #tpu.memory_space<vmem>>, vector<1x32xf32>
    %12 = vector.broadcast %11 : vector<1x32xf32> to vector<128x32xf32>
    %13 = arith.mulf %10, %12 : vector<128x32xf32>
    %c0_4 = arith.constant 0 : index
    %c0_5 = arith.constant 0 : index
    %14 = vector.load %arg6[%c0_4, %c0_5] : memref<1x32xf32, #tpu.memory_space<vmem>>, vector<1x32xf32>
    %15 = vector.broadcast %14 : vector<1x32xf32> to vector<128x32xf32>
    %16 = arith.addf %13, %15 : vector<128x32xf32>
    %17 = arith.truncf %16 : vector<128x32xf32> to vector<128x32xbf16>
    %c0_6 = arith.constant 0 : index
    %c0_7 = arith.constant 0 : index
    %18 = vector.load %arg7[%c0_6, %c0_7] : memref<32x16xbf16, #tpu.memory_space<vmem>>, vector<32x16xbf16>
    %cst = arith.constant dense<0.000000e+00> : vector<128x16xf32>
    %19 = tpu.matmul %17, %18, %cst {dimension_numbers = #tpu.dot_dimension_numbers<[1], [0], [0], [1], [0, 0, 1, 1], [], []>} : vector<128x32xbf16>, vector<32x16xbf16>, vector<128x16xf32> -> vector<128x16xf32>
    %c0_8 = arith.constant 0 : index
    %c0_9 = arith.constant 0 : index
    %20 = vector.load %arg8[%c0_8, %c0_9] : memref<1x16xf32, #tpu.memory_space<vmem>>, vector<1x16xf32>
    %21 = vector.broadcast %20 : vector<1x16xf32> to vector<128x16xf32>
    %22 = arith.addf %19, %21 : vector<128x16xf32>
    %c0_10 = arith.constant 0 : index
    %c0_11 = arith.constant 0 : index
    %c0_12 = arith.constant 0 : index
    %23 = vector.load %arg9[%c0_10, %c0_11, %c0_12] : memref<1x128x16xbf16, #tpu.memory_space<vmem>>, vector<1x128x16xbf16>
    %24 = vector.shape_cast %23 : vector<1x128x16xbf16> to vector<128x16xbf16>
    %25 = arith.extf %24 : vector<128x16xbf16> to vector<128x16xf32>
    %26 = arith.addf %22, %25 : vector<128x16xf32>
    %27 = arith.truncf %26 : vector<128x16xf32> to vector<128x16xbf16>
    %c0_13 = arith.constant 0 : index
    %c0_14 = arith.constant 0 : index
    %c0_15 = arith.constant 0 : index
    %28 = vector.load %arg13[%c0_13, %c0_14, %c0_15] : memref<1x128x16xbf16, #tpu.memory_space<vmem>>, vector<1x128x16xbf16>
    %29 = vector.shape_cast %28 : vector<1x128x16xbf16> to vector<128x16xbf16>
    %30 = vector.shape_cast %27 : vector<128x16xbf16> to vector<1x128x16xbf16>
    tpu.vector_store %arg13[%c0_13, %c0_14, %c0_15], %30 {strides = array<i32>} : memref<1x128x16xbf16, #tpu.memory_space<vmem>>, vector<1x128x16xbf16>,
    %31 = arith.truncf %26 : vector<128x16xf32> to vector<128x16xbf16>
    %c0_16 = arith.constant 0 : index
    %c0_17 = arith.constant 0 : index
    %32 = vector.load %arg10[%c0_16, %c0_17] : memref<16x32xbf16, #tpu.memory_space<vmem>>, vector<16x32xbf16>
    %cst_18 = arith.constant dense<0.000000e+00> : vector<128x32xf32>
    %33 = tpu.matmul %31, %32, %cst_18 {dimension_numbers = #tpu.dot_dimension_numbers<[1], [0], [0], [1], [0, 0, 1, 1], [], []>} : vector<128x16xbf16>, vector<16x32xbf16>, vector<128x32xf32> -> vector<128x32xf32>
    %c0_19 = arith.constant 0 : index
    %c0_20 = arith.constant 0 : index
    %34 = vector.load %arg11[%c0_19, %c0_20] : memref<1x32xf32, #tpu.memory_space<vmem>>, vector<1x32xf32>
    %35 = vector.broadcast %34 : vector<1x32xf32> to vector<128x32xf32>
    %36 = arith.addf %33, %35 : vector<128x32xf32>
    %c0_21 = arith.constant 0 : index
    %37 = memref.load %arg12[%c0_21] : memref<1xf32, #tpu.memory_space<smem>>
    %cst_22 = arith.constant 0.000000e+00 : f32
    %38 = vector.broadcast %cst_22 : f32 to vector<128x32xf32>
    %39 = arith.cmpf oge, %36, %38 : vector<128x32xf32>
    %40 = vector.broadcast %37 : f32 to vector<128x32xf32>
    %41 = arith.mulf %40, %36 : vector<128x32xf32>
    %42 = arith.select %39, %36, %41 : vector<128x32xi1>, vector<128x32xf32>
    %43 = arith.truncf %42 : vector<128x32xf32> to vector<128x32xbf16>
    %c0_23 = arith.constant 0 : index
    %c0_24 = arith.constant 0 : index
    %c0_25 = arith.constant 0 : index
    %44 = vector.load %arg14[%c0_23, %c0_24, %c0_25] : memref<1x128x32xbf16, #tpu.memory_space<vmem>>, vector<1x128x32xbf16>
    %45 = vector.shape_cast %44 : vector<1x128x32xbf16> to vector<128x32xbf16>
    %46 = vector.shape_cast %43 : vector<128x32xbf16> to vector<1x128x32xbf16>
    tpu.vector_store %arg14[%c0_23, %c0_24, %c0_25], %46 {strides = array<i32>} : memref<1x128x32xbf16, #tpu.memory_space<vmem>>, vector<1x128x32xbf16>,
    %47 = vector.shape_cast %42 : vector<128x32xf32> to vector<1x128x32xf32>
    %cst_26 = arith.constant dense<0.000000e+00> : vector<1xf32>
    %48 = vector.multi_reduction <add>, %47, %cst_26 [1, 2] : vector<1x128x32xf32> to vector<1xf32>
    %49 = vector.shape_cast %48 : vector<1xf32> to vector<1x1x1xf32>
    %50 = vector.extract %49[0, 0, 0] : f32 from vector<1x1x1xf32>
    %51 = vector.broadcast %50 : f32 to vector<1x1x1x1xf32>
    %c0_27 = arith.constant 0 : index
    %c0_28 = arith.constant 0 : index
    %c0_29 = arith.constant 0 : index
    %c0_30 = arith.constant 0 : index
    %52 = vector.load %arg15[%c0_27, %c0_28, %c0_29, %c0_30] : memref<1x1x1x1xf32, #tpu.memory_space<vmem>>, vector<1x1x1x1xf32>
    tpu.vector_store %arg15[%c0_27, %c0_28, %c0_29, %c0_30], %51 {strides = array<i32>} : memref<1x1x1x1xf32, #tpu.memory_space<vmem>>, vector<1x1x1x1xf32>,
    %53 = arith.mulf %42, %42 : vector<128x32xf32>
    %54 = vector.shape_cast %53 : vector<128x32xf32> to vector<1x128x32xf32>
    %cst_31 = arith.constant dense<0.000000e+00> : vector<1xf32>
    %55 = vector.multi_reduction <add>, %54, %cst_31 [1, 2] : vector<1x128x32xf32> to vector<1xf32>
    %56 = vector.shape_cast %55 : vector<1xf32> to vector<1x1x1xf32>
    %57 = vector.extract %56[0, 0, 0] : f32 from vector<1x1x1xf32>
    %58 = vector.broadcast %57 : f32 to vector<1x1x1x1xf32>
    %c0_32 = arith.constant 0 : index
    %c0_33 = arith.constant 0 : index
    %c0_34 = arith.constant 0 : index
    %c0_35 = arith.constant 0 : index
    %59 = vector.load %arg16[%c0_32, %c0_33, %c0_34, %c0_35] : memref<1x1x1x1xf32, #tpu.memory_space<vmem>>, vector<1x1x1x1xf32>
    tpu.vector_store %arg16[%c0_32, %c0_33, %c0_34, %c0_35], %58 {strides = array<i32>} : memref<1x1x1x1xf32, #tpu.memory_space<vmem>>, vector<1x1x1x1xf32>,
    return
  }
  func.func @transform_0(%arg0: i32, %arg1: i32) -> (i32, i32, i32) {
    %c0_i32 = arith.constant 0 : i32
    %c0_i32_0 = arith.constant 0 : i32
    return %arg0, %arg1, %c0_i32 : i32, i32, i32
  }
  func.func @transform_1(%arg0: i32, %arg1: i32) -> i32 {
    %c0_i32 = arith.constant 0 : i32
    %c0_i32_0 = arith.constant 0 : i32
    return %c0_i32 : i32
  }
  func.func @transform_2(%arg0: i32, %arg1: i32) -> i32 {
    %c0_i32 = arith.constant 0 : i32
    %c0_i32_0 = arith.constant 0 : i32
    return %c0_i32 : i32
  }
  func.func @transform_3(%arg0: i32, %arg1: i32) -> (i32, i32) {
    %c0_i32 = arith.constant 0 : i32
    %c0_i32_0 = arith.constant 0 : i32
    %c0_i32_1 = arith.constant 0 : i32
    return %c0_i32, %c0_i32_0 : i32, i32
  }
  func.func @transform_4(%arg0: i32, %arg1: i32) -> (i32, i32) {
    %c0_i32 = arith.constant 0 : i32
    %c0_i32_0 = arith.constant 0 : i32
    %c0_i32_1 = arith.constant 0 : i32
    return %c0_i32, %c0_i32_0 : i32, i32
  }
  func.func @transform_5(%arg0: i32, %arg1: i32) -> (i32, i32) {
    %c0_i32 = arith.constant 0 : i32
    %c0_i32_0 = arith.constant 0 : i32
    %c0_i32_1 = arith.constant 0 : i32
    return %c0_i32, %c0_i32_0 : i32, i32
  }
  func.func @transform_6(%arg0: i32, %arg1: i32) -> (i32, i32) {
    %c0_i32 = arith.constant 0 : i32
    %c0_i32_0 = arith.constant 0 : i32
    %c0_i32_1 = arith.constant 0 : i32
    return %c0_i32, %c0_i32_0 : i32, i32
  }
  func.func @transform_7(%arg0: i32, %arg1: i32) -> (i32, i32, i32) {
    %c0_i32 = arith.constant 0 : i32
    %c0_i32_0 = arith.constant 0 : i32
    return %arg0, %arg1, %c0_i32 : i32, i32, i32
  }
  func.func @transform_8(%arg0: i32, %arg1: i32) -> (i32, i32) {
    %c0_i32 = arith.constant 0 : i32
    %c0_i32_0 = arith.constant 0 : i32
    %c0_i32_1 = arith.constant 0 : i32
    return %c0_i32, %c0_i32_0 : i32, i32
  }
  func.func @transform_9(%arg0: i32, %arg1: i32) -> (i32, i32) {
    %c0_i32 = arith.constant 0 : i32
    %c0_i32_0 = arith.constant 0 : i32
    %c0_i32_1 = arith.constant 0 : i32
    return %c0_i32, %c0_i32_0 : i32, i32
  }
  func.func @transform_10(%arg0: i32, %arg1: i32) -> i32 {
    %c0_i32 = arith.constant 0 : i32
    %c0_i32_0 = arith.constant 0 : i32
    return %c0_i32 : i32
  }
  func.func @transform_11(%arg0: i32, %arg1: i32) -> (i32, i32, i32) {
    %c0_i32 = arith.constant 0 : i32
    %c0_i32_0 = arith.constant 0 : i32
    return %arg0, %arg1, %c0_i32 : i32, i32, i32
  }
  func.func @transform_12(%arg0: i32, %arg1: i32) -> (i32, i32, i32) {
    %c0_i32 = arith.constant 0 : i32
    %c0_i32_0 = arith.constant 0 : i32
    return %arg0, %arg1, %c0_i32 : i32, i32, i32
  }
  func.func @transform_13(%arg0: i32, %arg1: i32) -> (i32, i32, i32, i32) {
    %c0_i32 = arith.constant 0 : i32
    %c0_i32_0 = arith.constant 0 : i32
    %c0_i32_1 = arith.constant 0 : i32
    return %arg0, %arg1, %c0_i32, %c0_i32_0 : i32, i32, i32, i32
  }
  func.func @transform_14(%arg0: i32, %arg1: i32) -> (i32, i32, i32, i32) {
    %c0_i32 = arith.constant 0 : i32
    %c0_i32_0 = arith.constant 0 : i32
    %c0_i32_1 = arith.constant 0 : i32
    return %arg0, %arg1, %c0_i32, %c0_i32_0 : i32, i32, i32, i32
  }
}

module attributes {stable_mosaic.version = 11 : i64} {
  func.func @_pw_kernel(%arg0: i32, %arg1: i32, %arg2: memref<1x128x32xbf16, #tpu.memory_space<vmem>>, %arg3: memref<2xf32, #tpu.memory_space<smem>>, %arg4: memref<2xf32, #tpu.memory_space<smem>>, %arg5: memref<1x32xf32, #tpu.memory_space<vmem>>, %arg6: memref<1x32xf32, #tpu.memory_space<vmem>>, %arg7: memref<32x16xbf16, #tpu.memory_space<vmem>>, %arg8: memref<1x16xf32, #tpu.memory_space<vmem>>, %arg9: memref<1x128x16xbf16, #tpu.memory_space<vmem>>, %arg10: memref<1x128x16xbf16, #tpu.memory_space<vmem>>) attributes {dimension_semantics = [#tpu.dimension_semantics<parallel>, #tpu.dimension_semantics<parallel>], iteration_bounds = array<i64: 2, 1>, scalar_prefetch = 0 : i64, scratch_operands = 0 : i64, tpu.core_type = #tpu.core_type<tc>, window_params = [{transform_indices = @transform_0, window_bounds = array<i64: 1, 128, 32>}, {transform_indices = @transform_1, window_bounds = array<i64: 2>}, {transform_indices = @transform_2, window_bounds = array<i64: 2>}, {pipeline_mode = #tpu.pipeline_mode<synchronous>, transform_indices = @transform_3, window_bounds = array<i64: 1, 32>}, {pipeline_mode = #tpu.pipeline_mode<synchronous>, transform_indices = @transform_4, window_bounds = array<i64: 1, 32>}, {pipeline_mode = #tpu.pipeline_mode<synchronous>, transform_indices = @transform_5, window_bounds = array<i64: 32, 16>}, {pipeline_mode = #tpu.pipeline_mode<synchronous>, transform_indices = @transform_6, window_bounds = array<i64: 1, 16>}, {transform_indices = @transform_7, window_bounds = array<i64: 1, 128, 16>}, {transform_indices = @transform_8, window_bounds = array<i64: 1, 128, 16>}]} {
    %c0 = arith.constant 0 : index
    %c0_0 = arith.constant 0 : index
    %c0_1 = arith.constant 0 : index
    %0 = vector.load %arg2[%c0, %c0_0, %c0_1] : memref<1x128x32xbf16, #tpu.memory_space<vmem>>, vector<1x128x32xbf16>
    %1 = vector.shape_cast %0 : vector<1x128x32xbf16> to vector<128x32xbf16>
    %2 = arith.extf %1 : vector<128x32xbf16> to vector<128x32xf32>
    %3 = arith.index_cast %arg0 : i32 to index
    %4 = memref.load %arg3[%3] : memref<2xf32, #tpu.memory_space<smem>>
    %5 = vector.broadcast %4 : f32 to vector<128x32xf32>
    %6 = arith.subf %2, %5 : vector<128x32xf32>
    %7 = arith.index_cast %arg0 : i32 to index
    %8 = memref.load %arg4[%7] : memref<2xf32, #tpu.memory_space<smem>>
    %9 = vector.broadcast %8 : f32 to vector<128x32xf32>
    %10 = arith.mulf %6, %9 : vector<128x32xf32>
    %c0_2 = arith.constant 0 : index
    %c0_3 = arith.constant 0 : index
    %11 = vector.load %arg5[%c0_2, %c0_3] : memref<1x32xf32, #tpu.memory_space<vmem>>, vector<1x32xf32>
    %12 = vector.broadcast %11 : vector<1x32xf32> to vector<128x32xf32>
    %13 = arith.mulf %10, %12 : vector<128x32xf32>
    %c0_4 = arith.constant 0 : index
    %c0_5 = arith.constant 0 : index
    %14 = vector.load %arg6[%c0_4, %c0_5] : memref<1x32xf32, #tpu.memory_space<vmem>>, vector<1x32xf32>
    %15 = vector.broadcast %14 : vector<1x32xf32> to vector<128x32xf32>
    %16 = arith.addf %13, %15 : vector<128x32xf32>
    %17 = arith.truncf %16 : vector<128x32xf32> to vector<128x32xbf16>
    %c0_6 = arith.constant 0 : index
    %c0_7 = arith.constant 0 : index
    %18 = vector.load %arg7[%c0_6, %c0_7] : memref<32x16xbf16, #tpu.memory_space<vmem>>, vector<32x16xbf16>
    %cst = arith.constant dense<0.000000e+00> : vector<128x16xf32>
    %19 = tpu.matmul %17, %18, %cst {dimension_numbers = #tpu.dot_dimension_numbers<[1], [0], [0], [1], [0, 0, 1, 1], [], []>} : vector<128x32xbf16>, vector<32x16xbf16>, vector<128x16xf32> -> vector<128x16xf32>
    %c0_8 = arith.constant 0 : index
    %c0_9 = arith.constant 0 : index
    %20 = vector.load %arg8[%c0_8, %c0_9] : memref<1x16xf32, #tpu.memory_space<vmem>>, vector<1x16xf32>
    %21 = vector.broadcast %20 : vector<1x16xf32> to vector<128x16xf32>
    %22 = arith.addf %19, %21 : vector<128x16xf32>
    %c0_10 = arith.constant 0 : index
    %c0_11 = arith.constant 0 : index
    %c0_12 = arith.constant 0 : index
    %23 = vector.load %arg9[%c0_10, %c0_11, %c0_12] : memref<1x128x16xbf16, #tpu.memory_space<vmem>>, vector<1x128x16xbf16>
    %24 = vector.shape_cast %23 : vector<1x128x16xbf16> to vector<128x16xbf16>
    %25 = arith.extf %24 : vector<128x16xbf16> to vector<128x16xf32>
    %26 = arith.addf %22, %25 : vector<128x16xf32>
    %27 = arith.truncf %26 : vector<128x16xf32> to vector<128x16xbf16>
    %c0_13 = arith.constant 0 : index
    %c0_14 = arith.constant 0 : index
    %c0_15 = arith.constant 0 : index
    %28 = vector.load %arg10[%c0_13, %c0_14, %c0_15] : memref<1x128x16xbf16, #tpu.memory_space<vmem>>, vector<1x128x16xbf16>
    %29 = vector.shape_cast %28 : vector<1x128x16xbf16> to vector<128x16xbf16>
    %30 = vector.shape_cast %27 : vector<128x16xbf16> to vector<1x128x16xbf16>
    tpu.vector_store %arg10[%c0_13, %c0_14, %c0_15], %30 {strides = array<i32>} : memref<1x128x16xbf16, #tpu.memory_space<vmem>>, vector<1x128x16xbf16>,
    return
  }
  func.func @transform_0(%arg0: i32, %arg1: i32) -> (i32, i32, i32) {
    %c0_i32 = arith.constant 0 : i32
    %c0_i32_0 = arith.constant 0 : i32
    return %arg0, %arg1, %c0_i32 : i32, i32, i32
  }
  func.func @transform_1(%arg0: i32, %arg1: i32) -> i32 {
    %c0_i32 = arith.constant 0 : i32
    %c0_i32_0 = arith.constant 0 : i32
    return %c0_i32 : i32
  }
  func.func @transform_2(%arg0: i32, %arg1: i32) -> i32 {
    %c0_i32 = arith.constant 0 : i32
    %c0_i32_0 = arith.constant 0 : i32
    return %c0_i32 : i32
  }
  func.func @transform_3(%arg0: i32, %arg1: i32) -> (i32, i32) {
    %c0_i32 = arith.constant 0 : i32
    %c0_i32_0 = arith.constant 0 : i32
    %c0_i32_1 = arith.constant 0 : i32
    return %c0_i32, %c0_i32_0 : i32, i32
  }
  func.func @transform_4(%arg0: i32, %arg1: i32) -> (i32, i32) {
    %c0_i32 = arith.constant 0 : i32
    %c0_i32_0 = arith.constant 0 : i32
    %c0_i32_1 = arith.constant 0 : i32
    return %c0_i32, %c0_i32_0 : i32, i32
  }
  func.func @transform_5(%arg0: i32, %arg1: i32) -> (i32, i32) {
    %c0_i32 = arith.constant 0 : i32
    %c0_i32_0 = arith.constant 0 : i32
    %c0_i32_1 = arith.constant 0 : i32
    return %c0_i32, %c0_i32_0 : i32, i32
  }
  func.func @transform_6(%arg0: i32, %arg1: i32) -> (i32, i32) {
    %c0_i32 = arith.constant 0 : i32
    %c0_i32_0 = arith.constant 0 : i32
    %c0_i32_1 = arith.constant 0 : i32
    return %c0_i32, %c0_i32_0 : i32, i32
  }
  func.func @transform_7(%arg0: i32, %arg1: i32) -> (i32, i32, i32) {
    %c0_i32 = arith.constant 0 : i32
    %c0_i32_0 = arith.constant 0 : i32
    return %arg0, %arg1, %c0_i32 : i32, i32, i32
  }
  func.func @transform_8(%arg0: i32, %arg1: i32) -> (i32, i32, i32) {
    %c0_i32 = arith.constant 0 : i32
    %c0_i32_0 = arith.constant 0 : i32
    return %arg0, %arg1, %c0_i32 : i32, i32, i32
  }
}

module attributes {stable_mosaic.version = 11 : i64} {
  func.func @_dwconv_kernel(%arg0: i32, %arg1: i32, %arg2: memref<1x128x32xbf16, #tpu.memory_space<vmem>>, %arg3: memref<2xf32, #tpu.memory_space<smem>>, %arg4: memref<2xf32, #tpu.memory_space<smem>>, %arg5: memref<1x32xf32, #tpu.memory_space<vmem>>, %arg6: memref<1x32xf32, #tpu.memory_space<vmem>>, %arg7: memref<3x32xf32, #tpu.memory_space<vmem>>, %arg8: memref<1x32xf32, #tpu.memory_space<vmem>>, %arg9: memref<1xf32, #tpu.memory_space<smem>>, %arg10: memref<1x128x32xbf16, #tpu.memory_space<vmem>>, %arg11: memref<1x1x1x1xf32, #tpu.memory_space<vmem>>, %arg12: memref<1x1x1x1xf32, #tpu.memory_space<vmem>>) attributes {dimension_semantics = [#tpu.dimension_semantics<parallel>, #tpu.dimension_semantics<parallel>], iteration_bounds = array<i64: 2, 1>, scalar_prefetch = 0 : i64, scratch_operands = 0 : i64, tpu.core_type = #tpu.core_type<tc>, window_params = [{transform_indices = @transform_0, window_bounds = array<i64: 1, 128, 32>}, {transform_indices = @transform_1, window_bounds = array<i64: 2>}, {transform_indices = @transform_2, window_bounds = array<i64: 2>}, {transform_indices = @transform_3, window_bounds = array<i64: 1, 32>}, {transform_indices = @transform_4, window_bounds = array<i64: 1, 32>}, {transform_indices = @transform_5, window_bounds = array<i64: 3, 32>}, {transform_indices = @transform_6, window_bounds = array<i64: 1, 32>}, {transform_indices = @transform_7, window_bounds = array<i64: 1>}, {transform_indices = @transform_8, window_bounds = array<i64: 1, 128, 32>}, {transform_indices = @transform_9, window_bounds = array<i64: 1, 1, 1, 1>}, {transform_indices = @transform_10, window_bounds = array<i64: 1, 1, 1, 1>}]} {
    %c0 = arith.constant 0 : index
    %c0_0 = arith.constant 0 : index
    %c0_1 = arith.constant 0 : index
    %0 = vector.load %arg2[%c0, %c0_0, %c0_1] : memref<1x128x32xbf16, #tpu.memory_space<vmem>>, vector<1x128x32xbf16>
    %1 = vector.shape_cast %0 : vector<1x128x32xbf16> to vector<128x32xbf16>
    %2 = arith.extf %1 : vector<128x32xbf16> to vector<128x32xf32>
    %3 = arith.index_cast %arg0 : i32 to index
    %4 = memref.load %arg3[%3] : memref<2xf32, #tpu.memory_space<smem>>
    %5 = vector.broadcast %4 : f32 to vector<128x32xf32>
    %6 = arith.subf %2, %5 : vector<128x32xf32>
    %7 = arith.index_cast %arg0 : i32 to index
    %8 = memref.load %arg4[%7] : memref<2xf32, #tpu.memory_space<smem>>
    %9 = vector.broadcast %8 : f32 to vector<128x32xf32>
    %10 = arith.mulf %6, %9 : vector<128x32xf32>
    %c0_2 = arith.constant 0 : index
    %c0_3 = arith.constant 0 : index
    %11 = vector.load %arg5[%c0_2, %c0_3] : memref<1x32xf32, #tpu.memory_space<vmem>>, vector<1x32xf32>
    %12 = vector.broadcast %11 : vector<1x32xf32> to vector<128x32xf32>
    %13 = arith.mulf %10, %12 : vector<128x32xf32>
    %c0_4 = arith.constant 0 : index
    %c0_5 = arith.constant 0 : index
    %14 = vector.load %arg6[%c0_4, %c0_5] : memref<1x32xf32, #tpu.memory_space<vmem>>, vector<1x32xf32>
    %15 = vector.broadcast %14 : vector<1x32xf32> to vector<128x32xf32>
    %16 = arith.addf %13, %15 : vector<128x32xf32>
    %17 = tpu.iota {dimensions = array<i32: 0>} : vector<128x32xi32>
    %cst = arith.constant 0.000000e+00 : f32
    %18 = vector.broadcast %cst : f32 to vector<128x32xf32>
    %c2_i32 = arith.constant 2 : i32
    %19 = tpu.dynamic_rotate %16 by %c2_i32 dim 0 : vector<128x32xf32>, i32 -> vector<128x32xf32>
    %c2_i32_6 = arith.constant 2 : i32
    %20 = vector.broadcast %c2_i32_6 : i32 to vector<128x32xi32>
    %21 = arith.cmpi sge, %17, %20 : vector<128x32xi32>
    %cst_7 = arith.constant 0.000000e+00 : f32
    %22 = vector.broadcast %cst_7 : f32 to vector<128x32xf32>
    %23 = arith.select %21, %19, %22 : vector<128x32xi1>, vector<128x32xf32>
    %c0_8 = arith.constant 0 : index
    %c0_9 = arith.constant 0 : index
    %24 = vector.load %arg7[%c0_8, %c0_9] : memref<3x32xf32, #tpu.memory_space<vmem>>, vector<1x32xf32>
    %25 = vector.broadcast %24 : vector<1x32xf32> to vector<128x32xf32>
    %26 = arith.mulf %23, %25 : vector<128x32xf32>
    %27 = arith.addf %18, %26 : vector<128x32xf32>
    %c1 = arith.constant 1 : index
    %c0_10 = arith.constant 0 : index
    %28 = vector.load %arg7[%c1, %c0_10] : memref<3x32xf32, #tpu.memory_space<vmem>>, vector<1x32xf32>
    %29 = vector.broadcast %28 : vector<1x32xf32> to vector<128x32xf32>
    %30 = arith.mulf %16, %29 : vector<128x32xf32>
    %31 = arith.addf %27, %30 : vector<128x32xf32>
    %c126_i32 = arith.constant 126 : i32
    %32 = tpu.dynamic_rotate %16 by %c126_i32 dim 0 : vector<128x32xf32>, i32 -> vector<128x32xf32>
    %c126_i32_11 = arith.constant 126 : i32
    %33 = vector.broadcast %c126_i32_11 : i32 to vector<128x32xi32>
    %34 = arith.cmpi slt, %17, %33 : vector<128x32xi32>
    %cst_12 = arith.constant 0.000000e+00 : f32
    %35 = vector.broadcast %cst_12 : f32 to vector<128x32xf32>
    %36 = arith.select %34, %32, %35 : vector<128x32xi1>, vector<128x32xf32>
    %c2 = arith.constant 2 : index
    %c0_13 = arith.constant 0 : index
    %37 = vector.load %arg7[%c2, %c0_13] : memref<3x32xf32, #tpu.memory_space<vmem>>, vector<1x32xf32>
    %38 = vector.broadcast %37 : vector<1x32xf32> to vector<128x32xf32>
    %39 = arith.mulf %36, %38 : vector<128x32xf32>
    %40 = arith.addf %31, %39 : vector<128x32xf32>
    %c0_14 = arith.constant 0 : index
    %c0_15 = arith.constant 0 : index
    %41 = vector.load %arg8[%c0_14, %c0_15] : memref<1x32xf32, #tpu.memory_space<vmem>>, vector<1x32xf32>
    %42 = vector.broadcast %41 : vector<1x32xf32> to vector<128x32xf32>
    %43 = arith.addf %40, %42 : vector<128x32xf32>
    %c0_16 = arith.constant 0 : index
    %44 = memref.load %arg9[%c0_16] : memref<1xf32, #tpu.memory_space<smem>>
    %cst_17 = arith.constant 0.000000e+00 : f32
    %45 = vector.broadcast %cst_17 : f32 to vector<128x32xf32>
    %46 = arith.cmpf oge, %43, %45 : vector<128x32xf32>
    %47 = vector.broadcast %44 : f32 to vector<128x32xf32>
    %48 = arith.mulf %47, %43 : vector<128x32xf32>
    %49 = arith.select %46, %43, %48 : vector<128x32xi1>, vector<128x32xf32>
    %50 = arith.truncf %49 : vector<128x32xf32> to vector<128x32xbf16>
    %c0_18 = arith.constant 0 : index
    %c0_19 = arith.constant 0 : index
    %c0_20 = arith.constant 0 : index
    %51 = vector.load %arg10[%c0_18, %c0_19, %c0_20] : memref<1x128x32xbf16, #tpu.memory_space<vmem>>, vector<1x128x32xbf16>
    %52 = vector.shape_cast %51 : vector<1x128x32xbf16> to vector<128x32xbf16>
    %53 = vector.shape_cast %50 : vector<128x32xbf16> to vector<1x128x32xbf16>
    tpu.vector_store %arg10[%c0_18, %c0_19, %c0_20], %53 {strides = array<i32>} : memref<1x128x32xbf16, #tpu.memory_space<vmem>>, vector<1x128x32xbf16>,
    %54 = vector.shape_cast %49 : vector<128x32xf32> to vector<1x128x32xf32>
    %cst_21 = arith.constant dense<0.000000e+00> : vector<1xf32>
    %55 = vector.multi_reduction <add>, %54, %cst_21 [1, 2] : vector<1x128x32xf32> to vector<1xf32>
    %56 = vector.shape_cast %55 : vector<1xf32> to vector<1x1x1xf32>
    %57 = vector.extract %56[0, 0, 0] : f32 from vector<1x1x1xf32>
    %58 = vector.broadcast %57 : f32 to vector<1x1x1x1xf32>
    %c0_22 = arith.constant 0 : index
    %c0_23 = arith.constant 0 : index
    %c0_24 = arith.constant 0 : index
    %c0_25 = arith.constant 0 : index
    %59 = vector.load %arg11[%c0_22, %c0_23, %c0_24, %c0_25] : memref<1x1x1x1xf32, #tpu.memory_space<vmem>>, vector<1x1x1x1xf32>
    tpu.vector_store %arg11[%c0_22, %c0_23, %c0_24, %c0_25], %58 {strides = array<i32>} : memref<1x1x1x1xf32, #tpu.memory_space<vmem>>, vector<1x1x1x1xf32>,
    %60 = arith.mulf %49, %49 : vector<128x32xf32>
    %61 = vector.shape_cast %60 : vector<128x32xf32> to vector<1x128x32xf32>
    %cst_26 = arith.constant dense<0.000000e+00> : vector<1xf32>
    %62 = vector.multi_reduction <add>, %61, %cst_26 [1, 2] : vector<1x128x32xf32> to vector<1xf32>
    %63 = vector.shape_cast %62 : vector<1xf32> to vector<1x1x1xf32>
    %64 = vector.extract %63[0, 0, 0] : f32 from vector<1x1x1xf32>
    %65 = vector.broadcast %64 : f32 to vector<1x1x1x1xf32>
    %c0_27 = arith.constant 0 : index
    %c0_28 = arith.constant 0 : index
    %c0_29 = arith.constant 0 : index
    %c0_30 = arith.constant 0 : index
    %66 = vector.load %arg12[%c0_27, %c0_28, %c0_29, %c0_30] : memref<1x1x1x1xf32, #tpu.memory_space<vmem>>, vector<1x1x1x1xf32>
    tpu.vector_store %arg12[%c0_27, %c0_28, %c0_29, %c0_30], %65 {strides = array<i32>} : memref<1x1x1x1xf32, #tpu.memory_space<vmem>>, vector<1x1x1x1xf32>,
    return
  }
  func.func @transform_0(%arg0: i32, %arg1: i32) -> (i32, i32, i32) {
    %c0_i32 = arith.constant 0 : i32
    %c0_i32_0 = arith.constant 0 : i32
    return %arg0, %c0_i32, %arg1 : i32, i32, i32
  }
  func.func @transform_1(%arg0: i32, %arg1: i32) -> i32 {
    %c0_i32 = arith.constant 0 : i32
    %c0_i32_0 = arith.constant 0 : i32
    return %c0_i32 : i32
  }
  func.func @transform_2(%arg0: i32, %arg1: i32) -> i32 {
    %c0_i32 = arith.constant 0 : i32
    %c0_i32_0 = arith.constant 0 : i32
    return %c0_i32 : i32
  }
  func.func @transform_3(%arg0: i32, %arg1: i32) -> (i32, i32) {
    %c0_i32 = arith.constant 0 : i32
    %c0_i32_0 = arith.constant 0 : i32
    return %c0_i32, %arg1 : i32, i32
  }
  func.func @transform_4(%arg0: i32, %arg1: i32) -> (i32, i32) {
    %c0_i32 = arith.constant 0 : i32
    %c0_i32_0 = arith.constant 0 : i32
    return %c0_i32, %arg1 : i32, i32
  }
  func.func @transform_5(%arg0: i32, %arg1: i32) -> (i32, i32) {
    %c0_i32 = arith.constant 0 : i32
    %c0_i32_0 = arith.constant 0 : i32
    return %c0_i32, %arg1 : i32, i32
  }
  func.func @transform_6(%arg0: i32, %arg1: i32) -> (i32, i32) {
    %c0_i32 = arith.constant 0 : i32
    %c0_i32_0 = arith.constant 0 : i32
    return %c0_i32, %arg1 : i32, i32
  }
  func.func @transform_7(%arg0: i32, %arg1: i32) -> i32 {
    %c0_i32 = arith.constant 0 : i32
    %c0_i32_0 = arith.constant 0 : i32
    return %c0_i32 : i32
  }
  func.func @transform_8(%arg0: i32, %arg1: i32) -> (i32, i32, i32) {
    %c0_i32 = arith.constant 0 : i32
    %c0_i32_0 = arith.constant 0 : i32
    return %arg0, %c0_i32, %arg1 : i32, i32, i32
  }
  func.func @transform_9(%arg0: i32, %arg1: i32) -> (i32, i32, i32, i32) {
    %c0_i32 = arith.constant 0 : i32
    %c0_i32_0 = arith.constant 0 : i32
    %c0_i32_1 = arith.constant 0 : i32
    return %arg0, %arg1, %c0_i32, %c0_i32_0 : i32, i32, i32, i32
  }
  func.func @transform_10(%arg0: i32, %arg1: i32) -> (i32, i32, i32, i32) {
    %c0_i32 = arith.constant 0 : i32
    %c0_i32_0 = arith.constant 0 : i32
    %c0_i32_1 = arith.constant 0 : i32
    return %arg0, %arg1, %c0_i32, %c0_i32_0 : i32, i32, i32, i32
  }
}

module attributes {stable_mosaic.version = 11 : i64} {
  func.func @_mask_decode_kernel(%arg0: i32, %arg1: i32, %arg2: memref<1x128x16xbf16, #tpu.memory_space<vmem>>, %arg3: memref<1x128x32xbf16, #tpu.memory_space<vmem>>, %arg4: memref<16x32xbf16, #tpu.memory_space<vmem>>, %arg5: memref<1x32xf32, #tpu.memory_space<vmem>>, %arg6: memref<32x16xbf16, #tpu.memory_space<vmem>>, %arg7: memref<1x128x16xf32, #tpu.memory_space<vmem>>) attributes {dimension_semantics = [#tpu.dimension_semantics<parallel>, #tpu.dimension_semantics<parallel>], iteration_bounds = array<i64: 2, 1>, scalar_prefetch = 0 : i64, scratch_operands = 0 : i64, tpu.core_type = #tpu.core_type<tc>, window_params = [{transform_indices = @transform_0, window_bounds = array<i64: 1, 128, 16>}, {transform_indices = @transform_1, window_bounds = array<i64: 1, 128, 32>}, {pipeline_mode = #tpu.pipeline_mode<synchronous>, transform_indices = @transform_2, window_bounds = array<i64: 16, 32>}, {pipeline_mode = #tpu.pipeline_mode<synchronous>, transform_indices = @transform_3, window_bounds = array<i64: 1, 32>}, {pipeline_mode = #tpu.pipeline_mode<synchronous>, transform_indices = @transform_4, window_bounds = array<i64: 32, 16>}, {transform_indices = @transform_5, window_bounds = array<i64: 1, 128, 16>}]} {
    %c0 = arith.constant 0 : index
    %c0_0 = arith.constant 0 : index
    %c0_1 = arith.constant 0 : index
    %0 = vector.load %arg2[%c0, %c0_0, %c0_1] : memref<1x128x16xbf16, #tpu.memory_space<vmem>>, vector<1x128x16xbf16>
    %1 = vector.shape_cast %0 : vector<1x128x16xbf16> to vector<128x16xbf16>
    %c0_2 = arith.constant 0 : index
    %c0_3 = arith.constant 0 : index
    %2 = vector.load %arg4[%c0_2, %c0_3] : memref<16x32xbf16, #tpu.memory_space<vmem>>, vector<16x32xbf16>
    %cst = arith.constant dense<0.000000e+00> : vector<128x32xf32>
    %3 = tpu.matmul %1, %2, %cst {dimension_numbers = #tpu.dot_dimension_numbers<[1], [0], [0], [1], [0, 0, 1, 1], [], []>} : vector<128x16xbf16>, vector<16x32xbf16>, vector<128x32xf32> -> vector<128x32xf32>
    %c0_4 = arith.constant 0 : index
    %c0_5 = arith.constant 0 : index
    %4 = vector.load %arg5[%c0_4, %c0_5] : memref<1x32xf32, #tpu.memory_space<vmem>>, vector<1x32xf32>
    %5 = vector.broadcast %4 : vector<1x32xf32> to vector<128x32xf32>
    %6 = arith.addf %3, %5 : vector<128x32xf32>
    %cst_6 = arith.constant 0.000000e+00 : f32
    %7 = vector.broadcast %cst_6 : f32 to vector<128x32xf32>
    %8 = arith.maximumf %6, %7 : vector<128x32xf32>
    %c0_7 = arith.constant 0 : index
    %c0_8 = arith.constant 0 : index
    %c0_9 = arith.constant 0 : index
    %9 = vector.load %arg3[%c0_7, %c0_8, %c0_9] : memref<1x128x32xbf16, #tpu.memory_space<vmem>>, vector<1x128x32xbf16>
    %10 = vector.shape_cast %9 : vector<1x128x32xbf16> to vector<128x32xbf16>
    %11 = arith.extf %10 : vector<128x32xbf16> to vector<128x32xf32>
    %12 = arith.mulf %11, %8 : vector<128x32xf32>
    %13 = arith.truncf %12 : vector<128x32xf32> to vector<128x32xbf16>
    %c0_10 = arith.constant 0 : index
    %c0_11 = arith.constant 0 : index
    %14 = vector.load %arg6[%c0_10, %c0_11] : memref<32x16xbf16, #tpu.memory_space<vmem>>, vector<32x16xbf16>
    %cst_12 = arith.constant dense<0.000000e+00> : vector<128x16xf32>
    %15 = tpu.matmul %13, %14, %cst_12 {dimension_numbers = #tpu.dot_dimension_numbers<[1], [0], [0], [1], [0, 0, 1, 1], [], []>} : vector<128x32xbf16>, vector<32x16xbf16>, vector<128x16xf32> -> vector<128x16xf32>
    %c0_13 = arith.constant 0 : index
    %c0_14 = arith.constant 0 : index
    %c0_15 = arith.constant 0 : index
    %16 = vector.load %arg7[%c0_13, %c0_14, %c0_15] : memref<1x128x16xf32, #tpu.memory_space<vmem>>, vector<1x128x16xf32>
    %17 = vector.shape_cast %16 : vector<1x128x16xf32> to vector<128x16xf32>
    %18 = vector.shape_cast %15 : vector<128x16xf32> to vector<1x128x16xf32>
    tpu.vector_store %arg7[%c0_13, %c0_14, %c0_15], %18 {strides = array<i32>} : memref<1x128x16xf32, #tpu.memory_space<vmem>>, vector<1x128x16xf32>,
    return
  }
  func.func @transform_0(%arg0: i32, %arg1: i32) -> (i32, i32, i32) {
    %c0_i32 = arith.constant 0 : i32
    %c0_i32_0 = arith.constant 0 : i32
    return %arg0, %arg1, %c0_i32 : i32, i32, i32
  }
  func.func @transform_1(%arg0: i32, %arg1: i32) -> (i32, i32, i32) {
    %c0_i32 = arith.constant 0 : i32
    %c0_i32_0 = arith.constant 0 : i32
    return %arg0, %arg1, %c0_i32 : i32, i32, i32
  }
  func.func @transform_2(%arg0: i32, %arg1: i32) -> (i32, i32) {
    %c0_i32 = arith.constant 0 : i32
    %c0_i32_0 = arith.constant 0 : i32
    %c0_i32_1 = arith.constant 0 : i32
    return %c0_i32, %c0_i32_0 : i32, i32
  }
  func.func @transform_3(%arg0: i32, %arg1: i32) -> (i32, i32) {
    %c0_i32 = arith.constant 0 : i32
    %c0_i32_0 = arith.constant 0 : i32
    %c0_i32_1 = arith.constant 0 : i32
    return %c0_i32, %c0_i32_0 : i32, i32
  }
  func.func @transform_4(%arg0: i32, %arg1: i32) -> (i32, i32) {
    %c0_i32 = arith.constant 0 : i32
    %c0_i32_0 = arith.constant 0 : i32
    %c0_i32_1 = arith.constant 0 : i32
    return %c0_i32, %c0_i32_0 : i32, i32
  }
  func.func @transform_5(%arg0: i32, %arg1: i32) -> (i32, i32, i32) {
    %c0_i32 = arith.constant 0 : i32
    %c0_i32_0 = arith.constant 0 : i32
    return %arg0, %arg1, %c0_i32 : i32, i32, i32
  }
}

</mosaic_0001>

<bundles_post_ra>
// kernel: conv_tasnet_forward.13
= control target key start
LH: loop header
LB: loop body
LE: loop exit
PB: predicated region body
PF: predicated region fallthrough
CT: control target
= control target key end

     0   :  { %s1030_s18 = smov 0   ;;  %s1032_s19 = smov 0   ;;  %s1175_s0 = inlined_call_operand.vmem [shape: bf16[2,128,16], index: 0, kind: input, shape index: {}]   ;;  %s1176_s1 = inlined_call_operand.vmem [shape: bf16[16,32], index: 1, kind: input, shape index: {}]   ;;  %s1177_s2 = inlined_call_operand.vmem [shape: f32[1,32], index: 2, kind: input, shape index: {}]   ;;  %s1178_s3 = inlined_call_operand.vmem [shape: bf16[2,128,32], index: 3, kind: output, shape index: {0}]   ;;  %s1179_s4 = inlined_call_operand.vmem [shape: f32[2,1,1,1], index: 4, kind: output, shape index: {1}]   ;;  %s1180_s5 = inlined_call_operand.vmem [shape: f32[2,1,1,1], index: 5, kind: output, shape index: {2}]  }
   0x1   :  { %s1034_s20 = smov 0  }
   0x2 LB: > { %s28_s21 = sadd.s32 1, %s994_s19  ;;  %p851_p0 = scmp.ge.s32.totalorder %s998_s20, 1  ;;  %s998_s20 = sphi %s1034_s20, %s16_s20   ;;  %s994_s19 = sphi %s1032_s19, %s1182_s19   ;;  %s990_s18 = sphi %s1030_s18, %s1181_s18  }
   0x3   : > { %p30_p1 = scmp.ge.s32.totalorder %s28_s21, 2  ;;  %p217_p2 = scmp.lt.s32.totalorder %s998_s20, 3 }
   0x5   : > { %s1184_s21 = smov (%p30_p1, %s28_s21), 0  ;;  %p218_p3 = pnand %p851_p0, %p217_p2 }
   0x6   : > { %v967_v0 = vld [vmem:[%s1176_s1] sm:$0xff] (!%p218_p3)   ;;  %p266_p4 = scmp.lt.s32.totalorder (!%p218_p3), %s990_s18, 1  ;;  %vm369_vm0 = vcmask (!%p218_p3), 130048   ;;  %vm571_vm1 = vcmask (!%p218_p3), 257024   ;;  %vm588_vm2 = vcmask (!%p218_p3), 261120   ;;  %vm630_vm3 = vcmask (!%p218_p3), 0  }
   0x7   : > { %221 = sbr.rel (%p218_p3) target bundleno = 480 (0x1e0), region = 32  ;;  %919 = vmatprep.subr.bf16.mxu0 (!%p218_p3), %v967_v0  ;;  %937 = vmatprep.subr.bf16.mxu1 (!%p218_p3), %v967_v0  ;;  %v1068_v9 = vld [vmem:[%s1177_s2] ss:$0 sm:$0xff] (!%p218_p3) }
   0x8   : > { %920 = vmatpush3.bf16.msra.mxu0 (!%p218_p3), %v967_v0  ;;  %938 = vmatpush3.bf16.msra.mxu1 (!%p218_p3), %v967_v0 }
   0xe   : > { %s1186_s18 = smov (!%p266_p4, %s990_s18), 1 }
   0xf   : > { %s892_s24 = sshll.u32 %s1186_s18, 6  ;;  %s290_s10 = scalar_lea.vmem %s1179_s4, %s1186_s18 }
  0x10   : > { %s273_s27 = scalar_lea.vmem %s1175_s0, %s892_s24  ;;  %s1076_s7 = scalar_lea.vmem %s1178_s3, %s892_s24 }
  0x11   : > { %v968_v1 = vld [vmem:[%s273_s27] sm:$0xff]   ;;  %v969_v2 = vld [vmem:[%s273_s27 + $0x8] sm:$0xff]   ;;  %v970_v3 = vld [vmem:[%s273_s27 + $0x10] sm:$0xff]   ;;  %s296_s14 = scalar_lea.vmem %s1180_s5, %s1186_s18 }
  0x12   : > { %921 = vmatprep.mubr.msk.bf16.mxu0 %vm369_vm0, %v968_v1  ;;  %v972_v4 = vld [vmem:[%s273_s27 + $0x20] sm:$0xff]   ;;  %v973_v5 = vld [vmem:[%s273_s27 + $0x28] sm:$0xff]   ;;  %v974_v6 = vld [vmem:[%s273_s27 + $0x30] sm:$0xff]  }
  0x13   : > { %922 = vmatmul.mubr.msk.bf16.vlgmr.msra.gmra.mrb[0].mxu0 %vm369_vm0, %v969_v2  ;;  %929 = vmatprep.mubr.msk.bf16.mxu1 %vm369_vm0, %v972_v4  ;;  %v971_v7 = vld [vmem:[%s273_s27 + $0x18] sm:$0xff]  }
  0x14   : > { %925 = vmatprep.mubr.msk.bf16.mxu0 %vm369_vm0, %v970_v3  ;;  %930 = vmatmul.mubr.msk.bf16.vlgmr.msra.gmra.mrb[0].mxu1 %vm369_vm0, %v973_v5  ;;  %v975_v8 = vld [vmem:[%s273_s27 + $0x38] sm:$0xff]  }
  0x15   : > { %933 = vmatprep.mubr.msk.bf16.mxu1 %vm369_vm0, %v974_v6 }
  0x1b   : > { %926 = vmatmul.mubr.msk.bf16.gmra.mrb[4].mxu0 %vm369_vm0, %v971_v7 }
  0x1c   : > { %934 = vmatmul.mubr.msk.bf16.gmra.mrb[4].mxu1 %vm369_vm0, %v975_v8 }
  0xe6   : > { %v923_v10 = vpop.f32.mrb[0].mxu0 }
  0xe7   : > { %v437_v11 = vadd.f32 %v923_v10, %v1068_v9  ;;  %v428_v12 = vpop.f32.mrb[1].mxu0  ;;  %v931_v20 = vpop.f32.mrb[0].mxu1 }
  0xe8   : > { %v429_v13 = vadd.f32 %v1068_v9, %v428_v12  ;;  %v924_v14 = vpop.f32.mrb[2].mxu0  ;;  %v460_v24 = vpop.f32.mrb[1].mxu1  ;;  %v469_v42 = vadd.f32 %v931_v20, %v1068_v9 }
  0xe9   : > { %v493_v15 = vmax.f32 %v437_v11, 0.0  ;;  %v440_v16 = vadd.f32 %v924_v14, %v1068_v9  ;;  %v431_v17 = vpop.f32.mrb[3].mxu0  ;;  %v932_v28 = vpop.f32.mrb[2].mxu1  ;;  %v461_v47 = vadd.f32 %v1068_v9, %v460_v24 }
  0xea   : > { %v491_v18 = vmax.f32 %v429_v13, 0.0  ;;  %v432_v19 = vadd.f32 %v1068_v9, %v431_v17  ;;  %v1083_v32 = vpop.f32.mrb[3].mxu1  ;;  %v501_v56 = vmax.f32 %v469_v42, 0.0  ;;  %v472_v13 = vadd.f32 %v932_v28, %v1068_v9 }
  0xeb   : > { %v896_v21 = vpack.c.bf16 %v493_v15, %v493_v15  ;;  %v634_v22 = vmul.f32 %v493_v15, %v493_v15  ;;  %v494_v23 = vmax.f32 %v440_v16, 0.0  ;;  %v592_v29 = vsel %vm588_vm2, %v493_v15, 0.0 }
  0xec   : > { %v894_v25 = vpack.c.bf16 %v491_v18, %v491_v18  ;;  %v632_v26 = vmul.f32 %v491_v18, %v491_v18  ;;  %v492_v27 = vmax.f32 %v432_v19, 0.0  ;;  %v589_v30 = vsel %vm588_vm2, %v491_v18, 0.0 }
  0xed   : > { %574 = vst.msk [vmem:[%s1076_s7 + $0x8] sm:$0xf] %vm571_vm1, %v896_v21  ;;  %v897_v31 = vpack.c.bf16 %v494_v23, %v494_v23  ;;  %v651_v33 = vsel %vm588_vm2, %v634_v22, 0.0  ;;  %v635_v38 = vmul.f32 %v494_v23, %v494_v23  ;;  %v594_v53 = vsel %vm588_vm2, %v494_v23, 0.0 }
  0xee   : > { %572 = vst.msk [vmem:[%s1076_s7] sm:$0xf] %vm571_vm1, %v894_v25  ;;  %v895_v34 = vpack.c.bf16 %v492_v27, %v492_v27  ;;  %v590_v35 = vsel %vm588_vm2, %v492_v27, 0.0  ;;  %v633_v36 = vmul.f32 %v492_v27, %v492_v27  ;;  %v927_v37 = vpop.f32.mrb[4].mxu0  ;;  %v648_v43 = vsel %vm588_vm2, %v632_v26, 0.0 }
  0xef   : > { %575 = vst.msk [vmem:[%s1076_s7 + $0xc] sm:$0xf] %vm571_vm1, %v897_v31  ;;  %v591_v39 = vadd.f32 %v590_v35, %v589_v30  ;;  %v453_v40 = vadd.f32 %v927_v37, %v1068_v9  ;;  %v444_v41 = vpop.f32.mrb[5].mxu0  ;;  %v935_v57 = vpop.f32.mrb[4].mxu1  ;;  %v653_v58 = vsel %vm588_vm2, %v635_v38, 0.0  ;;  %v499_v61 = vmax.f32 %v461_v47, 0.0 }
  0xf0   : > { %573 = vst.msk [vmem:[%s1076_s7 + $0x4] sm:$0xf] %vm571_vm1, %v895_v34  ;;  %v649_v44 = vsel %vm588_vm2, %v633_v36, 0.0  ;;  %v445_v45 = vadd.f32 %v1068_v9, %v444_v41  ;;  %v928_v46 = vpop.f32.mrb[6].mxu0  ;;  %v476_v62 = vpop.f32.mrb[5].mxu1  ;;  %v904_v12 = vpack.c.bf16 %v501_v56, %v501_v56  ;;  %v608_v25 = vsel %vm588_vm2, %v501_v56, 0.0 }
  0xf1   : > { %v593_v48 = vadd.f32 %v592_v29, %v591_v39  ;;  %v650_v49 = vadd.f32 %v649_v44, %v648_v43  ;;  %v497_v50 = vmax.f32 %v453_v40, 0.0  ;;  %v456_v51 = vadd.f32 %v928_v46, %v1068_v9  ;;  %v447_v52 = vpop.f32.mrb[7].mxu0  ;;  %v936_v3 = vpop.f32.mrb[6].mxu1 }
  0xf2   : > { %v495_v54 = vmax.f32 %v445_v45, 0.0  ;;  %v448_v55 = vadd.f32 %v1068_v9, %v447_v52  ;;  %v479_v8 = vpop.f32.mrb[7].mxu1  ;;  %582 = vst.msk [vmem:[%s1076_s7 + $0x28] sm:$0xf] %vm571_vm1, %v904_v12  ;;  %v902_v23 = vpack.c.bf16 %v499_v61, %v499_v61  ;;  %v640_v26 = vmul.f32 %v499_v61, %v499_v61 }
  0xf3   : > { %v652_v59 = vadd.f32 %v651_v33, %v650_v49  ;;  %v900_v60 = vpack.c.bf16 %v497_v50, %v497_v50  ;;  %v595_v0 = vadd.f32 %v594_v53, %v593_v48  ;;  %v638_v4 = vmul.f32 %v497_v50, %v497_v50 }
  0xf4   : > { %v898_v63 = vpack.c.bf16 %v495_v54, %v495_v54  ;;  %v596_v1 = vsel %vm588_vm2, %v495_v54, 0.0  ;;  %v636_v2 = vmul.f32 %v495_v54, %v495_v54  ;;  %v498_v6 = vmax.f32 %v456_v51, 0.0  ;;  %580 = vst.msk [vmem:[%s1076_s7 + $0x20] sm:$0xf] %vm571_vm1, %v902_v23 }
  0xf5   : > { %578 = vst.msk [vmem:[%s1076_s7 + $0x18] sm:$0xf] %vm571_vm1, %v900_v60  ;;  %v654_v5 = vadd.f32 %v653_v58, %v652_v59  ;;  %v496_v7 = vmax.f32 %v448_v55, 0.0  ;;  %v597_v10 = vadd.f32 %v596_v1, %v595_v0  ;;  %v600_v20 = vsel %vm588_vm2, %v497_v50, 0.0 }
  0xf6   : > { %576 = vst.msk [vmem:[%s1076_s7 + $0x10] sm:$0xf] %vm571_vm1, %v898_v63  ;;  %v655_v11 = vsel %vm588_vm2, %v636_v2, 0.0  ;;  %v901_v15 = vpack.c.bf16 %v498_v6, %v498_v6  ;;  %v639_v16 = vmul.f32 %v498_v6, %v498_v6  ;;  %v659_v21 = vsel %vm588_vm2, %v638_v4, 0.0 }
  0xf7   : > { %v656_v14 = vadd.f32 %v655_v11, %v654_v5  ;;  %v899_v17 = vpack.c.bf16 %v496_v7, %v496_v7  ;;  %v598_v18 = vsel %vm588_vm2, %v496_v7, 0.0  ;;  %v637_v19 = vmul.f32 %v496_v7, %v496_v7 }
  0xf8   : > { %579 = vst.msk [vmem:[%s1076_s7 + $0x1c] sm:$0xf] %vm571_vm1, %v901_v15  ;;  %v599_v22 = vadd.f32 %v598_v18, %v597_v10  ;;  %v502_v27 = vmax.f32 %v472_v13, 0.0  ;;  %v464_v30 = vadd.f32 %v1068_v9, %v1083_v32  ;;  %v485_v31 = vadd.f32 %v935_v57, %v1068_v9 }
  0xf9   : > { %577 = vst.msk [vmem:[%s1076_s7 + $0x14] sm:$0xf] %vm571_vm1, %v899_v17  ;;  %v657_v24 = vsel %vm588_vm2, %v637_v19, 0.0  ;;  %v602_v33 = vsel %vm588_vm2, %v498_v6, 0.0  ;;  %v661_v34 = vsel %vm588_vm2, %v639_v16, 0.0  ;;  %v604_v35 = vsel %vm588_vm2, %v499_v61, 0.0 }
  0xfa   : > { %v601_v28 = vadd.f32 %v600_v20, %v599_v22  ;;  %v658_v29 = vadd.f32 %v657_v24, %v656_v14  ;;  %v905_v36 = vpack.c.bf16 %v502_v27, %v502_v27  ;;  %v500_v39 = vmax.f32 %v464_v30, 0.0 }
  0xfb   : > { %v505_v40 = vmax.f32 %v485_v31, 0.0  ;;  %v663_v41 = vsel %vm588_vm2, %v640_v26, 0.0  ;;  %v477_v32 = vadd.f32 %v1068_v9, %v476_v62  ;;  %v488_v42 = vadd.f32 %v936_v3, %v1068_v9 }
  0xfc   : > { %v660_v37 = vadd.f32 %v659_v21, %v658_v29  ;;  %v603_v38 = vadd.f32 %v602_v33, %v601_v28  ;;  %583 = vst.msk [vmem:[%s1076_s7 + $0x2c] sm:$0xf] %vm571_vm1, %v905_v36  ;;  %v480_v43 = vadd.f32 %v1068_v9, %v479_v8  ;;  %v642_v44 = vmul.f32 %v501_v56, %v501_v56 }
  0xfd   : > { %v903_v47 = vpack.c.bf16 %v500_v39, %v500_v39  ;;  %v606_v48 = vsel %vm588_vm2, %v500_v39, 0.0  ;;  %v641_v49 = vmul.f32 %v500_v39, %v500_v39  ;;  %v908_v50 = vpack.c.bf16 %v505_v40, %v505_v40 }
  0xfe   : > { %v605_v45 = vadd.f32 %v604_v35, %v603_v38  ;;  %v662_v46 = vadd.f32 %v661_v34, %v660_v37  ;;  %v503_v51 = vmax.f32 %v477_v32, 0.0  ;;  %v506_v54 = vmax.f32 %v488_v42, 0.0 }
  0xff   : > { %581 = vst.msk [vmem:[%s1076_s7 + $0x24] sm:$0xf] %vm571_vm1, %v903_v47  ;;  %v504_v55 = vmax.f32 %v480_v43, 0.0  ;;  %v643_v9 = vmul.f32 %v502_v27, %v502_v27  ;;  %v665_v56 = vsel %vm588_vm2, %v641_v49, 0.0  ;;  %586 = vst.msk [vmem:[%s1076_s7 + $0x38] sm:$0xf] %vm571_vm1, %v908_v50  ;;  %v646_v10 = vmul.f32 %v505_v40, %v505_v40 }
 0x100   : > { %v664_v52 = vadd.f32 %v663_v41, %v662_v46  ;;  %v607_v53 = vadd.f32 %v606_v48, %v605_v45  ;;  %v906_v57 = vpack.c.bf16 %v503_v51, %v503_v51  ;;  %v644_v58 = vmul.f32 %v503_v51, %v503_v51 }
 0x101   : > { %v909_v61 = vpack.c.bf16 %v506_v54, %v506_v54  ;;  %v907_v62 = vpack.c.bf16 %v504_v55, %v504_v55  ;;  %v667_v63 = vsel %vm588_vm2, %v642_v44, 0.0  ;;  %v610_v0 = vsel %vm588_vm2, %v502_v27, 0.0 }
 0x102   : > { %v609_v59 = vadd.f32 %v608_v25, %v607_v53  ;;  %v666_v60 = vadd.f32 %v665_v56, %v664_v52  ;;  %584 = vst.msk [vmem:[%s1076_s7 + $0x30] sm:$0xf] %vm571_vm1, %v906_v57  ;;  %v612_v1 = vsel %vm588_vm2, %v503_v51, 0.0  ;;  %v669_v4 = vsel %vm588_vm2, %v643_v9, 0.0 }
 0x103   : > { %587 = vst.msk [vmem:[%s1076_s7 + $0x3c] sm:$0xf] %vm571_vm1, %v909_v61  ;;  %585 = vst.msk [vmem:[%s1076_s7 + $0x34] sm:$0xf] %vm571_vm1, %v907_v62  ;;  %v671_v5 = vsel %vm588_vm2, %v644_v58, 0.0  ;;  %v645_v6 = vmul.f32 %v504_v55, %v504_v55  ;;  %v614_v11 = vsel %vm588_vm2, %v504_v55, 0.0  ;;  %v647_v15 = vmul.f32 %v506_v54, %v506_v54 }
 0x104   : > { %v668_v2 = vadd.f32 %v667_v63, %v666_v60  ;;  %v611_v3 = vadd.f32 %v610_v0, %v609_v59  ;;  %v616_v14 = vsel %vm588_vm2, %v505_v40, 0.0  ;;  %v618_v19 = vsel %vm588_vm2, %v506_v54, 0.0 }
 0x105   : > { %v673_v16 = vsel %vm588_vm2, %v645_v6, 0.0  ;;  %v675_v20 = vsel %vm588_vm2, %v646_v10, 0.0  ;;  %v677_v23 = vsel %vm588_vm2, %v647_v15, 0.0 }
 0x106   : > { %v613_v7 = vadd.f32 %v612_v1, %v611_v3  ;;  %v670_v8 = vadd.f32 %v669_v4, %v668_v2 }
 0x108   : > { %v615_v12 = vadd.f32 %v614_v11, %v613_v7  ;;  %v672_v13 = vadd.f32 %v671_v5, %v670_v8 }
 0x10a   : > { %v617_v17 = vadd.f32 %v616_v14, %v615_v12  ;;  %v674_v18 = vadd.f32 %v673_v16, %v672_v13 }
 0x10c   : > { %v619_v21 = vadd.f32 %v618_v19, %v617_v17  ;;  %v676_v22 = vadd.f32 %v675_v20, %v674_v18 }
 0x10e   : > { %620 = vadd.xlane.f32.xlu0 %v619_v21  ;;  %v678_v24 = vadd.f32 %v677_v23, %v676_v22 }
 0x112   : > { %679 = vadd.xlane.f32.xlu0 %v678_v24 }
 0x19b   : > { %v621_v25 = vpop.xlane.xlu0 %620 }
 0x19c   : > { %v622_v26 = vrot.slane %v621_v25, 4 }
 0x19e   : > { %v623_v27 = vadd.f32 %v622_v26, %v621_v25 }
 0x19f   : > { %v680_v28 = vpop.xlane.xlu0 %679 }
 0x1a0   : > { %v624_v29 = vrot.slane %v623_v27, 2  ;;  %v681_v30 = vrot.slane %v680_v28, 4 }
 0x1a2   : > { %v682_v31 = vadd.f32 %v681_v30, %v680_v28  ;;  %v625_v33 = vadd.f32 %v624_v29, %v623_v27 }
 0x1a4   : > { %v683_v34 = vrot.slane %v682_v31, 2  ;;  %v626_v35 = vrot.slane %v625_v33, 1 }
 0x1a6   : > { %v684_v36 = vadd.f32 %v683_v34, %v682_v31  ;;  %v627_v37 = vadd.f32 %v626_v35, %v625_v33 }
 0x1a8   : > { %939 = vpush %v627_v37  ;;  %v685_v38 = vrot.slane %v684_v36, 1 }
 0x1aa   : > { %v686_v39 = vadd.f32 %v685_v38, %v684_v36 }
 0x1ac   : > { %941 = vpush %v686_v39 }
 0x1d9   : > { %s940_s11 = spop %939 }
 0x1da   : > { %v629_v40 = vstv %s940_s11 }
 0x1db   : > { %631 = vst.msk [vmem:[%s290_s10] sm:$0x1] %vm630_vm3, %v629_v40 }
 0x1dd   : > { %s942_s15 = spop %941 }
 0x1de   : > { %v688_v41 = vstv %s942_s15 }
 0x1df   : > { %689 = vst.msk [vmem:[%s296_s14] sm:$0x1] %vm630_vm3, %v688_v41 }
 0x1e0 PF: > { %s16_s20 = sadd.s32 1, %s998_s20   ;;  %s1181_s18 = smov %s994_s19 }
 0x1e1   : > { %p13_p5 = scmp.ge.s32.totalorder %s16_s20, 4   ;;  %s1182_s19 = smov %s1184_s21 }
 0x1e3   :  { %15 = sbr.rel (!%p13_p5) target bundleno = 2 (0x2), region = 86 }

// kernel: conv_tasnet_forward.14
= control target key start
LH: loop header
LB: loop body
LE: loop exit
PB: predicated region body
PF: predicated region fallthrough
CT: control target
= control target key end

     0   :  { %12 = vsyncpa [#allocation3], 0  ;;  %s1313_s0 = inlined_call_operand.vmem [shape: bf16[2,128,32], index: 0, kind: input, shape index: {}]   ;;  %s1314_s1 = inlined_call_operand.vmem [shape: f32[2], index: 1, kind: input, shape index: {}]   ;;  %s1315_s2 = inlined_call_operand.vmem [shape: f32[2], index: 2, kind: input, shape index: {}]   ;;  %s1316_s3 = inlined_call_operand.vmem [shape: f32[1,32], index: 3, kind: input, shape index: {}]   ;;  %s1317_s4 = inlined_call_operand.vmem [shape: f32[1,32], index: 4, kind: input, shape index: {}]   ;;  %s1318_s5 = inlined_call_operand.vmem [shape: bf16[32,16], index: 5, kind: input, shape index: {}]   ;;  %s1319_s6 = inlined_call_operand.vmem [shape: f32[1,16], index: 6, kind: input, shape index: {}]   ;;  %s1320_s7 = inlined_call_operand.vmem [shape: bf16[2,128,16], index: 7, kind: output, shape index: {}]  }
   0x1   :  { %13 = vsyncpa [#allocation5], 0  ;;  %s1089_s24 = smov 0   ;;  %s1091_s25 = smov 0  }
   0x2   :  { %s1093_s26 = smov 0  }
   0x3 LB: > { %s803_s27 = sadd.s32 4294967295, %s1045_s26   ;;  %s31_s28 = sadd.s32 1, %s1041_s25  ;;  %s1045_s26 = sphi %s1093_s26, %s19_s26   ;;  %s1041_s25 = sphi %s1091_s25, %s1330_s25   ;;  %s1037_s24 = sphi %s1089_s24, %s1329_s24  }
   0x4   : > { %p33_p0 = scmp.ge.s32.totalorder %s31_s28, 2  ;;  %p805_p1 = scmp.ge.s32.totalorder %s1045_s26, 1 }
   0x5   : > { %p218_p2 = scmp.lt.s32.totalorder %s1045_s26, 3  ;;  %p1114_p4 = scmp.eq.s32.totalorder %s803_s27, 0 }
   0x6   : > { %s1332_s28 = smov (%p33_p0, %s31_s28), 0  ;;  %s231_s10 = sshll.u32 %s1314_s1, 4  ;;  %s232_s10 = int_to_ptr.vmem [resolvable:$true] %s231_s10 }
   0x7   : > { %p1110_p3 = pnand %p805_p1, %p218_p2  ;;  %s242_s13 = sshll.u32 %s1315_s2, 4  ;;  %s243_s13 = int_to_ptr.vmem [resolvable:$true] %s242_s13 }
   0x8   : > { %s1325_s30 = scalar_select %p1114_p4, 1, 0 }
   0x9   : > { %s1324_s29 = scalar_select %p1110_p3, 1, 0 }
   0xa   : > { %p946_p5 = pneg %p1110_p3  ;;  %s985_s15 = scalar_lea.vmem %s232_s10, 16 }
   0xb   : > { %p986_p7 = scmp.ne.s32.totalorder %s232_s10, %s985_s15  ;;  %p993_p11 = scmp.lt.s32.totalorder %s232_s10, %s232_s10 }
   0xc   : > { %p1128_p6 = pnand %p1114_p4, %p946_p5  ;;  %p994_p12 = scmp.lt.s32.totalorder %s985_s15, %s985_s15 }
   0xe   : > { %p987_p8 = pneg %p1128_p6  ;;  %p995_p13 = por %p994_p12, %p993_p11 }
  0x10   : > { %p988_p9 = pnand %p987_p8, %p986_p7 }
  0x12   : > { %p989_p10 = pneg %p988_p9 }
  0x14   : > { %p996_p0 = pnand %p995_p13, %p989_p10 }
  0x16   : > { %999 = shalt.err (!%p996_p0)
}
  0x17   : > { %s1047_s16 = smov [#allocation2]   ;;  %s1000_s17 = scalar_lea.vmem %s243_s13, 16 }
  0x18   : > { %949 = dma.vmem_to_smem (!%p1128_p6), %s232_s10, 16, %s1047_s16, [#allocation3]  }
  0x19   : > { %p1001_p1 = scmp.ne.s32.totalorder %s243_s13, %s1000_s17  ;;  %p1008_p4 = scmp.lt.s32.totalorder %s243_s13, %s243_s13 }
  0x1a   : > { %p1009_p3 = scmp.lt.s32.totalorder %s1000_s17, %s1000_s17 }
  0x1b   : > { %p1003_p2 = pnand %p1001_p1, %p987_p8 }
  0x1c   : > { %p1010_p7 = por %p1009_p3, %p1008_p4 }
  0x1d   : > { %p1004_p5 = pneg %p1003_p2 }
  0x1f   : > { %p1011_p9 = pnand %p1010_p7, %p1004_p5 }
  0x21   : > { %1014 = shalt.err (!%p1011_p9)
}
  0x22   : > { %s1048_s18 = smov [#allocation4]   ;;  %p1327_p10 = scmp.ne.s32.totalorder %s1324_s29, 0 }
  0x23   : > { %952 = dma.vmem_to_smem (!%p1128_p6), %s243_s13, 16, %s1048_s18, [#allocation5]  }
  0x24   : > { %280 = sbr.rel (%p1327_p10) target bundleno = 302 (0x12e), region = 48  ;;  %p1328_p11 = scmp.ne.s32.totalorder (!%p1327_p10), %s1325_s30, 0 }
  0x2b   : > { %1028 = dma.done.wait (%p1328_p11), [#allocation3], 16  }
  0x2c   : > { %1030 = vsyncadd (%p1328_p11), [#allocation3], 4294967280 }
  0x2d   : > { %1032 = dma.done.wait (%p1328_p11), [#allocation5], 16  }
  0x2e   : > { %1034 = vsyncadd (%p1328_p11), [#allocation5], 4294967280 }
  0x2f   : > { %290 = sfence }
  0x30   : > { %v983_v0 = vld [vmem:[%s1318_s5] sm:$0xff]   ;;  %p326_p3 = scmp.lt.s32.totalorder %s1037_s24, 1  ;;  %v984_v1 = vld [vmem:[%s1318_s5 + $0x8] sm:$0xff]   ;;  %s378_s23 = sld [smem:[#allocation2 + %s1037_s24]]  ;;  %vm491_vm0 = vcmask 261120   ;;  %vm677_vm1 = vcmask 125952  }
  0x31   : > { %914 = vmatprep.subr.bf16.mxu0 %v983_v0  ;;  %934 = vmatprep.subr.bf16.mxu1 %v983_v0  ;;  %s396_s29 = sld [smem:[#allocation4 + %s1037_s24]]  ;;  %v1182_v18 = vld [vmem:[%s1316_s3] ss:$0 sm:$0xff] }
  0x32   : > { %s1157_s27 = scalar_select %p326_p3, %s1037_s24, 1  ;;  %915 = vmatpush3.bf16.msra.mxu0 %v983_v0  ;;  %936 = vmatpush3.bf16.msra.mxu1 %v983_v0  ;;  %v1194_v27 = vld [vmem:[%s1317_s4] ss:$0 sm:$0xff] }
  0x33   : > { %916 = vmatprep.subr.bf16.mxu0 %v984_v1  ;;  %935 = vmatprep.subr.bf16.mxu1 %v984_v1 }
  0x34   : > { %s847_s30 = sshll.u32 %s1157_s27, 6 }
  0x35   : > { %s1166_s10 = scalar_lea.vmem %s1313_s0, %s847_s30  ;;  %s1270_s18 = scalar_lea.vmem %s1320_s7, %s847_s30 }
  0x36   : > { %v866_v2 = vld [vmem:[%s1166_s10] sm:$0xff]   ;;  %v897_v4 = vld [vmem:[%s1166_s10 + $0x8] sm:$0xff]   ;;  %917 = vmatpush3.bf16.msra.mxu0 %v984_v1  ;;  %937 = vmatpush3.bf16.msra.mxu1 %v984_v1  ;;  %v1171_v7 = vstv %s378_s23  ;;  %v898_v40 = vld [vmem:[%s1166_s10 + $0x10] sm:$0xff]  }
  0x37   : > { %v900_v3 = vld [vmem:[%s1166_s10 + $0x20] sm:$0xff]   ;;  %v867_v5 = vunpack.c.l.bf16 %v866_v2  ;;  %v868_v6 = vunpack.c.h.bf16 %v866_v2  ;;  %v901_v9 = vld [vmem:[%s1166_s10 + $0x28] sm:$0xff]   ;;  %v871_v11 = vunpack.c.l.bf16 %v897_v4  ;;  %v872_v12 = vunpack.c.h.bf16 %v897_v4  ;;  %v902_v45 = vld [vmem:[%s1166_s10 + $0x30] sm:$0xff]  }
  0x38   : > { %v883_v8 = vunpack.c.l.bf16 %v900_v3  ;;  %v884_v10 = vunpack.c.h.bf16 %v900_v3  ;;  %v887_v13 = vunpack.c.l.bf16 %v901_v9  ;;  %v1176_v16 = vstv %s396_s29  ;;  %v899_v50 = vld [vmem:[%s1166_s10 + $0x18] sm:$0xff]  }
  0x39   : > { %v380_v14 = vsub.f32 %v867_v5, %v1171_v7  ;;  %v381_v15 = vsub.f32 %v868_v6, %v1171_v7  ;;  %v382_v20 = vsub.f32 %v871_v11, %v1171_v7  ;;  %v383_v21 = vsub.f32 %v872_v12, %v1171_v7  ;;  %v903_v55 = vld [vmem:[%s1166_s10 + $0x38] sm:$0xff]  }
  0x3a   : > { %v388_v17 = vsub.f32 %v883_v8, %v1171_v7  ;;  %v389_v19 = vsub.f32 %v884_v10, %v1171_v7  ;;  %v888_v22 = vunpack.c.h.bf16 %v901_v9  ;;  %v390_v26 = vsub.f32 %v887_v13, %v1171_v7 }
  0x3b   : > { %v398_v23 = vmul.f32 %v1176_v16, %v380_v14  ;;  %v399_v24 = vmul.f32 %v1176_v16, %v381_v15  ;;  %v400_v29 = vmul.f32 %v1176_v16, %v382_v20  ;;  %v401_v30 = vmul.f32 %v1176_v16, %v383_v21 }
  0x3c   : > { %v406_v25 = vmul.f32 %v1176_v16, %v388_v17  ;;  %v407_v28 = vmul.f32 %v1176_v16, %v389_v19  ;;  %v391_v31 = vsub.f32 %v888_v22, %v1171_v7  ;;  %v408_v35 = vmul.f32 %v1176_v16, %v390_v26 }
  0x3d   : > { %v421_v32 = vmul.f32 %v1182_v18, %v398_v23  ;;  %v422_v33 = vmul.f32 %v1182_v18, %v399_v24  ;;  %v423_v37 = vmul.f32 %v1182_v18, %v400_v29  ;;  %v424_v38 = vmul.f32 %v1182_v18, %v401_v30 }
  0x3e   : > { %v429_v34 = vmul.f32 %v1182_v18, %v406_v25  ;;  %v430_v36 = vmul.f32 %v1182_v18, %v407_v28  ;;  %v409_v39 = vmul.f32 %v1176_v16, %v391_v31  ;;  %v431_v44 = vmul.f32 %v1182_v18, %v408_v35 }
  0x3f   : > { %v444_v41 = vadd.f32 %v1194_v27, %v421_v32  ;;  %v445_v42 = vadd.f32 %v1194_v27, %v422_v33  ;;  %v446_v47 = vadd.f32 %v1194_v27, %v423_v37  ;;  %v447_v48 = vadd.f32 %v1194_v27, %v424_v38 }
  0x40   : > { %v452_v43 = vadd.f32 %v1194_v27, %v429_v34  ;;  %v453_v46 = vadd.f32 %v1194_v27, %v430_v36  ;;  %v432_v49 = vmul.f32 %v1182_v18, %v409_v39  ;;  %v454_v52 = vadd.f32 %v1194_v27, %v431_v44 }
  0x41   : > { %v460_v51 = vpack.c.bf16 %v445_v42, %v444_v41  ;;  %v875_v53 = vunpack.c.l.bf16 %v898_v40  ;;  %v876_v54 = vunpack.c.h.bf16 %v898_v40  ;;  %v461_v57 = vpack.c.bf16 %v447_v48, %v446_v47  ;;  %v818_v40 = vld [vmem:[%s1319_s6] ss:$0 sm:$0xff] }
  0x42   : > { %v464_v56 = vpack.c.bf16 %v453_v46, %v452_v43  ;;  %v455_v58 = vadd.f32 %v1194_v27, %v432_v49  ;;  %v891_v59 = vunpack.c.l.bf16 %v902_v45  ;;  %v892_v62 = vunpack.c.h.bf16 %v902_v45 }
  0x43   : > { %918 = vmatprep.mubr.msk.bf16.mxu0 %vm491_vm0, %v460_v51  ;;  %v384_v60 = vsub.f32 %v875_v53, %v1171_v7  ;;  %v385_v61 = vsub.f32 %v876_v54, %v1171_v7  ;;  %v879_v63 = vunpack.c.l.bf16 %v899_v50  ;;  %v880_v2 = vunpack.c.h.bf16 %v899_v50 }
  0x44   : > { %926 = vmatprep.mubr.msk.bf16.mxu1 %vm491_vm0, %v464_v56  ;;  %919 = vmatmul.mubr.msk.bf16.vlgmr.msra.gmra.mrb[0].mxu0 %vm491_vm0, %v461_v57  ;;  %v465_v0 = vpack.c.bf16 %v455_v58, %v454_v52  ;;  %v392_v1 = vsub.f32 %v891_v59, %v1171_v7  ;;  %v895_v3 = vunpack.c.l.bf16 %v903_v55  ;;  %v393_v6 = vsub.f32 %v892_v62, %v1171_v7 }
  0x45   : > { %v402_v4 = vmul.f32 %v1176_v16, %v384_v60  ;;  %v403_v5 = vmul.f32 %v1176_v16, %v385_v61  ;;  %v386_v8 = vsub.f32 %v879_v63, %v1171_v7  ;;  %v387_v10 = vsub.f32 %v880_v2, %v1171_v7 }
  0x46   : > { %927 = vmatmul.mubr.msk.bf16.vlgmr.msra.gmra.mrb[0].mxu1 %vm491_vm0, %v465_v0  ;;  %v410_v9 = vmul.f32 %v1176_v16, %v392_v1  ;;  %v896_v11 = vunpack.c.h.bf16 %v903_v55  ;;  %v394_v12 = vsub.f32 %v895_v3, %v1171_v7  ;;  %v411_v15 = vmul.f32 %v1176_v16, %v393_v6 }
  0x47   : > { %v425_v13 = vmul.f32 %v1182_v18, %v402_v4  ;;  %v426_v14 = vmul.f32 %v1182_v18, %v403_v5  ;;  %v404_v17 = vmul.f32 %v1176_v16, %v386_v8  ;;  %v405_v20 = vmul.f32 %v1176_v16, %v387_v10 }
  0x48   : > { %v433_v19 = vmul.f32 %v1182_v18, %v410_v9  ;;  %v395_v21 = vsub.f32 %v896_v11, %v1171_v7  ;;  %v412_v22 = vmul.f32 %v1176_v16, %v394_v12  ;;  %v434_v25 = vmul.f32 %v1182_v18, %v411_v15 }
  0x49   : > { %v448_v23 = vadd.f32 %v1194_v27, %v425_v13  ;;  %v449_v24 = vadd.f32 %v1194_v27, %v426_v14  ;;  %v427_v26 = vmul.f32 %v1182_v18, %v404_v17  ;;  %v428_v29 = vmul.f32 %v1182_v18, %v405_v20 }
  0x4a   : > { %v456_v28 = vadd.f32 %v1194_v27, %v433_v19  ;;  %v413_v30 = vmul.f32 %v1176_v16, %v395_v21  ;;  %v435_v31 = vmul.f32 %v1182_v18, %v412_v22  ;;  %v457_v7 = vadd.f32 %v1194_v27, %v434_v25 }
  0x4b   : > { %v462_v32 = vpack.c.bf16 %v449_v24, %v448_v23  ;;  %v450_v33 = vadd.f32 %v1194_v27, %v427_v26  ;;  %v451_v34 = vadd.f32 %v1194_v27, %v428_v29 }
  0x4c   : > { %v436_v35 = vmul.f32 %v1182_v18, %v413_v30  ;;  %v458_v36 = vadd.f32 %v1194_v27, %v435_v31  ;;  %v466_v37 = vpack.c.bf16 %v457_v7, %v456_v28 }
  0x4d   : > { %922 = vmatprep.mubr.msk.bf16.mxu0 %vm491_vm0, %v462_v32  ;;  %v463_v38 = vpack.c.bf16 %v451_v34, %v450_v33 }
  0x4e   : > { %v459_v16 = vadd.f32 %v1194_v27, %v436_v35  ;;  %930 = vmatprep.mubr.msk.bf16.mxu1 %vm491_vm0, %v466_v37 }
  0x4f   : > { %923 = vmatmul.mubr.msk.bf16.gmra.mrb[4].mxu0 %vm491_vm0, %v463_v38 }
  0x50   : > { %v467_v39 = vpack.c.bf16 %v459_v16, %v458_v36 }
  0x52   : > { %931 = vmatmul.mubr.msk.bf16.gmra.mrb[4].mxu1 %vm491_vm0, %v467_v39 }
 0x117   : > { %v920_v18 = vpop.f32.mrb[0].mxu0 }
 0x118   : > { %v559_v41 = vadd.f32 %v920_v18, %v818_v40  ;;  %v550_v42 = vpop.f32.mrb[1].mxu0 }
 0x119   : > { %v928_v27 = vpop.f32.mrb[0].mxu1  ;;  %v551_v43 = vadd.f32 %v818_v40, %v550_v42  ;;  %v921_v44 = vpop.f32.mrb[2].mxu0 }
 0x11a   : > { %v851_v45 = vpack.c.bf16 %v559_v41, %v559_v41  ;;  %v591_v46 = vadd.f32 %v928_v27, %v818_v40  ;;  %v582_v47 = vpop.f32.mrb[1].mxu1  ;;  %v562_v48 = vadd.f32 %v921_v44, %v818_v40  ;;  %v553_v49 = vpop.f32.mrb[3].mxu0 }
 0x11b   : > { %v849_v50 = vpack.c.bf16 %v551_v43, %v551_v43  ;;  %v583_v51 = vadd.f32 %v818_v40, %v582_v47  ;;  %v929_v52 = vpop.f32.mrb[2].mxu1  ;;  %v554_v53 = vadd.f32 %v818_v40, %v553_v49 }
 0x11c   : > { %680 = vst.msk [vmem:[%s1270_s18 + $0x8] sm:$0xf] %vm677_vm1, %v851_v45  ;;  %v859_v54 = vpack.c.bf16 %v591_v46, %v591_v46  ;;  %v852_v55 = vpack.c.bf16 %v562_v48, %v562_v48  ;;  %v594_v56 = vadd.f32 %v929_v52, %v818_v40  ;;  %v585_v57 = vpop.f32.mrb[3].mxu1 }
 0x11d   : > { %678 = vst.msk [vmem:[%s1270_s18] sm:$0xf] %vm677_vm1, %v849_v50  ;;  %v857_v58 = vpack.c.bf16 %v583_v51, %v583_v51  ;;  %v850_v59 = vpack.c.bf16 %v554_v53, %v554_v53  ;;  %v586_v60 = vadd.f32 %v818_v40, %v585_v57 }
 0x11e   : > { %688 = vst.msk [vmem:[%s1270_s18 + $0x28] sm:$0xf] %vm677_vm1, %v859_v54  ;;  %681 = vst.msk [vmem:[%s1270_s18 + $0xc] sm:$0xf] %vm677_vm1, %v852_v55  ;;  %v860_v61 = vpack.c.bf16 %v594_v56, %v594_v56 }
 0x11f   : > { %686 = vst.msk [vmem:[%s1270_s18 + $0x20] sm:$0xf] %vm677_vm1, %v857_v58  ;;  %679 = vst.msk [vmem:[%s1270_s18 + $0x4] sm:$0xf] %vm677_vm1, %v850_v59  ;;  %v858_v62 = vpack.c.bf16 %v586_v60, %v586_v60 }
 0x120   : > { %689 = vst.msk [vmem:[%s1270_s18 + $0x2c] sm:$0xf] %vm677_vm1, %v860_v61 }
 0x121   : > { %687 = vst.msk [vmem:[%s1270_s18 + $0x24] sm:$0xf] %vm677_vm1, %v858_v62 }
 0x122   : > { %v924_v63 = vpop.f32.mrb[4].mxu0 }
 0x123   : > { %v575_v0 = vadd.f32 %v924_v63, %v818_v40  ;;  %v566_v1 = vpop.f32.mrb[5].mxu0 }
 0x124   : > { %v567_v3 = vadd.f32 %v818_v40, %v566_v1  ;;  %v925_v4 = vpop.f32.mrb[6].mxu0 }
 0x125   : > { %v932_v2 = vpop.f32.mrb[4].mxu1  ;;  %v855_v5 = vpack.c.bf16 %v575_v0, %v575_v0  ;;  %v578_v9 = vadd.f32 %v925_v4, %v818_v40  ;;  %v569_v10 = vpop.f32.mrb[7].mxu0 }
 0x126   : > { %v607_v6 = vadd.f32 %v932_v2, %v818_v40  ;;  %v598_v8 = vpop.f32.mrb[5].mxu1  ;;  %v853_v11 = vpack.c.bf16 %v567_v3, %v567_v3  ;;  %v570_v14 = vadd.f32 %v818_v40, %v569_v10 }
 0x127   : > { %v599_v12 = vadd.f32 %v818_v40, %v598_v8  ;;  %v933_v13 = vpop.f32.mrb[6].mxu1  ;;  %684 = vst.msk [vmem:[%s1270_s18 + $0x18] sm:$0xf] %vm677_vm1, %v855_v5  ;;  %v856_v17 = vpack.c.bf16 %v578_v9, %v578_v9 }
 0x128   : > { %v863_v15 = vpack.c.bf16 %v607_v6, %v607_v6  ;;  %v610_v19 = vadd.f32 %v933_v13, %v818_v40  ;;  %v601_v20 = vpop.f32.mrb[7].mxu1  ;;  %682 = vst.msk [vmem:[%s1270_s18 + $0x10] sm:$0xf] %vm677_vm1, %v853_v11  ;;  %v854_v22 = vpack.c.bf16 %v570_v14, %v570_v14 }
 0x129   : > { %v861_v21 = vpack.c.bf16 %v599_v12, %v599_v12  ;;  %v602_v23 = vadd.f32 %v818_v40, %v601_v20  ;;  %685 = vst.msk [vmem:[%s1270_s18 + $0x1c] sm:$0xf] %vm677_vm1, %v856_v17 }
 0x12a   : > { %692 = vst.msk [vmem:[%s1270_s18 + $0x38] sm:$0xf] %vm677_vm1, %v863_v15  ;;  %v864_v24 = vpack.c.bf16 %v610_v19, %v610_v19  ;;  %683 = vst.msk [vmem:[%s1270_s18 + $0x14] sm:$0xf] %vm677_vm1, %v854_v22 }
 0x12b   : > { %690 = vst.msk [vmem:[%s1270_s18 + $0x30] sm:$0xf] %vm677_vm1, %v861_v21  ;;  %v862_v25 = vpack.c.bf16 %v602_v23, %v602_v23 }
 0x12c   : > { %693 = vst.msk [vmem:[%s1270_s18 + $0x3c] sm:$0xf] %vm677_vm1, %v864_v24 }
 0x12d   : > { %691 = vst.msk [vmem:[%s1270_s18 + $0x34] sm:$0xf] %vm677_vm1, %v862_v25 }
 0x12e PF: > { %s19_s26 = sadd.s32 1, %s1045_s26   ;;  %s1329_s24 = smov %s1041_s25 }
 0x12f   : > { %p16_p4 = scmp.ge.s32.totalorder %s19_s26, 4   ;;  %s1330_s25 = smov %s1332_s28 }
 0x131   :  { %18 = sbr.rel (!%p16_p4) target bundleno = 3 (0x3), region = 87 }
 0x138   :  { %724 = vsyncpa [#allocation3], 1 }
 0x139   :  { %726 = vsyncpa [#allocation3 + $0x1], 1 }
 0x13a   :  { %727 = vsyncpa [#allocation5], 1 }

// kernel: conv_tasnet_forward.15
= control target key start
LH: loop header
LB: loop body
LE: loop exit
PB: predicated region body
PF: predicated region fallthrough
CT: control target
= control target key end

     0   :  { %s1636_s15 = smov 0   ;;  %s1638_s16 = smov 0   ;;  %s1895_s0 = inlined_call_operand.vmem [shape: bf16[2,128,16], index: 0, kind: input, shape index: {}]   ;;  %s1896_s1 = inlined_call_operand.vmem [shape: bf16[16,16], index: 1, kind: input, shape index: {}]   ;;  %s1897_s2 = inlined_call_operand.vmem [shape: f32[1,16], index: 2, kind: input, shape index: {}]   ;;  %s1898_s3 = inlined_call_operand.vmem [shape: f32[2,1,16], index: 3, kind: input, shape index: {}]   ;;  %s1899_s4 = inlined_call_operand.vmem [shape: bf16[16,32], index: 4, kind: input, shape index: {}]   ;;  %s1900_s5 = inlined_call_operand.vmem [shape: f32[1,32], index: 5, kind: input, shape index: {}]   ;;  %s1901_s6 = inlined_call_operand.<no memory space> [shape: f32[1], index: 6, kind: input, shape index: {}]   ;;  %s1902_s7 = inlined_call_operand.vmem [shape: bf16[2,128,16], index: 7, kind: output, shape index: {0}]   ;;  %s1903_s8 = inlined_call_operand.vmem [shape: bf16[2,128,32], index: 8, kind: output, shape index: {1}]   ;;  %s1904_s9 = inlined_call_operand.vmem [shape: f32[2,1,1,1], index: 9, kind: output, shape index: {2}]   ;;  %s1905_s10 = inlined_call_operand.vmem [shape: f32[2,1,1,1], index: 10, kind: output, shape index: {3}]  }
   0x1   :  { %16 = sst [smem:[#allocation2]] %s1901_s6  ;;  %s1640_s17 = smov 0  }
   0x2 LB: > { %s34_s6 = sadd.s32 1, %s1572_s16  ;;  %p1357_p0 = scmp.ge.s32.totalorder %s1576_s17, 1  ;;  %s1576_s17 = sphi %s1640_s17, %s22_s17   ;;  %s1572_s16 = sphi %s1638_s16, %s1907_s16   ;;  %s1568_s15 = sphi %s1636_s15, %s1906_s15  }
   0x3   : > { %p36_p1 = scmp.ge.s32.totalorder %s34_s6, 2  ;;  %p355_p2 = scmp.lt.s32.totalorder %s1576_s17, 3 }
   0x5   : > { %s1909_s6 = smov (%p36_p1, %s34_s6), 0  ;;  %p356_p3 = pnand %p1357_p0, %p355_p2 }
   0x6   : > { %v1544_v0 = vld [vmem:[%s1896_s1] sm:$0xff] (!%p356_p3)   ;;  %p426_p4 = scmp.lt.s32.totalorder (!%p356_p3), %s1568_s15, 1  ;;  %vm542_vm0 = vcmask (!%p356_p3), 130048   ;;  %vm751_vm1 = vcmask (!%p356_p3), 125952   ;;  %s904_s14 = sld [smem:[#allocation2]] (!%p356_p3)  ;;  %vm1018_vm3 = vcmask (!%p356_p3), 257024  }
   0x7   : > { %359 = sbr.rel (%p356_p3) target bundleno = 709 (0x2c5), region = 48  ;;  %1480 = vmatprep.subr.bf16.mxu0 (!%p356_p3), %v1544_v0  ;;  %v1553_v9 = vld [vmem:[%s1899_s4] sm:$0xff] (!%p356_p3)   ;;  %vm1035_vm4 = vcmask (!%p356_p3), 261120  }
   0x8   : > { %1481 = vmatpush3.bf16.msra.mxu0 (!%p356_p3), %v1544_v0  ;;  %1498 = vmatprep.subr.bf16.mxu1 (!%p356_p3), %v1553_v9  ;;  %v1684_v10 = vld [vmem:[%s1897_s2] ss:$0 sm:$0xff] (!%p356_p3) }
   0x9   : > { %1499 = vmatpush3.bf16.msra.mxu1 (!%p356_p3), %v1553_v9 }
   0xe   : > { %s1911_s15 = smov (!%p426_p4, %s1568_s15), 1 }
   0xf   : > { %s1660_s20 = sshll.u32 %s1911_s15, 6  ;;  %s437_s28 = scalar_lea.vmem %s1898_s3, %s1911_s15 }
  0x10   : > { %s433_s23 = scalar_lea.vmem %s1895_s0, %s1660_s20  ;;  %v1686_v12 = vld [vmem:[%s437_s28] ss:$0 sm:$0xff]  ;;  %s1696_s13 = scalar_lea.vmem %s1902_s7, %s1660_s20 }
  0x11   : > { %v1545_v1 = vld [vmem:[%s433_s23] sm:$0xff]   ;;  %v1546_v2 = vld [vmem:[%s433_s23 + $0x8] sm:$0xff]   ;;  %v1547_v3 = vld [vmem:[%s433_s23 + $0x10] sm:$0xff]   ;;  %s463_s25 = scalar_lea.vmem %s1904_s9, %s1911_s15  ;;  %s469_s29 = scalar_lea.vmem %s1905_s10, %s1911_s15 }
  0x12   : > { %1482 = vmatprep.mubr.msk.bf16.mxu0 %vm542_vm0, %v1545_v1  ;;  %v1548_v4 = vld [vmem:[%s433_s23 + $0x18] sm:$0xff]   ;;  %v1549_v5 = vld [vmem:[%s433_s23 + $0x20] sm:$0xff]   ;;  %v1550_v6 = vld [vmem:[%s433_s23 + $0x28] sm:$0xff]  }
  0x13   : > { %1483 = vmatmul.mubr.msk.bf16.vlgmr.msra.gmra.mrb[0].mxu0 %vm542_vm0, %v1546_v2  ;;  %v1551_v7 = vld [vmem:[%s433_s23 + $0x30] sm:$0xff]   ;;  %v1552_v8 = vld [vmem:[%s433_s23 + $0x38] sm:$0xff]   ;;  %s1782_s23 = scalar_lea.vmem %s1903_s8, %s1660_s20 }
  0x14   : > { %1486 = vmatprep.mubr.msk.bf16.mxu0 %vm542_vm0, %v1547_v3 }
  0x1b   : > { %1487 = vmatmul.mubr.msk.bf16.gmra.mrb[4].mxu0 %vm542_vm0, %v1548_v4 }
  0x1c   : > { %1490 = vmatprep.mubr.msk.bf16.mxu0 %vm542_vm0, %v1549_v5 }
  0x23   : > { %1491 = vmatmul.mubr.msk.bf16.gmra.mrb[8].mxu0 %vm542_vm0, %v1550_v6 }
  0x24   : > { %1494 = vmatprep.mubr.msk.bf16.mxu0 %vm542_vm0, %v1551_v7 }
  0x2b   : > { %1495 = vmatmul.mubr.msk.bf16.gmra.mrb[12].mxu0 %vm542_vm0, %v1552_v8 }
  0xe6   : > { %v1484_v11 = vpop.f32.mrb[0].mxu0 }
  0xe7   : > { %v610_v13 = vadd.f32 %v1484_v11, %v1684_v10  ;;  %v601_v14 = vpop.f32.mrb[1].mxu0 }
  0xe8   : > { %v602_v15 = vadd.f32 %v1684_v10, %v601_v14  ;;  %v1485_v16 = vpop.f32.mrb[2].mxu0 }
  0xe9   : > { %v673_v17 = vadd.f32 %v1686_v12, %v610_v13  ;;  %v613_v18 = vadd.f32 %v1485_v16, %v1684_v10  ;;  %v604_v19 = vpop.f32.mrb[3].mxu0 }
  0xea   : > { %v671_v20 = vadd.f32 %v1686_v12, %v602_v15  ;;  %v605_v21 = vadd.f32 %v1684_v10, %v604_v19 }
  0xeb   : > { %v1432_v22 = vpack.c.bf16 %v673_v17, %v673_v17  ;;  %v674_v23 = vadd.f32 %v1686_v12, %v613_v18 }
  0xec   : > { %v1430_v24 = vpack.c.bf16 %v671_v20, %v671_v20  ;;  %v672_v25 = vadd.f32 %v1686_v12, %v605_v21 }
  0xed   : > { %754 = vst.msk [vmem:[%s1696_s13 + $0x8] sm:$0xf] %vm751_vm1, %v1432_v22  ;;  %v688_v26 = vpack.c.bf16 %v674_v23, %v673_v17  ;;  %v1433_v27 = vpack.c.bf16 %v674_v23, %v674_v23  ;;  %v1771_v22 = vstv %s904_s14 }
  0xee   : > { %752 = vst.msk [vmem:[%s1696_s13] sm:$0xf] %vm751_vm1, %v1430_v24  ;;  %v1431_v28 = vpack.c.bf16 %v672_v25, %v672_v25  ;;  %v1488_v29 = vpop.f32.mrb[4].mxu0  ;;  %v687_v30 = vpack.c.bf16 %v672_v25, %v671_v20 }
  0xef   : > { %755 = vst.msk [vmem:[%s1696_s13 + $0xc] sm:$0xf] %vm751_vm1, %v1433_v27  ;;  %v626_v31 = vadd.f32 %v1488_v29, %v1684_v10  ;;  %v617_v32 = vpop.f32.mrb[5].mxu0 }
  0xf0   : > { %753 = vst.msk [vmem:[%s1696_s13 + $0x4] sm:$0xf] %vm751_vm1, %v1431_v28  ;;  %v618_v33 = vadd.f32 %v1684_v10, %v617_v32  ;;  %v1489_v34 = vpop.f32.mrb[6].mxu0  ;;  %1500 = vmatprep.mubr.msk.bf16.mxu1 %vm542_vm0, %v687_v30 }
  0xf1   : > { %v677_v35 = vadd.f32 %v1686_v12, %v626_v31  ;;  %v629_v36 = vadd.f32 %v1489_v34, %v1684_v10  ;;  %v620_v37 = vpop.f32.mrb[7].mxu0  ;;  %1501 = vmatmul.mubr.msk.bf16.vlgmr.msra.gmra.mrb[0].mxu1 %vm542_vm0, %v688_v26 }
  0xf2   : > { %v675_v38 = vadd.f32 %v1686_v12, %v618_v33  ;;  %v621_v39 = vadd.f32 %v1684_v10, %v620_v37 }
  0xf3   : > { %v1436_v40 = vpack.c.bf16 %v677_v35, %v677_v35  ;;  %v678_v41 = vadd.f32 %v1686_v12, %v629_v36 }
  0xf4   : > { %v1434_v42 = vpack.c.bf16 %v675_v38, %v675_v38  ;;  %v676_v43 = vadd.f32 %v1686_v12, %v621_v39 }
  0xf5   : > { %758 = vst.msk [vmem:[%s1696_s13 + $0x18] sm:$0xf] %vm751_vm1, %v1436_v40  ;;  %v690_v44 = vpack.c.bf16 %v678_v41, %v677_v35  ;;  %v1437_v45 = vpack.c.bf16 %v678_v41, %v678_v41 }
  0xf6   : > { %756 = vst.msk [vmem:[%s1696_s13 + $0x10] sm:$0xf] %vm751_vm1, %v1434_v42  ;;  %v689_v46 = vpack.c.bf16 %v676_v43, %v675_v38  ;;  %v1435_v47 = vpack.c.bf16 %v676_v43, %v676_v43  ;;  %v1492_v48 = vpop.f32.mrb[8].mxu0 }
  0xf7   : > { %759 = vst.msk [vmem:[%s1696_s13 + $0x1c] sm:$0xf] %vm751_vm1, %v1437_v45  ;;  %v642_v49 = vadd.f32 %v1492_v48, %v1684_v10  ;;  %v633_v50 = vpop.f32.mrb[9].mxu0 }
  0xf8   : > { %757 = vst.msk [vmem:[%s1696_s13 + $0x14] sm:$0xf] %vm751_vm1, %v1435_v47  ;;  %v634_v51 = vadd.f32 %v1684_v10, %v633_v50  ;;  %v1493_v52 = vpop.f32.mrb[10].mxu0  ;;  %1504 = vmatprep.mubr.msk.bf16.mxu1 %vm542_vm0, %v689_v46 }
  0xf9   : > { %v681_v53 = vadd.f32 %v1686_v12, %v642_v49  ;;  %v645_v54 = vadd.f32 %v1493_v52, %v1684_v10  ;;  %v636_v55 = vpop.f32.mrb[11].mxu0  ;;  %1505 = vmatmul.mubr.msk.bf16.gmra.mrb[4].mxu1 %vm542_vm0, %v690_v44 }
  0xfa   : > { %v679_v56 = vadd.f32 %v1686_v12, %v634_v51  ;;  %v637_v57 = vadd.f32 %v1684_v10, %v636_v55 }
  0xfb   : > { %v1440_v58 = vpack.c.bf16 %v681_v53, %v681_v53  ;;  %v682_v59 = vadd.f32 %v1686_v12, %v645_v54 }
  0xfc   : > { %v1438_v60 = vpack.c.bf16 %v679_v56, %v679_v56  ;;  %v680_v61 = vadd.f32 %v1686_v12, %v637_v57 }
  0xfd   : > { %762 = vst.msk [vmem:[%s1696_s13 + $0x28] sm:$0xf] %vm751_vm1, %v1440_v58  ;;  %v692_v62 = vpack.c.bf16 %v682_v59, %v681_v53  ;;  %v1441_v63 = vpack.c.bf16 %v682_v59, %v682_v59 }
  0xfe   : > { %760 = vst.msk [vmem:[%s1696_s13 + $0x20] sm:$0xf] %vm751_vm1, %v1438_v60  ;;  %v691_v0 = vpack.c.bf16 %v680_v61, %v679_v56  ;;  %v1439_v1 = vpack.c.bf16 %v680_v61, %v680_v61  ;;  %v1496_v2 = vpop.f32.mrb[12].mxu0 }
  0xff   : > { %763 = vst.msk [vmem:[%s1696_s13 + $0x2c] sm:$0xf] %vm751_vm1, %v1441_v63  ;;  %v658_v3 = vadd.f32 %v1496_v2, %v1684_v10  ;;  %v649_v4 = vpop.f32.mrb[13].mxu0 }
 0x100   : > { %761 = vst.msk [vmem:[%s1696_s13 + $0x24] sm:$0xf] %vm751_vm1, %v1439_v1  ;;  %v650_v5 = vadd.f32 %v1684_v10, %v649_v4  ;;  %v1497_v6 = vpop.f32.mrb[14].mxu0  ;;  %1508 = vmatprep.mubr.msk.bf16.mxu1 %vm542_vm0, %v691_v0 }
 0x101   : > { %v685_v7 = vadd.f32 %v1686_v12, %v658_v3  ;;  %v661_v8 = vadd.f32 %v1497_v6, %v1684_v10  ;;  %v652_v9 = vpop.f32.mrb[15].mxu0  ;;  %1509 = vmatmul.mubr.msk.bf16.gmra.mrb[8].mxu1 %vm542_vm0, %v692_v62 }
 0x102   : > { %v683_v11 = vadd.f32 %v1686_v12, %v650_v5  ;;  %v653_v13 = vadd.f32 %v1684_v10, %v652_v9  ;;  %v1769_v10 = vld [vmem:[%s1900_s5] ss:$0 sm:$0xff] }
 0x103   : > { %v1444_v14 = vpack.c.bf16 %v685_v7, %v685_v7  ;;  %v686_v15 = vadd.f32 %v1686_v12, %v661_v8 }
 0x104   : > { %v1442_v16 = vpack.c.bf16 %v683_v11, %v683_v11  ;;  %v684_v17 = vadd.f32 %v1686_v12, %v653_v13 }
 0x105   : > { %766 = vst.msk [vmem:[%s1696_s13 + $0x38] sm:$0xf] %vm751_vm1, %v1444_v14  ;;  %v694_v18 = vpack.c.bf16 %v686_v15, %v685_v7  ;;  %v1445_v19 = vpack.c.bf16 %v686_v15, %v686_v15 }
 0x106   : > { %764 = vst.msk [vmem:[%s1696_s13 + $0x30] sm:$0xf] %vm751_vm1, %v1442_v16  ;;  %v693_v20 = vpack.c.bf16 %v684_v17, %v683_v11  ;;  %v1443_v21 = vpack.c.bf16 %v684_v17, %v684_v17 }
 0x107   : > { %767 = vst.msk [vmem:[%s1696_s13 + $0x3c] sm:$0xf] %vm751_vm1, %v1445_v19 }
 0x108   : > { %765 = vst.msk [vmem:[%s1696_s13 + $0x34] sm:$0xf] %vm751_vm1, %v1443_v21  ;;  %1512 = vmatprep.mubr.msk.bf16.mxu1 %vm542_vm0, %v693_v20 }
 0x109   : > { %1513 = vmatmul.mubr.msk.bf16.gmra.mrb[12].mxu1 %vm542_vm0, %v694_v18 }
 0x1c4   : > { %v1502_v12 = vpop.f32.mrb[0].mxu1 }
 0x1c5   : > { %v850_v23 = vadd.f32 %v1502_v12, %v1769_v10  ;;  %v841_v24 = vpop.f32.mrb[1].mxu1 }
 0x1c6   : > { %v842_v25 = vadd.f32 %v1769_v10, %v841_v24  ;;  %v1503_v26 = vpop.f32.mrb[2].mxu1 }
 0x1c7   : > { %vm907_vm2 = vcmp.ge.f32.partialorder %v850_v23, 0.0  ;;  %v924_v27 = vmul.f32 %v1771_v22, %v850_v23  ;;  %v853_v28 = vadd.f32 %v1503_v26, %v1769_v10  ;;  %v844_v29 = vpop.f32.mrb[3].mxu1 }
 0x1c8   : > { %vm905_vm5 = vcmp.ge.f32.partialorder %v842_v25, 0.0  ;;  %v922_v30 = vmul.f32 %v1771_v22, %v842_v25  ;;  %v845_v33 = vadd.f32 %v1769_v10, %v844_v29 }
 0x1c9   : > { %v940_v31 = vsel %vm907_vm2, %v850_v23, %v924_v27  ;;  %vm908_vm6 = vcmp.ge.f32.partialorder %v853_v28, 0.0  ;;  %v925_v32 = vmul.f32 %v1771_v22, %v853_v28 }
 0x1ca   : > { %v1448_v34 = vpack.c.bf16 %v940_v31, %v940_v31  ;;  %v1081_v35 = vmul.f32 %v940_v31, %v940_v31  ;;  %v938_v36 = vsel %vm905_vm5, %v842_v25, %v922_v30  ;;  %v1039_v39 = vsel %vm1035_vm4, %v940_v31, 0.0 }
 0x1cb   : > { %v1446_v37 = vpack.c.bf16 %v938_v36, %v938_v36  ;;  %v941_v38 = vsel %vm908_vm6, %v853_v28, %v925_v32  ;;  %v1036_v42 = vsel %vm1035_vm4, %v938_v36, 0.0  ;;  %vm906_vm7 = vcmp.ge.f32.partialorder %v845_v33, 0.0 }
 0x1cc   : > { %1021 = vst.msk [vmem:[%s1782_s23 + $0x8] sm:$0xf] %vm1018_vm3, %v1448_v34  ;;  %v1449_v40 = vpack.c.bf16 %v941_v38, %v941_v38  ;;  %v1506_v41 = vpop.f32.mrb[4].mxu1  ;;  %v923_v43 = vmul.f32 %v1771_v22, %v845_v33  ;;  %v1098_v46 = vsel %vm1035_vm4, %v1081_v35, 0.0  ;;  %v1079_v47 = vmul.f32 %v938_v36, %v938_v36 }
 0x1cd   : > { %1019 = vst.msk [vmem:[%s1782_s23] sm:$0xf] %vm1018_vm3, %v1446_v37  ;;  %v866_v44 = vadd.f32 %v1506_v41, %v1769_v10  ;;  %v857_v45 = vpop.f32.mrb[5].mxu1  ;;  %v1041_v48 = vsel %vm1035_vm4, %v941_v38, 0.0  ;;  %v1082_v58 = vmul.f32 %v941_v38, %v941_v38 }
 0x1ce   : > { %1022 = vst.msk [vmem:[%s1782_s23 + $0xc] sm:$0xf] %vm1018_vm3, %v1449_v40  ;;  %v858_v49 = vadd.f32 %v1769_v10, %v857_v45  ;;  %v1507_v50 = vpop.f32.mrb[6].mxu1  ;;  %v939_v51 = vsel %vm906_vm7, %v845_v33, %v923_v43  ;;  %v1095_v62 = vsel %vm1035_vm4, %v1079_v47, 0.0 }
 0x1cf   : > { %vm911_vm8 = vcmp.ge.f32.partialorder %v866_v44, 0.0  ;;  %v928_v52 = vmul.f32 %v1771_v22, %v866_v44  ;;  %v869_v53 = vadd.f32 %v1507_v50, %v1769_v10  ;;  %v860_v54 = vpop.f32.mrb[7].mxu1  ;;  %v1447_v55 = vpack.c.bf16 %v939_v51, %v939_v51 }
 0x1d0   : > { %v1037_v56 = vsel %vm1035_vm4, %v939_v51, 0.0  ;;  %v1080_v57 = vmul.f32 %v939_v51, %v939_v51  ;;  %vm909_vm9 = vcmp.ge.f32.partialorder %v858_v49, 0.0  ;;  %v926_v61 = vmul.f32 %v1771_v22, %v858_v49 }
 0x1d1   : > { %v1038_v59 = vadd.f32 %v1037_v56, %v1036_v42  ;;  %v944_v60 = vsel %vm911_vm8, %v866_v44, %v928_v52  ;;  %1020 = vst.msk [vmem:[%s1782_s23 + $0x4] sm:$0xf] %vm1018_vm3, %v1447_v55  ;;  %vm912_vm10 = vcmp.ge.f32.partialorder %v869_v53, 0.0  ;;  %v929_v4 = vmul.f32 %v1771_v22, %v869_v53 }
 0x1d2   : > { %v1096_v63 = vsel %vm1035_vm4, %v1080_v57, 0.0  ;;  %v1452_v0 = vpack.c.bf16 %v944_v60, %v944_v60  ;;  %v942_v3 = vsel %vm909_vm9, %v858_v49, %v926_v61  ;;  %v1085_v5 = vmul.f32 %v944_v60, %v944_v60 }
 0x1d3   : > { %v1040_v1 = vadd.f32 %v1039_v39, %v1038_v59  ;;  %v1097_v2 = vadd.f32 %v1096_v63, %v1095_v62  ;;  %v1450_v6 = vpack.c.bf16 %v942_v3, %v942_v3  ;;  %v1043_v7 = vsel %vm1035_vm4, %v942_v3, 0.0 }
 0x1d4   : > { %1025 = vst.msk [vmem:[%s1782_s23 + $0x18] sm:$0xf] %vm1018_vm3, %v1452_v0  ;;  %v1083_v8 = vmul.f32 %v942_v3, %v942_v3  ;;  %v1510_v9 = vpop.f32.mrb[8].mxu1  ;;  %v945_v14 = vsel %vm912_vm10, %v869_v53, %v929_v4  ;;  %v861_v15 = vadd.f32 %v1769_v10, %v860_v54  ;;  %v1100_v17 = vsel %vm1035_vm4, %v1082_v58, 0.0 }
 0x1d5   : > { %v1099_v11 = vadd.f32 %v1098_v46, %v1097_v2  ;;  %v1042_v13 = vadd.f32 %v1041_v48, %v1040_v1  ;;  %v873_v16 = vpop.f32.mrb[9].mxu1  ;;  %1023 = vst.msk [vmem:[%s1782_s23 + $0x10] sm:$0xf] %vm1018_vm3, %v1450_v6  ;;  %v1453_v19 = vpack.c.bf16 %v945_v14, %v945_v14  ;;  %v1047_v25 = vsel %vm1035_vm4, %v944_v60, 0.0 }
 0x1d6   : > { %v1102_v18 = vsel %vm1035_vm4, %v1083_v8, 0.0  ;;  %v1511_v20 = vpop.f32.mrb[10].mxu1  ;;  %vm910_vm11 = vcmp.ge.f32.partialorder %v861_v15, 0.0  ;;  %v927_v23 = vmul.f32 %v1771_v22, %v861_v15  ;;  %v882_v26 = vadd.f32 %v1510_v9, %v1769_v10 }
 0x1d7   : > { %v1044_v21 = vadd.f32 %v1043_v7, %v1042_v13  ;;  %v1101_v12 = vadd.f32 %v1100_v17, %v1099_v11  ;;  %v876_v24 = vpop.f32.mrb[11].mxu1  ;;  %1026 = vst.msk [vmem:[%s1782_s23 + $0x1c] sm:$0xf] %vm1018_vm3, %v1453_v19  ;;  %v874_v27 = vadd.f32 %v1769_v10, %v873_v16  ;;  %v885_v28 = vadd.f32 %v1511_v20, %v1769_v10 }
 0x1d8   : > { %v1106_v29 = vsel %vm1035_vm4, %v1085_v5, 0.0  ;;  %v943_v31 = vsel %vm910_vm11, %v861_v15, %v927_v23  ;;  %v877_v32 = vadd.f32 %v1769_v10, %v876_v24  ;;  %vm915_vm12 = vcmp.ge.f32.partialorder %v882_v26, 0.0 }
 0x1d9   : > { %v1103_v30 = vadd.f32 %v1102_v18, %v1101_v12  ;;  %v1451_v33 = vpack.c.bf16 %v943_v31, %v943_v31  ;;  %v1045_v34 = vsel %vm1035_vm4, %v943_v31, 0.0  ;;  %v1084_v35 = vmul.f32 %v943_v31, %v943_v31 }
 0x1da   : > { %v1046_v36 = vadd.f32 %v1045_v34, %v1044_v21  ;;  %v932_v37 = vmul.f32 %v1771_v22, %v882_v26  ;;  %vm913_vm13 = vcmp.ge.f32.partialorder %v874_v27, 0.0  ;;  %v930_v38 = vmul.f32 %v1771_v22, %v874_v27 }
 0x1db   : > { %v1086_v39 = vmul.f32 %v945_v14, %v945_v14  ;;  %1024 = vst.msk [vmem:[%s1782_s23 + $0x14] sm:$0xf] %vm1018_vm3, %v1451_v33  ;;  %v1104_v40 = vsel %vm1035_vm4, %v1084_v35, 0.0  ;;  %vm916_vm14 = vcmp.ge.f32.partialorder %v885_v28, 0.0  ;;  %v933_v41 = vmul.f32 %v1771_v22, %v885_v28 }
 0x1dc   : > { %v1514_v42 = vpop.f32.mrb[12].mxu1  ;;  %v1048_v43 = vadd.f32 %v1047_v25, %v1046_v36  ;;  %v1105_v44 = vadd.f32 %v1104_v40, %v1103_v30  ;;  %v948_v45 = vsel %vm915_vm12, %v882_v26, %v932_v37  ;;  %v946_v46 = vsel %vm913_vm13, %v874_v27, %v930_v38 }
 0x1dd   : > { %v889_v47 = vpop.f32.mrb[13].mxu1  ;;  %v1049_v48 = vsel %vm1035_vm4, %v945_v14, 0.0  ;;  %v1456_v49 = vpack.c.bf16 %v948_v45, %v948_v45  ;;  %v1454_v50 = vpack.c.bf16 %v946_v46, %v946_v46  ;;  %vm914_vm15 = vcmp.ge.f32.partialorder %v877_v32, 0.0 }
 0x1de   : > { %v1515_v51 = vpop.f32.mrb[14].mxu1  ;;  %v1107_v52 = vadd.f32 %v1106_v29, %v1105_v44  ;;  %v1050_v53 = vadd.f32 %v1049_v48, %v1048_v43  ;;  %v1051_v54 = vsel %vm1035_vm4, %v946_v46, 0.0  ;;  %v1087_v55 = vmul.f32 %v946_v46, %v946_v46 }
 0x1df   : > { %v892_v56 = vpop.f32.mrb[15].mxu1  ;;  %v1108_v57 = vsel %vm1035_vm4, %v1086_v39, 0.0  ;;  %1029 = vst.msk [vmem:[%s1782_s23 + $0x28] sm:$0xf] %vm1018_vm3, %v1456_v49  ;;  %1027 = vst.msk [vmem:[%s1782_s23 + $0x20] sm:$0xf] %vm1018_vm3, %v1454_v50  ;;  %v949_v58 = vsel %vm916_vm14, %v885_v28, %v933_v41  ;;  %v931_v59 = vmul.f32 %v1771_v22, %v877_v32  ;;  %v898_v60 = vadd.f32 %v1514_v42, %v1769_v10 }
 0x1e0   : > { %v1052_v61 = vadd.f32 %v1051_v54, %v1050_v53  ;;  %v1109_v62 = vadd.f32 %v1108_v57, %v1107_v52  ;;  %v1110_v63 = vsel %vm1035_vm4, %v1087_v55, 0.0  ;;  %v1457_v0 = vpack.c.bf16 %v949_v58, %v949_v58 }
 0x1e1   : > { %v1055_v1 = vsel %vm1035_vm4, %v948_v45, 0.0  ;;  %v947_v2 = vsel %vm914_vm15, %v877_v32, %v931_v59  ;;  %vm919_vm0 = vcmp.ge.f32.partialorder %v898_v60, 0.0  ;;  %v1089_v7 = vmul.f32 %v948_v45, %v948_v45 }
 0x1e2   : > { %v1111_v3 = vadd.f32 %v1110_v63, %v1109_v62  ;;  %1030 = vst.msk [vmem:[%s1782_s23 + $0x2c] sm:$0xf] %vm1018_vm3, %v1457_v0  ;;  %v1455_v4 = vpack.c.bf16 %v947_v2, %v947_v2  ;;  %v1053_v5 = vsel %vm1035_vm4, %v947_v2, 0.0  ;;  %v1088_v6 = vmul.f32 %v947_v2, %v947_v2 }
 0x1e3   : > { %v1054_v8 = vadd.f32 %v1053_v5, %v1052_v61  ;;  %v936_v9 = vmul.f32 %v1771_v22, %v898_v60  ;;  %v890_v11 = vadd.f32 %v1769_v10, %v889_v47  ;;  %v1057_v13 = vsel %vm1035_vm4, %v949_v58, 0.0 }
 0x1e4   : > { %1028 = vst.msk [vmem:[%s1782_s23 + $0x24] sm:$0xf] %vm1018_vm3, %v1455_v4  ;;  %v1112_v14 = vsel %vm1035_vm4, %v1088_v6, 0.0  ;;  %v901_v15 = vadd.f32 %v1515_v51, %v1769_v10  ;;  %v893_v16 = vadd.f32 %v1769_v10, %v892_v56  ;;  %v1090_v12 = vmul.f32 %v949_v58, %v949_v58 }
 0x1e5   : > { %v1113_v17 = vadd.f32 %v1112_v14, %v1111_v3  ;;  %v952_v18 = vsel %vm919_vm0, %v898_v60, %v936_v9  ;;  %vm917_vm1 = vcmp.ge.f32.partialorder %v890_v11, 0.0  ;;  %v934_v19 = vmul.f32 %v1771_v22, %v890_v11 }
 0x1e6   : > { %v1460_v20 = vpack.c.bf16 %v952_v18, %v952_v18  ;;  %vm920_vm2 = vcmp.ge.f32.partialorder %v901_v15, 0.0  ;;  %v937_v21 = vmul.f32 %v1771_v22, %v901_v15  ;;  %vm918_vm5 = vcmp.ge.f32.partialorder %v893_v16, 0.0 }
 0x1e7   : > { %v950_v23 = vsel %vm917_vm1, %v890_v11, %v934_v19  ;;  %v935_v24 = vmul.f32 %v1771_v22, %v893_v16  ;;  %v1056_v25 = vadd.f32 %v1055_v1, %v1054_v8  ;;  %v1114_v32 = vsel %vm1035_vm4, %v1089_v7, 0.0 }
 0x1e8   : > { %1033 = vst.msk [vmem:[%s1782_s23 + $0x38] sm:$0xf] %vm1018_vm3, %v1460_v20  ;;  %v1458_v10 = vpack.c.bf16 %v950_v23, %v950_v23  ;;  %v1091_v26 = vmul.f32 %v950_v23, %v950_v23  ;;  %v953_v27 = vsel %vm920_vm2, %v901_v15, %v937_v21  ;;  %v1059_v28 = vsel %vm1035_vm4, %v950_v23, 0.0 }
 0x1e9   : > { %v951_v29 = vsel %vm918_vm5, %v893_v16, %v935_v24  ;;  %v1461_v30 = vpack.c.bf16 %v953_v27, %v953_v27  ;;  %v1058_v31 = vadd.f32 %v1057_v13, %v1056_v25  ;;  %v1115_v36 = vadd.f32 %v1114_v32, %v1113_v17 }
 0x1ea   : > { %1031 = vst.msk [vmem:[%s1782_s23 + $0x30] sm:$0xf] %vm1018_vm3, %v1458_v10  ;;  %v1459_v33 = vpack.c.bf16 %v951_v29, %v951_v29  ;;  %v1092_v34 = vmul.f32 %v951_v29, %v951_v29  ;;  %v1061_v22 = vsel %vm1035_vm4, %v951_v29, 0.0  ;;  %v1116_v37 = vsel %vm1035_vm4, %v1090_v12, 0.0 }
 0x1eb   : > { %1034 = vst.msk [vmem:[%s1782_s23 + $0x3c] sm:$0xf] %vm1018_vm3, %v1461_v30  ;;  %v1060_v35 = vadd.f32 %v1059_v28, %v1058_v31  ;;  %v1118_v38 = vsel %vm1035_vm4, %v1091_v26, 0.0  ;;  %v1117_v40 = vadd.f32 %v1116_v37, %v1115_v36  ;;  %v1063_v41 = vsel %vm1035_vm4, %v952_v18, 0.0 }
 0x1ec   : > { %1032 = vst.msk [vmem:[%s1782_s23 + $0x34] sm:$0xf] %vm1018_vm3, %v1459_v33  ;;  %v1093_v42 = vmul.f32 %v952_v18, %v952_v18  ;;  %v1120_v43 = vsel %vm1035_vm4, %v1092_v34, 0.0  ;;  %v1065_v46 = vsel %vm1035_vm4, %v953_v27, 0.0  ;;  %v1094_v47 = vmul.f32 %v953_v27, %v953_v27 }
 0x1ed   : > { %v1062_v39 = vadd.f32 %v1061_v22, %v1060_v35  ;;  %v1119_v45 = vadd.f32 %v1118_v38, %v1117_v40  ;;  %vm1077_vm3 = vcmask 0  }
 0x1ee   : > { %v1122_v50 = vsel %vm1035_vm4, %v1093_v42, 0.0  ;;  %v1124_v52 = vsel %vm1035_vm4, %v1094_v47, 0.0 }
 0x1ef   : > { %v1064_v44 = vadd.f32 %v1063_v41, %v1062_v39  ;;  %v1121_v49 = vadd.f32 %v1120_v43, %v1119_v45 }
 0x1f1   : > { %v1066_v48 = vadd.f32 %v1065_v46, %v1064_v44  ;;  %v1123_v51 = vadd.f32 %v1122_v50, %v1121_v49 }
 0x1f3   : > { %1067 = vadd.xlane.f32.xlu0 %v1066_v48  ;;  %v1125_v53 = vadd.f32 %v1124_v52, %v1123_v51 }
 0x1f7   : > { %1126 = vadd.xlane.f32.xlu0 %v1125_v53 }
 0x280   : > { %v1068_v54 = vpop.xlane.xlu0 %1067 }
 0x281   : > { %v1069_v55 = vrot.slane %v1068_v54, 4 }
 0x283   : > { %v1070_v56 = vadd.f32 %v1069_v55, %v1068_v54 }
 0x284   : > { %v1127_v57 = vpop.xlane.xlu0 %1126 }
 0x285   : > { %v1071_v58 = vrot.slane %v1070_v56, 2  ;;  %v1128_v59 = vrot.slane %v1127_v57, 4 }
 0x287   : > { %v1129_v60 = vadd.f32 %v1128_v59, %v1127_v57  ;;  %v1072_v61 = vadd.f32 %v1071_v58, %v1070_v56 }
 0x289   : > { %v1130_v62 = vrot.slane %v1129_v60, 2  ;;  %v1073_v63 = vrot.slane %v1072_v61, 1 }
 0x28b   : > { %v1131_v0 = vadd.f32 %v1130_v62, %v1129_v60  ;;  %v1074_v1 = vadd.f32 %v1073_v63, %v1072_v61 }
 0x28d   : > { %1516 = vpush %v1074_v1  ;;  %v1132_v2 = vrot.slane %v1131_v0, 1 }
 0x28f   : > { %v1133_v3 = vadd.f32 %v1132_v2, %v1131_v0 }
 0x291   : > { %1518 = vpush %v1133_v3 }
 0x2be   : > { %s1517_s26 = spop %1516 }
 0x2bf   : > { %v1076_v4 = vstv %s1517_s26 }
 0x2c0   : > { %1078 = vst.msk [vmem:[%s463_s25] sm:$0x1] %vm1077_vm3, %v1076_v4 }
 0x2c2   : > { %s1519_s30 = spop %1518 }
 0x2c3   : > { %v1135_v5 = vstv %s1519_s30 }
 0x2c4   : > { %1136 = vst.msk [vmem:[%s469_s29] sm:$0x1] %vm1077_vm3, %v1135_v5 }
 0x2c5 PF: > { %s22_s17 = sadd.s32 1, %s1576_s17   ;;  %s1906_s15 = smov %s1572_s16 }
 0x2c6   : > { %p19_p5 = scmp.ge.s32.totalorder %s22_s17, 4   ;;  %s1907_s16 = smov %s1909_s6 }
 0x2c8   :  { %21 = sbr.rel (!%p19_p5) target bundleno = 2 (0x2), region = 117 }

// kernel: conv_tasnet_forward.16
= control target key start
LH: loop header
LB: loop body
LE: loop exit
PB: predicated region body
PF: predicated region fallthrough
CT: control target
= control target key end

     0   :  { %s2141_s0 = inlined_call_operand.vmem [shape: bf16[2,128,32], index: 0, kind: input, shape index: {}]   ;;  %s2142_s1 = inlined_call_operand.vmem [shape: f32[2], index: 1, kind: input, shape index: {}]   ;;  %s2143_s2 = inlined_call_operand.vmem [shape: f32[2], index: 2, kind: input, shape index: {}]   ;;  %s2144_s3 = inlined_call_operand.vmem [shape: f32[1,32], index: 3, kind: input, shape index: {}]   ;;  %s2145_s4 = inlined_call_operand.vmem [shape: f32[1,32], index: 4, kind: input, shape index: {}]   ;;  %s2146_s5 = inlined_call_operand.vmem [shape: f32[3,32], index: 5, kind: input, shape index: {}]   ;;  %s2147_s6 = inlined_call_operand.vmem [shape: f32[1,32], index: 6, kind: input, shape index: {}]   ;;  %s2148_s7 = inlined_call_operand.<no memory space> [shape: f32[1], index: 7, kind: input, shape index: {}]   ;;  %s2149_s8 = inlined_call_operand.vmem [shape: bf16[2,128,32], index: 8, kind: output, shape index: {0}]   ;;  %s2150_s9 = inlined_call_operand.vmem [shape: f32[2,1,1,1], index: 9, kind: output, shape index: {1}]   ;;  %s2151_s10 = inlined_call_operand.vmem [shape: f32[2,1,1,1], index: 10, kind: output, shape index: {2}]  }
   0x1   :  { %16 = sst [smem:[#allocation2]] %s2148_s7 }
   0x2   :  { %17 = vsyncpa [#allocation4], 0 }
   0x3   :  { %18 = vsyncpa [#allocation6], 0  ;;  %s1635_s15 = smov 0   ;;  %s1637_s16 = smov 0  }
   0x4   :  { %s1639_s17 = smov 0  }
   0x5 LB: > { %s1366_s7 = sadd.s32 4294967295, %s1573_s17   ;;  %s36_s18 = sadd.s32 1, %s1569_s16  ;;  %s1573_s17 = sphi %s1639_s17, %s24_s17   ;;  %s1569_s16 = sphi %s1637_s16, %s2194_s16   ;;  %s1565_s15 = sphi %s1635_s15, %s2193_s15  }
   0x6   : > { %p38_p0 = scmp.ge.s32.totalorder %s36_s18, 2  ;;  %p1368_p1 = scmp.ge.s32.totalorder %s1573_s17, 1 }
   0x7   : > { %p320_p2 = scmp.lt.s32.totalorder %s1573_s17, 3  ;;  %p1660_p4 = scmp.eq.s32.totalorder %s1366_s7, 0 }
   0x8   : > { %s2196_s18 = smov (%p38_p0, %s36_s18), 0  ;;  %s333_s23 = sshll.u32 %s2142_s1, 4  ;;  %s334_s23 = int_to_ptr.vmem [resolvable:$true] %s333_s23 }
   0x9   : > { %p1656_p3 = pnand %p1368_p1, %p320_p2  ;;  %s344_s26 = sshll.u32 %s2143_s2, 4  ;;  %s345_s26 = int_to_ptr.vmem [resolvable:$true] %s344_s26 }
   0xa   : > { %s2156_s20 = scalar_select %p1660_p4, 1, 0 }
   0xb   : > { %s2155_s19 = scalar_select %p1656_p3, 1, 0 }
   0xc   : > { %p1476_p5 = pneg %p1656_p3  ;;  %s1513_s28 = scalar_lea.vmem %s334_s23, 16 }
   0xd   : > { %p1514_p7 = scmp.ne.s32.totalorder %s334_s23, %s1513_s28  ;;  %p1521_p11 = scmp.lt.s32.totalorder %s334_s23, %s334_s23 }
   0xe   : > { %p1674_p6 = pnand %p1660_p4, %p1476_p5  ;;  %p1522_p12 = scmp.lt.s32.totalorder %s1513_s28, %s1513_s28 }
  0x10   : > { %p1515_p8 = pneg %p1674_p6  ;;  %p1523_p13 = por %p1522_p12, %p1521_p11 }
  0x12   : > { %p1516_p9 = pnand %p1515_p8, %p1514_p7 }
  0x14   : > { %p1517_p10 = pneg %p1516_p9 }
  0x16   : > { %p1524_p0 = pnand %p1523_p13, %p1517_p10 }
  0x18   : > { %1527 = shalt.err (!%p1524_p0)
}
  0x19   : > { %s1575_s29 = smov [#allocation3]   ;;  %s1528_s30 = scalar_lea.vmem %s345_s26, 16 }
  0x1a   : > { %1479 = dma.vmem_to_smem (!%p1674_p6), %s334_s23, 16, %s1575_s29, [#allocation4]  }
  0x1b   : > { %p1529_p1 = scmp.ne.s32.totalorder %s345_s26, %s1528_s30  ;;  %p1536_p4 = scmp.lt.s32.totalorder %s345_s26, %s345_s26 }
  0x1c   : > { %p1537_p3 = scmp.lt.s32.totalorder %s1528_s30, %s1528_s30 }
  0x1d   : > { %p1531_p2 = pnand %p1529_p1, %p1515_p8 }
  0x1e   : > { %p1538_p7 = por %p1537_p3, %p1536_p4 }
  0x1f   : > { %p1532_p5 = pneg %p1531_p2 }
  0x21   : > { %p1539_p9 = pnand %p1538_p7, %p1532_p5 }
  0x23   : > { %1542 = shalt.err (!%p1539_p9)
}
  0x24   : > { %s1576_s11 = smov [#allocation5]   ;;  %p2158_p10 = scmp.ne.s32.totalorder %s2155_s19, 0 }
  0x25   : > { %1482 = dma.vmem_to_smem (!%p1674_p6), %s345_s26, 16, %s1576_s11, [#allocation6]  }
  0x26   : > { %396 = sbr.rel (%p2158_p10) target bundleno = 385 (0x181), region = 52  ;;  %p2159_p11 = scmp.ne.s32.totalorder (!%p2158_p10), %s2156_s20, 0 }
  0x2d   : > { %1556 = dma.done.wait (%p2159_p11), [#allocation4], 16  }
  0x2e   : > { %1558 = vsyncadd (%p2159_p11), [#allocation4], 4294967280 }
  0x2f   : > { %1560 = dma.done.wait (%p2159_p11), [#allocation6], 16  }
  0x30   : > { %1562 = vsyncadd (%p2159_p11), [#allocation6], 4294967280 }
  0x31   : > { %406 = sfence }
  0x32   : > { %p470_p3 = scmp.lt.s32.totalorder %s1565_s15, 1  ;;  %s543_s12 = sld [smem:[#allocation3 + %s1565_s15]]  ;;  %v625_v0 = vlaneseq  ;;  %v1383_v54 = vld [vmem:[%s2144_s3] ss:$0 sm:$0xff] }
  0x33   : > { %s1708_s20 = sld [smem:[#allocation5 + %s1565_s15]] }
  0x34   : > { %s1697_s13 = scalar_select %p470_p3, %s1565_s15, 1  ;;  %v1705_v1 = vshrl.u32 %v625_v0, 7 }
  0x35   : > { %s1713_s22 = sld [smem:[#allocation2]] }
  0x36   : > { %s1407_s14 = sshll.u32 %s1697_s13, 6  ;;  %v1711_v11 = vadd.s32 120, %v1705_v1  ;;  %vm658_vm0 = vcmp.lt.s32.totalorder %v1705_v1, 1  ;;  %vm675_vm1 = vcmp.ge.s32.totalorder %v1705_v1, 1  ;;  %vm797_vm2 = vcmp.lt.s32.totalorder %v1705_v1, 7  ;;  %s504_s15 = scalar_lea.vmem %s2150_s9, %s1697_s13 }
  0x37   : > { %s477_s21 = scalar_lea.vmem %s2141_s0, %s1407_s14  ;;  %s510_s26 = scalar_lea.vmem %s2151_s10, %s1697_s13 }
  0x38   : > { %v1426_v2 = vld [vmem:[%s477_s21] sm:$0xff]   ;;  %v1457_v3 = vld [vmem:[%s477_s21 + $0x8] sm:$0xff]   ;;  %v1458_v4 = vld [vmem:[%s477_s21 + $0x10] sm:$0xff]   ;;  %v544_v10 = vstv %s543_s12  ;;  %vm829_vm3 = vcmp.lt.s32.totalorder %v1711_v11, 127 }
  0x39   : > { %v1427_v5 = vunpack.c.l.bf16 %v1426_v2  ;;  %v1428_v6 = vunpack.c.h.bf16 %v1426_v2  ;;  %v1459_v7 = vld [vmem:[%s477_s21 + $0x18] sm:$0xff]   ;;  %v1460_v8 = vld [vmem:[%s477_s21 + $0x20] sm:$0xff]   ;;  %v1461_v9 = vld [vmem:[%s477_s21 + $0x28] sm:$0xff]   ;;  %v1431_v12 = vunpack.c.l.bf16 %v1457_v3  ;;  %v1432_v13 = vunpack.c.h.bf16 %v1457_v3 }
  0x3a   : > { %v1435_v14 = vunpack.c.l.bf16 %v1458_v4  ;;  %v1436_v15 = vunpack.c.h.bf16 %v1458_v4  ;;  %v1462_v16 = vld [vmem:[%s477_s21 + $0x30] sm:$0xff]   ;;  %v1463_v17 = vld [vmem:[%s477_s21 + $0x38] sm:$0xff]   ;;  %v1439_v18 = vunpack.c.l.bf16 %v1459_v7  ;;  %v1440_v19 = vunpack.c.h.bf16 %v1459_v7 }
  0x3b   : > { %v1443_v20 = vunpack.c.l.bf16 %v1460_v8  ;;  %v1444_v21 = vunpack.c.h.bf16 %v1460_v8  ;;  %v1447_v22 = vunpack.c.l.bf16 %v1461_v9  ;;  %v1448_v23 = vunpack.c.h.bf16 %v1461_v9  ;;  %v1384_v8 = vld [vmem:[%s2145_s4] ss:$0 sm:$0xff] }
  0x3c   : > { %v1451_v24 = vunpack.c.l.bf16 %v1462_v16  ;;  %v1452_v25 = vunpack.c.h.bf16 %v1462_v16  ;;  %v1455_v26 = vunpack.c.l.bf16 %v1463_v17  ;;  %v1456_v27 = vunpack.c.h.bf16 %v1463_v17 }
  0x3d   : > { %v545_v28 = vsub.f32 %v1427_v5, %v544_v10  ;;  %v546_v29 = vsub.f32 %v1428_v6, %v544_v10  ;;  %v547_v30 = vsub.f32 %v1431_v12, %v544_v10  ;;  %v548_v31 = vsub.f32 %v1432_v13, %v544_v10 }
  0x3e   : > { %v549_v32 = vsub.f32 %v1435_v14, %v544_v10  ;;  %v550_v33 = vsub.f32 %v1436_v15, %v544_v10  ;;  %v551_v34 = vsub.f32 %v1439_v18, %v544_v10  ;;  %v552_v35 = vsub.f32 %v1440_v19, %v544_v10 }
  0x3f   : > { %v553_v36 = vsub.f32 %v1443_v20, %v544_v10  ;;  %v554_v37 = vsub.f32 %v1444_v21, %v544_v10  ;;  %v555_v38 = vsub.f32 %v1447_v22, %v544_v10  ;;  %v556_v39 = vsub.f32 %v1448_v23, %v544_v10 }
  0x40   : > { %v557_v40 = vsub.f32 %v1451_v24, %v544_v10  ;;  %v558_v41 = vsub.f32 %v1452_v25, %v544_v10  ;;  %v559_v42 = vsub.f32 %v1455_v26, %v544_v10  ;;  %v560_v43 = vsub.f32 %v1456_v27, %v544_v10 }
  0x41   : > { %v562_v44 = vstv %s1708_s20  ;;  %v1717_v45 = vstv %s1713_s22  ;;  %s1980_s20 = scalar_lea.vmem %s2149_s8, %s1407_s14 }
  0x42   : > { %v563_v46 = vmul.f32 %v562_v44, %v545_v28  ;;  %v564_v47 = vmul.f32 %v562_v44, %v546_v29  ;;  %v565_v48 = vmul.f32 %v562_v44, %v547_v30  ;;  %v566_v49 = vmul.f32 %v562_v44, %v548_v31 }
  0x43   : > { %v567_v50 = vmul.f32 %v562_v44, %v549_v32  ;;  %v568_v51 = vmul.f32 %v562_v44, %v550_v33  ;;  %v569_v52 = vmul.f32 %v562_v44, %v551_v34  ;;  %v570_v53 = vmul.f32 %v562_v44, %v552_v35 }
  0x44   : > { %v571_v55 = vmul.f32 %v562_v44, %v553_v36  ;;  %v572_v56 = vmul.f32 %v562_v44, %v554_v37  ;;  %v573_v57 = vmul.f32 %v562_v44, %v555_v38  ;;  %v574_v58 = vmul.f32 %v562_v44, %v556_v39 }
  0x45   : > { %v575_v59 = vmul.f32 %v562_v44, %v557_v40  ;;  %v576_v60 = vmul.f32 %v562_v44, %v558_v41  ;;  %v577_v61 = vmul.f32 %v562_v44, %v559_v42  ;;  %v578_v62 = vmul.f32 %v562_v44, %v560_v43 }
  0x46   : > { %v586_v63 = vmul.f32 %v1383_v54, %v563_v46  ;;  %v587_v0 = vmul.f32 %v1383_v54, %v564_v47  ;;  %v588_v2 = vmul.f32 %v1383_v54, %v565_v48  ;;  %v589_v3 = vmul.f32 %v1383_v54, %v566_v49 }
  0x47   : > { %v590_v4 = vmul.f32 %v1383_v54, %v567_v50  ;;  %v591_v5 = vmul.f32 %v1383_v54, %v568_v51  ;;  %v592_v6 = vmul.f32 %v1383_v54, %v569_v52  ;;  %v593_v7 = vmul.f32 %v1383_v54, %v570_v53 }
  0x48   : > { %v594_v9 = vmul.f32 %v1383_v54, %v571_v55  ;;  %v595_v10 = vmul.f32 %v1383_v54, %v572_v56  ;;  %v596_v12 = vmul.f32 %v1383_v54, %v573_v57  ;;  %v597_v13 = vmul.f32 %v1383_v54, %v574_v58 }
  0x49   : > { %v598_v14 = vmul.f32 %v1383_v54, %v575_v59  ;;  %v599_v15 = vmul.f32 %v1383_v54, %v576_v60  ;;  %v600_v16 = vmul.f32 %v1383_v54, %v577_v61  ;;  %v601_v17 = vmul.f32 %v1383_v54, %v578_v62  ;;  %v1385_v59 = vld [vmem:[%s2146_s5] ss:$0 sm:$0xff] }
  0x4a   : > { %v1726_v18 = vadd.f32 %v1384_v8, %v586_v63  ;;  %v1728_v19 = vadd.f32 %v1384_v8, %v587_v0  ;;  %v1730_v20 = vadd.f32 %v1384_v8, %v588_v2  ;;  %v1732_v21 = vadd.f32 %v1384_v8, %v589_v3 }
  0x4b   : > { %v1734_v22 = vadd.f32 %v1384_v8, %v590_v4  ;;  %v1736_v23 = vadd.f32 %v1384_v8, %v591_v5  ;;  %v1738_v24 = vadd.f32 %v1384_v8, %v592_v6  ;;  %v1740_v25 = vadd.f32 %v1384_v8, %v593_v7 }
  0x4c   : > { %v1743_v26 = vadd.f32 %v1384_v8, %v594_v9  ;;  %v1745_v27 = vadd.f32 %v1384_v8, %v595_v10  ;;  %v1747_v28 = vadd.f32 %v1384_v8, %v596_v12  ;;  %v1749_v29 = vadd.f32 %v1384_v8, %v597_v13 }
  0x4d   : > { %v1751_v30 = vadd.f32 %v1384_v8, %v598_v14  ;;  %v1753_v31 = vadd.f32 %v1384_v8, %v599_v15  ;;  %v1755_v32 = vadd.f32 %v1384_v8, %v600_v16  ;;  %v1757_v33 = vadd.f32 %v1384_v8, %v601_v17  ;;  %v1386_v14 = vld [vmem:[%s2146_s5 + $0x1] ss:$0 sm:$0xff] }
  0x4e   : > { %v642_v34 = vrot.slane %v1726_v18, 7  ;;  %v643_v35 = vrot.slane %v1728_v19, 7  ;;  %v644_v36 = vrot.slane %v1730_v20, 7  ;;  %v645_v37 = vrot.slane %v1732_v21, 7 }
  0x4f   : > { %v646_v38 = vrot.slane %v1734_v22, 7  ;;  %v647_v39 = vrot.slane %v1736_v23, 7  ;;  %v648_v40 = vrot.slane %v1738_v24, 7  ;;  %v649_v41 = vrot.slane %v1740_v25, 7 }
  0x50   : > { %v650_v42 = vrot.slane %v1743_v26, 7  ;;  %v651_v43 = vrot.slane %v1745_v27, 7  ;;  %v652_v44 = vrot.slane %v1747_v28, 7  ;;  %v653_v46 = vrot.slane %v1749_v29, 7 }
  0x51   : > { %v654_v47 = vrot.slane %v1751_v30, 7  ;;  %v655_v48 = vrot.slane %v1753_v31, 7  ;;  %v656_v49 = vrot.slane %v1755_v32, 7  ;;  %v657_v50 = vrot.slane %v1757_v33, 7 }
  0x52   : > { %v663_v51 = vsel %vm658_vm0, %v652_v44, %v653_v46  ;;  %v664_v52 = vsel %vm658_vm0, %v651_v43, %v652_v44  ;;  %v665_v53 = vsel %vm658_vm0, %v650_v42, %v651_v43  ;;  %v666_v54 = vsel %vm658_vm0, %v649_v41, %v650_v42 }
  0x53   : > { %v659_v55 = vsel %vm658_vm0, %v656_v49, %v657_v50  ;;  %v660_v56 = vsel %vm658_vm0, %v655_v48, %v656_v49  ;;  %v661_v57 = vsel %vm658_vm0, %v654_v47, %v655_v48  ;;  %v662_v58 = vsel %vm658_vm0, %v653_v46, %v654_v47 }
  0x54   : > { %v667_v60 = vsel %vm658_vm0, %v648_v40, %v649_v41  ;;  %v668_v61 = vsel %vm658_vm0, %v647_v39, %v648_v40  ;;  %v669_v62 = vsel %vm658_vm0, %v646_v38, %v647_v39  ;;  %v670_v63 = vsel %vm658_vm0, %v645_v37, %v646_v38 }
  0x55   : > { %v671_v0 = vsel %vm658_vm0, %v644_v36, %v645_v37  ;;  %v672_v2 = vsel %vm658_vm0, %v643_v35, %v644_v36  ;;  %v673_v3 = vsel %vm658_vm0, %v642_v34, %v643_v35  ;;  %v674_v4 = vsel %vm658_vm0, %v657_v50, %v642_v34 }
  0x56   : > { %v691_v5 = vsel %vm675_vm1, %v674_v4, 0.0  ;;  %v713_v6 = vmul.f32 %v1385_v59, %v673_v3  ;;  %v714_v7 = vmul.f32 %v1385_v59, %v672_v2  ;;  %v715_v8 = vmul.f32 %v1385_v59, %v671_v0 }
  0x57   : > { %v712_v9 = vmul.f32 %v1385_v59, %v691_v5  ;;  %v716_v10 = vmul.f32 %v1385_v59, %v670_v63  ;;  %v717_v12 = vmul.f32 %v1385_v59, %v669_v62  ;;  %v718_v13 = vmul.f32 %v1385_v59, %v668_v61 }
  0x58   : > { %v719_v15 = vmul.f32 %v1385_v59, %v667_v60  ;;  %v720_v16 = vmul.f32 %v1385_v59, %v666_v54  ;;  %v721_v17 = vmul.f32 %v1385_v59, %v665_v53  ;;  %v722_v35 = vmul.f32 %v1385_v59, %v664_v52 }
  0x59   : > { %v723_v36 = vmul.f32 %v1385_v59, %v663_v51  ;;  %v724_v34 = vmul.f32 %v1385_v59, %v662_v58  ;;  %v725_v37 = vmul.f32 %v1385_v59, %v661_v57  ;;  %v726_v38 = vmul.f32 %v1385_v59, %v660_v56 }
  0x5a   : > { %v727_v39 = vmul.f32 %v1385_v59, %v659_v55  ;;  %v749_v40 = vmul.f32 %v1386_v14, %v1726_v18  ;;  %v750_v41 = vmul.f32 %v1386_v14, %v1728_v19  ;;  %v751_v42 = vmul.f32 %v1386_v14, %v1730_v20 }
  0x5b   : > { %v752_v43 = vmul.f32 %v1386_v14, %v1732_v21  ;;  %v753_v44 = vmul.f32 %v1386_v14, %v1734_v22  ;;  %v754_v46 = vmul.f32 %v1386_v14, %v1736_v23  ;;  %v755_v47 = vmul.f32 %v1386_v14, %v1738_v24 }
  0x5c   : > { %v756_v48 = vmul.f32 %v1386_v14, %v1740_v25  ;;  %v757_v49 = vmul.f32 %v1386_v14, %v1743_v26  ;;  %v758_v50 = vmul.f32 %v1386_v14, %v1745_v27  ;;  %v759_v51 = vmul.f32 %v1386_v14, %v1747_v28 }
  0x5d   : > { %v760_v52 = vmul.f32 %v1386_v14, %v1749_v29  ;;  %v761_v53 = vmul.f32 %v1386_v14, %v1751_v30  ;;  %v762_v54 = vmul.f32 %v1386_v14, %v1753_v31  ;;  %v763_v55 = vmul.f32 %v1386_v14, %v1755_v32 }
  0x5e   : > { %v764_v56 = vmul.f32 %v1386_v14, %v1757_v33  ;;  %v1832_v57 = vadd.f32 %v749_v40, %v712_v9  ;;  %v1834_v58 = vadd.f32 %v750_v41, %v713_v6  ;;  %v1836_v59 = vadd.f32 %v751_v42, %v714_v7 }
  0x5f   : > { %v1838_v60 = vadd.f32 %v752_v43, %v715_v8  ;;  %v1840_v61 = vadd.f32 %v753_v44, %v716_v10  ;;  %v1842_v62 = vadd.f32 %v754_v46, %v717_v12  ;;  %v1844_v63 = vadd.f32 %v755_v47, %v718_v13 }
  0x60   : > { %v1846_v0 = vadd.f32 %v756_v48, %v719_v15  ;;  %v1848_v2 = vadd.f32 %v757_v49, %v720_v16  ;;  %v1850_v3 = vadd.f32 %v758_v50, %v721_v17  ;;  %v1852_v4 = vadd.f32 %v759_v51, %v722_v35 }
  0x61   : > { %v1855_v5 = vadd.f32 %v760_v52, %v723_v36  ;;  %v1857_v6 = vadd.f32 %v761_v53, %v724_v34  ;;  %v1859_v7 = vadd.f32 %v762_v54, %v725_v37  ;;  %v1861_v8 = vadd.f32 %v763_v55, %v726_v38 }
  0x62   : > { %v1863_v9 = vadd.f32 %v764_v56, %v727_v39  ;;  %v781_v10 = vrot.slane %v1726_v18, 1  ;;  %v782_v12 = vrot.slane %v1728_v19, 1  ;;  %v783_v13 = vrot.slane %v1730_v20, 1 }
  0x63   : > { %v784_v14 = vrot.slane %v1732_v21, 1  ;;  %v785_v15 = vrot.slane %v1734_v22, 1  ;;  %v786_v16 = vrot.slane %v1736_v23, 1  ;;  %v787_v17 = vrot.slane %v1738_v24, 1 }
  0x64   : > { %v788_v35 = vrot.slane %v1740_v25, 1  ;;  %v789_v36 = vrot.slane %v1743_v26, 1  ;;  %v790_v34 = vrot.slane %v1745_v27, 1  ;;  %v791_v18 = vrot.slane %v1747_v28, 1 }
  0x65   : > { %v792_v19 = vrot.slane %v1749_v29, 1  ;;  %v793_v20 = vrot.slane %v1751_v30, 1  ;;  %v794_v21 = vrot.slane %v1753_v31, 1  ;;  %v795_v22 = vrot.slane %v1755_v32, 1  ;;  %v1387_v31 = vld [vmem:[%s2146_s5 + $0x2] ss:$0 sm:$0xff] }
  0x66   : > { %v796_v23 = vrot.slane %v1757_v33, 1  ;;  %v803_v24 = vsel %vm797_vm2, %v790_v34, %v791_v18  ;;  %v804_v25 = vsel %vm797_vm2, %v789_v36, %v790_v34  ;;  %v805_v26 = vsel %vm797_vm2, %v788_v35, %v789_v36  ;;  %v1388_v34 = vld [vmem:[%s2147_s6] ss:$0 sm:$0xff] }
  0x67   : > { %v799_v27 = vsel %vm797_vm2, %v794_v21, %v795_v22  ;;  %v800_v28 = vsel %vm797_vm2, %v793_v20, %v794_v21  ;;  %v801_v29 = vsel %vm797_vm2, %v792_v19, %v793_v20  ;;  %v802_v30 = vsel %vm797_vm2, %v791_v18, %v792_v19 }
  0x68   : > { %v798_v32 = vsel %vm797_vm2, %v795_v22, %v796_v23  ;;  %v806_v33 = vsel %vm797_vm2, %v787_v17, %v788_v35  ;;  %v807_v37 = vsel %vm797_vm2, %v786_v16, %v787_v17  ;;  %v808_v38 = vsel %vm797_vm2, %v785_v15, %v786_v16 }
  0x69   : > { %v809_v39 = vsel %vm797_vm2, %v784_v14, %v785_v15  ;;  %v810_v40 = vsel %vm797_vm2, %v783_v13, %v784_v14  ;;  %v811_v41 = vsel %vm797_vm2, %v782_v12, %v783_v13  ;;  %v812_v42 = vsel %vm797_vm2, %v781_v10, %v782_v12 }
  0x6a   : > { %v813_v43 = vsel %vm797_vm2, %v796_v23, %v781_v10  ;;  %v851_v44 = vmul.f32 %v1387_v31, %v812_v42  ;;  %v852_v46 = vmul.f32 %v1387_v31, %v811_v41  ;;  %v853_v47 = vmul.f32 %v1387_v31, %v810_v40 }
  0x6b   : > { %v845_v48 = vsel %vm829_vm3, %v813_v43, 0.0  ;;  %v854_v49 = vmul.f32 %v1387_v31, %v809_v39  ;;  %v855_v50 = vmul.f32 %v1387_v31, %v808_v38  ;;  %v856_v51 = vmul.f32 %v1387_v31, %v807_v37 }
  0x6c   : > { %v857_v52 = vmul.f32 %v1387_v31, %v806_v33  ;;  %v858_v53 = vmul.f32 %v1387_v31, %v805_v26  ;;  %v859_v54 = vmul.f32 %v1387_v31, %v804_v25  ;;  %v860_v55 = vmul.f32 %v1387_v31, %v803_v24 }
  0x6d   : > { %v861_v56 = vmul.f32 %v1387_v31, %v802_v30  ;;  %v862_v13 = vmul.f32 %v1387_v31, %v801_v29  ;;  %v863_v14 = vmul.f32 %v1387_v31, %v800_v28  ;;  %v864_v12 = vmul.f32 %v1387_v31, %v799_v27 }
  0x6e   : > { %v865_v15 = vmul.f32 %v1387_v31, %v798_v32  ;;  %v866_v1 = vmul.f32 %v1387_v31, %v845_v48  ;;  %v867_v10 = vadd.f32 %v851_v44, %v1832_v57  ;;  %v868_v16 = vadd.f32 %v852_v46, %v1834_v58 }
  0x6f   : > { %v869_v11 = vadd.f32 %v853_v47, %v1836_v59  ;;  %v870_v17 = vadd.f32 %v854_v49, %v1838_v60  ;;  %v871_v35 = vadd.f32 %v855_v50, %v1840_v61  ;;  %v872_v36 = vadd.f32 %v856_v51, %v1842_v62 }
  0x70   : > { %v873_v18 = vadd.f32 %v857_v52, %v1844_v63  ;;  %v874_v19 = vadd.f32 %v858_v53, %v1846_v0  ;;  %v875_v57 = vadd.f32 %v859_v54, %v1848_v2  ;;  %v876_v58 = vadd.f32 %v860_v55, %v1850_v3 }
  0x71   : > { %v877_v59 = vadd.f32 %v861_v56, %v1852_v4  ;;  %v878_v60 = vadd.f32 %v862_v13, %v1855_v5  ;;  %v879_v61 = vadd.f32 %v863_v14, %v1857_v6  ;;  %v880_v62 = vadd.f32 %v864_v12, %v1859_v7 }
  0x72   : > { %v881_v20 = vadd.f32 %v865_v15, %v1861_v8  ;;  %v882_v21 = vadd.f32 %v866_v1, %v1863_v9  ;;  %v890_v22 = vadd.f32 %v1388_v34, %v867_v10  ;;  %v891_v63 = vadd.f32 %v1388_v34, %v868_v16 }
  0x73   : > { %v892_v23 = vadd.f32 %v1388_v34, %v869_v11  ;;  %v893_v0 = vadd.f32 %v1388_v34, %v870_v17  ;;  %v894_v24 = vadd.f32 %v1388_v34, %v871_v35  ;;  %v895_v2 = vadd.f32 %v1388_v34, %v872_v36 }
  0x74   : > { %v896_v25 = vadd.f32 %v1388_v34, %v873_v18  ;;  %v897_v3 = vadd.f32 %v1388_v34, %v874_v19  ;;  %v898_v26 = vadd.f32 %v1388_v34, %v875_v57  ;;  %v899_v4 = vadd.f32 %v1388_v34, %v876_v58 }
  0x75   : > { %v900_v27 = vadd.f32 %v1388_v34, %v877_v59  ;;  %v901_v5 = vadd.f32 %v1388_v34, %v878_v60  ;;  %v902_v28 = vadd.f32 %v1388_v34, %v879_v61  ;;  %v903_v6 = vadd.f32 %v1388_v34, %v880_v62 }
  0x76   : > { %v904_v29 = vadd.f32 %v1388_v34, %v881_v20  ;;  %v905_v7 = vadd.f32 %v1388_v34, %v882_v21  ;;  %vm908_vm5 = vcmp.ge.f32.partialorder %v891_v63, 0.0  ;;  %vm909_vm6 = vcmp.ge.f32.partialorder %v892_v23, 0.0 }
  0x77   : > { %vm910_vm7 = vcmp.ge.f32.partialorder %v893_v0, 0.0  ;;  %vm911_vm8 = vcmp.ge.f32.partialorder %v894_v24, 0.0  ;;  %vm912_vm9 = vcmp.ge.f32.partialorder %v895_v2, 0.0  ;;  %vm913_vm10 = vcmp.ge.f32.partialorder %v896_v25, 0.0 }
  0x78   : > { %vm914_vm11 = vcmp.ge.f32.partialorder %v897_v3, 0.0  ;;  %vm915_vm12 = vcmp.ge.f32.partialorder %v898_v26, 0.0  ;;  %vm917_vm14 = vcmp.ge.f32.partialorder %v900_v27, 0.0  ;;  %vm918_vm15 = vcmp.ge.f32.partialorder %v901_v5, 0.0 }
  0x79   : > { %vm919_vm0 = vcmp.ge.f32.partialorder %v902_v28, 0.0  ;;  %vm920_vm1 = vcmp.ge.f32.partialorder %v903_v6, 0.0  ;;  %vm1020_vm2 = vcmask 257024   ;;  %vm921_vm3 = vcmp.ge.f32.partialorder %v904_v29, 0.0 }
  0x7a   : > { %vm922_vm4 = vcmp.ge.f32.partialorder %v905_v7, 0.0  ;;  %v924_v8 = vmul.f32 %v1717_v45, %v890_v22  ;;  %v925_v9 = vmul.f32 %v1717_v45, %v891_v63  ;;  %v926_v30 = vmul.f32 %v1717_v45, %v892_v23 }
  0x7b   : > { %v927_v31 = vmul.f32 %v1717_v45, %v893_v0  ;;  %v928_v32 = vmul.f32 %v1717_v45, %v894_v24  ;;  %v929_v33 = vmul.f32 %v1717_v45, %v895_v2  ;;  %v930_v37 = vmul.f32 %v1717_v45, %v896_v25 }
  0x7c   : > { %v931_v38 = vmul.f32 %v1717_v45, %v897_v3  ;;  %v932_v39 = vmul.f32 %v1717_v45, %v898_v26  ;;  %v933_v40 = vmul.f32 %v1717_v45, %v899_v4  ;;  %v934_v41 = vmul.f32 %v1717_v45, %v900_v27 }
  0x7d   : > { %v935_v42 = vmul.f32 %v1717_v45, %v901_v5  ;;  %v936_v43 = vmul.f32 %v1717_v45, %v902_v28  ;;  %v937_v44 = vmul.f32 %v1717_v45, %v903_v6  ;;  %v938_v46 = vmul.f32 %v1717_v45, %v904_v29 }
  0x7e   : > { %v939_v47 = vmul.f32 %v1717_v45, %v905_v7  ;;  %vm2160_vm13 = vcmp.ge.f32.partialorder %v890_v22, 0.0  ;;  %v941_v49 = vsel %vm908_vm5, %v891_v63, %v925_v9  ;;  %v942_v50 = vsel %vm909_vm6, %v892_v23, %v926_v30 }
  0x7f   : > { %v940_v48 = vsel %vm2160_vm13, %v890_v22, %v924_v8  ;;  %v943_v51 = vsel %vm910_vm7, %v893_v0, %v927_v31  ;;  %v1958_v52 = vsel %vm911_vm8, %v894_v24, %v928_v32  ;;  %v1961_v53 = vsel %vm912_vm9, %v895_v2, %v929_v33 }
  0x80   : > { %v1964_v54 = vsel %vm913_vm10, %v896_v25, %v930_v37  ;;  %v1967_v55 = vsel %vm914_vm11, %v897_v3, %v931_v38  ;;  %v1970_v45 = vsel %vm915_vm12, %v898_v26, %v932_v39  ;;  %vm2161_vm5 = vcmp.ge.f32.partialorder %v899_v4, 0.0 }
  0x81   : > { %v1973_v56 = vsel %vm2161_vm5, %v899_v4, %v933_v40  ;;  %v1983_v13 = vsel %vm917_vm14, %v900_v27, %v934_v41  ;;  %v1986_v14 = vsel %vm918_vm15, %v901_v5, %v935_v42  ;;  %v1989_v12 = vsel %vm919_vm0, %v902_v28, %v936_v43 }
  0x82   : > { %v1992_v15 = vsel %vm920_vm1, %v903_v6, %v937_v44  ;;  %v1995_v1 = vsel %vm921_vm3, %v904_v29, %v938_v46  ;;  %v1998_v10 = vsel %vm922_vm4, %v905_v7, %v939_v47  ;;  %v1409_v16 = vpack.c.bf16 %v940_v48, %v940_v48 }
  0x83   : > { %v1411_v11 = vpack.c.bf16 %v942_v50, %v942_v50  ;;  %v1412_v17 = vpack.c.bf16 %v943_v51, %v943_v51  ;;  %v1413_v35 = vpack.c.bf16 %v1958_v52, %v1958_v52  ;;  %v1414_v36 = vpack.c.bf16 %v1961_v53, %v1961_v53 }
  0x84   : > { %v1415_v34 = vpack.c.bf16 %v1964_v54, %v1964_v54  ;;  %v1416_v18 = vpack.c.bf16 %v1967_v55, %v1967_v55  ;;  %v1417_v19 = vpack.c.bf16 %v1970_v45, %v1970_v45  ;;  %v1418_v57 = vpack.c.bf16 %v1973_v56, %v1973_v56  ;;  %1021 = vst.msk [vmem:[%s1980_s20] sm:$0xf] %vm1020_vm2, %v1409_v16 }
  0x85   : > { %v1419_v58 = vpack.c.bf16 %v1983_v13, %v1983_v13  ;;  %1023 = vst.msk [vmem:[%s1980_s20 + $0x8] sm:$0xf] %vm1020_vm2, %v1411_v11  ;;  %v1420_v59 = vpack.c.bf16 %v1986_v14, %v1986_v14  ;;  %v1421_v60 = vpack.c.bf16 %v1989_v12, %v1989_v12  ;;  %v1422_v61 = vpack.c.bf16 %v1992_v15, %v1992_v15 }
  0x86   : > { %v1423_v62 = vpack.c.bf16 %v1995_v1, %v1995_v1  ;;  %1024 = vst.msk [vmem:[%s1980_s20 + $0xc] sm:$0xf] %vm1020_vm2, %v1412_v17  ;;  %1025 = vst.msk [vmem:[%s1980_s20 + $0x10] sm:$0xf] %vm1020_vm2, %v1413_v35  ;;  %v1424_v20 = vpack.c.bf16 %v1998_v10, %v1998_v10  ;;  %vm2162_vm4 = vcmask 261120   ;;  %v1410_v25 = vpack.c.bf16 %v941_v49, %v941_v49 }
  0x87   : > { %1026 = vst.msk [vmem:[%s1980_s20 + $0x14] sm:$0xf] %vm1020_vm2, %v1414_v36  ;;  %1027 = vst.msk [vmem:[%s1980_s20 + $0x18] sm:$0xf] %vm1020_vm2, %v1415_v34  ;;  %v1038_v21 = vsel %vm2162_vm4, %v940_v48, 0.0  ;;  %v1081_v26 = vmul.f32 %v940_v48, %v940_v48  ;;  %v1082_v27 = vmul.f32 %v941_v49, %v941_v49  ;;  %v1083_v5 = vmul.f32 %v942_v50, %v942_v50 }
  0x88   : > { %1028 = vst.msk [vmem:[%s1980_s20 + $0x1c] sm:$0xf] %vm1020_vm2, %v1416_v18  ;;  %1029 = vst.msk [vmem:[%s1980_s20 + $0x20] sm:$0xf] %vm1020_vm2, %v1417_v19  ;;  %v1084_v29 = vmul.f32 %v943_v51, %v943_v51  ;;  %v1085_v30 = vmul.f32 %v1958_v52, %v1958_v52  ;;  %v1086_v39 = vmul.f32 %v1961_v53, %v1961_v53 }
  0x89   : > { %1030 = vst.msk [vmem:[%s1980_s20 + $0x24] sm:$0xf] %vm1020_vm2, %v1418_v57  ;;  %1031 = vst.msk [vmem:[%s1980_s20 + $0x28] sm:$0xf] %vm1020_vm2, %v1419_v58  ;;  %v1087_v44 = vmul.f32 %v1964_v54, %v1964_v54 }
  0x8a   : > { %vm2163_vm6 = vmmov %vm2162_vm4  ;;  %1032 = vst.msk [vmem:[%s1980_s20 + $0x2c] sm:$0xf] %vm1020_vm2, %v1420_v59 }
  0x8b   : > { %v1039_v22 = vsel %vm2163_vm6, %v941_v49, 0.0  ;;  %vm2164_vm7 = vmmov %vm2162_vm4  ;;  %1033 = vst.msk [vmem:[%s1980_s20 + $0x30] sm:$0xf] %vm1020_vm2, %v1421_v60 }
  0x8c   : > { %v1041_v63 = vsel %vm2164_vm7, %v942_v50, 0.0  ;;  %1034 = vst.msk [vmem:[%s1980_s20 + $0x34] sm:$0xf] %vm1020_vm2, %v1422_v61  ;;  %1035 = vst.msk [vmem:[%s1980_s20 + $0x38] sm:$0xf] %vm1020_vm2, %v1423_v62  ;;  %v1040_v23 = vadd.f32 %v1039_v22, %v1038_v21  ;;  %v1088_v50 = vmul.f32 %v1967_v55, %v1967_v55 }
  0x8d   : > { %1036 = vst.msk [vmem:[%s1980_s20 + $0x3c] sm:$0xf] %vm1020_vm2, %v1424_v20  ;;  %vm2165_vm8 = vmmov %vm2162_vm4 }
  0x8e   : > { %v1043_v0 = vsel %vm2165_vm8, %v943_v51, 0.0  ;;  %v1042_v24 = vadd.f32 %v1041_v63, %v1040_v23  ;;  %vm2166_vm9 = vmmov %vm2162_vm4  ;;  %1022 = vst.msk [vmem:[%s1980_s20 + $0x4] sm:$0xf] %vm1020_vm2, %v1410_v25 }
  0x8f   : > { %v1045_v2 = vsel %vm2166_vm9, %v1958_v52, 0.0  ;;  %vm2167_vm10 = vmmov %vm2162_vm4 }
  0x90   : > { %v1044_v3 = vadd.f32 %v1043_v0, %v1042_v24  ;;  %v1047_v4 = vsel %vm2167_vm10, %v1961_v53, 0.0  ;;  %vm2168_vm11 = vmmov %vm2162_vm4  ;;  %v1094_v24 = vmul.f32 %v1992_v15, %v1992_v15 }
  0x91   : > { %v1049_v6 = vsel %vm2168_vm11, %v1964_v54, 0.0  ;;  %vm2169_vm12 = vmmov %vm2162_vm4  ;;  %v1089_v54 = vmul.f32 %v1970_v45, %v1970_v45 }
  0x92   : > { %v1046_v28 = vadd.f32 %v1045_v2, %v1044_v3  ;;  %v1097_v8 = vsel %vm2169_vm12, %v1081_v26, 0.0  ;;  %vm2170_vm13 = vmmov %vm2162_vm4  ;;  %v1095_v3 = vmul.f32 %v1995_v1, %v1995_v1 }
  0x93   : > { %v1051_v9 = vsel %vm2170_vm13, %v1967_v55, 0.0  ;;  %vm2171_vm14 = vmmov %vm2162_vm4  ;;  %v1090_v55 = vmul.f32 %v1973_v56, %v1973_v56 }
  0x94   : > { %v1048_v7 = vadd.f32 %v1047_v4, %v1046_v28  ;;  %v1098_v31 = vsel %vm2171_vm14, %v1082_v27, 0.0  ;;  %vm2172_vm15 = vmmov %vm2162_vm4 }
  0x95   : > { %v1100_v32 = vsel %vm2172_vm15, %v1083_v5, 0.0  ;;  %v1099_v37 = vadd.f32 %v1098_v31, %v1097_v8  ;;  %vm2173_vm0 = vmmov %vm2162_vm4 }
  0x96   : > { %v1050_v33 = vadd.f32 %v1049_v6, %v1048_v7  ;;  %v1053_v38 = vsel %vm2173_vm0, %v1970_v45, 0.0  ;;  %vm2174_vm1 = vmmov %vm2173_vm0  ;;  %v1091_v45 = vmul.f32 %v1983_v13, %v1983_v13 }
  0x97   : > { %v1102_v40 = vsel %vm2174_vm1, %v1084_v29, 0.0  ;;  %v1101_v42 = vadd.f32 %v1100_v32, %v1099_v37  ;;  %vm2175_vm2 = vmmov %vm2173_vm0 }
  0x98   : > { %v1052_v41 = vadd.f32 %v1051_v9, %v1050_v33  ;;  %v1055_v43 = vsel %vm2175_vm2, %v1973_v56, 0.0  ;;  %vm2176_vm3 = vmmov %vm2173_vm0  ;;  %v1092_v56 = vmul.f32 %v1986_v14, %v1986_v14 }
  0x99   : > { %v1104_v46 = vsel %vm2176_vm3, %v1085_v30, 0.0  ;;  %v1103_v48 = vadd.f32 %v1102_v40, %v1101_v42  ;;  %vm2177_vm5 = vmmov %vm2173_vm0 }
  0x9a   : > { %v1054_v47 = vadd.f32 %v1053_v38, %v1052_v41  ;;  %v1057_v49 = vsel %vm2177_vm5, %v1983_v13, 0.0  ;;  %vm2178_vm4 = vmmov %vm2173_vm0  ;;  %v1093_v13 = vmul.f32 %v1989_v12, %v1989_v12  ;;  %v1118_v2 = vsel %vm2173_vm0, %v1092_v56, 0.0 }
  0x9b   : > { %v1106_v51 = vsel %vm2178_vm4, %v1086_v39, 0.0  ;;  %v1105_v53 = vadd.f32 %v1104_v46, %v1103_v48  ;;  %vm2179_vm6 = vmmov %vm2173_vm0  ;;  %vm1079_vm4 = vcmask 0  }
  0x9c   : > { %v1056_v52 = vadd.f32 %v1055_v43, %v1054_v47  ;;  %v1059_v16 = vsel %vm2179_vm6, %v1986_v14, 0.0  ;;  %vm2180_vm7 = vmmov %vm2173_vm0 }
  0x9d   : > { %v1108_v11 = vsel %vm2180_vm7, %v1087_v44, 0.0  ;;  %v1107_v35 = vadd.f32 %v1106_v51, %v1105_v53  ;;  %vm2181_vm8 = vmmov %vm2173_vm0 }
  0x9e   : > { %v1058_v17 = vadd.f32 %v1057_v49, %v1056_v52  ;;  %v1061_v36 = vsel %vm2181_vm8, %v1989_v12, 0.0  ;;  %vm2182_vm9 = vmmov %vm2173_vm0  ;;  %v1096_v12 = vmul.f32 %v1998_v10, %v1998_v10 }
  0x9f   : > { %v1110_v34 = vsel %vm2182_vm9, %v1088_v50, 0.0  ;;  %v1109_v19 = vadd.f32 %v1108_v11, %v1107_v35  ;;  %vm2183_vm10 = vmmov %vm2173_vm0 }
  0xa0   : > { %v1060_v18 = vadd.f32 %v1059_v16, %v1058_v17  ;;  %v1063_v57 = vsel %vm2183_vm10, %v1992_v15, 0.0  ;;  %vm2184_vm11 = vmmov %vm2173_vm0 }
  0xa1   : > { %v1112_v58 = vsel %vm2184_vm11, %v1089_v54, 0.0  ;;  %v1111_v60 = vadd.f32 %v1110_v34, %v1109_v19  ;;  %vm2185_vm12 = vmmov %vm2173_vm0 }
  0xa2   : > { %v1062_v59 = vadd.f32 %v1061_v36, %v1060_v18  ;;  %v1065_v61 = vsel %vm2185_vm12, %v1995_v1, 0.0  ;;  %vm2186_vm13 = vmmov %vm2173_vm0 }
  0xa3   : > { %v1114_v62 = vsel %vm2186_vm13, %v1090_v55, 0.0  ;;  %v1113_v21 = vadd.f32 %v1112_v58, %v1111_v60  ;;  %vm2187_vm14 = vmmov %vm2173_vm0 }
  0xa4   : > { %v1064_v20 = vadd.f32 %v1063_v57, %v1062_v59  ;;  %v1067_v22 = vsel %vm2187_vm14, %v1998_v10, 0.0  ;;  %vm2188_vm15 = vmmov %vm2173_vm0 }
  0xa5   : > { %v1116_v63 = vsel %vm2188_vm15, %v1091_v45, 0.0  ;;  %v1115_v0 = vadd.f32 %v1114_v62, %v1113_v21  ;;  %vm2189_vm1 = vmmov %vm2173_vm0 }
  0xa6   : > { %v1066_v23 = vadd.f32 %v1065_v61, %v1064_v20  ;;  %v1120_v26 = vsel %vm2189_vm1, %v1093_v13, 0.0  ;;  %vm2190_vm2 = vmmov %vm2173_vm0 }
  0xa7   : > { %v1117_v25 = vadd.f32 %v1116_v63, %v1115_v0  ;;  %v1122_v27 = vsel %vm2190_vm2, %v1094_v24, 0.0  ;;  %vm2191_vm3 = vmmov %vm2173_vm0 }
  0xa8   : > { %v1068_v14 = vadd.f32 %v1067_v22, %v1066_v23  ;;  %v1124_v28 = vsel %vm2191_vm3, %v1095_v3, 0.0  ;;  %vm2192_vm5 = vmmov %vm2173_vm0 }
  0xa9   : > { %v1119_v4 = vadd.f32 %v1118_v2, %v1117_v25  ;;  %v1126_v6 = vsel %vm2192_vm5, %v1096_v12, 0.0 }
  0xaa   : > { %1069 = vadd.xlane.f32.xlu0 %v1068_v14 }
  0xab   : > { %v1121_v5 = vadd.f32 %v1120_v26, %v1119_v4 }
  0xad   : > { %v1123_v15 = vadd.f32 %v1122_v27, %v1121_v5 }
  0xaf   : > { %v1125_v29 = vadd.f32 %v1124_v28, %v1123_v15 }
  0xb1   : > { %v1127_v7 = vadd.f32 %v1126_v6, %v1125_v29 }
  0xb3   : > { %1128 = vadd.xlane.f32.xlu0 %v1127_v7 }
 0x137   : > { %v1070_v8 = vpop.xlane.xlu0 %1069 }
 0x138   : > { %v1071_v1 = vrot.slane %v1070_v8, 4 }
 0x13a   : > { %v1072_v9 = vadd.f32 %v1071_v1, %v1070_v8 }
 0x13c   : > { %v1073_v30 = vrot.slane %v1072_v9, 2 }
 0x13e   : > { %v1074_v31 = vadd.f32 %v1073_v30, %v1072_v9 }
 0x140   : > { %v1075_v32 = vrot.slane %v1074_v31, 1  ;;  %v1129_v10 = vpop.xlane.xlu0 %1128 }
 0x141   : > { %v1130_v33 = vrot.slane %v1129_v10, 4 }
 0x142   : > { %v1076_v37 = vadd.f32 %v1075_v32, %v1074_v31 }
 0x143   : > { %v1131_v38 = vadd.f32 %v1130_v33, %v1129_v10 }
 0x144   : > { %1464 = vpush %v1076_v37 }
 0x145   : > { %v1132_v39 = vrot.slane %v1131_v38, 2 }
 0x147   : > { %v1133_v40 = vadd.f32 %v1132_v39, %v1131_v38 }
 0x149   : > { %v1134_v41 = vrot.slane %v1133_v40, 1 }
 0x14b   : > { %v1135_v42 = vadd.f32 %v1134_v41, %v1133_v40 }
 0x14d   : > { %1466 = vpush %v1135_v42 }
 0x175   : > { %s1465_s23 = spop %1464 }
 0x176   : > { %v1078_v43 = vstv %s1465_s23 }
 0x177   : > { %1080 = vst.msk [vmem:[%s504_s15] sm:$0x1] %vm1079_vm4, %v1078_v43 }
 0x17e   : > { %s1467_s27 = spop %1466 }
 0x17f   : > { %v1137_v44 = vstv %s1467_s27 }
 0x180   : > { %1138 = vst.msk [vmem:[%s510_s26] sm:$0x1] %vm1079_vm4, %v1137_v44 }
 0x181 PF: > { %s24_s17 = sadd.s32 1, %s1573_s17   ;;  %s2193_s15 = smov %s1569_s16 }
 0x182   : > { %p21_p4 = scmp.ge.s32.totalorder %s24_s17, 4   ;;  %s2194_s16 = smov %s2196_s18 }
 0x184   :  { %23 = sbr.rel (!%p21_p4) target bundleno = 5 (0x5), region = 127 }
 0x18b   :  { %1202 = vsyncpa [#allocation4], 1 }
 0x18c   :  { %1204 = vsyncpa [#allocation4 + $0x1], 1 }
 0x18d   :  { %1205 = vsyncpa [#allocation6], 1 }

// kernel: conv_tasnet_forward.19
= control target key start
LH: loop header
LB: loop body
LE: loop exit
PB: predicated region body
PF: predicated region fallthrough
CT: control target
= control target key end

     0   :  { %13 = vsyncpa [#allocation3], 0  ;;  %s1518_s0 = inlined_call_operand.vmem [shape: bf16[2,128,32], index: 0, kind: input, shape index: {}]   ;;  %s1519_s1 = inlined_call_operand.vmem [shape: f32[2], index: 1, kind: input, shape index: {}]   ;;  %s1520_s2 = inlined_call_operand.vmem [shape: f32[2], index: 2, kind: input, shape index: {}]   ;;  %s1521_s3 = inlined_call_operand.vmem [shape: f32[1,32], index: 3, kind: input, shape index: {}]   ;;  %s1522_s4 = inlined_call_operand.vmem [shape: f32[1,32], index: 4, kind: input, shape index: {}]   ;;  %s1523_s5 = inlined_call_operand.vmem [shape: bf16[32,16], index: 5, kind: input, shape index: {}]   ;;  %s1524_s6 = inlined_call_operand.vmem [shape: f32[1,16], index: 6, kind: input, shape index: {}]   ;;  %s1525_s7 = inlined_call_operand.vmem [shape: bf16[2,128,16], index: 7, kind: input, shape index: {}]   ;;  %s1526_s8 = inlined_call_operand.vmem [shape: bf16[2,128,16], index: 8, kind: output, shape index: {}]  }
   0x1   :  { %14 = vsyncpa [#allocation5], 0  ;;  %s1265_s27 = smov 0   ;;  %s1267_s28 = smov 0  }
   0x2   :  { %s1269_s29 = smov 0  }
   0x3 LB: > { %s932_s30 = sadd.s32 4294967295, %s1216_s29   ;;  %s32_s9 = sadd.s32 1, %s1212_s28  ;;  %s1216_s29 = sphi %s1269_s29, %s20_s29   ;;  %s1212_s28 = sphi %s1267_s28, %s1536_s28   ;;  %s1208_s27 = sphi %s1265_s27, %s1535_s27  }
   0x4   : > { %p34_p0 = scmp.ge.s32.totalorder %s32_s9, 2  ;;  %p934_p1 = scmp.ge.s32.totalorder %s1216_s29, 1 }
   0x5   : > { %p247_p2 = scmp.lt.s32.totalorder %s1216_s29, 3  ;;  %p1290_p4 = scmp.eq.s32.totalorder %s932_s30, 0 }
   0x6   : > { %s1538_s9 = smov (%p34_p0, %s32_s9), 0  ;;  %s260_s14 = sshll.u32 %s1519_s1, 4  ;;  %s261_s14 = int_to_ptr.vmem [resolvable:$true] %s260_s14 }
   0x7   : > { %p1286_p3 = pnand %p934_p1, %p247_p2  ;;  %s271_s17 = sshll.u32 %s1520_s2, 4  ;;  %s272_s17 = int_to_ptr.vmem [resolvable:$true] %s271_s17 }
   0x8   : > { %s1531_s11 = scalar_select %p1290_p4, 1, 0 }
   0x9   : > { %s1530_s10 = scalar_select %p1286_p3, 1, 0 }
   0xa   : > { %p1117_p5 = pneg %p1286_p3  ;;  %s1156_s19 = scalar_lea.vmem %s261_s14, 16 }
   0xb   : > { %p1157_p7 = scmp.ne.s32.totalorder %s261_s14, %s1156_s19  ;;  %p1164_p11 = scmp.lt.s32.totalorder %s261_s14, %s261_s14 }
   0xc   : > { %p1304_p6 = pnand %p1290_p4, %p1117_p5  ;;  %p1165_p12 = scmp.lt.s32.totalorder %s1156_s19, %s1156_s19 }
   0xe   : > { %p1158_p8 = pneg %p1304_p6  ;;  %p1166_p13 = por %p1165_p12, %p1164_p11 }
  0x10   : > { %p1159_p9 = pnand %p1158_p8, %p1157_p7 }
  0x12   : > { %p1160_p10 = pneg %p1159_p9 }
  0x14   : > { %p1167_p0 = pnand %p1166_p13, %p1160_p10 }
  0x16   : > { %1170 = shalt.err (!%p1167_p0)
}
  0x17   : > { %s1218_s20 = smov [#allocation2]   ;;  %s1171_s21 = scalar_lea.vmem %s272_s17, 16 }
  0x18   : > { %1120 = dma.vmem_to_smem (!%p1304_p6), %s261_s14, 16, %s1218_s20, [#allocation3]  }
  0x19   : > { %p1172_p1 = scmp.ne.s32.totalorder %s272_s17, %s1171_s21  ;;  %p1179_p4 = scmp.lt.s32.totalorder %s272_s17, %s272_s17 }
  0x1a   : > { %p1180_p3 = scmp.lt.s32.totalorder %s1171_s21, %s1171_s21 }
  0x1b   : > { %p1174_p2 = pnand %p1172_p1, %p1158_p8 }
  0x1c   : > { %p1181_p7 = por %p1180_p3, %p1179_p4 }
  0x1d   : > { %p1175_p5 = pneg %p1174_p2 }
  0x1f   : > { %p1182_p9 = pnand %p1181_p7, %p1175_p5 }
  0x21   : > { %1185 = shalt.err (!%p1182_p9)
}
  0x22   : > { %s1219_s22 = smov [#allocation4]   ;;  %p1533_p10 = scmp.ne.s32.totalorder %s1530_s10, 0 }
  0x23   : > { %1123 = dma.vmem_to_smem (!%p1304_p6), %s272_s17, 16, %s1219_s22, [#allocation5]  }
  0x24   : > { %322 = sbr.rel (%p1533_p10) target bundleno = 304 (0x130), region = 52  ;;  %p1534_p11 = scmp.ne.s32.totalorder (!%p1533_p10), %s1531_s11, 0 }
  0x2b   : > { %1199 = dma.done.wait (%p1534_p11), [#allocation3], 16  }
  0x2c   : > { %1201 = vsyncadd (%p1534_p11), [#allocation3], 4294967280 }
  0x2d   : > { %1203 = dma.done.wait (%p1534_p11), [#allocation5], 16  }
  0x2e   : > { %1205 = vsyncadd (%p1534_p11), [#allocation5], 4294967280 }
  0x2f   : > { %332 = sfence }
  0x30   : > { %v1154_v0 = vld [vmem:[%s1523_s5] sm:$0xff]   ;;  %p379_p3 = scmp.lt.s32.totalorder %s1208_s27, 1  ;;  %v1155_v1 = vld [vmem:[%s1523_s5 + $0x8] sm:$0xff]   ;;  %s441_s30 = sld [smem:[#allocation2 + %s1208_s27]]  ;;  %vm554_vm0 = vcmask 261120   ;;  %vm788_vm1 = vcmask 125952  }
  0x31   : > { %1085 = vmatprep.subr.bf16.mxu0 %v1154_v0  ;;  %1105 = vmatprep.subr.bf16.mxu1 %v1154_v0  ;;  %s459_s11 = sld [smem:[#allocation4 + %s1208_s27]]  ;;  %v1356_v18 = vld [vmem:[%s1521_s3] ss:$0 sm:$0xff] }
  0x32   : > { %s380_s10 = scalar_select %p379_p3, %s1208_s27, 1  ;;  %1086 = vmatpush3.bf16.msra.mxu0 %v1154_v0  ;;  %1107 = vmatpush3.bf16.msra.mxu1 %v1154_v0  ;;  %v1368_v27 = vld [vmem:[%s1522_s4] ss:$0 sm:$0xff] }
  0x33   : > { %1087 = vmatprep.subr.bf16.mxu0 %v1155_v1  ;;  %1106 = vmatprep.subr.bf16.mxu1 %v1155_v1 }
  0x34   : > { %s1334_s12 = sshll.u32 %s380_s10, 6 }
  0x35   : > { %s1340_s15 = scalar_lea.vmem %s1518_s0, %s1334_s12  ;;  %s1440_s21 = scalar_lea.vmem %s1525_s7, %s1334_s12 }
  0x36   : > { %v998_v2 = vld [vmem:[%s1340_s15] sm:$0xff]   ;;  %v1061_v4 = vld [vmem:[%s1340_s15 + $0x8] sm:$0xff]   ;;  %1088 = vmatpush3.bf16.msra.mxu0 %v1155_v1  ;;  %1108 = vmatpush3.bf16.msra.mxu1 %v1155_v1  ;;  %v1345_v7 = vstv %s441_s30  ;;  %v1062_v40 = vld [vmem:[%s1340_s15 + $0x10] sm:$0xff]   ;;  %s1459_s26 = scalar_lea.vmem %s1526_s8, %s1334_s12 }
  0x37   : > { %v1064_v3 = vld [vmem:[%s1340_s15 + $0x20] sm:$0xff]   ;;  %v999_v5 = vunpack.c.l.bf16 %v998_v2  ;;  %v1000_v6 = vunpack.c.h.bf16 %v998_v2  ;;  %v1065_v9 = vld [vmem:[%s1340_s15 + $0x28] sm:$0xff]   ;;  %v1003_v11 = vunpack.c.l.bf16 %v1061_v4  ;;  %v1004_v12 = vunpack.c.h.bf16 %v1061_v4  ;;  %v1066_v45 = vld [vmem:[%s1340_s15 + $0x30] sm:$0xff]  }
  0x38   : > { %v1015_v8 = vunpack.c.l.bf16 %v1064_v3  ;;  %v1016_v10 = vunpack.c.h.bf16 %v1064_v3  ;;  %v1019_v13 = vunpack.c.l.bf16 %v1065_v9  ;;  %v1350_v16 = vstv %s459_s11  ;;  %v1063_v50 = vld [vmem:[%s1340_s15 + $0x18] sm:$0xff]  }
  0x39   : > { %v443_v14 = vsub.f32 %v999_v5, %v1345_v7  ;;  %v444_v15 = vsub.f32 %v1000_v6, %v1345_v7  ;;  %v445_v20 = vsub.f32 %v1003_v11, %v1345_v7  ;;  %v446_v21 = vsub.f32 %v1004_v12, %v1345_v7  ;;  %v1067_v55 = vld [vmem:[%s1340_s15 + $0x38] sm:$0xff]  }
  0x3a   : > { %v451_v17 = vsub.f32 %v1015_v8, %v1345_v7  ;;  %v452_v19 = vsub.f32 %v1016_v10, %v1345_v7  ;;  %v1020_v22 = vunpack.c.h.bf16 %v1065_v9  ;;  %v453_v26 = vsub.f32 %v1019_v13, %v1345_v7 }
  0x3b   : > { %v461_v23 = vmul.f32 %v1350_v16, %v443_v14  ;;  %v462_v24 = vmul.f32 %v1350_v16, %v444_v15  ;;  %v463_v29 = vmul.f32 %v1350_v16, %v445_v20  ;;  %v464_v30 = vmul.f32 %v1350_v16, %v446_v21 }
  0x3c   : > { %v469_v25 = vmul.f32 %v1350_v16, %v451_v17  ;;  %v470_v28 = vmul.f32 %v1350_v16, %v452_v19  ;;  %v454_v31 = vsub.f32 %v1020_v22, %v1345_v7  ;;  %v471_v35 = vmul.f32 %v1350_v16, %v453_v26 }
  0x3d   : > { %v484_v32 = vmul.f32 %v1356_v18, %v461_v23  ;;  %v485_v33 = vmul.f32 %v1356_v18, %v462_v24  ;;  %v486_v37 = vmul.f32 %v1356_v18, %v463_v29  ;;  %v487_v38 = vmul.f32 %v1356_v18, %v464_v30 }
  0x3e   : > { %v492_v34 = vmul.f32 %v1356_v18, %v469_v25  ;;  %v493_v36 = vmul.f32 %v1356_v18, %v470_v28  ;;  %v472_v39 = vmul.f32 %v1350_v16, %v454_v31  ;;  %v494_v44 = vmul.f32 %v1356_v18, %v471_v35 }
  0x3f   : > { %v507_v41 = vadd.f32 %v1368_v27, %v484_v32  ;;  %v508_v42 = vadd.f32 %v1368_v27, %v485_v33  ;;  %v509_v47 = vadd.f32 %v1368_v27, %v486_v37  ;;  %v510_v48 = vadd.f32 %v1368_v27, %v487_v38 }
  0x40   : > { %v515_v43 = vadd.f32 %v1368_v27, %v492_v34  ;;  %v516_v46 = vadd.f32 %v1368_v27, %v493_v36  ;;  %v495_v49 = vmul.f32 %v1356_v18, %v472_v39  ;;  %v517_v52 = vadd.f32 %v1368_v27, %v494_v44 }
  0x41   : > { %v523_v51 = vpack.c.bf16 %v508_v42, %v507_v41  ;;  %v1007_v53 = vunpack.c.l.bf16 %v1062_v40  ;;  %v1008_v54 = vunpack.c.h.bf16 %v1062_v40  ;;  %v524_v57 = vpack.c.bf16 %v510_v48, %v509_v47  ;;  %v1030_v40 = vld [vmem:[%s1440_s21] sm:$0xff]   ;;  %v1072_v41 = vld [vmem:[%s1440_s21 + $0x28] sm:$0xff]  }
  0x42   : > { %v527_v56 = vpack.c.bf16 %v516_v46, %v515_v43  ;;  %v518_v58 = vadd.f32 %v1368_v27, %v495_v49  ;;  %v1023_v59 = vunpack.c.l.bf16 %v1066_v45  ;;  %v1024_v62 = vunpack.c.h.bf16 %v1066_v45  ;;  %v1071_v43 = vld [vmem:[%s1440_s21 + $0x20] sm:$0xff]  }
  0x43   : > { %1089 = vmatprep.mubr.msk.bf16.mxu0 %vm554_vm0, %v523_v51  ;;  %v447_v60 = vsub.f32 %v1007_v53, %v1345_v7  ;;  %v448_v61 = vsub.f32 %v1008_v54, %v1345_v7  ;;  %v1011_v63 = vunpack.c.l.bf16 %v1063_v50  ;;  %v1012_v2 = vunpack.c.h.bf16 %v1063_v50 }
  0x44   : > { %1097 = vmatprep.mubr.msk.bf16.mxu1 %vm554_vm0, %v527_v56  ;;  %1090 = vmatmul.mubr.msk.bf16.vlgmr.msra.gmra.mrb[0].mxu0 %vm554_vm0, %v524_v57  ;;  %v528_v0 = vpack.c.bf16 %v518_v58, %v517_v52  ;;  %v455_v1 = vsub.f32 %v1023_v59, %v1345_v7  ;;  %v1027_v3 = vunpack.c.l.bf16 %v1067_v55  ;;  %v456_v6 = vsub.f32 %v1024_v62, %v1345_v7 }
  0x45   : > { %v465_v4 = vmul.f32 %v1350_v16, %v447_v60  ;;  %v466_v5 = vmul.f32 %v1350_v16, %v448_v61  ;;  %v449_v8 = vsub.f32 %v1011_v63, %v1345_v7  ;;  %v450_v10 = vsub.f32 %v1012_v2, %v1345_v7 }
  0x46   : > { %1098 = vmatmul.mubr.msk.bf16.vlgmr.msra.gmra.mrb[0].mxu1 %vm554_vm0, %v528_v0  ;;  %v473_v9 = vmul.f32 %v1350_v16, %v455_v1  ;;  %v1028_v11 = vunpack.c.h.bf16 %v1067_v55  ;;  %v457_v12 = vsub.f32 %v1027_v3, %v1345_v7  ;;  %v474_v15 = vmul.f32 %v1350_v16, %v456_v6 }
  0x47   : > { %v488_v13 = vmul.f32 %v1356_v18, %v465_v4  ;;  %v489_v14 = vmul.f32 %v1356_v18, %v466_v5  ;;  %v467_v17 = vmul.f32 %v1350_v16, %v449_v8  ;;  %v468_v20 = vmul.f32 %v1350_v16, %v450_v10 }
  0x48   : > { %v496_v19 = vmul.f32 %v1356_v18, %v473_v9  ;;  %v458_v21 = vsub.f32 %v1028_v11, %v1345_v7  ;;  %v475_v22 = vmul.f32 %v1350_v16, %v457_v12  ;;  %v497_v25 = vmul.f32 %v1356_v18, %v474_v15 }
  0x49   : > { %v511_v23 = vadd.f32 %v1368_v27, %v488_v13  ;;  %v512_v24 = vadd.f32 %v1368_v27, %v489_v14  ;;  %v490_v26 = vmul.f32 %v1356_v18, %v467_v17  ;;  %v491_v29 = vmul.f32 %v1356_v18, %v468_v20  ;;  %v1070_v20 = vld [vmem:[%s1440_s21 + $0x18] sm:$0xff]  }
  0x4a   : > { %v519_v28 = vadd.f32 %v1368_v27, %v496_v19  ;;  %v476_v30 = vmul.f32 %v1350_v16, %v458_v21  ;;  %v498_v31 = vmul.f32 %v1356_v18, %v475_v22  ;;  %v520_v32 = vadd.f32 %v1368_v27, %v497_v25  ;;  %v1069_v22 = vld [vmem:[%s1440_s21 + $0x10] sm:$0xff]  }
  0x4b   : > { %v525_v7 = vpack.c.bf16 %v512_v24, %v511_v23  ;;  %v513_v33 = vadd.f32 %v1368_v27, %v490_v26  ;;  %v514_v34 = vadd.f32 %v1368_v27, %v491_v29  ;;  %v1031_v45 = vunpack.c.l.bf16 %v1030_v40  ;;  %v1074_v24 = vld [vmem:[%s1440_s21 + $0x38] sm:$0xff]   ;;  %v1073_v26 = vld [vmem:[%s1440_s21 + $0x30] sm:$0xff]  }
  0x4c   : > { %v499_v35 = vmul.f32 %v1356_v18, %v476_v30  ;;  %v521_v36 = vadd.f32 %v1368_v27, %v498_v31  ;;  %v529_v37 = vpack.c.bf16 %v520_v32, %v519_v28  ;;  %v1068_v18 = vld [vmem:[%s1440_s21 + $0x8] sm:$0xff]   ;;  %v1051_v47 = vunpack.c.l.bf16 %v1072_v41 }
  0x4d   : > { %1093 = vmatprep.mubr.msk.bf16.mxu0 %vm554_vm0, %v525_v7  ;;  %v526_v38 = vpack.c.bf16 %v514_v34, %v513_v33  ;;  %v1035_v42 = vunpack.c.l.bf16 %v1068_v18  ;;  %v1036_v49 = vunpack.c.h.bf16 %v1068_v18  ;;  %v1047_v52 = vunpack.c.l.bf16 %v1071_v43 }
  0x4e   : > { %v522_v16 = vadd.f32 %v1368_v27, %v499_v35  ;;  %1101 = vmatprep.mubr.msk.bf16.mxu1 %vm554_vm0, %v529_v37  ;;  %v1447_v27 = vld [vmem:[%s1524_s6] ss:$0 sm:$0xff]  ;;  %v1032_v54 = vunpack.c.h.bf16 %v1030_v40  ;;  %v1052_v59 = vunpack.c.h.bf16 %v1072_v41  ;;  %v1048_v1 = vunpack.c.h.bf16 %v1071_v43 }
  0x4f   : > { %1094 = vmatmul.mubr.msk.bf16.gmra.mrb[4].mxu0 %vm554_vm0, %v526_v38  ;;  %v1043_v25 = vunpack.c.l.bf16 %v1070_v20  ;;  %v1039_v29 = vunpack.c.l.bf16 %v1069_v22  ;;  %v1059_v31 = vunpack.c.l.bf16 %v1074_v24  ;;  %v1044_v32 = vunpack.c.h.bf16 %v1070_v20 }
  0x50   : > { %v530_v39 = vpack.c.bf16 %v522_v16, %v521_v36  ;;  %v1055_v35 = vunpack.c.l.bf16 %v1073_v26  ;;  %v1040_v37 = vunpack.c.h.bf16 %v1069_v22  ;;  %v1060_v40 = vunpack.c.h.bf16 %v1074_v24 }
  0x52   : > { %1102 = vmatmul.mubr.msk.bf16.gmra.mrb[4].mxu1 %vm554_vm0, %v530_v39 }
 0x117   : > { %v1091_v44 = vpop.f32.mrb[0].mxu0 }
 0x118   : > { %v622_v46 = vadd.f32 %v1091_v44, %v1447_v27  ;;  %v613_v48 = vpop.f32.mrb[1].mxu0 }
 0x119   : > { %v1099_v50 = vpop.f32.mrb[0].mxu1  ;;  %v614_v51 = vadd.f32 %v1447_v27, %v613_v48  ;;  %v1092_v53 = vpop.f32.mrb[2].mxu0 }
 0x11a   : > { %v710_v55 = vadd.f32 %v1035_v42, %v622_v46  ;;  %v654_v56 = vadd.f32 %v1099_v50, %v1447_v27  ;;  %v645_v57 = vpop.f32.mrb[1].mxu1  ;;  %v625_v58 = vadd.f32 %v1092_v53, %v1447_v27  ;;  %v616_v60 = vpop.f32.mrb[3].mxu0  ;;  %v1056_v46 = vunpack.c.h.bf16 %v1073_v26 }
 0x11b   : > { %v708_v61 = vadd.f32 %v1031_v45, %v614_v51  ;;  %v646_v62 = vadd.f32 %v1447_v27, %v645_v57  ;;  %v1100_v63 = vpop.f32.mrb[2].mxu1  ;;  %v617_v0 = vadd.f32 %v1447_v27, %v616_v60 }
 0x11c   : > { %v983_v2 = vpack.c.bf16 %v710_v55, %v710_v55  ;;  %v718_v3 = vadd.f32 %v1051_v47, %v654_v56  ;;  %v711_v4 = vadd.f32 %v1036_v49, %v625_v58  ;;  %v657_v5 = vadd.f32 %v1100_v63, %v1447_v27  ;;  %v648_v6 = vpop.f32.mrb[3].mxu1 }
 0x11d   : > { %v981_v8 = vpack.c.bf16 %v708_v61, %v708_v61  ;;  %v716_v9 = vadd.f32 %v1047_v52, %v646_v62  ;;  %v709_v10 = vadd.f32 %v1032_v54, %v617_v0  ;;  %v649_v11 = vadd.f32 %v1447_v27, %v648_v6 }
 0x11e   : > { %791 = vst.msk [vmem:[%s1459_s26 + $0x8] sm:$0xf] %vm788_vm1, %v983_v2  ;;  %v991_v12 = vpack.c.bf16 %v718_v3, %v718_v3  ;;  %v984_v13 = vpack.c.bf16 %v711_v4, %v711_v4  ;;  %v719_v14 = vadd.f32 %v1052_v59, %v657_v5 }
 0x11f   : > { %789 = vst.msk [vmem:[%s1459_s26] sm:$0xf] %vm788_vm1, %v981_v8  ;;  %v989_v15 = vpack.c.bf16 %v716_v9, %v716_v9  ;;  %v982_v17 = vpack.c.bf16 %v709_v10, %v709_v10  ;;  %v717_v19 = vadd.f32 %v1048_v1, %v649_v11 }
 0x120   : > { %799 = vst.msk [vmem:[%s1459_s26 + $0x28] sm:$0xf] %vm788_vm1, %v991_v12  ;;  %792 = vst.msk [vmem:[%s1459_s26 + $0xc] sm:$0xf] %vm788_vm1, %v984_v13  ;;  %v992_v21 = vpack.c.bf16 %v719_v14, %v719_v14 }
 0x121   : > { %797 = vst.msk [vmem:[%s1459_s26 + $0x20] sm:$0xf] %vm788_vm1, %v989_v15  ;;  %790 = vst.msk [vmem:[%s1459_s26 + $0x4] sm:$0xf] %vm788_vm1, %v982_v17  ;;  %v990_v23 = vpack.c.bf16 %v717_v19, %v717_v19 }
 0x122   : > { %800 = vst.msk [vmem:[%s1459_s26 + $0x2c] sm:$0xf] %vm788_vm1, %v992_v21  ;;  %v1095_v28 = vpop.f32.mrb[4].mxu0 }
 0x123   : > { %798 = vst.msk [vmem:[%s1459_s26 + $0x24] sm:$0xf] %vm788_vm1, %v990_v23  ;;  %v638_v30 = vadd.f32 %v1095_v28, %v1447_v27  ;;  %v629_v7 = vpop.f32.mrb[5].mxu0 }
 0x124   : > { %v630_v34 = vadd.f32 %v1447_v27, %v629_v7  ;;  %v1096_v36 = vpop.f32.mrb[6].mxu0 }
 0x125   : > { %v1103_v33 = vpop.f32.mrb[4].mxu1  ;;  %v714_v38 = vadd.f32 %v1043_v25, %v638_v30  ;;  %v641_v18 = vadd.f32 %v1096_v36, %v1447_v27  ;;  %v632_v41 = vpop.f32.mrb[7].mxu0 }
 0x126   : > { %v670_v16 = vadd.f32 %v1103_v33, %v1447_v27  ;;  %v661_v39 = vpop.f32.mrb[5].mxu1  ;;  %v712_v42 = vadd.f32 %v1039_v29, %v630_v34  ;;  %v633_v45 = vadd.f32 %v1447_v27, %v632_v41 }
 0x127   : > { %v662_v43 = vadd.f32 %v1447_v27, %v661_v39  ;;  %v1104_v44 = vpop.f32.mrb[6].mxu1  ;;  %v987_v47 = vpack.c.bf16 %v714_v38, %v714_v38  ;;  %v715_v49 = vadd.f32 %v1044_v32, %v641_v18 }
 0x128   : > { %v722_v48 = vadd.f32 %v1059_v31, %v670_v16  ;;  %v673_v50 = vadd.f32 %v1104_v44, %v1447_v27  ;;  %v664_v51 = vpop.f32.mrb[7].mxu1  ;;  %v985_v52 = vpack.c.bf16 %v712_v42, %v712_v42  ;;  %v713_v54 = vadd.f32 %v1040_v37, %v633_v45 }
 0x129   : > { %v720_v53 = vadd.f32 %v1055_v35, %v662_v43  ;;  %v665_v55 = vadd.f32 %v1447_v27, %v664_v51  ;;  %795 = vst.msk [vmem:[%s1459_s26 + $0x18] sm:$0xf] %vm788_vm1, %v987_v47  ;;  %v988_v57 = vpack.c.bf16 %v715_v49, %v715_v49 }
 0x12a   : > { %v995_v56 = vpack.c.bf16 %v722_v48, %v722_v48  ;;  %v723_v58 = vadd.f32 %v1060_v40, %v673_v50  ;;  %793 = vst.msk [vmem:[%s1459_s26 + $0x10] sm:$0xf] %vm788_vm1, %v985_v52  ;;  %v986_v60 = vpack.c.bf16 %v713_v54, %v713_v54 }
 0x12b   : > { %v993_v59 = vpack.c.bf16 %v720_v53, %v720_v53  ;;  %v721_v61 = vadd.f32 %v1056_v46, %v665_v55  ;;  %796 = vst.msk [vmem:[%s1459_s26 + $0x1c] sm:$0xf] %vm788_vm1, %v988_v57 }
 0x12c   : > { %803 = vst.msk [vmem:[%s1459_s26 + $0x38] sm:$0xf] %vm788_vm1, %v995_v56  ;;  %v996_v62 = vpack.c.bf16 %v723_v58, %v723_v58  ;;  %794 = vst.msk [vmem:[%s1459_s26 + $0x14] sm:$0xf] %vm788_vm1, %v986_v60 }
 0x12d   : > { %801 = vst.msk [vmem:[%s1459_s26 + $0x30] sm:$0xf] %vm788_vm1, %v993_v59  ;;  %v994_v27 = vpack.c.bf16 %v721_v61, %v721_v61 }
 0x12e   : > { %804 = vst.msk [vmem:[%s1459_s26 + $0x3c] sm:$0xf] %vm788_vm1, %v996_v62 }
 0x12f   : > { %802 = vst.msk [vmem:[%s1459_s26 + $0x34] sm:$0xf] %vm788_vm1, %v994_v27 }
 0x130 PF: > { %s20_s29 = sadd.s32 1, %s1216_s29   ;;  %s1535_s27 = smov %s1212_s28 }
 0x131   : > { %p17_p4 = scmp.ge.s32.totalorder %s20_s29, 4   ;;  %s1536_s28 = smov %s1538_s9 }
 0x133   :  { %19 = sbr.rel (!%p17_p4) target bundleno = 3 (0x3), region = 94 }
 0x13a   :  { %835 = vsyncpa [#allocation3], 1 }
 0x13b   :  { %837 = vsyncpa [#allocation3 + $0x1], 1 }
 0x13c   :  { %838 = vsyncpa [#allocation5], 1 }

// kernel: conv_tasnet_forward.17
= control target key start
LH: loop header
LB: loop body
LE: loop exit
PB: predicated region body
PF: predicated region fallthrough
CT: control target
= control target key end

     0   :  { %s2466_s0 = inlined_call_operand.vmem [shape: bf16[2,128,32], index: 0, kind: input, shape index: {}]   ;;  %s2467_s1 = inlined_call_operand.vmem [shape: f32[2], index: 1, kind: input, shape index: {}]   ;;  %s2468_s2 = inlined_call_operand.vmem [shape: f32[2], index: 2, kind: input, shape index: {}]   ;;  %s2469_s3 = inlined_call_operand.vmem [shape: f32[1,32], index: 3, kind: input, shape index: {}]   ;;  %s2470_s4 = inlined_call_operand.vmem [shape: f32[1,32], index: 4, kind: input, shape index: {}]   ;;  %s2471_s5 = inlined_call_operand.vmem [shape: bf16[32,16], index: 5, kind: input, shape index: {}]   ;;  %s2472_s6 = inlined_call_operand.vmem [shape: f32[1,16], index: 6, kind: input, shape index: {}]   ;;  %s2473_s7 = inlined_call_operand.vmem [shape: bf16[2,128,16], index: 7, kind: input, shape index: {}]   ;;  %s2474_s8 = inlined_call_operand.vmem [shape: bf16[16,32], index: 8, kind: input, shape index: {}]   ;;  %s2475_s9 = inlined_call_operand.vmem [shape: f32[1,32], index: 9, kind: input, shape index: {}]   ;;  %s2476_s10 = inlined_call_operand.<no memory space> [shape: f32[1], index: 10, kind: input, shape index: {}]   ;;  %s2477_s11 = inlined_call_operand.vmem [shape: bf16[2,128,16], index: 11, kind: output, shape index: {0}]   ;;  %s2478_s12 = inlined_call_operand.vmem [shape: bf16[2,128,32], index: 12, kind: output, shape index: {1}]   ;;  %s2479_s13 = inlined_call_operand.vmem [shape: f32[2,1,1,1], index: 13, kind: output, shape index: {2}]   ;;  %s2480_s14 = inlined_call_operand.vmem [shape: f32[2,1,1,1], index: 14, kind: output, shape index: {3}]  }
   0x1   :  { %20 = sst [smem:[#allocation2]] %s2476_s10 }
   0x2   :  { %21 = vsyncpa [#allocation4], 0 }
   0x3   :  { %22 = vsyncpa [#allocation6], 0  ;;  %s2079_s15 = smov 0   ;;  %s2081_s16 = smov 0  }
   0x4   :  { %s2083_s17 = smov 0  }
   0x5 LB: > { %s1640_s10 = sadd.s32 4294967295, %s1997_s17   ;;  %s40_s18 = sadd.s32 1, %s1993_s16  ;;  %s1997_s17 = sphi %s2083_s17, %s28_s17   ;;  %s1993_s16 = sphi %s2081_s16, %s2490_s16   ;;  %s1989_s15 = sphi %s2079_s15, %s2489_s15  }
   0x6   : > { %p42_p0 = scmp.ge.s32.totalorder %s40_s18, 2  ;;  %p1642_p1 = scmp.ge.s32.totalorder %s1997_s17, 1 }
   0x7   : > { %p402_p2 = scmp.lt.s32.totalorder %s1997_s17, 3  ;;  %p2104_p4 = scmp.eq.s32.totalorder %s1640_s10, 0 }
   0x8   : > { %s2492_s18 = smov (%p42_p0, %s40_s18), 0  ;;  %s415_s23 = sshll.u32 %s2467_s1, 4  ;;  %s416_s23 = int_to_ptr.vmem [resolvable:$true] %s415_s23 }
   0x9   : > { %p2100_p3 = pnand %p1642_p1, %p402_p2  ;;  %s426_s26 = sshll.u32 %s2468_s2, 4  ;;  %s427_s26 = int_to_ptr.vmem [resolvable:$true] %s426_s26 }
   0xa   : > { %s2485_s20 = scalar_select %p2104_p4, 1, 0 }
   0xb   : > { %s2484_s19 = scalar_select %p2100_p3, 1, 0 }
   0xc   : > { %p1897_p5 = pneg %p2100_p3  ;;  %s1937_s28 = scalar_lea.vmem %s416_s23, 16 }
   0xd   : > { %p1938_p7 = scmp.ne.s32.totalorder %s416_s23, %s1937_s28  ;;  %p1945_p11 = scmp.lt.s32.totalorder %s416_s23, %s416_s23 }
   0xe   : > { %p2118_p6 = pnand %p2104_p4, %p1897_p5  ;;  %p1946_p12 = scmp.lt.s32.totalorder %s1937_s28, %s1937_s28 }
  0x10   : > { %p1939_p8 = pneg %p2118_p6  ;;  %p1947_p13 = por %p1946_p12, %p1945_p11 }
  0x12   : > { %p1940_p9 = pnand %p1939_p8, %p1938_p7 }
  0x14   : > { %p1941_p10 = pneg %p1940_p9 }
  0x16   : > { %p1948_p0 = pnand %p1947_p13, %p1941_p10 }
  0x18   : > { %1951 = shalt.err (!%p1948_p0)
}
  0x19   : > { %s1999_s29 = smov [#allocation3]   ;;  %s1952_s30 = scalar_lea.vmem %s427_s26, 16 }
  0x1a   : > { %1900 = dma.vmem_to_smem (!%p2118_p6), %s416_s23, 16, %s1999_s29, [#allocation4]  }
  0x1b   : > { %p1953_p1 = scmp.ne.s32.totalorder %s427_s26, %s1952_s30  ;;  %p1960_p4 = scmp.lt.s32.totalorder %s427_s26, %s427_s26 }
  0x1c   : > { %p1961_p3 = scmp.lt.s32.totalorder %s1952_s30, %s1952_s30 }
  0x1d   : > { %p1955_p2 = pnand %p1953_p1, %p1939_p8 }
  0x1e   : > { %p1962_p7 = por %p1961_p3, %p1960_p4 }
  0x1f   : > { %p1956_p5 = pneg %p1955_p2 }
  0x21   : > { %p1963_p9 = pnand %p1962_p7, %p1956_p5 }
  0x23   : > { %1966 = shalt.err (!%p1963_p9)
}
  0x24   : > { %s2000_s10 = smov [#allocation5]   ;;  %p2487_p10 = scmp.ne.s32.totalorder %s2484_s19, 0 }
  0x25   : > { %1903 = dma.vmem_to_smem (!%p2118_p6), %s427_s26, 16, %s2000_s10, [#allocation6]  }
  0x26   : > { %486 = sbr.rel (%p2487_p10) target bundleno = 760 (0x2f8), region = 64  ;;  %p2488_p11 = scmp.ne.s32.totalorder (!%p2487_p10), %s2485_s20, 0 }
  0x2d   : > { %1980 = dma.done.wait (%p2488_p11), [#allocation4], 16  }
  0x2e   : > { %1982 = vsyncadd (%p2488_p11), [#allocation4], 4294967280 }
  0x2f   : > { %1984 = dma.done.wait (%p2488_p11), [#allocation6], 16  }
  0x30   : > { %1986 = vsyncadd (%p2488_p11), [#allocation6], 4294967280 }
  0x31   : > { %496 = sfence }
  0x32   : > { %v1934_v0 = vld [vmem:[%s2471_s5] sm:$0xff]   ;;  %p576_p3 = scmp.lt.s32.totalorder %s1989_s15, 1  ;;  %v1935_v1 = vld [vmem:[%s2471_s5 + $0x8] sm:$0xff]   ;;  %s660_s24 = sld [smem:[#allocation3 + %s1989_s15]]  ;;  %vm773_vm0 = vcmask 261120   ;;  %vm1007_vm1 = vcmask 125952  }
  0x33   : > { %1847 = vmatprep.subr.bf16.mxu0 %v1934_v0  ;;  %s678_s20 = sld [smem:[#allocation5 + %s1989_s15]]  ;;  %v2173_v18 = vld [vmem:[%s2469_s3] ss:$0 sm:$0xff]  ;;  %vm1039_vm2 = vcmask 130048   ;;  %vm1275_vm4 = vcmask 257024  }
  0x34   : > { %s2147_s25 = scalar_select %p576_p3, %s1989_s15, 1  ;;  %1848 = vmatpush3.bf16.msra.mxu0 %v1934_v0  ;;  %v2185_v27 = vld [vmem:[%s2470_s4] ss:$0 sm:$0xff] }
  0x35   : > { %1849 = vmatprep.subr.bf16.mxu0 %v1935_v1  ;;  %s1161_s10 = sld [smem:[#allocation2]] }
  0x36   : > { %s2151_s26 = sshll.u32 %s2147_s25, 6  ;;  %s620_s27 = scalar_lea.vmem %s2479_s13, %s2147_s25 }
  0x37   : > { %s2157_s29 = scalar_lea.vmem %s2466_s0, %s2151_s26  ;;  %s2276_s30 = scalar_lea.vmem %s2477_s11, %s2151_s26 }
  0x38   : > { %v1751_v2 = vld [vmem:[%s2157_s29] sm:$0xff]   ;;  %v1814_v3 = vld [vmem:[%s2157_s29 + $0x8] sm:$0xff]   ;;  %v1815_v4 = vld [vmem:[%s2157_s29 + $0x10] sm:$0xff]   ;;  %1850 = vmatpush3.bf16.msra.mxu0 %v1935_v1  ;;  %v2162_v7 = vstv %s660_s24  ;;  %s2353_s24 = scalar_lea.vmem %s2478_s12, %s2151_s26 }
  0x39   : > { %v1752_v5 = vunpack.c.l.bf16 %v1751_v2  ;;  %v1753_v6 = vunpack.c.h.bf16 %v1751_v2  ;;  %v1756_v8 = vunpack.c.l.bf16 %v1814_v3  ;;  %v1816_v9 = vld [vmem:[%s2157_s29 + $0x18] sm:$0xff]   ;;  %v1757_v10 = vunpack.c.h.bf16 %v1814_v3  ;;  %v1817_v40 = vld [vmem:[%s2157_s29 + $0x20] sm:$0xff]   ;;  %v1818_v45 = vld [vmem:[%s2157_s29 + $0x28] sm:$0xff]  }
  0x3a   : > { %v1760_v11 = vunpack.c.l.bf16 %v1815_v4  ;;  %v1761_v12 = vunpack.c.h.bf16 %v1815_v4  ;;  %v1764_v13 = vunpack.c.l.bf16 %v1816_v9  ;;  %v2167_v16 = vstv %s678_s20  ;;  %v1819_v50 = vld [vmem:[%s2157_s29 + $0x30] sm:$0xff]   ;;  %v1820_v55 = vld [vmem:[%s2157_s29 + $0x38] sm:$0xff]   ;;  %s2260_s20 = scalar_lea.vmem %s2473_s7, %s2151_s26 }
  0x3b   : > { %v662_v14 = vsub.f32 %v1752_v5, %v2162_v7  ;;  %v663_v15 = vsub.f32 %v1753_v6, %v2162_v7  ;;  %v664_v17 = vsub.f32 %v1756_v8, %v2162_v7  ;;  %v665_v19 = vsub.f32 %v1757_v10, %v2162_v7 }
  0x3c   : > { %v666_v20 = vsub.f32 %v1760_v11, %v2162_v7  ;;  %v667_v21 = vsub.f32 %v1761_v12, %v2162_v7  ;;  %v1765_v22 = vunpack.c.h.bf16 %v1816_v9  ;;  %v668_v26 = vsub.f32 %v1764_v13, %v2162_v7 }
  0x3d   : > { %v680_v23 = vmul.f32 %v2167_v16, %v662_v14  ;;  %v681_v24 = vmul.f32 %v2167_v16, %v663_v15  ;;  %v682_v25 = vmul.f32 %v2167_v16, %v664_v17  ;;  %v683_v28 = vmul.f32 %v2167_v16, %v665_v19 }
  0x3e   : > { %v684_v29 = vmul.f32 %v2167_v16, %v666_v20  ;;  %v685_v30 = vmul.f32 %v2167_v16, %v667_v21  ;;  %v669_v31 = vsub.f32 %v1765_v22, %v2162_v7  ;;  %v686_v35 = vmul.f32 %v2167_v16, %v668_v26 }
  0x3f   : > { %v703_v32 = vmul.f32 %v2173_v18, %v680_v23  ;;  %v704_v33 = vmul.f32 %v2173_v18, %v681_v24  ;;  %v705_v34 = vmul.f32 %v2173_v18, %v682_v25  ;;  %v706_v36 = vmul.f32 %v2173_v18, %v683_v28 }
  0x40   : > { %v707_v37 = vmul.f32 %v2173_v18, %v684_v29  ;;  %v708_v38 = vmul.f32 %v2173_v18, %v685_v30  ;;  %v687_v39 = vmul.f32 %v2167_v16, %v669_v31  ;;  %v709_v44 = vmul.f32 %v2173_v18, %v686_v35 }
  0x41   : > { %v726_v41 = vadd.f32 %v2185_v27, %v703_v32  ;;  %v727_v42 = vadd.f32 %v2185_v27, %v704_v33  ;;  %v728_v43 = vadd.f32 %v2185_v27, %v705_v34  ;;  %v729_v46 = vadd.f32 %v2185_v27, %v706_v36 }
  0x42   : > { %v730_v47 = vadd.f32 %v2185_v27, %v707_v37  ;;  %v731_v48 = vadd.f32 %v2185_v27, %v708_v38  ;;  %v710_v49 = vmul.f32 %v2173_v18, %v687_v39  ;;  %v732_v52 = vadd.f32 %v2185_v27, %v709_v44 }
  0x43   : > { %v742_v51 = vpack.c.bf16 %v727_v42, %v726_v41  ;;  %v1768_v53 = vunpack.c.l.bf16 %v1817_v40  ;;  %v1769_v54 = vunpack.c.h.bf16 %v1817_v40  ;;  %v743_v56 = vpack.c.bf16 %v729_v46, %v728_v43  ;;  %v1936_v40 = vld [vmem:[%s2474_s8] sm:$0xff]  }
  0x44   : > { %v744_v57 = vpack.c.bf16 %v731_v48, %v730_v47  ;;  %v733_v58 = vadd.f32 %v2185_v27, %v710_v49  ;;  %v1772_v59 = vunpack.c.l.bf16 %v1818_v45  ;;  %v1773_v62 = vunpack.c.h.bf16 %v1818_v45  ;;  %1867 = vmatprep.subr.bf16.mxu1 %v1936_v40  ;;  %v2267_v41 = vld [vmem:[%s2472_s6] ss:$0 sm:$0xff] }
  0x45   : > { %1851 = vmatprep.mubr.msk.bf16.mxu0 %vm773_vm0, %v742_v51  ;;  %v670_v60 = vsub.f32 %v1768_v53, %v2162_v7  ;;  %v671_v61 = vsub.f32 %v1769_v54, %v2162_v7  ;;  %v1776_v63 = vunpack.c.l.bf16 %v1819_v50  ;;  %v1777_v1 = vunpack.c.h.bf16 %v1819_v50  ;;  %1868 = vmatpush3.bf16.msra.mxu1 %v1936_v40 }
  0x46   : > { %1852 = vmatmul.mubr.msk.bf16.vlgmr.msra.gmra.mrb[0].mxu0 %vm773_vm0, %v743_v56  ;;  %v672_v0 = vsub.f32 %v1772_v59, %v2162_v7  ;;  %v1780_v2 = vunpack.c.l.bf16 %v1820_v55  ;;  %v673_v5 = vsub.f32 %v1773_v62, %v2162_v7  ;;  %v745_v8 = vpack.c.bf16 %v733_v58, %v732_v52  ;;  %v1823_v56 = vld [vmem:[%s2260_s20 + $0x18] sm:$0xff]   ;;  %v1822_v59 = vld [vmem:[%s2260_s20 + $0x10] sm:$0xff]  }
  0x47   : > { %1855 = vmatprep.mubr.msk.bf16.mxu0 %vm773_vm0, %v744_v57  ;;  %v688_v3 = vmul.f32 %v2167_v16, %v670_v60  ;;  %v689_v4 = vmul.f32 %v2167_v16, %v671_v61  ;;  %v674_v6 = vsub.f32 %v1776_v63, %v2162_v7  ;;  %v675_v10 = vsub.f32 %v1777_v1, %v2162_v7 }
  0x48   : > { %v690_v9 = vmul.f32 %v2167_v16, %v672_v0  ;;  %v1781_v11 = vunpack.c.h.bf16 %v1820_v55  ;;  %v691_v14 = vmul.f32 %v2167_v16, %v673_v5  ;;  %v676_v20 = vsub.f32 %v1780_v2, %v2162_v7 }
  0x49   : > { %v711_v12 = vmul.f32 %v2173_v18, %v688_v3  ;;  %v712_v13 = vmul.f32 %v2173_v18, %v689_v4  ;;  %v692_v15 = vmul.f32 %v2167_v16, %v674_v6  ;;  %v693_v19 = vmul.f32 %v2167_v16, %v675_v10 }
  0x4a   : > { %v713_v17 = vmul.f32 %v2173_v18, %v690_v9  ;;  %v677_v21 = vsub.f32 %v1781_v11, %v2162_v7  ;;  %v714_v24 = vmul.f32 %v2173_v18, %v691_v14  ;;  %v694_v31 = vmul.f32 %v2167_v16, %v676_v20 }
  0x4b   : > { %v734_v22 = vadd.f32 %v2185_v27, %v711_v12  ;;  %v735_v23 = vadd.f32 %v2185_v27, %v712_v13  ;;  %v715_v25 = vmul.f32 %v2173_v18, %v692_v15  ;;  %v716_v26 = vmul.f32 %v2173_v18, %v693_v19  ;;  %v1825_v19 = vld [vmem:[%s2260_s20 + $0x28] sm:$0xff]  }
  0x4c   : > { %v736_v29 = vadd.f32 %v2185_v27, %v713_v17  ;;  %v737_v30 = vadd.f32 %v2185_v27, %v714_v24  ;;  %v695_v7 = vmul.f32 %v2167_v16, %v677_v21  ;;  %v717_v35 = vmul.f32 %v2173_v18, %v694_v31 }
  0x4d   : > { %v746_v28 = vpack.c.bf16 %v735_v23, %v734_v22  ;;  %v738_v32 = vadd.f32 %v2185_v27, %v715_v25  ;;  %v739_v33 = vadd.f32 %v2185_v27, %v716_v26  ;;  %v1796_v0 = vunpack.c.l.bf16 %v1823_v56  ;;  %v1824_v22 = vld [vmem:[%s2260_s20 + $0x20] sm:$0xff]  }
  0x4e   : > { %1856 = vmatmul.mubr.msk.bf16.gmra.mrb[4].mxu0 %vm773_vm0, %v745_v8  ;;  %v747_v34 = vpack.c.bf16 %v737_v30, %v736_v29  ;;  %v718_v36 = vmul.f32 %v2173_v18, %v695_v7  ;;  %v740_v38 = vadd.f32 %v2185_v27, %v717_v35  ;;  %v1821_v18 = vld [vmem:[%s2260_s20 + $0x8] sm:$0xff]   ;;  %v1792_v3 = vunpack.c.l.bf16 %v1822_v59 }
  0x4f   : > { %1859 = vmatprep.mubr.msk.bf16.mxu0 %vm773_vm0, %v746_v28  ;;  %v748_v37 = vpack.c.bf16 %v739_v33, %v738_v32  ;;  %v1788_v42 = vunpack.c.l.bf16 %v1821_v18  ;;  %v1789_v47 = vunpack.c.h.bf16 %v1821_v18  ;;  %v1797_v8 = vunpack.c.h.bf16 %v1823_v56 }
  0x50   : > { %v741_v39 = vadd.f32 %v2185_v27, %v718_v36  ;;  %v1783_v27 = vld [vmem:[%s2260_s20] sm:$0xff]   ;;  %v1793_v11 = vunpack.c.h.bf16 %v1822_v59  ;;  %v1804_v28 = vunpack.c.l.bf16 %v1825_v19  ;;  %v1800_v7 = vunpack.c.l.bf16 %v1824_v22 }
  0x51   : > { %v1784_v44 = vunpack.c.l.bf16 %v1783_v27  ;;  %v1785_v50 = vunpack.c.h.bf16 %v1783_v27  ;;  %v1827_v27 = vld [vmem:[%s2260_s20 + $0x38] sm:$0xff]  }
  0x52   : > { %v749_v16 = vpack.c.bf16 %v741_v39, %v740_v38  ;;  %v1813_v56 = vunpack.c.h.bf16 %v1827_v27 }
  0x56   : > { %1860 = vmatmul.mubr.msk.bf16.gmra.mrb[8].mxu0 %vm773_vm0, %v747_v34  ;;  %v1805_v34 = vunpack.c.h.bf16 %v1825_v19 }
  0x57   : > { %1863 = vmatprep.mubr.msk.bf16.mxu0 %vm773_vm0, %v748_v37  ;;  %v1801_v37 = vunpack.c.h.bf16 %v1824_v22 }
  0x5e   : > { %1864 = vmatmul.mubr.msk.bf16.gmra.mrb[12].mxu0 %vm773_vm0, %v749_v16 }
 0x119   : > { %v1853_v43 = vpop.f32.mrb[0].mxu0 }
 0x11a   : > { %v841_v45 = vadd.f32 %v1853_v43, %v2267_v41  ;;  %v832_v46 = vpop.f32.mrb[1].mxu0 }
 0x11b   : > { %v833_v48 = vadd.f32 %v2267_v41, %v832_v46  ;;  %v1854_v49 = vpop.f32.mrb[2].mxu0 }
 0x11c   : > { %v929_v51 = vadd.f32 %v1788_v42, %v841_v45  ;;  %v844_v52 = vadd.f32 %v1854_v49, %v2267_v41  ;;  %v835_v53 = vpop.f32.mrb[3].mxu0  ;;  %v1812_v49 = vunpack.c.l.bf16 %v1827_v27 }
 0x11d   : > { %v927_v54 = vadd.f32 %v1784_v44, %v833_v48  ;;  %v836_v55 = vadd.f32 %v2267_v41, %v835_v53  ;;  %v1826_v44 = vld [vmem:[%s2260_s20 + $0x30] sm:$0xff]  }
 0x11e   : > { %v1720_v57 = vpack.c.bf16 %v929_v51, %v929_v51  ;;  %v930_v58 = vadd.f32 %v1789_v47, %v844_v52  ;;  %v1808_v53 = vunpack.c.l.bf16 %v1826_v44  ;;  %v1809_v59 = vunpack.c.h.bf16 %v1826_v44 }
 0x11f   : > { %v1718_v60 = vpack.c.bf16 %v927_v54, %v927_v54  ;;  %v928_v61 = vadd.f32 %v1785_v50, %v836_v55 }
 0x120   : > { %1010 = vst.msk [vmem:[%s2276_s30 + $0x8] sm:$0xf] %vm1007_vm1, %v1720_v57  ;;  %v944_v62 = vpack.c.bf16 %v930_v58, %v929_v51  ;;  %v1721_v63 = vpack.c.bf16 %v930_v58, %v930_v58 }
 0x121   : > { %1008 = vst.msk [vmem:[%s2276_s30] sm:$0xf] %vm1007_vm1, %v1718_v60  ;;  %v1719_v1 = vpack.c.bf16 %v928_v61, %v928_v61  ;;  %v1857_v2 = vpop.f32.mrb[4].mxu0  ;;  %v943_v4 = vpack.c.bf16 %v928_v61, %v927_v54 }
 0x122   : > { %1011 = vst.msk [vmem:[%s2276_s30 + $0xc] sm:$0xf] %vm1007_vm1, %v1721_v63  ;;  %v857_v5 = vadd.f32 %v1857_v2, %v2267_v41  ;;  %v848_v6 = vpop.f32.mrb[5].mxu0 }
 0x123   : > { %1009 = vst.msk [vmem:[%s2276_s30 + $0x4] sm:$0xf] %vm1007_vm1, %v1719_v1  ;;  %v849_v9 = vadd.f32 %v2267_v41, %v848_v6  ;;  %v1858_v10 = vpop.f32.mrb[6].mxu0  ;;  %1869 = vmatprep.mubr.msk.bf16.mxu1 %vm1039_vm2, %v943_v4 }
 0x124   : > { %v933_v12 = vadd.f32 %v1796_v0, %v857_v5  ;;  %v860_v13 = vadd.f32 %v1858_v10, %v2267_v41  ;;  %v851_v14 = vpop.f32.mrb[7].mxu0  ;;  %1870 = vmatmul.mubr.msk.bf16.vlgmr.msra.gmra.mrb[0].mxu1 %vm1039_vm2, %v944_v62 }
 0x125   : > { %v931_v15 = vadd.f32 %v1792_v3, %v849_v9  ;;  %v852_v17 = vadd.f32 %v2267_v41, %v851_v14 }
 0x126   : > { %v1724_v20 = vpack.c.bf16 %v933_v12, %v933_v12  ;;  %v934_v21 = vadd.f32 %v1797_v8, %v860_v13 }
 0x127   : > { %v1722_v23 = vpack.c.bf16 %v931_v15, %v931_v15  ;;  %v932_v24 = vadd.f32 %v1793_v11, %v852_v17  ;;  %v2342_v11 = vstv %s1161_s10 }
 0x128   : > { %1014 = vst.msk [vmem:[%s2276_s30 + $0x18] sm:$0xf] %vm1007_vm1, %v1724_v20  ;;  %v946_v25 = vpack.c.bf16 %v934_v21, %v933_v12  ;;  %v1725_v26 = vpack.c.bf16 %v934_v21, %v934_v21 }
 0x129   : > { %1012 = vst.msk [vmem:[%s2276_s30 + $0x10] sm:$0xf] %vm1007_vm1, %v1722_v23  ;;  %v945_v29 = vpack.c.bf16 %v932_v24, %v931_v15  ;;  %v1723_v30 = vpack.c.bf16 %v932_v24, %v932_v24  ;;  %v1861_v31 = vpop.f32.mrb[8].mxu0 }
 0x12a   : > { %1015 = vst.msk [vmem:[%s2276_s30 + $0x1c] sm:$0xf] %vm1007_vm1, %v1725_v26  ;;  %v873_v32 = vadd.f32 %v1861_v31, %v2267_v41  ;;  %v864_v33 = vpop.f32.mrb[9].mxu0 }
 0x12b   : > { %1013 = vst.msk [vmem:[%s2276_s30 + $0x14] sm:$0xf] %vm1007_vm1, %v1723_v30  ;;  %v865_v35 = vadd.f32 %v2267_v41, %v864_v33  ;;  %v1862_v36 = vpop.f32.mrb[10].mxu0  ;;  %1873 = vmatprep.mubr.msk.bf16.mxu1 %vm1039_vm2, %v945_v29 }
 0x12c   : > { %v937_v38 = vadd.f32 %v1804_v28, %v873_v32  ;;  %v876_v39 = vadd.f32 %v1862_v36, %v2267_v41  ;;  %v867_v16 = vpop.f32.mrb[11].mxu0  ;;  %1874 = vmatmul.mubr.msk.bf16.gmra.mrb[4].mxu1 %vm1039_vm2, %v946_v25 }
 0x12d   : > { %v935_v40 = vadd.f32 %v1800_v7, %v865_v35  ;;  %v868_v18 = vadd.f32 %v2267_v41, %v867_v16 }
 0x12e   : > { %v1728_v42 = vpack.c.bf16 %v937_v38, %v937_v38  ;;  %v938_v43 = vadd.f32 %v1805_v34, %v876_v39 }
 0x12f   : > { %v1726_v45 = vpack.c.bf16 %v935_v40, %v935_v40  ;;  %v936_v46 = vadd.f32 %v1801_v37, %v868_v18 }
 0x130   : > { %1018 = vst.msk [vmem:[%s2276_s30 + $0x28] sm:$0xf] %vm1007_vm1, %v1728_v42  ;;  %v948_v47 = vpack.c.bf16 %v938_v43, %v937_v38  ;;  %v1729_v48 = vpack.c.bf16 %v938_v43, %v938_v43 }
 0x131   : > { %1016 = vst.msk [vmem:[%s2276_s30 + $0x20] sm:$0xf] %vm1007_vm1, %v1726_v45  ;;  %v947_v50 = vpack.c.bf16 %v936_v46, %v935_v40  ;;  %v1727_v51 = vpack.c.bf16 %v936_v46, %v936_v46  ;;  %v1865_v52 = vpop.f32.mrb[12].mxu0 }
 0x132   : > { %1019 = vst.msk [vmem:[%s2276_s30 + $0x2c] sm:$0xf] %vm1007_vm1, %v1729_v48  ;;  %v889_v54 = vadd.f32 %v1865_v52, %v2267_v41  ;;  %v880_v55 = vpop.f32.mrb[13].mxu0 }
 0x133   : > { %1017 = vst.msk [vmem:[%s2276_s30 + $0x24] sm:$0xf] %vm1007_vm1, %v1727_v51  ;;  %v881_v57 = vadd.f32 %v2267_v41, %v880_v55  ;;  %v1866_v58 = vpop.f32.mrb[14].mxu0  ;;  %1877 = vmatprep.mubr.msk.bf16.mxu1 %vm1039_vm2, %v947_v50 }
 0x134   : > { %v941_v60 = vadd.f32 %v1812_v49, %v889_v54  ;;  %v892_v61 = vadd.f32 %v1866_v58, %v2267_v41  ;;  %v883_v62 = vpop.f32.mrb[15].mxu0  ;;  %1878 = vmatmul.mubr.msk.bf16.gmra.mrb[8].mxu1 %vm1039_vm2, %v948_v47 }
 0x135   : > { %v939_v63 = vadd.f32 %v1808_v53, %v881_v57  ;;  %v884_v0 = vadd.f32 %v2267_v41, %v883_v62  ;;  %v2340_v41 = vld [vmem:[%s2475_s9] ss:$0 sm:$0xff] }
 0x136   : > { %v1732_v1 = vpack.c.bf16 %v941_v60, %v941_v60  ;;  %v942_v2 = vadd.f32 %v1813_v56, %v892_v61 }
 0x137   : > { %v1730_v3 = vpack.c.bf16 %v939_v63, %v939_v63  ;;  %v940_v4 = vadd.f32 %v1809_v59, %v884_v0 }
 0x138   : > { %1022 = vst.msk [vmem:[%s2276_s30 + $0x38] sm:$0xf] %vm1007_vm1, %v1732_v1  ;;  %v950_v5 = vpack.c.bf16 %v942_v2, %v941_v60  ;;  %v1733_v6 = vpack.c.bf16 %v942_v2, %v942_v2 }
 0x139   : > { %1020 = vst.msk [vmem:[%s2276_s30 + $0x30] sm:$0xf] %vm1007_vm1, %v1730_v3  ;;  %v949_v8 = vpack.c.bf16 %v940_v4, %v939_v63  ;;  %v1731_v9 = vpack.c.bf16 %v940_v4, %v940_v4 }
 0x13a   : > { %1023 = vst.msk [vmem:[%s2276_s30 + $0x3c] sm:$0xf] %vm1007_vm1, %v1733_v6 }
 0x13b   : > { %1021 = vst.msk [vmem:[%s2276_s30 + $0x34] sm:$0xf] %vm1007_vm1, %v1731_v9  ;;  %1881 = vmatprep.mubr.msk.bf16.mxu1 %vm1039_vm2, %v949_v8  ;;  %s626_s30 = scalar_lea.vmem %s2480_s14, %s2147_s25 }
 0x13c   : > { %1882 = vmatmul.mubr.msk.bf16.gmra.mrb[12].mxu1 %vm1039_vm2, %v950_v5 }
 0x1f7   : > { %v1871_v10 = vpop.f32.mrb[0].mxu1 }
 0x1f8   : > { %v1107_v12 = vadd.f32 %v1871_v10, %v2340_v41  ;;  %v1098_v13 = vpop.f32.mrb[1].mxu1 }
 0x1f9   : > { %v1099_v14 = vadd.f32 %v2340_v41, %v1098_v13  ;;  %v1872_v15 = vpop.f32.mrb[2].mxu1 }
 0x1fa   : > { %vm1164_vm3 = vcmp.ge.f32.partialorder %v1107_v12, 0.0  ;;  %v1181_v17 = vmul.f32 %v2342_v11, %v1107_v12  ;;  %v1110_v19 = vadd.f32 %v1872_v15, %v2340_v41  ;;  %v1101_v20 = vpop.f32.mrb[3].mxu1 }
 0x1fb   : > { %vm1162_vm5 = vcmp.ge.f32.partialorder %v1099_v14, 0.0  ;;  %v1179_v21 = vmul.f32 %v2342_v11, %v1099_v14  ;;  %v1102_v24 = vadd.f32 %v2340_v41, %v1101_v20 }
 0x1fc   : > { %v1197_v22 = vsel %vm1164_vm3, %v1107_v12, %v1181_v17  ;;  %vm1165_vm6 = vcmp.ge.f32.partialorder %v1110_v19, 0.0  ;;  %v1182_v23 = vmul.f32 %v2342_v11, %v1110_v19 }
 0x1fd   : > { %v1736_v25 = vpack.c.bf16 %v1197_v22, %v1197_v22  ;;  %v1337_v26 = vmul.f32 %v1197_v22, %v1197_v22  ;;  %v1195_v28 = vsel %vm1162_vm5, %v1099_v14, %v1179_v21  ;;  %v1295_v31 = vsel %vm773_vm0, %v1197_v22, 0.0 }
 0x1fe   : > { %v1734_v29 = vpack.c.bf16 %v1195_v28, %v1195_v28  ;;  %v1198_v30 = vsel %vm1165_vm6, %v1110_v19, %v1182_v23  ;;  %v1292_v33 = vsel %vm773_vm0, %v1195_v28, 0.0  ;;  %vm1163_vm7 = vcmp.ge.f32.partialorder %v1102_v24, 0.0 }
 0x1ff   : > { %1278 = vst.msk [vmem:[%s2353_s24 + $0x8] sm:$0xf] %vm1275_vm4, %v1736_v25  ;;  %v1737_v7 = vpack.c.bf16 %v1198_v30, %v1198_v30  ;;  %v1875_v32 = vpop.f32.mrb[4].mxu1  ;;  %v1180_v34 = vmul.f32 %v2342_v11, %v1102_v24  ;;  %v1354_v37 = vsel %vm773_vm0, %v1337_v26, 0.0  ;;  %v1335_v38 = vmul.f32 %v1195_v28, %v1195_v28 }
 0x200   : > { %1276 = vst.msk [vmem:[%s2353_s24] sm:$0xf] %vm1275_vm4, %v1734_v29  ;;  %v1123_v35 = vadd.f32 %v1875_v32, %v2340_v41  ;;  %v1114_v36 = vpop.f32.mrb[5].mxu1  ;;  %v1297_v39 = vsel %vm773_vm0, %v1198_v30, 0.0  ;;  %v1338_v47 = vmul.f32 %v1198_v30, %v1198_v30 }
 0x201   : > { %1279 = vst.msk [vmem:[%s2353_s24 + $0xc] sm:$0xf] %vm1275_vm4, %v1737_v7  ;;  %v1115_v16 = vadd.f32 %v2340_v41, %v1114_v36  ;;  %v1876_v40 = vpop.f32.mrb[6].mxu1  ;;  %v1196_v18 = vsel %vm1163_vm7, %v1102_v24, %v1180_v34  ;;  %v1351_v51 = vsel %vm773_vm0, %v1335_v38, 0.0 }
 0x202   : > { %vm1168_vm8 = vcmp.ge.f32.partialorder %v1123_v35, 0.0  ;;  %v1185_v27 = vmul.f32 %v2342_v11, %v1123_v35  ;;  %v1126_v42 = vadd.f32 %v1876_v40, %v2340_v41  ;;  %v1117_v43 = vpop.f32.mrb[7].mxu1  ;;  %v1735_v44 = vpack.c.bf16 %v1196_v18, %v1196_v18 }
 0x203   : > { %v1293_v45 = vsel %vm773_vm0, %v1196_v18, 0.0  ;;  %v1336_v46 = vmul.f32 %v1196_v18, %v1196_v18  ;;  %vm1166_vm9 = vcmp.ge.f32.partialorder %v1115_v16, 0.0  ;;  %v1183_v50 = vmul.f32 %v2342_v11, %v1115_v16 }
 0x204   : > { %v1294_v48 = vadd.f32 %v1293_v45, %v1292_v33  ;;  %v1201_v49 = vsel %vm1168_vm8, %v1123_v35, %v1185_v27  ;;  %1277 = vst.msk [vmem:[%s2353_s24 + $0x4] sm:$0xf] %vm1275_vm4, %v1735_v44  ;;  %vm1169_vm10 = vcmp.ge.f32.partialorder %v1126_v42, 0.0  ;;  %v1186_v57 = vmul.f32 %v2342_v11, %v1126_v42 }
 0x205   : > { %v1352_v52 = vsel %vm773_vm0, %v1336_v46, 0.0  ;;  %v1740_v53 = vpack.c.bf16 %v1201_v49, %v1201_v49  ;;  %v1199_v56 = vsel %vm1166_vm9, %v1115_v16, %v1183_v50  ;;  %v1341_v58 = vmul.f32 %v1201_v49, %v1201_v49 }
 0x206   : > { %v1296_v54 = vadd.f32 %v1295_v31, %v1294_v48  ;;  %v1353_v55 = vadd.f32 %v1352_v52, %v1351_v51  ;;  %v1738_v59 = vpack.c.bf16 %v1199_v56, %v1199_v56  ;;  %v1299_v60 = vsel %vm773_vm0, %v1199_v56, 0.0 }
 0x207   : > { %1282 = vst.msk [vmem:[%s2353_s24 + $0x18] sm:$0xf] %vm1275_vm4, %v1740_v53  ;;  %v1339_v61 = vmul.f32 %v1199_v56, %v1199_v56  ;;  %v1879_v62 = vpop.f32.mrb[8].mxu1  ;;  %v1202_v1 = vsel %vm1169_vm10, %v1126_v42, %v1186_v57  ;;  %v1118_v2 = vadd.f32 %v2340_v41, %v1117_v43  ;;  %v1356_v4 = vsel %vm773_vm0, %v1338_v47, 0.0 }
 0x208   : > { %v1355_v63 = vadd.f32 %v1354_v37, %v1353_v55  ;;  %v1298_v0 = vadd.f32 %v1297_v39, %v1296_v54  ;;  %v1130_v3 = vpop.f32.mrb[9].mxu1  ;;  %1280 = vst.msk [vmem:[%s2353_s24 + $0x10] sm:$0xf] %vm1275_vm4, %v1738_v59  ;;  %v1741_v6 = vpack.c.bf16 %v1202_v1, %v1202_v1  ;;  %v1303_v14 = vsel %vm773_vm0, %v1201_v49, 0.0 }
 0x209   : > { %v1358_v5 = vsel %vm773_vm0, %v1339_v61, 0.0  ;;  %v1880_v8 = vpop.f32.mrb[10].mxu1  ;;  %vm1167_vm11 = vcmp.ge.f32.partialorder %v1118_v2, 0.0  ;;  %v1184_v12 = vmul.f32 %v2342_v11, %v1118_v2  ;;  %v1139_v15 = vadd.f32 %v1879_v62, %v2340_v41 }
 0x20a   : > { %v1300_v9 = vadd.f32 %v1299_v60, %v1298_v0  ;;  %v1357_v10 = vadd.f32 %v1356_v4, %v1355_v63  ;;  %v1133_v13 = vpop.f32.mrb[11].mxu1  ;;  %1283 = vst.msk [vmem:[%s2353_s24 + $0x1c] sm:$0xf] %vm1275_vm4, %v1741_v6  ;;  %v1131_v17 = vadd.f32 %v2340_v41, %v1130_v3  ;;  %v1142_v19 = vadd.f32 %v1880_v8, %v2340_v41 }
 0x20b   : > { %v1362_v20 = vsel %vm773_vm0, %v1341_v58, 0.0  ;;  %v1200_v22 = vsel %vm1167_vm11, %v1118_v2, %v1184_v12  ;;  %v1134_v23 = vadd.f32 %v2340_v41, %v1133_v13  ;;  %vm1172_vm12 = vcmp.ge.f32.partialorder %v1139_v15, 0.0 }
 0x20c   : > { %v1359_v21 = vadd.f32 %v1358_v5, %v1357_v10  ;;  %v1739_v24 = vpack.c.bf16 %v1200_v22, %v1200_v22  ;;  %v1301_v25 = vsel %vm773_vm0, %v1200_v22, 0.0  ;;  %v1340_v26 = vmul.f32 %v1200_v22, %v1200_v22 }
 0x20d   : > { %v1302_v28 = vadd.f32 %v1301_v25, %v1300_v9  ;;  %v1189_v29 = vmul.f32 %v2342_v11, %v1139_v15  ;;  %vm1170_vm13 = vcmp.ge.f32.partialorder %v1131_v17, 0.0  ;;  %v1187_v30 = vmul.f32 %v2342_v11, %v1131_v17 }
 0x20e   : > { %v1342_v31 = vmul.f32 %v1202_v1, %v1202_v1  ;;  %1281 = vst.msk [vmem:[%s2353_s24 + $0x14] sm:$0xf] %vm1275_vm4, %v1739_v24  ;;  %v1360_v7 = vsel %vm773_vm0, %v1340_v26, 0.0  ;;  %vm1173_vm14 = vcmp.ge.f32.partialorder %v1142_v19, 0.0  ;;  %v1190_v32 = vmul.f32 %v2342_v11, %v1142_v19 }
 0x20f   : > { %v1883_v33 = vpop.f32.mrb[12].mxu1  ;;  %v1304_v34 = vadd.f32 %v1303_v14, %v1302_v28  ;;  %v1361_v35 = vadd.f32 %v1360_v7, %v1359_v21  ;;  %v1205_v36 = vsel %vm1172_vm12, %v1139_v15, %v1189_v29  ;;  %v1203_v37 = vsel %vm1170_vm13, %v1131_v17, %v1187_v30 }
 0x210   : > { %v1146_v38 = vpop.f32.mrb[13].mxu1  ;;  %v1305_v39 = vsel %vm773_vm0, %v1202_v1, 0.0  ;;  %v1744_v16 = vpack.c.bf16 %v1205_v36, %v1205_v36  ;;  %v1742_v40 = vpack.c.bf16 %v1203_v37, %v1203_v37  ;;  %vm1171_vm15 = vcmp.ge.f32.partialorder %v1134_v23, 0.0 }
 0x211   : > { %v1884_v18 = vpop.f32.mrb[14].mxu1  ;;  %v1363_v27 = vadd.f32 %v1362_v20, %v1361_v35  ;;  %v1306_v42 = vadd.f32 %v1305_v39, %v1304_v34  ;;  %v1307_v43 = vsel %vm773_vm0, %v1203_v37, 0.0  ;;  %v1343_v44 = vmul.f32 %v1203_v37, %v1203_v37 }
 0x212   : > { %v1149_v45 = vpop.f32.mrb[15].mxu1  ;;  %v1364_v46 = vsel %vm773_vm0, %v1342_v31, 0.0  ;;  %1286 = vst.msk [vmem:[%s2353_s24 + $0x28] sm:$0xf] %vm1275_vm4, %v1744_v16  ;;  %1284 = vst.msk [vmem:[%s2353_s24 + $0x20] sm:$0xf] %vm1275_vm4, %v1742_v40  ;;  %v1206_v47 = vsel %vm1173_vm14, %v1142_v19, %v1190_v32  ;;  %v1188_v48 = vmul.f32 %v2342_v11, %v1134_v23  ;;  %v1155_v49 = vadd.f32 %v1883_v33, %v2340_v41 }
 0x213   : > { %v1308_v50 = vadd.f32 %v1307_v43, %v1306_v42  ;;  %v1365_v51 = vadd.f32 %v1364_v46, %v1363_v27  ;;  %v1366_v52 = vsel %vm773_vm0, %v1343_v44, 0.0  ;;  %v1745_v53 = vpack.c.bf16 %v1206_v47, %v1206_v47 }
 0x214   : > { %v1311_v54 = vsel %vm773_vm0, %v1205_v36, 0.0  ;;  %v1204_v55 = vsel %vm1171_vm15, %v1134_v23, %v1188_v48  ;;  %vm1176_vm1 = vcmp.ge.f32.partialorder %v1155_v49, 0.0  ;;  %v1345_v60 = vmul.f32 %v1205_v36, %v1205_v36 }
 0x215   : > { %v1367_v56 = vadd.f32 %v1366_v52, %v1365_v51  ;;  %1287 = vst.msk [vmem:[%s2353_s24 + $0x2c] sm:$0xf] %vm1275_vm4, %v1745_v53  ;;  %v1743_v57 = vpack.c.bf16 %v1204_v55, %v1204_v55  ;;  %v1309_v58 = vsel %vm773_vm0, %v1204_v55, 0.0  ;;  %v1344_v59 = vmul.f32 %v1204_v55, %v1204_v55 }
 0x216   : > { %v1310_v61 = vadd.f32 %v1309_v58, %v1308_v50  ;;  %v1193_v62 = vmul.f32 %v2342_v11, %v1155_v49  ;;  %v1147_v63 = vadd.f32 %v2340_v41, %v1146_v38  ;;  %v1313_v0 = vsel %vm773_vm0, %v1206_v47, 0.0 }
 0x217   : > { %1285 = vst.msk [vmem:[%s2353_s24 + $0x24] sm:$0xf] %vm1275_vm4, %v1743_v57  ;;  %v1368_v1 = vsel %vm773_vm0, %v1344_v59, 0.0  ;;  %v1158_v2 = vadd.f32 %v1884_v18, %v2340_v41  ;;  %v1150_v3 = vadd.f32 %v2340_v41, %v1149_v45  ;;  %v1346_v10 = vmul.f32 %v1206_v47, %v1206_v47 }
 0x218   : > { %v1369_v4 = vadd.f32 %v1368_v1, %v1367_v56  ;;  %v1209_v5 = vsel %vm1176_vm1, %v1155_v49, %v1193_v62  ;;  %vm1174_vm2 = vcmp.ge.f32.partialorder %v1147_v63, 0.0  ;;  %v1191_v6 = vmul.f32 %v2342_v11, %v1147_v63 }
 0x219   : > { %v1748_v8 = vpack.c.bf16 %v1209_v5, %v1209_v5  ;;  %vm1177_vm3 = vcmp.ge.f32.partialorder %v1158_v2, 0.0  ;;  %v1194_v9 = vmul.f32 %v2342_v11, %v1158_v2  ;;  %vm1175_vm5 = vcmp.ge.f32.partialorder %v1150_v3, 0.0 }
 0x21a   : > { %v1207_v12 = vsel %vm1174_vm2, %v1147_v63, %v1191_v6  ;;  %v1192_v13 = vmul.f32 %v2342_v11, %v1150_v3  ;;  %v1312_v14 = vadd.f32 %v1311_v54, %v1310_v61  ;;  %v1370_v23 = vsel %vm773_vm0, %v1345_v60, 0.0 }
 0x21b   : > { %1290 = vst.msk [vmem:[%s2353_s24 + $0x38] sm:$0xf] %vm1275_vm4, %v1748_v8  ;;  %v1746_v41 = vpack.c.bf16 %v1207_v12, %v1207_v12  ;;  %v1347_v15 = vmul.f32 %v1207_v12, %v1207_v12  ;;  %v1210_v17 = vsel %vm1177_vm3, %v1158_v2, %v1194_v9  ;;  %v1315_v19 = vsel %vm773_vm0, %v1207_v12, 0.0 }
 0x21c   : > { %v1208_v20 = vsel %vm1175_vm5, %v1150_v3, %v1192_v13  ;;  %v1749_v21 = vpack.c.bf16 %v1210_v17, %v1210_v17  ;;  %v1314_v22 = vadd.f32 %v1313_v0, %v1312_v14  ;;  %v1371_v28 = vadd.f32 %v1370_v23, %v1369_v4 }
 0x21d   : > { %1288 = vst.msk [vmem:[%s2353_s24 + $0x30] sm:$0xf] %vm1275_vm4, %v1746_v41  ;;  %v1747_v24 = vpack.c.bf16 %v1208_v20, %v1208_v20  ;;  %v1348_v25 = vmul.f32 %v1208_v20, %v1208_v20  ;;  %v1317_v11 = vsel %vm773_vm0, %v1208_v20, 0.0  ;;  %v1372_v29 = vsel %vm773_vm0, %v1346_v10, 0.0 }
 0x21e   : > { %1291 = vst.msk [vmem:[%s2353_s24 + $0x3c] sm:$0xf] %vm1275_vm4, %v1749_v21  ;;  %v1316_v26 = vadd.f32 %v1315_v19, %v1314_v22  ;;  %v1374_v30 = vsel %vm773_vm0, %v1347_v15, 0.0  ;;  %v1373_v7 = vadd.f32 %v1372_v29, %v1371_v28  ;;  %v1319_v32 = vsel %vm773_vm0, %v1209_v5, 0.0 }
 0x21f   : > { %1289 = vst.msk [vmem:[%s2353_s24 + $0x34] sm:$0xf] %vm1275_vm4, %v1747_v24  ;;  %v1349_v33 = vmul.f32 %v1209_v5, %v1209_v5  ;;  %v1376_v34 = vsel %vm773_vm0, %v1348_v25, 0.0  ;;  %v1321_v37 = vsel %vm773_vm0, %v1210_v17, 0.0  ;;  %v1350_v38 = vmul.f32 %v1210_v17, %v1210_v17 }
 0x220   : > { %v1318_v31 = vadd.f32 %v1317_v11, %v1316_v26  ;;  %v1375_v36 = vadd.f32 %v1374_v30, %v1373_v7 }
 0x221   : > { %v1378_v40 = vsel %vm773_vm0, %v1349_v33, 0.0  ;;  %v1380_v27 = vsel %vm773_vm0, %v1350_v38, 0.0  ;;  %vm1333_vm0 = vcmask 0  }
 0x222   : > { %v1320_v35 = vadd.f32 %v1319_v32, %v1318_v31  ;;  %v1377_v16 = vadd.f32 %v1376_v34, %v1375_v36 }
 0x224   : > { %v1322_v39 = vadd.f32 %v1321_v37, %v1320_v35  ;;  %v1379_v18 = vadd.f32 %v1378_v40, %v1377_v16 }
 0x226   : > { %1323 = vadd.xlane.f32.xlu0 %v1322_v39  ;;  %v1381_v42 = vadd.f32 %v1380_v27, %v1379_v18 }
 0x22a   : > { %1382 = vadd.xlane.f32.xlu0 %v1381_v42 }
 0x2b3   : > { %v1324_v43 = vpop.xlane.xlu0 %1323 }
 0x2b4   : > { %v1325_v44 = vrot.slane %v1324_v43, 4 }
 0x2b6   : > { %v1326_v45 = vadd.f32 %v1325_v44, %v1324_v43 }
 0x2b7   : > { %v1383_v46 = vpop.xlane.xlu0 %1382 }
 0x2b8   : > { %v1327_v47 = vrot.slane %v1326_v45, 2  ;;  %v1384_v48 = vrot.slane %v1383_v46, 4 }
 0x2ba   : > { %v1385_v49 = vadd.f32 %v1384_v48, %v1383_v46  ;;  %v1328_v50 = vadd.f32 %v1327_v47, %v1326_v45 }
 0x2bc   : > { %v1386_v51 = vrot.slane %v1385_v49, 2  ;;  %v1329_v52 = vrot.slane %v1328_v50, 1 }
 0x2be   : > { %v1387_v53 = vadd.f32 %v1386_v51, %v1385_v49  ;;  %v1330_v54 = vadd.f32 %v1329_v52, %v1328_v50 }
 0x2c0   : > { %1885 = vpush %v1330_v54  ;;  %v1388_v55 = vrot.slane %v1387_v53, 1 }
 0x2c2   : > { %v1389_v56 = vadd.f32 %v1388_v55, %v1387_v53 }
 0x2c4   : > { %1887 = vpush %v1389_v56 }
 0x2f1   : > { %s1886_s28 = spop %1885 }
 0x2f2   : > { %v1332_v57 = vstv %s1886_s28 }
 0x2f3   : > { %1334 = vst.msk [vmem:[%s620_s27] sm:$0x1] %vm1333_vm0, %v1332_v57 }
 0x2f5   : > { %s1888_s10 = spop %1887 }
 0x2f6   : > { %v1391_v58 = vstv %s1888_s10 }
 0x2f7   : > { %1392 = vst.msk [vmem:[%s626_s30] sm:$0x1] %vm1333_vm0, %v1391_v58 }
 0x2f8 PF: > { %s28_s17 = sadd.s32 1, %s1997_s17   ;;  %s2489_s15 = smov %s1993_s16 }
 0x2f9   : > { %p25_p4 = scmp.ge.s32.totalorder %s28_s17, 4   ;;  %s2490_s16 = smov %s2492_s18 }
 0x2fb   :  { %27 = sbr.rel (!%p25_p4) target bundleno = 5 (0x5), region = 142 }
 0x302   :  { %1484 = vsyncpa [#allocation4], 1 }
 0x303   :  { %1486 = vsyncpa [#allocation4 + $0x1], 1 }
 0x304   :  { %1487 = vsyncpa [#allocation6], 1 }

// kernel: conv_tasnet_forward.25
= control target key start
LH: loop header
LB: loop body
LE: loop exit
PB: predicated region body
PF: predicated region fallthrough
CT: control target
= control target key end

     0   :  { %s1054_s18 = smov 0   ;;  %s1056_s19 = smov 0   ;;  %s1184_s0 = inlined_call_operand.vmem [shape: bf16[2,128,16], index: 0, kind: input, shape index: {}]   ;;  %s1185_s1 = inlined_call_operand.vmem [shape: bf16[2,128,32], index: 1, kind: input, shape index: {}]   ;;  %s1186_s2 = inlined_call_operand.vmem [shape: bf16[16,32], index: 2, kind: input, shape index: {}]   ;;  %s1187_s3 = inlined_call_operand.vmem [shape: f32[1,32], index: 3, kind: input, shape index: {}]   ;;  %s1188_s4 = inlined_call_operand.vmem [shape: bf16[32,16], index: 4, kind: input, shape index: {}]   ;;  %s1189_s5 = inlined_call_operand.vmem [shape: f32[2,128,16], index: 5, kind: output, shape index: {}]  }
   0x1   :  { %s1058_s20 = smov 0  }
   0x2 LB: > { %s27_s21 = sadd.s32 1, %s1018_s19  ;;  %p829_p0 = scmp.ge.s32.totalorder %s1022_s20, 1  ;;  %s1022_s20 = sphi %s1058_s20, %s15_s20   ;;  %s1018_s19 = sphi %s1056_s19, %s1191_s19   ;;  %s1014_s18 = sphi %s1054_s18, %s1190_s18  }
   0x3   : > { %p29_p1 = scmp.ge.s32.totalorder %s27_s21, 2  ;;  %p225_p2 = scmp.lt.s32.totalorder %s1022_s20, 3 }
   0x5   : > { %s1193_s21 = smov (%p29_p1, %s27_s21), 0  ;;  %p226_p3 = pnand %p829_p0, %p225_p2 }
   0x6   : > { %v989_v0 = vld [vmem:[%s1186_s2] sm:$0xff] (!%p226_p3)   ;;  %p271_p4 = scmp.lt.s32.totalorder (!%p226_p3), %s1014_s18, 1  ;;  %vm372_vm0 = vcmask (!%p226_p3), 130048   ;;  %v999_v10 = vld [vmem:[%s1188_s4 + $0x8] sm:$0xff] (!%p226_p3)   ;;  %vm582_vm1 = vcmask (!%p226_p3), 261120  }
   0x7   : > { %229 = sbr.rel (%p226_p3) target bundleno = 483 (0x1e3), region = 40  ;;  %927 = vmatprep.subr.bf16.mxu0 (!%p226_p3), %v989_v0  ;;  %v998_v9 = vld [vmem:[%s1188_s4] sm:$0xff] (!%p226_p3)  }
   0x8   : > { %928 = vmatpush3.bf16.msra.mxu0 (!%p226_p3), %v989_v0  ;;  %945 = vmatprep.subr.bf16.mxu1 (!%p226_p3), %v998_v9  ;;  %v1103_v11 = vld [vmem:[%s1187_s3] ss:$0 sm:$0xff] (!%p226_p3) }
   0x9   : > { %946 = vmatpush3.bf16.msra.mxu1 (!%p226_p3), %v998_v9 }
   0xa   : > { %947 = vmatprep.subr.bf16.mxu1 (!%p226_p3), %v999_v10 }
   0xd   : > { %948 = vmatpush3.bf16.msra.mxu1 (!%p226_p3), %v999_v10 }
   0xe   : > { %s1195_s18 = smov (!%p271_p4, %s1014_s18), 1 }
   0xf   : > { %s866_s24 = sshll.u32 %s1195_s18, 6  ;;  %s868_s12 = sshll.u32 %s1195_s18, 7 }
  0x10   : > { %s278_s27 = scalar_lea.vmem %s1184_s0, %s866_s24  ;;  %s1098_s9 = scalar_lea.vmem %s1185_s1, %s866_s24 }
  0x11   : > { %v990_v1 = vld [vmem:[%s278_s27] sm:$0xff]   ;;  %v991_v2 = vld [vmem:[%s278_s27 + $0x8] sm:$0xff]   ;;  %v992_v3 = vld [vmem:[%s278_s27 + $0x10] sm:$0xff]   ;;  %s1141_s15 = scalar_lea.vmem %s1189_s5, %s868_s12 }
  0x12   : > { %929 = vmatprep.mubr.msk.bf16.mxu0 %vm372_vm0, %v990_v1  ;;  %v993_v4 = vld [vmem:[%s278_s27 + $0x18] sm:$0xff]   ;;  %v994_v5 = vld [vmem:[%s278_s27 + $0x20] sm:$0xff]   ;;  %v995_v6 = vld [vmem:[%s278_s27 + $0x28] sm:$0xff]  }
  0x13   : > { %930 = vmatmul.mubr.msk.bf16.vlgmr.msra.gmra.mrb[0].mxu0 %vm372_vm0, %v991_v2  ;;  %v996_v7 = vld [vmem:[%s278_s27 + $0x30] sm:$0xff]   ;;  %v997_v8 = vld [vmem:[%s278_s27 + $0x38] sm:$0xff]   ;;  %v901_v12 = vld [vmem:[%s1098_s9 + $0x8] sm:$0xff]  }
  0x14   : > { %933 = vmatprep.mubr.msk.bf16.mxu0 %vm372_vm0, %v992_v3  ;;  %v870_v13 = vld [vmem:[%s1098_s9] sm:$0xff]   ;;  %v875_v16 = vunpack.c.l.bf16 %v901_v12  ;;  %v876_v23 = vunpack.c.h.bf16 %v901_v12  ;;  %v903_v32 = vld [vmem:[%s1098_s9 + $0x18] sm:$0xff]   ;;  %v902_v34 = vld [vmem:[%s1098_s9 + $0x10] sm:$0xff]  }
  0x15   : > { %v871_v19 = vunpack.c.l.bf16 %v870_v13  ;;  %v872_v27 = vunpack.c.h.bf16 %v870_v13  ;;  %v883_v39 = vunpack.c.l.bf16 %v903_v32  ;;  %v879_v42 = vunpack.c.l.bf16 %v902_v34  ;;  %v905_v56 = vld [vmem:[%s1098_s9 + $0x28] sm:$0xff]   ;;  %v904_v58 = vld [vmem:[%s1098_s9 + $0x20] sm:$0xff]  }
  0x16   : > { %v884_v47 = vunpack.c.h.bf16 %v903_v32  ;;  %v880_v51 = vunpack.c.h.bf16 %v902_v34  ;;  %v891_v63 = vunpack.c.l.bf16 %v905_v56  ;;  %v887_v3 = vunpack.c.l.bf16 %v904_v58 }
  0x17   : > { %v888_v12 = vunpack.c.h.bf16 %v904_v58 }
  0x1b   : > { %934 = vmatmul.mubr.msk.bf16.gmra.mrb[4].mxu0 %vm372_vm0, %v993_v4 }
  0x1c   : > { %937 = vmatprep.mubr.msk.bf16.mxu0 %vm372_vm0, %v994_v5 }
  0x23   : > { %938 = vmatmul.mubr.msk.bf16.gmra.mrb[8].mxu0 %vm372_vm0, %v995_v6 }
  0x24   : > { %941 = vmatprep.mubr.msk.bf16.mxu0 %vm372_vm0, %v996_v7  ;;  %v892_v7 = vunpack.c.h.bf16 %v905_v56 }
  0x2b   : > { %942 = vmatmul.mubr.msk.bf16.gmra.mrb[12].mxu0 %vm372_vm0, %v997_v8 }
  0xe6   : > { %v931_v14 = vpop.f32.mrb[0].mxu0 }
  0xe7   : > { %v440_v15 = vadd.f32 %v931_v14, %v1103_v11  ;;  %v431_v17 = vpop.f32.mrb[1].mxu0 }
  0xe8   : > { %v432_v18 = vadd.f32 %v1103_v11, %v431_v17  ;;  %v932_v20 = vpop.f32.mrb[2].mxu0  ;;  %v907_v17 = vld [vmem:[%s1098_s9 + $0x38] sm:$0xff]  }
  0xe9   : > { %v496_v21 = vmax.f32 %v440_v15, 0.0  ;;  %v443_v22 = vadd.f32 %v932_v20, %v1103_v11  ;;  %v434_v24 = vpop.f32.mrb[3].mxu0  ;;  %v900_v32 = vunpack.c.h.bf16 %v907_v17 }
  0xea   : > { %v494_v25 = vmax.f32 %v432_v18, 0.0  ;;  %v435_v26 = vadd.f32 %v1103_v11, %v434_v24  ;;  %v899_v24 = vunpack.c.l.bf16 %v907_v17 }
  0xeb   : > { %v544_v28 = vmul.f32 %v875_v16, %v496_v21  ;;  %v497_v29 = vmax.f32 %v443_v22, 0.0 }
  0xec   : > { %v542_v30 = vmul.f32 %v871_v19, %v494_v25  ;;  %v495_v31 = vmax.f32 %v435_v26, 0.0  ;;  %v906_v19 = vld [vmem:[%s1098_s9 + $0x30] sm:$0xff]  }
  0xed   : > { %v545_v33 = vmul.f32 %v876_v23, %v497_v29 }
  0xee   : > { %v543_v35 = vmul.f32 %v872_v27, %v495_v31  ;;  %v935_v36 = vpop.f32.mrb[4].mxu0 }
  0xef   : > { %v559_v37 = vpack.c.bf16 %v545_v33, %v544_v28  ;;  %v456_v38 = vadd.f32 %v935_v36, %v1103_v11  ;;  %v447_v40 = vpop.f32.mrb[5].mxu0  ;;  %v895_v28 = vunpack.c.l.bf16 %v906_v19  ;;  %v896_v36 = vunpack.c.h.bf16 %v906_v19 }
  0xf0   : > { %v448_v41 = vadd.f32 %v1103_v11, %v447_v40  ;;  %v936_v43 = vpop.f32.mrb[6].mxu0  ;;  %v558_v44 = vpack.c.bf16 %v543_v35, %v542_v30 }
  0xf1   : > { %v500_v45 = vmax.f32 %v456_v38, 0.0  ;;  %v459_v46 = vadd.f32 %v936_v43, %v1103_v11  ;;  %v450_v48 = vpop.f32.mrb[7].mxu0 }
  0xf2   : > { %v498_v49 = vmax.f32 %v448_v41, 0.0  ;;  %v451_v50 = vadd.f32 %v1103_v11, %v450_v48  ;;  %949 = vmatprep.mubr.msk.bf16.mxu1 %vm582_vm1, %v558_v44 }
  0xf3   : > { %v548_v52 = vmul.f32 %v883_v39, %v500_v45  ;;  %v501_v53 = vmax.f32 %v459_v46, 0.0  ;;  %950 = vmatmul.mubr.msk.bf16.vlgmr.msra.gmra.mrb[0].mxu1 %vm582_vm1, %v559_v37 }
  0xf4   : > { %v546_v54 = vmul.f32 %v879_v42, %v498_v49  ;;  %v499_v55 = vmax.f32 %v451_v50, 0.0 }
  0xf5   : > { %v549_v57 = vmul.f32 %v884_v47, %v501_v53 }
  0xf6   : > { %v547_v59 = vmul.f32 %v880_v51, %v499_v55  ;;  %v939_v60 = vpop.f32.mrb[8].mxu0 }
  0xf7   : > { %v561_v61 = vpack.c.bf16 %v549_v57, %v548_v52  ;;  %v472_v62 = vadd.f32 %v939_v60, %v1103_v11  ;;  %v463_v0 = vpop.f32.mrb[9].mxu0 }
  0xf8   : > { %v560_v1 = vpack.c.bf16 %v547_v59, %v546_v54  ;;  %v464_v2 = vadd.f32 %v1103_v11, %v463_v0  ;;  %v940_v4 = vpop.f32.mrb[10].mxu0 }
  0xf9   : > { %v504_v5 = vmax.f32 %v472_v62, 0.0  ;;  %v475_v6 = vadd.f32 %v940_v4, %v1103_v11  ;;  %v466_v8 = vpop.f32.mrb[11].mxu0 }
  0xfa   : > { %v502_v9 = vmax.f32 %v464_v2, 0.0  ;;  %v467_v10 = vadd.f32 %v1103_v11, %v466_v8  ;;  %953 = vmatprep.mubr.msk.bf16.mxu1 %vm582_vm1, %v560_v1 }
  0xfb   : > { %v552_v13 = vmul.f32 %v891_v63, %v504_v5  ;;  %v505_v14 = vmax.f32 %v475_v6, 0.0  ;;  %954 = vmatmul.mubr.msk.bf16.gmra.mrb[4].mxu1 %vm582_vm1, %v561_v61 }
  0xfc   : > { %v550_v15 = vmul.f32 %v887_v3, %v502_v9  ;;  %v503_v16 = vmax.f32 %v467_v10, 0.0 }
  0xfd   : > { %v553_v18 = vmul.f32 %v892_v7, %v505_v14 }
  0xfe   : > { %v551_v20 = vmul.f32 %v888_v12, %v503_v16  ;;  %v943_v21 = vpop.f32.mrb[12].mxu0 }
  0xff   : > { %v563_v22 = vpack.c.bf16 %v553_v18, %v552_v13  ;;  %v488_v23 = vadd.f32 %v943_v21, %v1103_v11  ;;  %v479_v25 = vpop.f32.mrb[13].mxu0 }
 0x100   : > { %v562_v26 = vpack.c.bf16 %v551_v20, %v550_v15  ;;  %v480_v27 = vadd.f32 %v1103_v11, %v479_v25  ;;  %v944_v29 = vpop.f32.mrb[14].mxu0 }
 0x101   : > { %v508_v30 = vmax.f32 %v488_v23, 0.0  ;;  %v491_v31 = vadd.f32 %v944_v29, %v1103_v11  ;;  %v482_v33 = vpop.f32.mrb[15].mxu0 }
 0x102   : > { %v506_v34 = vmax.f32 %v480_v27, 0.0  ;;  %v483_v35 = vadd.f32 %v1103_v11, %v482_v33  ;;  %957 = vmatprep.mubr.msk.bf16.mxu1 %vm582_vm1, %v562_v26 }
 0x103   : > { %v556_v37 = vmul.f32 %v899_v24, %v508_v30  ;;  %v509_v38 = vmax.f32 %v491_v31, 0.0  ;;  %958 = vmatmul.mubr.msk.bf16.gmra.mrb[8].mxu1 %vm582_vm1, %v563_v22 }
 0x104   : > { %v554_v39 = vmul.f32 %v895_v28, %v506_v34  ;;  %v507_v40 = vmax.f32 %v483_v35, 0.0 }
 0x105   : > { %v557_v41 = vmul.f32 %v900_v32, %v509_v38 }
 0x106   : > { %v555_v42 = vmul.f32 %v896_v36, %v507_v40 }
 0x107   : > { %v565_v43 = vpack.c.bf16 %v557_v41, %v556_v37 }
 0x108   : > { %v564_v44 = vpack.c.bf16 %v555_v42, %v554_v39 }
 0x10a   : > { %961 = vmatprep.mubr.msk.bf16.mxu1 %vm582_vm1, %v564_v44 }
 0x10b   : > { %962 = vmatmul.mubr.msk.bf16.gmra.mrb[12].mxu1 %vm582_vm1, %v565_v43 }
 0x1c6   : > { %v951_v11 = vpop.f32.mrb[0].mxu1 }
 0x1c7   : > { %706 = vst.msk [vmem:[%s1141_s15 + $0x10] sm:$0xff] %vm372_vm0, %v951_v11  ;;  %v641_v45 = vpop.f32.mrb[1].mxu1 }
 0x1c8   : > { %704 = vst.msk [vmem:[%s1141_s15] sm:$0xff] %vm372_vm0, %v641_v45  ;;  %v952_v46 = vpop.f32.mrb[2].mxu1 }
 0x1c9   : > { %707 = vst.msk [vmem:[%s1141_s15 + $0x18] sm:$0xff] %vm372_vm0, %v952_v46  ;;  %v644_v47 = vpop.f32.mrb[3].mxu1 }
 0x1ca   : > { %705 = vst.msk [vmem:[%s1141_s15 + $0x8] sm:$0xff] %vm372_vm0, %v644_v47 }
 0x1ce   : > { %v955_v48 = vpop.f32.mrb[4].mxu1 }
 0x1cf   : > { %710 = vst.msk [vmem:[%s1141_s15 + $0x30] sm:$0xff] %vm372_vm0, %v955_v48  ;;  %v657_v49 = vpop.f32.mrb[5].mxu1 }
 0x1d0   : > { %708 = vst.msk [vmem:[%s1141_s15 + $0x20] sm:$0xff] %vm372_vm0, %v657_v49  ;;  %v956_v50 = vpop.f32.mrb[6].mxu1 }
 0x1d1   : > { %711 = vst.msk [vmem:[%s1141_s15 + $0x38] sm:$0xff] %vm372_vm0, %v956_v50  ;;  %v660_v51 = vpop.f32.mrb[7].mxu1 }
 0x1d2   : > { %709 = vst.msk [vmem:[%s1141_s15 + $0x28] sm:$0xff] %vm372_vm0, %v660_v51 }
 0x1d6   : > { %v959_v52 = vpop.f32.mrb[8].mxu1 }
 0x1d7   : > { %714 = vst.msk [vmem:[%s1141_s15 + $0x50] sm:$0xff] %vm372_vm0, %v959_v52  ;;  %v673_v53 = vpop.f32.mrb[9].mxu1 }
 0x1d8   : > { %712 = vst.msk [vmem:[%s1141_s15 + $0x40] sm:$0xff] %vm372_vm0, %v673_v53  ;;  %v960_v54 = vpop.f32.mrb[10].mxu1 }
 0x1d9   : > { %715 = vst.msk [vmem:[%s1141_s15 + $0x58] sm:$0xff] %vm372_vm0, %v960_v54  ;;  %v676_v55 = vpop.f32.mrb[11].mxu1 }
 0x1da   : > { %713 = vst.msk [vmem:[%s1141_s15 + $0x48] sm:$0xff] %vm372_vm0, %v676_v55 }
 0x1de   : > { %v963_v56 = vpop.f32.mrb[12].mxu1 }
 0x1df   : > { %718 = vst.msk [vmem:[%s1141_s15 + $0x70] sm:$0xff] %vm372_vm0, %v963_v56  ;;  %v689_v57 = vpop.f32.mrb[13].mxu1 }
 0x1e0   : > { %716 = vst.msk [vmem:[%s1141_s15 + $0x60] sm:$0xff] %vm372_vm0, %v689_v57  ;;  %v964_v58 = vpop.f32.mrb[14].mxu1 }
 0x1e1   : > { %719 = vst.msk [vmem:[%s1141_s15 + $0x78] sm:$0xff] %vm372_vm0, %v964_v58  ;;  %v692_v59 = vpop.f32.mrb[15].mxu1 }
 0x1e2   : > { %717 = vst.msk [vmem:[%s1141_s15 + $0x68] sm:$0xff] %vm372_vm0, %v692_v59 }
 0x1e3 PF: > { %s15_s20 = sadd.s32 1, %s1022_s20   ;;  %s1190_s18 = smov %s1018_s19 }
 0x1e4   : > { %p12_p5 = scmp.ge.s32.totalorder %s15_s20, 4   ;;  %s1191_s19 = smov %s1193_s21 }
 0x1e6   :  { %14 = sbr.rel (!%p12_p5) target bundleno = 2 (0x2), region = 73 }

// kernel: conv_tasnet_forward.18
= control target key start
LH: loop header
LB: loop body
LE: loop exit
PB: predicated region body
PF: predicated region fallthrough
CT: control target
= control target key end

     0   :  { %s2141_s0 = inlined_call_operand.vmem [shape: bf16[2,128,32], index: 0, kind: input, shape index: {}]   ;;  %s2142_s1 = inlined_call_operand.vmem [shape: f32[2], index: 1, kind: input, shape index: {}]   ;;  %s2143_s2 = inlined_call_operand.vmem [shape: f32[2], index: 2, kind: input, shape index: {}]   ;;  %s2144_s3 = inlined_call_operand.vmem [shape: f32[1,32], index: 3, kind: input, shape index: {}]   ;;  %s2145_s4 = inlined_call_operand.vmem [shape: f32[1,32], index: 4, kind: input, shape index: {}]   ;;  %s2146_s5 = inlined_call_operand.vmem [shape: f32[3,32], index: 5, kind: input, shape index: {}]   ;;  %s2147_s6 = inlined_call_operand.vmem [shape: f32[1,32], index: 6, kind: input, shape index: {}]   ;;  %s2148_s7 = inlined_call_operand.<no memory space> [shape: f32[1], index: 7, kind: input, shape index: {}]   ;;  %s2149_s8 = inlined_call_operand.vmem [shape: bf16[2,128,32], index: 8, kind: output, shape index: {0}]   ;;  %s2150_s9 = inlined_call_operand.vmem [shape: f32[2,1,1,1], index: 9, kind: output, shape index: {1}]   ;;  %s2151_s10 = inlined_call_operand.vmem [shape: f32[2,1,1,1], index: 10, kind: output, shape index: {2}]  }
   0x1   :  { %16 = sst [smem:[#allocation2]] %s2148_s7 }
   0x2   :  { %17 = vsyncpa [#allocation4], 0 }
   0x3   :  { %18 = vsyncpa [#allocation6], 0  ;;  %s1635_s15 = smov 0   ;;  %s1637_s16 = smov 0  }
   0x4   :  { %s1639_s17 = smov 0  }
   0x5 LB: > { %s1366_s7 = sadd.s32 4294967295, %s1573_s17   ;;  %s36_s18 = sadd.s32 1, %s1569_s16  ;;  %s1573_s17 = sphi %s1639_s17, %s24_s17   ;;  %s1569_s16 = sphi %s1637_s16, %s2194_s16   ;;  %s1565_s15 = sphi %s1635_s15, %s2193_s15  }
   0x6   : > { %p38_p0 = scmp.ge.s32.totalorder %s36_s18, 2  ;;  %p1368_p1 = scmp.ge.s32.totalorder %s1573_s17, 1 }
   0x7   : > { %p320_p2 = scmp.lt.s32.totalorder %s1573_s17, 3  ;;  %p1660_p4 = scmp.eq.s32.totalorder %s1366_s7, 0 }
   0x8   : > { %s2196_s18 = smov (%p38_p0, %s36_s18), 0  ;;  %s333_s23 = sshll.u32 %s2142_s1, 4  ;;  %s334_s23 = int_to_ptr.vmem [resolvable:$true] %s333_s23 }
   0x9   : > { %p1656_p3 = pnand %p1368_p1, %p320_p2  ;;  %s344_s26 = sshll.u32 %s2143_s2, 4  ;;  %s345_s26 = int_to_ptr.vmem [resolvable:$true] %s344_s26 }
   0xa   : > { %s2156_s20 = scalar_select %p1660_p4, 1, 0 }
   0xb   : > { %s2155_s19 = scalar_select %p1656_p3, 1, 0 }
   0xc   : > { %p1476_p5 = pneg %p1656_p3  ;;  %s1513_s28 = scalar_lea.vmem %s334_s23, 16 }
   0xd   : > { %p1514_p7 = scmp.ne.s32.totalorder %s334_s23, %s1513_s28  ;;  %p1521_p11 = scmp.lt.s32.totalorder %s334_s23, %s334_s23 }
   0xe   : > { %p1674_p6 = pnand %p1660_p4, %p1476_p5  ;;  %p1522_p12 = scmp.lt.s32.totalorder %s1513_s28, %s1513_s28 }
  0x10   : > { %p1515_p8 = pneg %p1674_p6  ;;  %p1523_p13 = por %p1522_p12, %p1521_p11 }
  0x12   : > { %p1516_p9 = pnand %p1515_p8, %p1514_p7 }
  0x14   : > { %p1517_p10 = pneg %p1516_p9 }
  0x16   : > { %p1524_p0 = pnand %p1523_p13, %p1517_p10 }
  0x18   : > { %1527 = shalt.err (!%p1524_p0)
}
  0x19   : > { %s1575_s29 = smov [#allocation3]   ;;  %s1528_s30 = scalar_lea.vmem %s345_s26, 16 }
  0x1a   : > { %1479 = dma.vmem_to_smem (!%p1674_p6), %s334_s23, 16, %s1575_s29, [#allocation4]  }
  0x1b   : > { %p1529_p1 = scmp.ne.s32.totalorder %s345_s26, %s1528_s30  ;;  %p1536_p4 = scmp.lt.s32.totalorder %s345_s26, %s345_s26 }
  0x1c   : > { %p1537_p3 = scmp.lt.s32.totalorder %s1528_s30, %s1528_s30 }
  0x1d   : > { %p1531_p2 = pnand %p1529_p1, %p1515_p8 }
  0x1e   : > { %p1538_p7 = por %p1537_p3, %p1536_p4 }
  0x1f   : > { %p1532_p5 = pneg %p1531_p2 }
  0x21   : > { %p1539_p9 = pnand %p1538_p7, %p1532_p5 }
  0x23   : > { %1542 = shalt.err (!%p1539_p9)
}
  0x24   : > { %s1576_s11 = smov [#allocation5]   ;;  %p2158_p10 = scmp.ne.s32.totalorder %s2155_s19, 0 }
  0x25   : > { %1482 = dma.vmem_to_smem (!%p1674_p6), %s345_s26, 16, %s1576_s11, [#allocation6]  }
  0x26   : > { %396 = sbr.rel (%p2158_p10) target bundleno = 385 (0x181), region = 52  ;;  %p2159_p11 = scmp.ne.s32.totalorder (!%p2158_p10), %s2156_s20, 0 }
  0x2d   : > { %1556 = dma.done.wait (%p2159_p11), [#allocation4], 16  }
  0x2e   : > { %1558 = vsyncadd (%p2159_p11), [#allocation4], 4294967280 }
  0x2f   : > { %1560 = dma.done.wait (%p2159_p11), [#allocation6], 16  }
  0x30   : > { %1562 = vsyncadd (%p2159_p11), [#allocation6], 4294967280 }
  0x31   : > { %406 = sfence }
  0x32   : > { %p470_p3 = scmp.lt.s32.totalorder %s1565_s15, 1  ;;  %s543_s12 = sld [smem:[#allocation3 + %s1565_s15]]  ;;  %v625_v0 = vlaneseq  ;;  %v1383_v54 = vld [vmem:[%s2144_s3] ss:$0 sm:$0xff] }
  0x33   : > { %s1708_s20 = sld [smem:[#allocation5 + %s1565_s15]] }
  0x34   : > { %s1697_s13 = scalar_select %p470_p3, %s1565_s15, 1  ;;  %v1705_v1 = vshrl.u32 %v625_v0, 7 }
  0x35   : > { %s1713_s22 = sld [smem:[#allocation2]] }
  0x36   : > { %s1407_s14 = sshll.u32 %s1697_s13, 6  ;;  %v1711_v11 = vadd.s32 120, %v1705_v1  ;;  %vm658_vm0 = vcmp.lt.s32.totalorder %v1705_v1, 2  ;;  %vm675_vm1 = vcmp.ge.s32.totalorder %v1705_v1, 2  ;;  %vm797_vm2 = vcmp.lt.s32.totalorder %v1705_v1, 6  ;;  %s504_s15 = scalar_lea.vmem %s2150_s9, %s1697_s13 }
  0x37   : > { %s477_s21 = scalar_lea.vmem %s2141_s0, %s1407_s14  ;;  %s510_s26 = scalar_lea.vmem %s2151_s10, %s1697_s13 }
  0x38   : > { %v1426_v2 = vld [vmem:[%s477_s21] sm:$0xff]   ;;  %v1457_v3 = vld [vmem:[%s477_s21 + $0x8] sm:$0xff]   ;;  %v1458_v4 = vld [vmem:[%s477_s21 + $0x10] sm:$0xff]   ;;  %v544_v10 = vstv %s543_s12  ;;  %vm829_vm3 = vcmp.lt.s32.totalorder %v1711_v11, 126 }
  0x39   : > { %v1427_v5 = vunpack.c.l.bf16 %v1426_v2  ;;  %v1428_v6 = vunpack.c.h.bf16 %v1426_v2  ;;  %v1459_v7 = vld [vmem:[%s477_s21 + $0x18] sm:$0xff]   ;;  %v1460_v8 = vld [vmem:[%s477_s21 + $0x20] sm:$0xff]   ;;  %v1461_v9 = vld [vmem:[%s477_s21 + $0x28] sm:$0xff]   ;;  %v1431_v12 = vunpack.c.l.bf16 %v1457_v3  ;;  %v1432_v13 = vunpack.c.h.bf16 %v1457_v3 }
  0x3a   : > { %v1435_v14 = vunpack.c.l.bf16 %v1458_v4  ;;  %v1436_v15 = vunpack.c.h.bf16 %v1458_v4  ;;  %v1462_v16 = vld [vmem:[%s477_s21 + $0x30] sm:$0xff]   ;;  %v1463_v17 = vld [vmem:[%s477_s21 + $0x38] sm:$0xff]   ;;  %v1439_v18 = vunpack.c.l.bf16 %v1459_v7  ;;  %v1440_v19 = vunpack.c.h.bf16 %v1459_v7 }
  0x3b   : > { %v1443_v20 = vunpack.c.l.bf16 %v1460_v8  ;;  %v1444_v21 = vunpack.c.h.bf16 %v1460_v8  ;;  %v1447_v22 = vunpack.c.l.bf16 %v1461_v9  ;;  %v1448_v23 = vunpack.c.h.bf16 %v1461_v9  ;;  %v1384_v8 = vld [vmem:[%s2145_s4] ss:$0 sm:$0xff] }
  0x3c   : > { %v1451_v24 = vunpack.c.l.bf16 %v1462_v16  ;;  %v1452_v25 = vunpack.c.h.bf16 %v1462_v16  ;;  %v1455_v26 = vunpack.c.l.bf16 %v1463_v17  ;;  %v1456_v27 = vunpack.c.h.bf16 %v1463_v17 }
  0x3d   : > { %v545_v28 = vsub.f32 %v1427_v5, %v544_v10  ;;  %v546_v29 = vsub.f32 %v1428_v6, %v544_v10  ;;  %v547_v30 = vsub.f32 %v1431_v12, %v544_v10  ;;  %v548_v31 = vsub.f32 %v1432_v13, %v544_v10 }
  0x3e   : > { %v549_v32 = vsub.f32 %v1435_v14, %v544_v10  ;;  %v550_v33 = vsub.f32 %v1436_v15, %v544_v10  ;;  %v551_v34 = vsub.f32 %v1439_v18, %v544_v10  ;;  %v552_v35 = vsub.f32 %v1440_v19, %v544_v10 }
  0x3f   : > { %v553_v36 = vsub.f32 %v1443_v20, %v544_v10  ;;  %v554_v37 = vsub.f32 %v1444_v21, %v544_v10  ;;  %v555_v38 = vsub.f32 %v1447_v22, %v544_v10  ;;  %v556_v39 = vsub.f32 %v1448_v23, %v544_v10 }
  0x40   : > { %v557_v40 = vsub.f32 %v1451_v24, %v544_v10  ;;  %v558_v41 = vsub.f32 %v1452_v25, %v544_v10  ;;  %v559_v42 = vsub.f32 %v1455_v26, %v544_v10  ;;  %v560_v43 = vsub.f32 %v1456_v27, %v544_v10 }
  0x41   : > { %v562_v44 = vstv %s1708_s20  ;;  %v1717_v45 = vstv %s1713_s22  ;;  %s1980_s20 = scalar_lea.vmem %s2149_s8, %s1407_s14 }
  0x42   : > { %v563_v46 = vmul.f32 %v562_v44, %v545_v28  ;;  %v564_v47 = vmul.f32 %v562_v44, %v546_v29  ;;  %v565_v48 = vmul.f32 %v562_v44, %v547_v30  ;;  %v566_v49 = vmul.f32 %v562_v44, %v548_v31 }
  0x43   : > { %v567_v50 = vmul.f32 %v562_v44, %v549_v32  ;;  %v568_v51 = vmul.f32 %v562_v44, %v550_v33  ;;  %v569_v52 = vmul.f32 %v562_v44, %v551_v34  ;;  %v570_v53 = vmul.f32 %v562_v44, %v552_v35 }
  0x44   : > { %v571_v55 = vmul.f32 %v562_v44, %v553_v36  ;;  %v572_v56 = vmul.f32 %v562_v44, %v554_v37  ;;  %v573_v57 = vmul.f32 %v562_v44, %v555_v38  ;;  %v574_v58 = vmul.f32 %v562_v44, %v556_v39 }
  0x45   : > { %v575_v59 = vmul.f32 %v562_v44, %v557_v40  ;;  %v576_v60 = vmul.f32 %v562_v44, %v558_v41  ;;  %v577_v61 = vmul.f32 %v562_v44, %v559_v42  ;;  %v578_v62 = vmul.f32 %v562_v44, %v560_v43 }
  0x46   : > { %v586_v63 = vmul.f32 %v1383_v54, %v563_v46  ;;  %v587_v0 = vmul.f32 %v1383_v54, %v564_v47  ;;  %v588_v2 = vmul.f32 %v1383_v54, %v565_v48  ;;  %v589_v3 = vmul.f32 %v1383_v54, %v566_v49 }
  0x47   : > { %v590_v4 = vmul.f32 %v1383_v54, %v567_v50  ;;  %v591_v5 = vmul.f32 %v1383_v54, %v568_v51  ;;  %v592_v6 = vmul.f32 %v1383_v54, %v569_v52  ;;  %v593_v7 = vmul.f32 %v1383_v54, %v570_v53 }
  0x48   : > { %v594_v9 = vmul.f32 %v1383_v54, %v571_v55  ;;  %v595_v10 = vmul.f32 %v1383_v54, %v572_v56  ;;  %v596_v12 = vmul.f32 %v1383_v54, %v573_v57  ;;  %v597_v13 = vmul.f32 %v1383_v54, %v574_v58 }
  0x49   : > { %v598_v14 = vmul.f32 %v1383_v54, %v575_v59  ;;  %v599_v15 = vmul.f32 %v1383_v54, %v576_v60  ;;  %v600_v16 = vmul.f32 %v1383_v54, %v577_v61  ;;  %v601_v17 = vmul.f32 %v1383_v54, %v578_v62  ;;  %v1385_v59 = vld [vmem:[%s2146_s5] ss:$0 sm:$0xff] }
  0x4a   : > { %v1726_v18 = vadd.f32 %v1384_v8, %v586_v63  ;;  %v1728_v19 = vadd.f32 %v1384_v8, %v587_v0  ;;  %v1730_v20 = vadd.f32 %v1384_v8, %v588_v2  ;;  %v1732_v21 = vadd.f32 %v1384_v8, %v589_v3 }
  0x4b   : > { %v1734_v22 = vadd.f32 %v1384_v8, %v590_v4  ;;  %v1736_v23 = vadd.f32 %v1384_v8, %v591_v5  ;;  %v1738_v24 = vadd.f32 %v1384_v8, %v592_v6  ;;  %v1740_v25 = vadd.f32 %v1384_v8, %v593_v7 }
  0x4c   : > { %v1743_v26 = vadd.f32 %v1384_v8, %v594_v9  ;;  %v1745_v27 = vadd.f32 %v1384_v8, %v595_v10  ;;  %v1747_v28 = vadd.f32 %v1384_v8, %v596_v12  ;;  %v1749_v29 = vadd.f32 %v1384_v8, %v597_v13 }
  0x4d   : > { %v1751_v30 = vadd.f32 %v1384_v8, %v598_v14  ;;  %v1753_v31 = vadd.f32 %v1384_v8, %v599_v15  ;;  %v1755_v32 = vadd.f32 %v1384_v8, %v600_v16  ;;  %v1757_v33 = vadd.f32 %v1384_v8, %v601_v17  ;;  %v1386_v14 = vld [vmem:[%s2146_s5 + $0x1] ss:$0 sm:$0xff] }
  0x4e   : > { %v642_v34 = vrot.slane %v1726_v18, 6  ;;  %v643_v35 = vrot.slane %v1728_v19, 6  ;;  %v644_v36 = vrot.slane %v1730_v20, 6  ;;  %v645_v37 = vrot.slane %v1732_v21, 6 }
  0x4f   : > { %v646_v38 = vrot.slane %v1734_v22, 6  ;;  %v647_v39 = vrot.slane %v1736_v23, 6  ;;  %v648_v40 = vrot.slane %v1738_v24, 6  ;;  %v649_v41 = vrot.slane %v1740_v25, 6 }
  0x50   : > { %v650_v42 = vrot.slane %v1743_v26, 6  ;;  %v651_v43 = vrot.slane %v1745_v27, 6  ;;  %v652_v44 = vrot.slane %v1747_v28, 6  ;;  %v653_v46 = vrot.slane %v1749_v29, 6 }
  0x51   : > { %v654_v47 = vrot.slane %v1751_v30, 6  ;;  %v655_v48 = vrot.slane %v1753_v31, 6  ;;  %v656_v49 = vrot.slane %v1755_v32, 6  ;;  %v657_v50 = vrot.slane %v1757_v33, 6 }
  0x52   : > { %v663_v51 = vsel %vm658_vm0, %v652_v44, %v653_v46  ;;  %v664_v52 = vsel %vm658_vm0, %v651_v43, %v652_v44  ;;  %v665_v53 = vsel %vm658_vm0, %v650_v42, %v651_v43  ;;  %v666_v54 = vsel %vm658_vm0, %v649_v41, %v650_v42 }
  0x53   : > { %v659_v55 = vsel %vm658_vm0, %v656_v49, %v657_v50  ;;  %v660_v56 = vsel %vm658_vm0, %v655_v48, %v656_v49  ;;  %v661_v57 = vsel %vm658_vm0, %v654_v47, %v655_v48  ;;  %v662_v58 = vsel %vm658_vm0, %v653_v46, %v654_v47 }
  0x54   : > { %v667_v60 = vsel %vm658_vm0, %v648_v40, %v649_v41  ;;  %v668_v61 = vsel %vm658_vm0, %v647_v39, %v648_v40  ;;  %v669_v62 = vsel %vm658_vm0, %v646_v38, %v647_v39  ;;  %v670_v63 = vsel %vm658_vm0, %v645_v37, %v646_v38 }
  0x55   : > { %v671_v0 = vsel %vm658_vm0, %v644_v36, %v645_v37  ;;  %v672_v2 = vsel %vm658_vm0, %v643_v35, %v644_v36  ;;  %v673_v3 = vsel %vm658_vm0, %v642_v34, %v643_v35  ;;  %v674_v4 = vsel %vm658_vm0, %v657_v50, %v642_v34 }
  0x56   : > { %v691_v5 = vsel %vm675_vm1, %v674_v4, 0.0  ;;  %v713_v6 = vmul.f32 %v1385_v59, %v673_v3  ;;  %v714_v7 = vmul.f32 %v1385_v59, %v672_v2  ;;  %v715_v8 = vmul.f32 %v1385_v59, %v671_v0 }
  0x57   : > { %v712_v9 = vmul.f32 %v1385_v59, %v691_v5  ;;  %v716_v10 = vmul.f32 %v1385_v59, %v670_v63  ;;  %v717_v12 = vmul.f32 %v1385_v59, %v669_v62  ;;  %v718_v13 = vmul.f32 %v1385_v59, %v668_v61 }
  0x58   : > { %v719_v15 = vmul.f32 %v1385_v59, %v667_v60  ;;  %v720_v16 = vmul.f32 %v1385_v59, %v666_v54  ;;  %v721_v17 = vmul.f32 %v1385_v59, %v665_v53  ;;  %v722_v35 = vmul.f32 %v1385_v59, %v664_v52 }
  0x59   : > { %v723_v36 = vmul.f32 %v1385_v59, %v663_v51  ;;  %v724_v34 = vmul.f32 %v1385_v59, %v662_v58  ;;  %v725_v37 = vmul.f32 %v1385_v59, %v661_v57  ;;  %v726_v38 = vmul.f32 %v1385_v59, %v660_v56 }
  0x5a   : > { %v727_v39 = vmul.f32 %v1385_v59, %v659_v55  ;;  %v749_v40 = vmul.f32 %v1386_v14, %v1726_v18  ;;  %v750_v41 = vmul.f32 %v1386_v14, %v1728_v19  ;;  %v751_v42 = vmul.f32 %v1386_v14, %v1730_v20 }
  0x5b   : > { %v752_v43 = vmul.f32 %v1386_v14, %v1732_v21  ;;  %v753_v44 = vmul.f32 %v1386_v14, %v1734_v22  ;;  %v754_v46 = vmul.f32 %v1386_v14, %v1736_v23  ;;  %v755_v47 = vmul.f32 %v1386_v14, %v1738_v24 }
  0x5c   : > { %v756_v48 = vmul.f32 %v1386_v14, %v1740_v25  ;;  %v757_v49 = vmul.f32 %v1386_v14, %v1743_v26  ;;  %v758_v50 = vmul.f32 %v1386_v14, %v1745_v27  ;;  %v759_v51 = vmul.f32 %v1386_v14, %v1747_v28 }
  0x5d   : > { %v760_v52 = vmul.f32 %v1386_v14, %v1749_v29  ;;  %v761_v53 = vmul.f32 %v1386_v14, %v1751_v30  ;;  %v762_v54 = vmul.f32 %v1386_v14, %v1753_v31  ;;  %v763_v55 = vmul.f32 %v1386_v14, %v1755_v32 }
  0x5e   : > { %v764_v56 = vmul.f32 %v1386_v14, %v1757_v33  ;;  %v1832_v57 = vadd.f32 %v749_v40, %v712_v9  ;;  %v1834_v58 = vadd.f32 %v750_v41, %v713_v6  ;;  %v1836_v59 = vadd.f32 %v751_v42, %v714_v7 }
  0x5f   : > { %v1838_v60 = vadd.f32 %v752_v43, %v715_v8  ;;  %v1840_v61 = vadd.f32 %v753_v44, %v716_v10  ;;  %v1842_v62 = vadd.f32 %v754_v46, %v717_v12  ;;  %v1844_v63 = vadd.f32 %v755_v47, %v718_v13 }
  0x60   : > { %v1846_v0 = vadd.f32 %v756_v48, %v719_v15  ;;  %v1848_v2 = vadd.f32 %v757_v49, %v720_v16  ;;  %v1850_v3 = vadd.f32 %v758_v50, %v721_v17  ;;  %v1852_v4 = vadd.f32 %v759_v51, %v722_v35 }
  0x61   : > { %v1855_v5 = vadd.f32 %v760_v52, %v723_v36  ;;  %v1857_v6 = vadd.f32 %v761_v53, %v724_v34  ;;  %v1859_v7 = vadd.f32 %v762_v54, %v725_v37  ;;  %v1861_v8 = vadd.f32 %v763_v55, %v726_v38 }
  0x62   : > { %v1863_v9 = vadd.f32 %v764_v56, %v727_v39  ;;  %v781_v10 = vrot.slane %v1726_v18, 2  ;;  %v782_v12 = vrot.slane %v1728_v19, 2  ;;  %v783_v13 = vrot.slane %v1730_v20, 2 }
  0x63   : > { %v784_v14 = vrot.slane %v1732_v21, 2  ;;  %v785_v15 = vrot.slane %v1734_v22, 2  ;;  %v786_v16 = vrot.slane %v1736_v23, 2  ;;  %v787_v17 = vrot.slane %v1738_v24, 2 }
  0x64   : > { %v788_v35 = vrot.slane %v1740_v25, 2  ;;  %v789_v36 = vrot.slane %v1743_v26, 2  ;;  %v790_v34 = vrot.slane %v1745_v27, 2  ;;  %v791_v18 = vrot.slane %v1747_v28, 2 }
  0x65   : > { %v792_v19 = vrot.slane %v1749_v29, 2  ;;  %v793_v20 = vrot.slane %v1751_v30, 2  ;;  %v794_v21 = vrot.slane %v1753_v31, 2  ;;  %v795_v22 = vrot.slane %v1755_v32, 2  ;;  %v1387_v31 = vld [vmem:[%s2146_s5 + $0x2] ss:$0 sm:$0xff] }
  0x66   : > { %v796_v23 = vrot.slane %v1757_v33, 2  ;;  %v803_v24 = vsel %vm797_vm2, %v790_v34, %v791_v18  ;;  %v804_v25 = vsel %vm797_vm2, %v789_v36, %v790_v34  ;;  %v805_v26 = vsel %vm797_vm2, %v788_v35, %v789_v36  ;;  %v1388_v34 = vld [vmem:[%s2147_s6] ss:$0 sm:$0xff] }
  0x67   : > { %v799_v27 = vsel %vm797_vm2, %v794_v21, %v795_v22  ;;  %v800_v28 = vsel %vm797_vm2, %v793_v20, %v794_v21  ;;  %v801_v29 = vsel %vm797_vm2, %v792_v19, %v793_v20  ;;  %v802_v30 = vsel %vm797_vm2, %v791_v18, %v792_v19 }
  0x68   : > { %v798_v32 = vsel %vm797_vm2, %v795_v22, %v796_v23  ;;  %v806_v33 = vsel %vm797_vm2, %v787_v17, %v788_v35  ;;  %v807_v37 = vsel %vm797_vm2, %v786_v16, %v787_v17  ;;  %v808_v38 = vsel %vm797_vm2, %v785_v15, %v786_v16 }
  0x69   : > { %v809_v39 = vsel %vm797_vm2, %v784_v14, %v785_v15  ;;  %v810_v40 = vsel %vm797_vm2, %v783_v13, %v784_v14  ;;  %v811_v41 = vsel %vm797_vm2, %v782_v12, %v783_v13  ;;  %v812_v42 = vsel %vm797_vm2, %v781_v10, %v782_v12 }
  0x6a   : > { %v813_v43 = vsel %vm797_vm2, %v796_v23, %v781_v10  ;;  %v851_v44 = vmul.f32 %v1387_v31, %v812_v42  ;;  %v852_v46 = vmul.f32 %v1387_v31, %v811_v41  ;;  %v853_v47 = vmul.f32 %v1387_v31, %v810_v40 }
  0x6b   : > { %v845_v48 = vsel %vm829_vm3, %v813_v43, 0.0  ;;  %v854_v49 = vmul.f32 %v1387_v31, %v809_v39  ;;  %v855_v50 = vmul.f32 %v1387_v31, %v808_v38  ;;  %v856_v51 = vmul.f32 %v1387_v31, %v807_v37 }
  0x6c   : > { %v857_v52 = vmul.f32 %v1387_v31, %v806_v33  ;;  %v858_v53 = vmul.f32 %v1387_v31, %v805_v26  ;;  %v859_v54 = vmul.f32 %v1387_v31, %v804_v25  ;;  %v860_v55 = vmul.f32 %v1387_v31, %v803_v24 }
  0x6d   : > { %v861_v56 = vmul.f32 %v1387_v31, %v802_v30  ;;  %v862_v13 = vmul.f32 %v1387_v31, %v801_v29  ;;  %v863_v14 = vmul.f32 %v1387_v31, %v800_v28  ;;  %v864_v12 = vmul.f32 %v1387_v31, %v799_v27 }
  0x6e   : > { %v865_v15 = vmul.f32 %v1387_v31, %v798_v32  ;;  %v866_v1 = vmul.f32 %v1387_v31, %v845_v48  ;;  %v867_v10 = vadd.f32 %v851_v44, %v1832_v57  ;;  %v868_v16 = vadd.f32 %v852_v46, %v1834_v58 }
  0x6f   : > { %v869_v11 = vadd.f32 %v853_v47, %v1836_v59  ;;  %v870_v17 = vadd.f32 %v854_v49, %v1838_v60  ;;  %v871_v35 = vadd.f32 %v855_v50, %v1840_v61  ;;  %v872_v36 = vadd.f32 %v856_v51, %v1842_v62 }
  0x70   : > { %v873_v18 = vadd.f32 %v857_v52, %v1844_v63  ;;  %v874_v19 = vadd.f32 %v858_v53, %v1846_v0  ;;  %v875_v57 = vadd.f32 %v859_v54, %v1848_v2  ;;  %v876_v58 = vadd.f32 %v860_v55, %v1850_v3 }
  0x71   : > { %v877_v59 = vadd.f32 %v861_v56, %v1852_v4  ;;  %v878_v60 = vadd.f32 %v862_v13, %v1855_v5  ;;  %v879_v61 = vadd.f32 %v863_v14, %v1857_v6  ;;  %v880_v62 = vadd.f32 %v864_v12, %v1859_v7 }
  0x72   : > { %v881_v20 = vadd.f32 %v865_v15, %v1861_v8  ;;  %v882_v21 = vadd.f32 %v866_v1, %v1863_v9  ;;  %v890_v22 = vadd.f32 %v1388_v34, %v867_v10  ;;  %v891_v63 = vadd.f32 %v1388_v34, %v868_v16 }
  0x73   : > { %v892_v23 = vadd.f32 %v1388_v34, %v869_v11  ;;  %v893_v0 = vadd.f32 %v1388_v34, %v870_v17  ;;  %v894_v24 = vadd.f32 %v1388_v34, %v871_v35  ;;  %v895_v2 = vadd.f32 %v1388_v34, %v872_v36 }
  0x74   : > { %v896_v25 = vadd.f32 %v1388_v34, %v873_v18  ;;  %v897_v3 = vadd.f32 %v1388_v34, %v874_v19  ;;  %v898_v26 = vadd.f32 %v1388_v34, %v875_v57  ;;  %v899_v4 = vadd.f32 %v1388_v34, %v876_v58 }
  0x75   : > { %v900_v27 = vadd.f32 %v1388_v34, %v877_v59  ;;  %v901_v5 = vadd.f32 %v1388_v34, %v878_v60  ;;  %v902_v28 = vadd.f32 %v1388_v34, %v879_v61  ;;  %v903_v6 = vadd.f32 %v1388_v34, %v880_v62 }
  0x76   : > { %v904_v29 = vadd.f32 %v1388_v34, %v881_v20  ;;  %v905_v7 = vadd.f32 %v1388_v34, %v882_v21  ;;  %vm908_vm5 = vcmp.ge.f32.partialorder %v891_v63, 0.0  ;;  %vm909_vm6 = vcmp.ge.f32.partialorder %v892_v23, 0.0 }
  0x77   : > { %vm910_vm7 = vcmp.ge.f32.partialorder %v893_v0, 0.0  ;;  %vm911_vm8 = vcmp.ge.f32.partialorder %v894_v24, 0.0  ;;  %vm912_vm9 = vcmp.ge.f32.partialorder %v895_v2, 0.0  ;;  %vm913_vm10 = vcmp.ge.f32.partialorder %v896_v25, 0.0 }
  0x78   : > { %vm914_vm11 = vcmp.ge.f32.partialorder %v897_v3, 0.0  ;;  %vm915_vm12 = vcmp.ge.f32.partialorder %v898_v26, 0.0  ;;  %vm917_vm14 = vcmp.ge.f32.partialorder %v900_v27, 0.0  ;;  %vm918_vm15 = vcmp.ge.f32.partialorder %v901_v5, 0.0 }
  0x79   : > { %vm919_vm0 = vcmp.ge.f32.partialorder %v902_v28, 0.0  ;;  %vm920_vm1 = vcmp.ge.f32.partialorder %v903_v6, 0.0  ;;  %vm1020_vm2 = vcmask 257024   ;;  %vm921_vm3 = vcmp.ge.f32.partialorder %v904_v29, 0.0 }
  0x7a   : > { %vm922_vm4 = vcmp.ge.f32.partialorder %v905_v7, 0.0  ;;  %v924_v8 = vmul.f32 %v1717_v45, %v890_v22  ;;  %v925_v9 = vmul.f32 %v1717_v45, %v891_v63  ;;  %v926_v30 = vmul.f32 %v1717_v45, %v892_v23 }
  0x7b   : > { %v927_v31 = vmul.f32 %v1717_v45, %v893_v0  ;;  %v928_v32 = vmul.f32 %v1717_v45, %v894_v24  ;;  %v929_v33 = vmul.f32 %v1717_v45, %v895_v2  ;;  %v930_v37 = vmul.f32 %v1717_v45, %v896_v25 }
  0x7c   : > { %v931_v38 = vmul.f32 %v1717_v45, %v897_v3  ;;  %v932_v39 = vmul.f32 %v1717_v45, %v898_v26  ;;  %v933_v40 = vmul.f32 %v1717_v45, %v899_v4  ;;  %v934_v41 = vmul.f32 %v1717_v45, %v900_v27 }
  0x7d   : > { %v935_v42 = vmul.f32 %v1717_v45, %v901_v5  ;;  %v936_v43 = vmul.f32 %v1717_v45, %v902_v28  ;;  %v937_v44 = vmul.f32 %v1717_v45, %v903_v6  ;;  %v938_v46 = vmul.f32 %v1717_v45, %v904_v29 }
  0x7e   : > { %v939_v47 = vmul.f32 %v1717_v45, %v905_v7  ;;  %vm2160_vm13 = vcmp.ge.f32.partialorder %v890_v22, 0.0  ;;  %v941_v49 = vsel %vm908_vm5, %v891_v63, %v925_v9  ;;  %v942_v50 = vsel %vm909_vm6, %v892_v23, %v926_v30 }
  0x7f   : > { %v940_v48 = vsel %vm2160_vm13, %v890_v22, %v924_v8  ;;  %v943_v51 = vsel %vm910_vm7, %v893_v0, %v927_v31  ;;  %v1958_v52 = vsel %vm911_vm8, %v894_v24, %v928_v32  ;;  %v1961_v53 = vsel %vm912_vm9, %v895_v2, %v929_v33 }
  0x80   : > { %v1964_v54 = vsel %vm913_vm10, %v896_v25, %v930_v37  ;;  %v1967_v55 = vsel %vm914_vm11, %v897_v3, %v931_v38  ;;  %v1970_v45 = vsel %vm915_vm12, %v898_v26, %v932_v39  ;;  %vm2161_vm5 = vcmp.ge.f32.partialorder %v899_v4, 0.0 }
  0x81   : > { %v1973_v56 = vsel %vm2161_vm5, %v899_v4, %v933_v40  ;;  %v1983_v13 = vsel %vm917_vm14, %v900_v27, %v934_v41  ;;  %v1986_v14 = vsel %vm918_vm15, %v901_v5, %v935_v42  ;;  %v1989_v12 = vsel %vm919_vm0, %v902_v28, %v936_v43 }
  0x82   : > { %v1992_v15 = vsel %vm920_vm1, %v903_v6, %v937_v44  ;;  %v1995_v1 = vsel %vm921_vm3, %v904_v29, %v938_v46  ;;  %v1998_v10 = vsel %vm922_vm4, %v905_v7, %v939_v47  ;;  %v1409_v16 = vpack.c.bf16 %v940_v48, %v940_v48 }
  0x83   : > { %v1411_v11 = vpack.c.bf16 %v942_v50, %v942_v50  ;;  %v1412_v17 = vpack.c.bf16 %v943_v51, %v943_v51  ;;  %v1413_v35 = vpack.c.bf16 %v1958_v52, %v1958_v52  ;;  %v1414_v36 = vpack.c.bf16 %v1961_v53, %v1961_v53 }
  0x84   : > { %v1415_v34 = vpack.c.bf16 %v1964_v54, %v1964_v54  ;;  %v1416_v18 = vpack.c.bf16 %v1967_v55, %v1967_v55  ;;  %v1417_v19 = vpack.c.bf16 %v1970_v45, %v1970_v45  ;;  %v1418_v57 = vpack.c.bf16 %v1973_v56, %v1973_v56  ;;  %1021 = vst.msk [vmem:[%s1980_s20] sm:$0xf] %vm1020_vm2, %v1409_v16 }
  0x85   : > { %v1419_v58 = vpack.c.bf16 %v1983_v13, %v1983_v13  ;;  %1023 = vst.msk [vmem:[%s1980_s20 + $0x8] sm:$0xf] %vm1020_vm2, %v1411_v11  ;;  %v1420_v59 = vpack.c.bf16 %v1986_v14, %v1986_v14  ;;  %v1421_v60 = vpack.c.bf16 %v1989_v12, %v1989_v12  ;;  %v1422_v61 = vpack.c.bf16 %v1992_v15, %v1992_v15 }
  0x86   : > { %v1423_v62 = vpack.c.bf16 %v1995_v1, %v1995_v1  ;;  %1024 = vst.msk [vmem:[%s1980_s20 + $0xc] sm:$0xf] %vm1020_vm2, %v1412_v17  ;;  %1025 = vst.msk [vmem:[%s1980_s20 + $0x10] sm:$0xf] %vm1020_vm2, %v1413_v35  ;;  %v1424_v20 = vpack.c.bf16 %v1998_v10, %v1998_v10  ;;  %vm2162_vm4 = vcmask 261120   ;;  %v1410_v25 = vpack.c.bf16 %v941_v49, %v941_v49 }
  0x87   : > { %1026 = vst.msk [vmem:[%s1980_s20 + $0x14] sm:$0xf] %vm1020_vm2, %v1414_v36  ;;  %1027 = vst.msk [vmem:[%s1980_s20 + $0x18] sm:$0xf] %vm1020_vm2, %v1415_v34  ;;  %v1038_v21 = vsel %vm2162_vm4, %v940_v48, 0.0  ;;  %v1081_v26 = vmul.f32 %v940_v48, %v940_v48  ;;  %v1082_v27 = vmul.f32 %v941_v49, %v941_v49  ;;  %v1083_v5 = vmul.f32 %v942_v50, %v942_v50 }
  0x88   : > { %1028 = vst.msk [vmem:[%s1980_s20 + $0x1c] sm:$0xf] %vm1020_vm2, %v1416_v18  ;;  %1029 = vst.msk [vmem:[%s1980_s20 + $0x20] sm:$0xf] %vm1020_vm2, %v1417_v19  ;;  %v1084_v29 = vmul.f32 %v943_v51, %v943_v51  ;;  %v1085_v30 = vmul.f32 %v1958_v52, %v1958_v52  ;;  %v1086_v39 = vmul.f32 %v1961_v53, %v1961_v53 }
  0x89   : > { %1030 = vst.msk [vmem:[%s1980_s20 + $0x24] sm:$0xf] %vm1020_vm2, %v1418_v57  ;;  %1031 = vst.msk [vmem:[%s1980_s20 + $0x28] sm:$0xf] %vm1020_vm2, %v1419_v58  ;;  %v1087_v44 = vmul.f32 %v1964_v54, %v1964_v54 }
  0x8a   : > { %vm2163_vm6 = vmmov %vm2162_vm4  ;;  %1032 = vst.msk [vmem:[%s1980_s20 + $0x2c] sm:$0xf] %vm1020_vm2, %v1420_v59 }
  0x8b   : > { %v1039_v22 = vsel %vm2163_vm6, %v941_v49, 0.0  ;;  %vm2164_vm7 = vmmov %vm2162_vm4  ;;  %1033 = vst.msk [vmem:[%s1980_s20 + $0x30] sm:$0xf] %vm1020_vm2, %v1421_v60 }
  0x8c   : > { %v1041_v63 = vsel %vm2164_vm7, %v942_v50, 0.0  ;;  %1034 = vst.msk [vmem:[%s1980_s20 + $0x34] sm:$0xf] %vm1020_vm2, %v1422_v61  ;;  %1035 = vst.msk [vmem:[%s1980_s20 + $0x38] sm:$0xf] %vm1020_vm2, %v1423_v62  ;;  %v1040_v23 = vadd.f32 %v1039_v22, %v1038_v21  ;;  %v1088_v50 = vmul.f32 %v1967_v55, %v1967_v55 }
  0x8d   : > { %1036 = vst.msk [vmem:[%s1980_s20 + $0x3c] sm:$0xf] %vm1020_vm2, %v1424_v20  ;;  %vm2165_vm8 = vmmov %vm2162_vm4 }
  0x8e   : > { %v1043_v0 = vsel %vm2165_vm8, %v943_v51, 0.0  ;;  %v1042_v24 = vadd.f32 %v1041_v63, %v1040_v23  ;;  %vm2166_vm9 = vmmov %vm2162_vm4  ;;  %1022 = vst.msk [vmem:[%s1980_s20 + $0x4] sm:$0xf] %vm1020_vm2, %v1410_v25 }
  0x8f   : > { %v1045_v2 = vsel %vm2166_vm9, %v1958_v52, 0.0  ;;  %vm2167_vm10 = vmmov %vm2162_vm4 }
  0x90   : > { %v1044_v3 = vadd.f32 %v1043_v0, %v1042_v24  ;;  %v1047_v4 = vsel %vm2167_vm10, %v1961_v53, 0.0  ;;  %vm2168_vm11 = vmmov %vm2162_vm4  ;;  %v1094_v24 = vmul.f32 %v1992_v15, %v1992_v15 }
  0x91   : > { %v1049_v6 = vsel %vm2168_vm11, %v1964_v54, 0.0  ;;  %vm2169_vm12 = vmmov %vm2162_vm4  ;;  %v1089_v54 = vmul.f32 %v1970_v45, %v1970_v45 }
  0x92   : > { %v1046_v28 = vadd.f32 %v1045_v2, %v1044_v3  ;;  %v1097_v8 = vsel %vm2169_vm12, %v1081_v26, 0.0  ;;  %vm2170_vm13 = vmmov %vm2162_vm4  ;;  %v1095_v3 = vmul.f32 %v1995_v1, %v1995_v1 }
  0x93   : > { %v1051_v9 = vsel %vm2170_vm13, %v1967_v55, 0.0  ;;  %vm2171_vm14 = vmmov %vm2162_vm4  ;;  %v1090_v55 = vmul.f32 %v1973_v56, %v1973_v56 }
  0x94   : > { %v1048_v7 = vadd.f32 %v1047_v4, %v1046_v28  ;;  %v1098_v31 = vsel %vm2171_vm14, %v1082_v27, 0.0  ;;  %vm2172_vm15 = vmmov %vm2162_vm4 }
  0x95   : > { %v1100_v32 = vsel %vm2172_vm15, %v1083_v5, 0.0  ;;  %v1099_v37 = vadd.f32 %v1098_v31, %v1097_v8  ;;  %vm2173_vm0 = vmmov %vm2162_vm4 }
  0x96   : > { %v1050_v33 = vadd.f32 %v1049_v6, %v1048_v7  ;;  %v1053_v38 = vsel %vm2173_vm0, %v1970_v45, 0.0  ;;  %vm2174_vm1 = vmmov %vm2173_vm0  ;;  %v1091_v45 = vmul.f32 %v1983_v13, %v1983_v13 }
  0x97   : > { %v1102_v40 = vsel %vm2174_vm1, %v1084_v29, 0.0  ;;  %v1101_v42 = vadd.f32 %v1100_v32, %v1099_v37  ;;  %vm2175_vm2 = vmmov %vm2173_vm0 }
  0x98   : > { %v1052_v41 = vadd.f32 %v1051_v9, %v1050_v33  ;;  %v1055_v43 = vsel %vm2175_vm2, %v1973_v56, 0.0  ;;  %vm2176_vm3 = vmmov %vm2173_vm0  ;;  %v1092_v56 = vmul.f32 %v1986_v14, %v1986_v14 }
  0x99   : > { %v1104_v46 = vsel %vm2176_vm3, %v1085_v30, 0.0  ;;  %v1103_v48 = vadd.f32 %v1102_v40, %v1101_v42  ;;  %vm2177_vm5 = vmmov %vm2173_vm0 }
  0x9a   : > { %v1054_v47 = vadd.f32 %v1053_v38, %v1052_v41  ;;  %v1057_v49 = vsel %vm2177_vm5, %v1983_v13, 0.0  ;;  %vm2178_vm4 = vmmov %vm2173_vm0  ;;  %v1093_v13 = vmul.f32 %v1989_v12, %v1989_v12  ;;  %v1118_v2 = vsel %vm2173_vm0, %v1092_v56, 0.0 }
  0x9b   : > { %v1106_v51 = vsel %vm2178_vm4, %v1086_v39, 0.0  ;;  %v1105_v53 = vadd.f32 %v1104_v46, %v1103_v48  ;;  %vm2179_vm6 = vmmov %vm2173_vm0  ;;  %vm1079_vm4 = vcmask 0  }
  0x9c   : > { %v1056_v52 = vadd.f32 %v1055_v43, %v1054_v47  ;;  %v1059_v16 = vsel %vm2179_vm6, %v1986_v14, 0.0  ;;  %vm2180_vm7 = vmmov %vm2173_vm0 }
  0x9d   : > { %v1108_v11 = vsel %vm2180_vm7, %v1087_v44, 0.0  ;;  %v1107_v35 = vadd.f32 %v1106_v51, %v1105_v53  ;;  %vm2181_vm8 = vmmov %vm2173_vm0 }
  0x9e   : > { %v1058_v17 = vadd.f32 %v1057_v49, %v1056_v52  ;;  %v1061_v36 = vsel %vm2181_vm8, %v1989_v12, 0.0  ;;  %vm2182_vm9 = vmmov %vm2173_vm0  ;;  %v1096_v12 = vmul.f32 %v1998_v10, %v1998_v10 }
  0x9f   : > { %v1110_v34 = vsel %vm2182_vm9, %v1088_v50, 0.0  ;;  %v1109_v19 = vadd.f32 %v1108_v11, %v1107_v35  ;;  %vm2183_vm10 = vmmov %vm2173_vm0 }
  0xa0   : > { %v1060_v18 = vadd.f32 %v1059_v16, %v1058_v17  ;;  %v1063_v57 = vsel %vm2183_vm10, %v1992_v15, 0.0  ;;  %vm2184_vm11 = vmmov %vm2173_vm0 }
  0xa1   : > { %v1112_v58 = vsel %vm2184_vm11, %v1089_v54, 0.0  ;;  %v1111_v60 = vadd.f32 %v1110_v34, %v1109_v19  ;;  %vm2185_vm12 = vmmov %vm2173_vm0 }
  0xa2   : > { %v1062_v59 = vadd.f32 %v1061_v36, %v1060_v18  ;;  %v1065_v61 = vsel %vm2185_vm12, %v1995_v1, 0.0  ;;  %vm2186_vm13 = vmmov %vm2173_vm0 }
  0xa3   : > { %v1114_v62 = vsel %vm2186_vm13, %v1090_v55, 0.0  ;;  %v1113_v21 = vadd.f32 %v1112_v58, %v1111_v60  ;;  %vm2187_vm14 = vmmov %vm2173_vm0 }
  0xa4   : > { %v1064_v20 = vadd.f32 %v1063_v57, %v1062_v59  ;;  %v1067_v22 = vsel %vm2187_vm14, %v1998_v10, 0.0  ;;  %vm2188_vm15 = vmmov %vm2173_vm0 }
  0xa5   : > { %v1116_v63 = vsel %vm2188_vm15, %v1091_v45, 0.0  ;;  %v1115_v0 = vadd.f32 %v1114_v62, %v1113_v21  ;;  %vm2189_vm1 = vmmov %vm2173_vm0 }
  0xa6   : > { %v1066_v23 = vadd.f32 %v1065_v61, %v1064_v20  ;;  %v1120_v26 = vsel %vm2189_vm1, %v1093_v13, 0.0  ;;  %vm2190_vm2 = vmmov %vm2173_vm0 }
  0xa7   : > { %v1117_v25 = vadd.f32 %v1116_v63, %v1115_v0  ;;  %v1122_v27 = vsel %vm2190_vm2, %v1094_v24, 0.0  ;;  %vm2191_vm3 = vmmov %vm2173_vm0 }
  0xa8   : > { %v1068_v14 = vadd.f32 %v1067_v22, %v1066_v23  ;;  %v1124_v28 = vsel %vm2191_vm3, %v1095_v3, 0.0  ;;  %vm2192_vm5 = vmmov %vm2173_vm0 }
  0xa9   : > { %v1119_v4 = vadd.f32 %v1118_v2, %v1117_v25  ;;  %v1126_v6 = vsel %vm2192_vm5, %v1096_v12, 0.0 }
  0xaa   : > { %1069 = vadd.xlane.f32.xlu0 %v1068_v14 }
  0xab   : > { %v1121_v5 = vadd.f32 %v1120_v26, %v1119_v4 }
  0xad   : > { %v1123_v15 = vadd.f32 %v1122_v27, %v1121_v5 }
  0xaf   : > { %v1125_v29 = vadd.f32 %v1124_v28, %v1123_v15 }
  0xb1   : > { %v1127_v7 = vadd.f32 %v1126_v6, %v1125_v29 }
  0xb3   : > { %1128 = vadd.xlane.f32.xlu0 %v1127_v7 }
 0x137   : > { %v1070_v8 = vpop.xlane.xlu0 %1069 }
 0x138   : > { %v1071_v1 = vrot.slane %v1070_v8, 4 }
 0x13a   : > { %v1072_v9 = vadd.f32 %v1071_v1, %v1070_v8 }
 0x13c   : > { %v1073_v30 = vrot.slane %v1072_v9, 2 }
 0x13e   : > { %v1074_v31 = vadd.f32 %v1073_v30, %v1072_v9 }
 0x140   : > { %v1075_v32 = vrot.slane %v1074_v31, 1  ;;  %v1129_v10 = vpop.xlane.xlu0 %1128 }
 0x141   : > { %v1130_v33 = vrot.slane %v1129_v10, 4 }
 0x142   : > { %v1076_v37 = vadd.f32 %v1075_v32, %v1074_v31 }
 0x143   : > { %v1131_v38 = vadd.f32 %v1130_v33, %v1129_v10 }
 0x144   : > { %1464 = vpush %v1076_v37 }
 0x145   : > { %v1132_v39 = vrot.slane %v1131_v38, 2 }
 0x147   : > { %v1133_v40 = vadd.f32 %v1132_v39, %v1131_v38 }
 0x149   : > { %v1134_v41 = vrot.slane %v1133_v40, 1 }
 0x14b   : > { %v1135_v42 = vadd.f32 %v1134_v41, %v1133_v40 }
 0x14d   : > { %1466 = vpush %v1135_v42 }
 0x175   : > { %s1465_s23 = spop %1464 }
 0x176   : > { %v1078_v43 = vstv %s1465_s23 }
 0x177   : > { %1080 = vst.msk [vmem:[%s504_s15] sm:$0x1] %vm1079_vm4, %v1078_v43 }
 0x17e   : > { %s1467_s27 = spop %1466 }
 0x17f   : > { %v1137_v44 = vstv %s1467_s27 }
 0x180   : > { %1138 = vst.msk [vmem:[%s510_s26] sm:$0x1] %vm1079_vm4, %v1137_v44 }
 0x181 PF: > { %s24_s17 = sadd.s32 1, %s1573_s17   ;;  %s2193_s15 = smov %s1569_s16 }
 0x182   : > { %p21_p4 = scmp.ge.s32.totalorder %s24_s17, 4   ;;  %s2194_s16 = smov %s2196_s18 }
 0x184   :  { %23 = sbr.rel (!%p21_p4) target bundleno = 5 (0x5), region = 127 }
 0x18b   :  { %1202 = vsyncpa [#allocation4], 1 }
 0x18c   :  { %1204 = vsyncpa [#allocation4 + $0x1], 1 }
 0x18d   :  { %1205 = vsyncpa [#allocation6], 1 }

</bundles_post_ra>
